<compile_context>
chip_gen: v7x
topology: tpu7x:2x2x1
jax: 0.10.0
libtpu: 0.0.40
codegen_flags: <defaults>
</compile_context>

<pallas_src>
import jax
import jax.numpy as jnp
from jax.experimental import pallas as pl
from jax.experimental.pallas import tpu as pltpu

# ------------------------------ constants -----------------------------------
SAMPLE_RATE = 16000
N_FFT = 512          # n_freqs = 257 >= N_MELS
HOP_SIZE = 256
F_MIN = 30.0
F_MAX = 8000.0
N_MELS = 229

H = 88               # LSTM hidden size (per direction)
H_P = 128            # hidden padded to full lane width
G = 4 * H_P          # padded gate width per direction (i|f|g|o), 512
D_MEL_P = 256        # mel features padded 229 -> 256
FC_P = 128           # final FC output padded 88 -> 128

VMEM_LIMIT = 32 * 1024 * 1024
MAX_TIME_CHUNK = 16  # time steps processed per recurrence grid iteration


# ----------------------------- Pallas kernels -------------------------------

def _sigmoid(z):
    return 1.0 / (1.0 + jnp.exp(-z))


def dense_kernel(x_ref, w_ref, b_ref, o_ref):
    # x block: (1, tr, K) bf16;  w block: (1, K, Nout) bf16;  b: (1, 1, Nout) f32
    acc = jnp.dot(x_ref[0], w_ref[0], preferred_element_type=jnp.float32)
    o_ref[0] = (acc + b_ref[0]).astype(o_ref.dtype)


def dense2_kernel(xa_ref, xb_ref, wa_ref, wb_ref, b_ref, o_ref):
    # split-K dense: acc = xa @ wa + xb @ wb + b   (replaces concat(xa, xb) @ W)
    acc = jnp.dot(xa_ref[0], wa_ref[0], preferred_element_type=jnp.float32)
    acc = acc + jnp.dot(xb_ref[0], wb_ref[0], preferred_element_type=jnp.float32)
    o_ref[0] = (acc + b_ref[0]).astype(o_ref.dtype)


def bilstm_chunk_kernel(xpf_ref, xpb_ref, whhf_ref, whhb_ref,
                        of_ref, ob_ref, hf, cf, hb, cb):
    # grid = (branch, time_chunk); time-chunk axis is sequential ("arbitrary");
    # h/c live in VMEM scratch across the whole time loop of each branch.
    c = pl.program_id(1)

    @pl.when(c == 0)
    def _():
        hf[...] = jnp.zeros_like(hf)
        cf[...] = jnp.zeros_like(cf)
        hb[...] = jnp.zeros_like(hb)
        cb[...] = jnp.zeros_like(cb)

    whh_f = whhf_ref[0]
    whh_b = whhb_ref[0]
    ts = of_ref.shape[1]          # static time-chunk length

    def cell(xp, whh, h_ref, c_ref):
        # gates = (x @ W_ih^T + b_ih + b_hh) + h @ W_hh^T   (PyTorch order i,f,g,o)
        gates = xp + jnp.dot(h_ref[...].astype(jnp.bfloat16), whh,
                             preferred_element_type=jnp.float32)
        i = _sigmoid(gates[:, 0 * H_P:1 * H_P])
        f = _sigmoid(gates[:, 1 * H_P:2 * H_P])
        g = jnp.tanh(gates[:, 2 * H_P:3 * H_P])
        o = _sigmoid(gates[:, 3 * H_P:4 * H_P])
        c_new = f * c_ref[...] + i * g
        h_new = o * jnp.tanh(c_new)
        c_ref[...] = c_new
        h_ref[...] = h_new
        return h_new

    # static (fully unrolled) inner loop over the time chunk; fwd scans the
    # chunk forward, bwd scans it in reverse (global reverse order is preserved
    # because the bwd BlockSpec mirrors the chunk index).
    for s in range(ts):
        h_new = cell(xpf_ref[0, s], whh_f, hf, cf)
        of_ref[0, s] = h_new.astype(of_ref.dtype)
        sb = ts - 1 - s
        h_new_b = cell(xpb_ref[0, sb], whh_b, hb, cb)
        ob_ref[0, sb] = h_new_b.astype(ob_ref.dtype)


# ----------------------------- Pallas wrappers -------------------------------

def _row_tile(r):
    for tile in (1024, 512, 256, 128, 64, 32, 16, 8):
        if r % tile == 0:
            return tile
    return r


def _time_chunk(t):
    for c in range(min(MAX_TIME_CHUNK, t), 0, -1):
        if t % c == 0:
            return c
    return 1


def branched_dense(x, w, b):
    """x:(Bx,R,K) bf16 (Bx in {1,B}), w:(B,K,Nout) bf16, b:(B,1,Nout) f32 -> (B,R,Nout) f32."""
    nb, k, nout = w.shape
    bx, r, kx = x.shape
    assert kx == k and bx in (1, nb)
    tr = _row_tile(r)
    if bx == nb:
        x_map = lambda br, ri: (br, ri, 0)
    else:  # input shared between branches (e.g. mel for layer 1)
        x_map = lambda br, ri: (0, ri, 0)
    return pl.pallas_call(
        dense_kernel,
        out_shape=jax.ShapeDtypeStruct((nb, r, nout), jnp.float32),
        grid=(nb, r // tr),
        in_specs=[pl.BlockSpec((1, tr, k), x_map),
                  pl.BlockSpec((1, k, nout), lambda br, ri: (br, 0, 0)),
                  pl.BlockSpec((1, 1, nout), lambda br, ri: (br, 0, 0))],
        out_specs=pl.BlockSpec((1, tr, nout), lambda br, ri: (br, ri, 0)),
        compiler_params=pltpu.CompilerParams(
            dimension_semantics=("parallel", "parallel"),
            vmem_limit_bytes=VMEM_LIMIT),
    )(x, w, b)


def branched_dense2(xa, xb, wa, wb, b):
    """Split-K dense: concat(xa,xb) @ W without materializing the concat.
       xa,xb:(B,R,K) bf16, wa,wb:(B,K,Nout) bf16, b:(B,1,Nout) f32 -> (B,R,Nout) f32."""
    nb, r, k = xa.shape
    nout = wa.shape[-1]
    tr = _row_tile(r)
    return pl.pallas_call(
        dense2_kernel,
        out_shape=jax.ShapeDtypeStruct((nb, r, nout), jnp.float32),
        grid=(nb, r // tr),
        in_specs=[pl.BlockSpec((1, tr, k), lambda br, ri: (br, ri, 0)),
                  pl.BlockSpec((1, tr, k), lambda br, ri: (br, ri, 0)),
                  pl.BlockSpec((1, k, nout), lambda br, ri: (br, 0, 0)),
                  pl.BlockSpec((1, k, nout), lambda br, ri: (br, 0, 0)),
                  pl.BlockSpec((1, 1, nout), lambda br, ri: (br, 0, 0))],
        out_specs=pl.BlockSpec((1, tr, nout), lambda br, ri: (br, ri, 0)),
        compiler_params=pltpu.CompilerParams(
            dimension_semantics=("parallel", "parallel"),
            vmem_limit_bytes=VMEM_LIMIT),
    )(xa, xb, wa, wb, b)


def bilstm_recurrence(xp, whh_f, whh_b):
    """xp:(B,T,N,2G) f32 (fwd gates | bwd gates), whh_*:(B,H_P,G) bf16
       -> (h_fwd, h_bwd) each (B,T,N,H_P) bf16."""
    nb, seq, n, g2 = xp.shape
    assert g2 == 2 * G
    ts = _time_chunk(seq)
    nchunks = seq // ts
    return pl.pallas_call(
        bilstm_chunk_kernel,
        out_shape=(jax.ShapeDtypeStruct((nb, seq, n, H_P), jnp.bfloat16),
                   jax.ShapeDtypeStruct((nb, seq, n, H_P), jnp.bfloat16)),
        grid=(nb, nchunks),
        in_specs=[
            # fwd gates: chunk c
            pl.BlockSpec((1, ts, n, G), lambda b, c: (b, c, 0, 0)),
            # bwd gates: mirrored chunk (last-dim block 1 = backward half)
            pl.BlockSpec((1, ts, n, G), lambda b, c: (b, nchunks - 1 - c, 0, 1)),
            pl.BlockSpec((1, H_P, G), lambda b, c: (b, 0, 0)),
            pl.BlockSpec((1, H_P, G), lambda b, c: (b, 0, 0)),
        ],
        out_specs=(
            pl.BlockSpec((1, ts, n, H_P), lambda b, c: (b, c, 0, 0)),
            pl.BlockSpec((1, ts, n, H_P), lambda b, c: (b, nchunks - 1 - c, 0, 0)),
        ),
        scratch_shapes=[pltpu.VMEM((n, H_P), jnp.float32),
                        pltpu.VMEM((n, H_P), jnp.float32),
                        pltpu.VMEM((n, H_P), jnp.float32),
                        pltpu.VMEM((n, H_P), jnp.float32)],
        compiler_params=pltpu.CompilerParams(
            dimension_semantics=("parallel", "arbitrary"),
            vmem_limit_bytes=VMEM_LIMIT),
    )(xp, xp, whh_f, whh_b)


# --------------------- Log-mel spectrogram (plain JAX glue) ------------------
# TODO(synk): torchaudio MelSpectrogram (STFT via FFT) has no Pallas equivalent;
# reproduced with jnp (HTK mel scale, periodic hann window, center/reflect pad).

def _hz_to_mel(f):
    return 2595.0 * jnp.log10(1.0 + f / 700.0)


def _mel_to_hz(m):
    return 700.0 * (10.0 ** (m / 2595.0) - 1.0)


def _mel_filterbank(n_freqs, n_mels):
    all_freqs = jnp.linspace(0.0, SAMPLE_RATE / 2.0, n_freqs)
    m_pts = jnp.linspace(_hz_to_mel(F_MIN), _hz_to_mel(F_MAX), n_mels + 2)
    f_pts = _mel_to_hz(m_pts)
    f_diff = f_pts[1:] - f_pts[:-1]
    slopes = f_pts[None, :] - all_freqs[:, None]
    down = -slopes[:, :-2] / f_diff[:-1]
    up = slopes[:, 2:] / f_diff[1:]
    return jnp.maximum(0.0, jnp.minimum(down, up))            # (n_freqs, n_mels)


def log_mel_spectrogram(audio):
    # NOTE: the reference forward computes `padded_audio` but feeds the
    # *unpadded* audio to the mel transform; we replicate that.
    pad = N_FFT // 2
    x = jnp.pad(audio, ((0, 0), (pad, pad)), mode="reflect")   # center=True
    n_frames = 1 + (x.shape[1] - N_FFT) // HOP_SIZE
    idx = jnp.arange(n_frames)[:, None] * HOP_SIZE + jnp.arange(N_FFT)[None, :]
    frames = x[:, idx]                                         # (N, T, n_fft)
    window = 0.5 - 0.5 * jnp.cos(2.0 * jnp.pi * jnp.arange(N_FFT) / N_FFT)
    spec = jnp.fft.rfft(frames * window, axis=-1)
    power = jnp.abs(spec) ** 2                                 # (N, T, n_freqs)
    fb = _mel_filterbank(N_FFT // 2 + 1, N_MELS)
    mel = power @ fb                                           # (N, T, n_mels)
    mel = mel[:, 1:, :]                                        # [:, :, 1:] in torch layout
    return jnp.log(jnp.maximum(mel, 1e-9)).astype(jnp.float32)


# --------------------------- parameter handling ------------------------------

def _init_lstm_dir(key, input_size):
    ks = jax.random.split(key, 4)
    s = 1.0 / (H ** 0.5)
    u = lambda k, shape: jax.random.uniform(k, shape, jnp.float32, -s, s)
    return dict(w_ih=u(ks[0], (4 * H, input_size)),   # PyTorch layout (4H, Din)
                w_hh=u(ks[1], (4 * H, H)),
                b_ih=u(ks[2], (4 * H,)),
                b_hh=u(ks[3], (4 * H,)))


def _init_branch(key):
    ks = jax.random.split(key, 6)
    l1f = _init_lstm_dir(ks[0], N_MELS)
    l1b = _init_lstm_dir(ks[1], N_MELS)
    l2f = _init_lstm_dir(ks[2], 2 * H)
    l2b = _init_lstm_dir(ks[3], 2 * H)
    sf = 1.0 / ((2 * H) ** 0.5)
    w_fc = jax.random.uniform(ks[4], (H, 2 * H), jnp.float32, -sf, sf)
    b_fc = jax.random.uniform(ks[5], (H,), jnp.float32, -sf, sf)
    return l1f, l1b, l2f, l2b, w_fc, b_fc


def _gate_pad_cols(w):
    """(4H, Din) torch-layout -> (Din, 4*H_P): transpose, pad each 88-gate to 128 lanes."""
    w4 = w.reshape(4, H, -1)
    w4 = jnp.pad(w4, ((0, 0), (0, H_P - H), (0, 0)))
    return w4.reshape(G, -1).T


def _gate_pad_bias(b_ih, b_hh):
    b = (b_ih + b_hh).reshape(4, H)
    return jnp.pad(b, ((0, 0), (0, H_P - H))).reshape(G)


def _pad_in_rows_mel(wt):                       # (229, X) -> (256, X)
    return jnp.pad(wt, ((0, D_MEL_P - N_MELS), (0, 0)))


def _split_pad_hidden_rows(wt):                 # (176, X) -> ((128, X), (128, X))
    """Split concat-hidden input rows into (from h_fwd, from h_bwd), pad each 88->128."""
    return (jnp.pad(wt[:H], ((0, H_P - H), (0, 0))),
            jnp.pad(wt[H:], ((0, H_P - H), (0, 0))))


def _pack_branch(branch):
    l1f, l1b, l2f, l2b, w_fc, b_fc = branch

    # ---- layer 1 (mel input) ----
    wih1 = jnp.concatenate([_pad_in_rows_mel(_gate_pad_cols(l1f["w_ih"])),
                            _pad_in_rows_mel(_gate_pad_cols(l1b["w_ih"]))], axis=1)   # (256, 2G)
    b1 = jnp.concatenate([_gate_pad_bias(l1f["b_ih"], l1f["b_hh"]),
                          _gate_pad_bias(l1b["b_ih"], l1b["b_hh"])])[None]            # (1, 2G)
    whh1_f = jnp.pad(_gate_pad_cols(l1f["w_hh"]), ((0, H_P - H), (0, 0)))             # (H_P, G)
    whh1_b = jnp.pad(_gate_pad_cols(l1b["w_hh"]), ((0, H_P - H), (0, 0)))

    # ---- layer 2 (input = concat(h_fwd, h_bwd) split along K) ----
    w2f_hf, w2f_hb = _split_pad_hidden_rows(_gate_pad_cols(l2f["w_ih"]))
    w2b_hf, w2b_hb = _split_pad_hidden_rows(_gate_pad_cols(l2b["w_ih"]))
    wih2_hf = jnp.concatenate([w2f_hf, w2b_hf], axis=1)                               # (H_P, 2G)
    wih2_hb = jnp.concatenate([w2f_hb, w2b_hb], axis=1)                               # (H_P, 2G)
    b2 = jnp.concatenate([_gate_pad_bias(l2f["b_ih"], l2f["b_hh"]),
                          _gate_pad_bias(l2b["b_ih"], l2b["b_hh"])])[None]
    whh2_f = jnp.pad(_gate_pad_cols(l2f["w_hh"]), ((0, H_P - H), (0, 0)))
    whh2_b = jnp.pad(_gate_pad_cols(l2b["w_hh"]), ((0, H_P - H), (0, 0)))

    # ---- final FC (input = concat(h_fwd, h_bwd) split along K) ----
    wfc_t = jnp.pad(w_fc.T, ((0, 0), (0, FC_P - H)))                                  # (176, 128)
    wfc_hf, wfc_hb = _split_pad_hidden_rows(wfc_t)                                    # (128, 128) x2
    bfc = jnp.pad(b_fc, (0, FC_P - H))[None]                                          # (1, 128)

    return dict(wih1=wih1, b1=b1, whh1_f=whh1_f, whh1_b=whh1_b,
                wih2_hf=wih2_hf, wih2_hb=wih2_hb, b2=b2,
                whh2_f=whh2_f, whh2_b=whh2_b,
                wfc_hf=wfc_hf, wfc_hb=wfc_hb, bfc=bfc)


def init_params(key):
    kf, ko = jax.random.split(key)
    frame = _pack_branch(_init_branch(kf))
    onset = _pack_branch(_init_branch(ko))
    packed = {}
    for name in frame:
        stacked = jnp.stack([frame[name], onset[name]])        # branch axis (frame, onset)
        if name.startswith(("wih", "whh", "wfc")):
            stacked = stacked.astype(jnp.bfloat16)              # matmul operands in bf16
        packed[name] = stacked
    return packed


# --------------------------------- forward -----------------------------------

def transcriber_forward(audio, params):
    mel = log_mel_spectrogram(audio)                            # (N, T, 229) f32
    n, t, _ = mel.shape
    mel_p = jnp.pad(mel, ((0, 0), (0, 0), (0, D_MEL_P - N_MELS)))
    # rows ordered (time, batch) so the recurrence consumes one time block per
    # grid step with no further transposes
    x0 = jnp.transpose(mel_p, (1, 0, 2)).reshape(1, t * n, D_MEL_P).astype(jnp.bfloat16)

    # ---- LSTM layer 1: batched input projection + bidirectional recurrence ----
    xp1 = branched_dense(x0, params["wih1"], params["b1"])      # (2, t*n, 2G) f32
    xp1 = xp1.reshape(2, t, n, 2 * G)
    h1f, h1b = bilstm_recurrence(xp1, params["whh1_f"], params["whh1_b"])

    # ---- LSTM layer 2 (split-K projection: no explicit concat of h_fwd|h_bwd) ----
    xp2 = branched_dense2(h1f.reshape(2, t * n, H_P), h1b.reshape(2, t * n, H_P),
                          params["wih2_hf"], params["wih2_hb"], params["b2"])
    xp2 = xp2.reshape(2, t, n, 2 * G)
    h2f, h2b = bilstm_recurrence(xp2, params["whh2_f"], params["whh2_b"])

    # ---- final FC (split-K, lane-dense 128-wide output, sliced back to 88) ----
    y = branched_dense2(h2f.reshape(2, t * n, H_P), h2b.reshape(2, t * n, H_P),
                        params["wfc_hf"], params["wfc_hb"], params["bfc"])   # (2, t*n, 128)
    y = y.reshape(2, t, n, FC_P)[..., :H]
    y = jnp.transpose(y, (0, 2, 1, 3))                          # (2, n, t, 88)
    return y[0], y[1]                                           # frame_out, onset_out


if __name__ == "__main__":
    key = jax.random.PRNGKey(0)
    k_audio, k_params = jax.random.split(key)
    audio = jax.random.normal(k_audio, (2, 2048), jnp.float32) * 0.1
    params = init_params(k_params)

    frame_out, onset_out = jax.jit(transcriber_forward)(audio, params)
    jax.block_until_ready((frame_out, onset_out))

    assert frame_out.shape == (2, 8, 88), frame_out.shape
    assert onset_out.shape == (2, 8, 88), onset_out.shape
    assert bool(jnp.isfinite(frame_out).all()) and bool(jnp.isfinite(onset_out).all())
    print("KERNEL_OK")
</pallas_src>

<mosaic_0001>
module attributes {stable_mosaic.version = 11 : i64} {
  func.func private @main(%arg0: i32) attributes {dimension_semantics = [#tpu.dimension_semantics<core_parallel>], iteration_bounds = array<i64: 2>, tpu.core_type = #tpu.core_type<sc_scalar_subcore>, window_params = []} {
    return
  }
}

module attributes {stable_mosaic.version = 11 : i64} {
  func.func private @main(%arg0: i32) attributes {dimension_semantics = [#tpu.dimension_semantics<core_parallel>], iteration_bounds = array<i64: 2>, tpu.core_type = #tpu.core_type<sc_scalar_subcore>, window_params = []} {
    return
  }
}

module attributes {stable_mosaic.version = 11 : i64} {
  func.func @dense_kernel(%arg0: i32, %arg1: i32, %arg2: memref<1x16x256xbf16, #tpu.memory_space<vmem>>, %arg3: memref<1x256x1024xbf16, #tpu.memory_space<vmem>>, %arg4: memref<1x1x1024xf32, #tpu.memory_space<vmem>>, %arg5: memref<1x16x1024xf32, #tpu.memory_space<vmem>>) attributes {dimension_semantics = [#tpu.dimension_semantics<parallel>, #tpu.dimension_semantics<parallel>], iteration_bounds = array<i64: 2, 1>, scalar_prefetch = 0 : i64, scratch_operands = 0 : i64, tpu.core_type = #tpu.core_type<tc>, window_params = [{transform_indices = @transform_0, window_bounds = array<i64: 1, 16, 256>}, {transform_indices = @transform_1, window_bounds = array<i64: 1, 256, 1024>}, {transform_indices = @transform_2, window_bounds = array<i64: 1, 1, 1024>}, {transform_indices = @transform_3, window_bounds = array<i64: 1, 16, 1024>}]} {
    %c0 = arith.constant 0 : index
    %c0_0 = arith.constant 0 : index
    %c0_1 = arith.constant 0 : index
    %0 = vector.load %arg2[%c0, %c0_0, %c0_1] : memref<1x16x256xbf16, #tpu.memory_space<vmem>>, vector<1x16x256xbf16>
    %1 = vector.shape_cast %0 : vector<1x16x256xbf16> to vector<16x256xbf16>
    %c0_2 = arith.constant 0 : index
    %c0_3 = arith.constant 0 : index
    %c0_4 = arith.constant 0 : index
    %2 = vector.load %arg3[%c0_2, %c0_3, %c0_4] : memref<1x256x1024xbf16, #tpu.memory_space<vmem>>, vector<1x256x1024xbf16>
    %3 = vector.shape_cast %2 : vector<1x256x1024xbf16> to vector<256x1024xbf16>
    %cst = arith.constant dense<0.000000e+00> : vector<16x1024xf32>
    %4 = tpu.matmul %1, %3, %cst {dimension_numbers = #tpu.dot_dimension_numbers<[1], [0], [0], [1], [0, 0, 1, 1], [], []>} : vector<16x256xbf16>, vector<256x1024xbf16>, vector<16x1024xf32> -> vector<16x1024xf32>
    %c0_5 = arith.constant 0 : index
    %c0_6 = arith.constant 0 : index
    %c0_7 = arith.constant 0 : index
    %5 = vector.load %arg4[%c0_5, %c0_6, %c0_7] : memref<1x1x1024xf32, #tpu.memory_space<vmem>>, vector<1x1x1024xf32>
    %6 = vector.shape_cast %5 : vector<1x1x1024xf32> to vector<1x1024xf32>
    %7 = vector.broadcast %6 : vector<1x1024xf32> to vector<16x1024xf32>
    %8 = arith.addf %4, %7 : vector<16x1024xf32>
    %c0_8 = arith.constant 0 : index
    %c0_9 = arith.constant 0 : index
    %c0_10 = arith.constant 0 : index
    %9 = vector.load %arg5[%c0_8, %c0_9, %c0_10] : memref<1x16x1024xf32, #tpu.memory_space<vmem>>, vector<1x16x1024xf32>
    %10 = vector.shape_cast %9 : vector<1x16x1024xf32> to vector<16x1024xf32>
    %11 = vector.shape_cast %8 : vector<16x1024xf32> to vector<1x16x1024xf32>
    tpu.vector_store %arg5[%c0_8, %c0_9, %c0_10], %11 {strides = array<i32>} : memref<1x16x1024xf32, #tpu.memory_space<vmem>>, vector<1x16x1024xf32>,
    return
  }
  func.func @transform_0(%arg0: i32, %arg1: i32) -> (i32, i32, i32) {
    %c0_i32 = arith.constant 0 : i32
    %c0_i32_0 = arith.constant 0 : i32
    %c0_i32_1 = arith.constant 0 : i32
    return %c0_i32, %arg1, %c0_i32_0 : i32, i32, i32
  }
  func.func @transform_1(%arg0: i32, %arg1: i32) -> (i32, i32, i32) {
    %c0_i32 = arith.constant 0 : i32
    %c0_i32_0 = arith.constant 0 : i32
    %c0_i32_1 = arith.constant 0 : i32
    return %arg0, %c0_i32, %c0_i32_0 : i32, i32, i32
  }
  func.func @transform_2(%arg0: i32, %arg1: i32) -> (i32, i32, i32) {
    %c0_i32 = arith.constant 0 : i32
    %c0_i32_0 = arith.constant 0 : i32
    %c0_i32_1 = arith.constant 0 : i32
    return %arg0, %c0_i32, %c0_i32_0 : i32, i32, i32
  }
  func.func @transform_3(%arg0: i32, %arg1: i32) -> (i32, i32, i32) {
    %c0_i32 = arith.constant 0 : i32
    %c0_i32_0 = arith.constant 0 : i32
    return %arg0, %arg1, %c0_i32 : i32, i32, i32
  }
}

module attributes {stable_mosaic.version = 11 : i64} {
  func.func @dense2_kernel(%arg0: i32, %arg1: i32, %arg2: memref<1x16x128xbf16, #tpu.memory_space<vmem>>, %arg3: memref<1x16x128xbf16, #tpu.memory_space<vmem>>, %arg4: memref<1x128x1024xbf16, #tpu.memory_space<vmem>>, %arg5: memref<1x128x1024xbf16, #tpu.memory_space<vmem>>, %arg6: memref<1x1x1024xf32, #tpu.memory_space<vmem>>, %arg7: memref<1x16x1024xf32, #tpu.memory_space<vmem>>) attributes {dimension_semantics = [#tpu.dimension_semantics<parallel>, #tpu.dimension_semantics<parallel>], iteration_bounds = array<i64: 2, 1>, scalar_prefetch = 0 : i64, scratch_operands = 0 : i64, tpu.core_type = #tpu.core_type<tc>, window_params = [{transform_indices = @transform_0, window_bounds = array<i64: 1, 16, 128>}, {transform_indices = @transform_1, window_bounds = array<i64: 1, 16, 128>}, {transform_indices = @transform_2, window_bounds = array<i64: 1, 128, 1024>}, {transform_indices = @transform_3, window_bounds = array<i64: 1, 128, 1024>}, {transform_indices = @transform_4, window_bounds = array<i64: 1, 1, 1024>}, {transform_indices = @transform_5, window_bounds = array<i64: 1, 16, 1024>}]} {
    %c0 = arith.constant 0 : index
    %c0_0 = arith.constant 0 : index
    %c0_1 = arith.constant 0 : index
    %0 = vector.load %arg2[%c0, %c0_0, %c0_1] : memref<1x16x128xbf16, #tpu.memory_space<vmem>>, vector<1x16x128xbf16>
    %1 = vector.shape_cast %0 : vector<1x16x128xbf16> to vector<16x128xbf16>
    %c0_2 = arith.constant 0 : index
    %c0_3 = arith.constant 0 : index
    %c0_4 = arith.constant 0 : index
    %2 = vector.load %arg4[%c0_2, %c0_3, %c0_4] : memref<1x128x1024xbf16, #tpu.memory_space<vmem>>, vector<1x128x1024xbf16>
    %3 = vector.shape_cast %2 : vector<1x128x1024xbf16> to vector<128x1024xbf16>
    %cst = arith.constant dense<0.000000e+00> : vector<16x1024xf32>
    %4 = tpu.matmul %1, %3, %cst {dimension_numbers = #tpu.dot_dimension_numbers<[1], [0], [0], [1], [0, 0, 1, 1], [], []>} : vector<16x128xbf16>, vector<128x1024xbf16>, vector<16x1024xf32> -> vector<16x1024xf32>
    %c0_5 = arith.constant 0 : index
    %c0_6 = arith.constant 0 : index
    %c0_7 = arith.constant 0 : index
    %5 = vector.load %arg3[%c0_5, %c0_6, %c0_7] : memref<1x16x128xbf16, #tpu.memory_space<vmem>>, vector<1x16x128xbf16>
    %6 = vector.shape_cast %5 : vector<1x16x128xbf16> to vector<16x128xbf16>
    %c0_8 = arith.constant 0 : index
    %c0_9 = arith.constant 0 : index
    %c0_10 = arith.constant 0 : index
    %7 = vector.load %arg5[%c0_8, %c0_9, %c0_10] : memref<1x128x1024xbf16, #tpu.memory_space<vmem>>, vector<1x128x1024xbf16>
    %8 = vector.shape_cast %7 : vector<1x128x1024xbf16> to vector<128x1024xbf16>
    %cst_11 = arith.constant dense<0.000000e+00> : vector<16x1024xf32>
    %9 = tpu.matmul %6, %8, %cst_11 {dimension_numbers = #tpu.dot_dimension_numbers<[1], [0], [0], [1], [0, 0, 1, 1], [], []>} : vector<16x128xbf16>, vector<128x1024xbf16>, vector<16x1024xf32> -> vector<16x1024xf32>
    %10 = arith.addf %4, %9 : vector<16x1024xf32>
    %c0_12 = arith.constant 0 : index
    %c0_13 = arith.constant 0 : index
    %c0_14 = arith.constant 0 : index
    %11 = vector.load %arg6[%c0_12, %c0_13, %c0_14] : memref<1x1x1024xf32, #tpu.memory_space<vmem>>, vector<1x1x1024xf32>
    %12 = vector.shape_cast %11 : vector<1x1x1024xf32> to vector<1x1024xf32>
    %13 = vector.broadcast %12 : vector<1x1024xf32> to vector<16x1024xf32>
    %14 = arith.addf %10, %13 : vector<16x1024xf32>
    %c0_15 = arith.constant 0 : index
    %c0_16 = arith.constant 0 : index
    %c0_17 = arith.constant 0 : index
    %15 = vector.load %arg7[%c0_15, %c0_16, %c0_17] : memref<1x16x1024xf32, #tpu.memory_space<vmem>>, vector<1x16x1024xf32>
    %16 = vector.shape_cast %15 : vector<1x16x1024xf32> to vector<16x1024xf32>
    %17 = vector.shape_cast %14 : vector<16x1024xf32> to vector<1x16x1024xf32>
    tpu.vector_store %arg7[%c0_15, %c0_16, %c0_17], %17 {strides = array<i32>} : memref<1x16x1024xf32, #tpu.memory_space<vmem>>, vector<1x16x1024xf32>,
    return
  }
  func.func @transform_0(%arg0: i32, %arg1: i32) -> (i32, i32, i32) {
    %c0_i32 = arith.constant 0 : i32
    %c0_i32_0 = arith.constant 0 : i32
    return %arg0, %arg1, %c0_i32 : i32, i32, i32
  }
  func.func @transform_1(%arg0: i32, %arg1: i32) -> (i32, i32, i32) {
    %c0_i32 = arith.constant 0 : i32
    %c0_i32_0 = arith.constant 0 : i32
    return %arg0, %arg1, %c0_i32 : i32, i32, i32
  }
  func.func @transform_2(%arg0: i32, %arg1: i32) -> (i32, i32, i32) {
    %c0_i32 = arith.constant 0 : i32
    %c0_i32_0 = arith.constant 0 : i32
    %c0_i32_1 = arith.constant 0 : i32
    return %arg0, %c0_i32, %c0_i32_0 : i32, i32, i32
  }
  func.func @transform_3(%arg0: i32, %arg1: i32) -> (i32, i32, i32) {
    %c0_i32 = arith.constant 0 : i32
    %c0_i32_0 = arith.constant 0 : i32
    %c0_i32_1 = arith.constant 0 : i32
    return %arg0, %c0_i32, %c0_i32_0 : i32, i32, i32
  }
  func.func @transform_4(%arg0: i32, %arg1: i32) -> (i32, i32, i32) {
    %c0_i32 = arith.constant 0 : i32
    %c0_i32_0 = arith.constant 0 : i32
    %c0_i32_1 = arith.constant 0 : i32
    return %arg0, %c0_i32, %c0_i32_0 : i32, i32, i32
  }
  func.func @transform_5(%arg0: i32, %arg1: i32) -> (i32, i32, i32) {
    %c0_i32 = arith.constant 0 : i32
    %c0_i32_0 = arith.constant 0 : i32
    return %arg0, %arg1, %c0_i32 : i32, i32, i32
  }
}

module attributes {stable_mosaic.version = 11 : i64} {
  func.func @bilstm_chunk_kernel(%arg0: i32, %arg1: i32, %arg2: memref<1x8x2x512xf32, #tpu.memory_space<vmem>>, %arg3: memref<1x8x2x512xf32, #tpu.memory_space<vmem>>, %arg4: memref<1x128x512xbf16, #tpu.memory_space<vmem>>, %arg5: memref<1x128x512xbf16, #tpu.memory_space<vmem>>, %arg6: memref<1x8x2x128xbf16, #tpu.memory_space<vmem>>, %arg7: memref<1x8x2x128xbf16, #tpu.memory_space<vmem>>, %arg8: memref<2x128xf32, #tpu.memory_space<vmem>>, %arg9: memref<2x128xf32, #tpu.memory_space<vmem>>, %arg10: memref<2x128xf32, #tpu.memory_space<vmem>>, %arg11: memref<2x128xf32, #tpu.memory_space<vmem>>) attributes {dimension_semantics = [#tpu.dimension_semantics<parallel>, #tpu.dimension_semantics<arbitrary>], iteration_bounds = array<i64: 2, 1>, scalar_prefetch = 0 : i64, scratch_operands = 4 : i64, tpu.core_type = #tpu.core_type<tc>, window_params = [{transform_indices = @transform_0, window_bounds = array<i64: 1, 8, 2, 512>}, {transform_indices = @transform_1, window_bounds = array<i64: 1, 8, 2, 512>}, {transform_indices = @transform_2, window_bounds = array<i64: 1, 128, 512>}, {transform_indices = @transform_3, window_bounds = array<i64: 1, 128, 512>}, {transform_indices = @transform_4, window_bounds = array<i64: 1, 8, 2, 128>}, {transform_indices = @transform_5, window_bounds = array<i64: 1, 8, 2, 128>}]} {
    %c0_i32 = arith.constant 0 : i32
    %0 = arith.cmpi eq, %arg1, %c0_i32 : i32
    %1 = arith.extui %0 : i1 to i32
    %c0_i32_0 = arith.constant 0 : i32
    %2 = arith.cmpi ne, %1, %c0_i32_0 : i32
    scf.if %2 {
      %cst_414 = arith.constant 0.000000e+00 : f32
      %711 = vector.broadcast %cst_414 : f32 to vector<2x128xf32>
      %c0_415 = arith.constant 0 : index
      %c0_416 = arith.constant 0 : index
      %712 = vector.load %arg8[%c0_415, %c0_416] : memref<2x128xf32, #tpu.memory_space<vmem>>, vector<2x128xf32>
      tpu.vector_store %arg8[%c0_415, %c0_416], %711 {strides = array<i32>} : memref<2x128xf32, #tpu.memory_space<vmem>>, vector<2x128xf32>,
      %cst_417 = arith.constant 0.000000e+00 : f32
      %713 = vector.broadcast %cst_417 : f32 to vector<2x128xf32>
      %c0_418 = arith.constant 0 : index
      %c0_419 = arith.constant 0 : index
      %714 = vector.load %arg9[%c0_418, %c0_419] : memref<2x128xf32, #tpu.memory_space<vmem>>, vector<2x128xf32>
      tpu.vector_store %arg9[%c0_418, %c0_419], %713 {strides = array<i32>} : memref<2x128xf32, #tpu.memory_space<vmem>>, vector<2x128xf32>,
      %cst_420 = arith.constant 0.000000e+00 : f32
      %715 = vector.broadcast %cst_420 : f32 to vector<2x128xf32>
      %c0_421 = arith.constant 0 : index
      %c0_422 = arith.constant 0 : index
      %716 = vector.load %arg10[%c0_421, %c0_422] : memref<2x128xf32, #tpu.memory_space<vmem>>, vector<2x128xf32>
      tpu.vector_store %arg10[%c0_421, %c0_422], %715 {strides = array<i32>} : memref<2x128xf32, #tpu.memory_space<vmem>>, vector<2x128xf32>,
      %cst_423 = arith.constant 0.000000e+00 : f32
      %717 = vector.broadcast %cst_423 : f32 to vector<2x128xf32>
      %c0_424 = arith.constant 0 : index
      %c0_425 = arith.constant 0 : index
      %718 = vector.load %arg11[%c0_424, %c0_425] : memref<2x128xf32, #tpu.memory_space<vmem>>, vector<2x128xf32>
      tpu.vector_store %arg11[%c0_424, %c0_425], %717 {strides = array<i32>} : memref<2x128xf32, #tpu.memory_space<vmem>>, vector<2x128xf32>,
    } else {
    }
    %c0 = arith.constant 0 : index
    %c0_1 = arith.constant 0 : index
    %c0_2 = arith.constant 0 : index
    %3 = vector.load %arg4[%c0, %c0_1, %c0_2] : memref<1x128x512xbf16, #tpu.memory_space<vmem>>, vector<1x128x512xbf16>
    %4 = vector.shape_cast %3 : vector<1x128x512xbf16> to vector<128x512xbf16>
    %c0_3 = arith.constant 0 : index
    %c0_4 = arith.constant 0 : index
    %c0_5 = arith.constant 0 : index
    %5 = vector.load %arg5[%c0_3, %c0_4, %c0_5] : memref<1x128x512xbf16, #tpu.memory_space<vmem>>, vector<1x128x512xbf16>
    %6 = vector.shape_cast %5 : vector<1x128x512xbf16> to vector<128x512xbf16>
    %c0_6 = arith.constant 0 : index
    %c0_7 = arith.constant 0 : index
    %c0_8 = arith.constant 0 : index
    %c0_9 = arith.constant 0 : index
    %7 = vector.load %arg2[%c0_6, %c0_7, %c0_8, %c0_9] : memref<1x8x2x512xf32, #tpu.memory_space<vmem>>, vector<1x1x2x512xf32>
    %8 = vector.shape_cast %7 : vector<1x1x2x512xf32> to vector<2x512xf32>
    %c0_10 = arith.constant 0 : index
    %c0_11 = arith.constant 0 : index
    %9 = vector.load %arg8[%c0_10, %c0_11] : memref<2x128xf32, #tpu.memory_space<vmem>>, vector<2x128xf32>
    %10 = arith.truncf %9 : vector<2x128xf32> to vector<2x128xbf16>
    %cst = arith.constant dense<0.000000e+00> : vector<2x512xf32>
    %11 = tpu.matmul %10, %4, %cst {dimension_numbers = #tpu.dot_dimension_numbers<[1], [0], [0], [1], [0, 0, 1, 1], [], []>} : vector<2x128xbf16>, vector<128x512xbf16>, vector<2x512xf32> -> vector<2x512xf32>
    %12 = arith.addf %8, %11 : vector<2x512xf32>
    %13 = vector.extract_strided_slice %12 {offsets = [0, 0], sizes = [2, 128], strides = [1, 1]} : vector<2x512xf32> to vector<2x128xf32>
    %cst_12 = arith.constant 0.000000e+00 : f32
    %14 = vector.broadcast %cst_12 : f32 to vector<2x128xf32>
    %15 = arith.subf %14, %13 : vector<2x128xf32>
    %16 = math.exp %15 : vector<2x128xf32>
    %cst_13 = arith.constant 1.000000e+00 : f32
    %17 = vector.broadcast %cst_13 : f32 to vector<2x128xf32>
    %18 = arith.addf %17, %16 : vector<2x128xf32>
    %cst_14 = arith.constant 1.000000e+00 : f32
    %19 = vector.broadcast %cst_14 : f32 to vector<2x128xf32>
    %20 = arith.divf %19, %18 : vector<2x128xf32>
    %21 = vector.extract_strided_slice %12 {offsets = [0, 128], sizes = [2, 128], strides = [1, 1]} : vector<2x512xf32> to vector<2x128xf32>
    %cst_15 = arith.constant 0.000000e+00 : f32
    %22 = vector.broadcast %cst_15 : f32 to vector<2x128xf32>
    %23 = arith.subf %22, %21 : vector<2x128xf32>
    %24 = math.exp %23 : vector<2x128xf32>
    %cst_16 = arith.constant 1.000000e+00 : f32
    %25 = vector.broadcast %cst_16 : f32 to vector<2x128xf32>
    %26 = arith.addf %25, %24 : vector<2x128xf32>
    %cst_17 = arith.constant 1.000000e+00 : f32
    %27 = vector.broadcast %cst_17 : f32 to vector<2x128xf32>
    %28 = arith.divf %27, %26 : vector<2x128xf32>
    %29 = vector.extract_strided_slice %12 {offsets = [0, 256], sizes = [2, 128], strides = [1, 1]} : vector<2x512xf32> to vector<2x128xf32>
    %30 = math.tanh %29 : vector<2x128xf32>
    %31 = vector.extract_strided_slice %12 {offsets = [0, 384], sizes = [2, 128], strides = [1, 1]} : vector<2x512xf32> to vector<2x128xf32>
    %cst_18 = arith.constant 0.000000e+00 : f32
    %32 = vector.broadcast %cst_18 : f32 to vector<2x128xf32>
    %33 = arith.subf %32, %31 : vector<2x128xf32>
    %34 = math.exp %33 : vector<2x128xf32>
    %cst_19 = arith.constant 1.000000e+00 : f32
    %35 = vector.broadcast %cst_19 : f32 to vector<2x128xf32>
    %36 = arith.addf %35, %34 : vector<2x128xf32>
    %cst_20 = arith.constant 1.000000e+00 : f32
    %37 = vector.broadcast %cst_20 : f32 to vector<2x128xf32>
    %38 = arith.divf %37, %36 : vector<2x128xf32>
    %c0_21 = arith.constant 0 : index
    %c0_22 = arith.constant 0 : index
    %39 = vector.load %arg9[%c0_21, %c0_22] : memref<2x128xf32, #tpu.memory_space<vmem>>, vector<2x128xf32>
    %40 = arith.mulf %28, %39 : vector<2x128xf32>
    %41 = arith.mulf %20, %30 : vector<2x128xf32>
    %42 = arith.addf %40, %41 : vector<2x128xf32>
    %43 = math.tanh %42 : vector<2x128xf32>
    %44 = arith.mulf %38, %43 : vector<2x128xf32>
    %c0_23 = arith.constant 0 : index
    %c0_24 = arith.constant 0 : index
    %45 = vector.load %arg9[%c0_23, %c0_24] : memref<2x128xf32, #tpu.memory_space<vmem>>, vector<2x128xf32>
    tpu.vector_store %arg9[%c0_23, %c0_24], %42 {strides = array<i32>} : memref<2x128xf32, #tpu.memory_space<vmem>>, vector<2x128xf32>,
    %c0_25 = arith.constant 0 : index
    %c0_26 = arith.constant 0 : index
    %46 = vector.load %arg8[%c0_25, %c0_26] : memref<2x128xf32, #tpu.memory_space<vmem>>, vector<2x128xf32>
    tpu.vector_store %arg8[%c0_25, %c0_26], %44 {strides = array<i32>} : memref<2x128xf32, #tpu.memory_space<vmem>>, vector<2x128xf32>,
    %47 = arith.truncf %44 : vector<2x128xf32> to vector<2x128xbf16>
    %c0_27 = arith.constant 0 : index
    %c0_28 = arith.constant 0 : index
    %c0_29 = arith.constant 0 : index
    %c0_30 = arith.constant 0 : index
    %48 = vector.load %arg6[%c0_27, %c0_28, %c0_29, %c0_30] : memref<1x8x2x128xbf16, #tpu.memory_space<vmem>>, vector<1x1x2x128xbf16>
    %49 = vector.shape_cast %48 : vector<1x1x2x128xbf16> to vector<2x128xbf16>
    %50 = vector.shape_cast %47 : vector<2x128xbf16> to vector<1x1x2x128xbf16>
    tpu.vector_store %arg6[%c0_27, %c0_28, %c0_29, %c0_30], %50 {strides = array<i32>} : memref<1x8x2x128xbf16, #tpu.memory_space<vmem>>, vector<1x1x2x128xbf16>,
    %c0_31 = arith.constant 0 : index
    %c7 = arith.constant 7 : index
    %c0_32 = arith.constant 0 : index
    %c0_33 = arith.constant 0 : index
    %51 = vector.load %arg3[%c0_31, %c7, %c0_32, %c0_33] : memref<1x8x2x512xf32, #tpu.memory_space<vmem>>, vector<1x1x2x512xf32>
    %52 = vector.shape_cast %51 : vector<1x1x2x512xf32> to vector<2x512xf32>
    %c0_34 = arith.constant 0 : index
    %c0_35 = arith.constant 0 : index
    %53 = vector.load %arg10[%c0_34, %c0_35] : memref<2x128xf32, #tpu.memory_space<vmem>>, vector<2x128xf32>
    %54 = arith.truncf %53 : vector<2x128xf32> to vector<2x128xbf16>
    %cst_36 = arith.constant dense<0.000000e+00> : vector<2x512xf32>
    %55 = tpu.matmul %54, %6, %cst_36 {dimension_numbers = #tpu.dot_dimension_numbers<[1], [0], [0], [1], [0, 0, 1, 1], [], []>} : vector<2x128xbf16>, vector<128x512xbf16>, vector<2x512xf32> -> vector<2x512xf32>
    %56 = arith.addf %52, %55 : vector<2x512xf32>
    %57 = vector.extract_strided_slice %56 {offsets = [0, 0], sizes = [2, 128], strides = [1, 1]} : vector<2x512xf32> to vector<2x128xf32>
    %cst_37 = arith.constant 0.000000e+00 : f32
    %58 = vector.broadcast %cst_37 : f32 to vector<2x128xf32>
    %59 = arith.subf %58, %57 : vector<2x128xf32>
    %60 = math.exp %59 : vector<2x128xf32>
    %cst_38 = arith.constant 1.000000e+00 : f32
    %61 = vector.broadcast %cst_38 : f32 to vector<2x128xf32>
    %62 = arith.addf %61, %60 : vector<2x128xf32>
    %cst_39 = arith.constant 1.000000e+00 : f32
    %63 = vector.broadcast %cst_39 : f32 to vector<2x128xf32>
    %64 = arith.divf %63, %62 : vector<2x128xf32>
    %65 = vector.extract_strided_slice %56 {offsets = [0, 128], sizes = [2, 128], strides = [1, 1]} : vector<2x512xf32> to vector<2x128xf32>
    %cst_40 = arith.constant 0.000000e+00 : f32
    %66 = vector.broadcast %cst_40 : f32 to vector<2x128xf32>
    %67 = arith.subf %66, %65 : vector<2x128xf32>
    %68 = math.exp %67 : vector<2x128xf32>
    %cst_41 = arith.constant 1.000000e+00 : f32
    %69 = vector.broadcast %cst_41 : f32 to vector<2x128xf32>
    %70 = arith.addf %69, %68 : vector<2x128xf32>
    %cst_42 = arith.constant 1.000000e+00 : f32
    %71 = vector.broadcast %cst_42 : f32 to vector<2x128xf32>
    %72 = arith.divf %71, %70 : vector<2x128xf32>
    %73 = vector.extract_strided_slice %56 {offsets = [0, 256], sizes = [2, 128], strides = [1, 1]} : vector<2x512xf32> to vector<2x128xf32>
    %74 = math.tanh %73 : vector<2x128xf32>
    %75 = vector.extract_strided_slice %56 {offsets = [0, 384], sizes = [2, 128], strides = [1, 1]} : vector<2x512xf32> to vector<2x128xf32>
    %cst_43 = arith.constant 0.000000e+00 : f32
    %76 = vector.broadcast %cst_43 : f32 to vector<2x128xf32>
    %77 = arith.subf %76, %75 : vector<2x128xf32>
    %78 = math.exp %77 : vector<2x128xf32>
    %cst_44 = arith.constant 1.000000e+00 : f32
    %79 = vector.broadcast %cst_44 : f32 to vector<2x128xf32>
    %80 = arith.addf %79, %78 : vector<2x128xf32>
    %cst_45 = arith.constant 1.000000e+00 : f32
    %81 = vector.broadcast %cst_45 : f32 to vector<2x128xf32>
    %82 = arith.divf %81, %80 : vector<2x128xf32>
    %c0_46 = arith.constant 0 : index
    %c0_47 = arith.constant 0 : index
    %83 = vector.load %arg11[%c0_46, %c0_47] : memref<2x128xf32, #tpu.memory_space<vmem>>, vector<2x128xf32>
    %84 = arith.mulf %72, %83 : vector<2x128xf32>
    %85 = arith.mulf %64, %74 : vector<2x128xf32>
    %86 = arith.addf %84, %85 : vector<2x128xf32>
    %87 = math.tanh %86 : vector<2x128xf32>
    %88 = arith.mulf %82, %87 : vector<2x128xf32>
    %c0_48 = arith.constant 0 : index
    %c0_49 = arith.constant 0 : index
    %89 = vector.load %arg11[%c0_48, %c0_49] : memref<2x128xf32, #tpu.memory_space<vmem>>, vector<2x128xf32>
    tpu.vector_store %arg11[%c0_48, %c0_49], %86 {strides = array<i32>} : memref<2x128xf32, #tpu.memory_space<vmem>>, vector<2x128xf32>,
    %c0_50 = arith.constant 0 : index
    %c0_51 = arith.constant 0 : index
    %90 = vector.load %arg10[%c0_50, %c0_51] : memref<2x128xf32, #tpu.memory_space<vmem>>, vector<2x128xf32>
    tpu.vector_store %arg10[%c0_50, %c0_51], %88 {strides = array<i32>} : memref<2x128xf32, #tpu.memory_space<vmem>>, vector<2x128xf32>,
    %91 = arith.truncf %88 : vector<2x128xf32> to vector<2x128xbf16>
    %c0_52 = arith.constant 0 : index
    %c7_53 = arith.constant 7 : index
    %c0_54 = arith.constant 0 : index
    %c0_55 = arith.constant 0 : index
    %92 = vector.load %arg7[%c0_52, %c7_53, %c0_54, %c0_55] : memref<1x8x2x128xbf16, #tpu.memory_space<vmem>>, vector<1x1x2x128xbf16>
    %93 = vector.shape_cast %92 : vector<1x1x2x128xbf16> to vector<2x128xbf16>
    %94 = vector.shape_cast %91 : vector<2x128xbf16> to vector<1x1x2x128xbf16>
    tpu.vector_store %arg7[%c0_52, %c7_53, %c0_54, %c0_55], %94 {strides = array<i32>} : memref<1x8x2x128xbf16, #tpu.memory_space<vmem>>, vector<1x1x2x128xbf16>,
    %c0_56 = arith.constant 0 : index
    %c1 = arith.constant 1 : index
    %c0_57 = arith.constant 0 : index
    %c0_58 = arith.constant 0 : index
    %95 = vector.load %arg2[%c0_56, %c1, %c0_57, %c0_58] : memref<1x8x2x512xf32, #tpu.memory_space<vmem>>, vector<1x1x2x512xf32>
    %96 = vector.shape_cast %95 : vector<1x1x2x512xf32> to vector<2x512xf32>
    %c0_59 = arith.constant 0 : index
    %c0_60 = arith.constant 0 : index
    %97 = vector.load %arg8[%c0_59, %c0_60] : memref<2x128xf32, #tpu.memory_space<vmem>>, vector<2x128xf32>
    %98 = arith.truncf %97 : vector<2x128xf32> to vector<2x128xbf16>
    %cst_61 = arith.constant dense<0.000000e+00> : vector<2x512xf32>
    %99 = tpu.matmul %98, %4, %cst_61 {dimension_numbers = #tpu.dot_dimension_numbers<[1], [0], [0], [1], [0, 0, 1, 1], [], []>} : vector<2x128xbf16>, vector<128x512xbf16>, vector<2x512xf32> -> vector<2x512xf32>
    %100 = arith.addf %96, %99 : vector<2x512xf32>
    %101 = vector.extract_strided_slice %100 {offsets = [0, 0], sizes = [2, 128], strides = [1, 1]} : vector<2x512xf32> to vector<2x128xf32>
    %cst_62 = arith.constant 0.000000e+00 : f32
    %102 = vector.broadcast %cst_62 : f32 to vector<2x128xf32>
    %103 = arith.subf %102, %101 : vector<2x128xf32>
    %104 = math.exp %103 : vector<2x128xf32>
    %cst_63 = arith.constant 1.000000e+00 : f32
    %105 = vector.broadcast %cst_63 : f32 to vector<2x128xf32>
    %106 = arith.addf %105, %104 : vector<2x128xf32>
    %cst_64 = arith.constant 1.000000e+00 : f32
    %107 = vector.broadcast %cst_64 : f32 to vector<2x128xf32>
    %108 = arith.divf %107, %106 : vector<2x128xf32>
    %109 = vector.extract_strided_slice %100 {offsets = [0, 128], sizes = [2, 128], strides = [1, 1]} : vector<2x512xf32> to vector<2x128xf32>
    %cst_65 = arith.constant 0.000000e+00 : f32
    %110 = vector.broadcast %cst_65 : f32 to vector<2x128xf32>
    %111 = arith.subf %110, %109 : vector<2x128xf32>
    %112 = math.exp %111 : vector<2x128xf32>
    %cst_66 = arith.constant 1.000000e+00 : f32
    %113 = vector.broadcast %cst_66 : f32 to vector<2x128xf32>
    %114 = arith.addf %113, %112 : vector<2x128xf32>
    %cst_67 = arith.constant 1.000000e+00 : f32
    %115 = vector.broadcast %cst_67 : f32 to vector<2x128xf32>
    %116 = arith.divf %115, %114 : vector<2x128xf32>
    %117 = vector.extract_strided_slice %100 {offsets = [0, 256], sizes = [2, 128], strides = [1, 1]} : vector<2x512xf32> to vector<2x128xf32>
    %118 = math.tanh %117 : vector<2x128xf32>
    %119 = vector.extract_strided_slice %100 {offsets = [0, 384], sizes = [2, 128], strides = [1, 1]} : vector<2x512xf32> to vector<2x128xf32>
    %cst_68 = arith.constant 0.000000e+00 : f32
    %120 = vector.broadcast %cst_68 : f32 to vector<2x128xf32>
    %121 = arith.subf %120, %119 : vector<2x128xf32>
    %122 = math.exp %121 : vector<2x128xf32>
    %cst_69 = arith.constant 1.000000e+00 : f32
    %123 = vector.broadcast %cst_69 : f32 to vector<2x128xf32>
    %124 = arith.addf %123, %122 : vector<2x128xf32>
    %cst_70 = arith.constant 1.000000e+00 : f32
    %125 = vector.broadcast %cst_70 : f32 to vector<2x128xf32>
    %126 = arith.divf %125, %124 : vector<2x128xf32>
    %c0_71 = arith.constant 0 : index
    %c0_72 = arith.constant 0 : index
    %127 = vector.load %arg9[%c0_71, %c0_72] : memref<2x128xf32, #tpu.memory_space<vmem>>, vector<2x128xf32>
    %128 = arith.mulf %116, %127 : vector<2x128xf32>
    %129 = arith.mulf %108, %118 : vector<2x128xf32>
    %130 = arith.addf %128, %129 : vector<2x128xf32>
    %131 = math.tanh %130 : vector<2x128xf32>
    %132 = arith.mulf %126, %131 : vector<2x128xf32>
    %c0_73 = arith.constant 0 : index
    %c0_74 = arith.constant 0 : index
    %133 = vector.load %arg9[%c0_73, %c0_74] : memref<2x128xf32, #tpu.memory_space<vmem>>, vector<2x128xf32>
    tpu.vector_store %arg9[%c0_73, %c0_74], %130 {strides = array<i32>} : memref<2x128xf32, #tpu.memory_space<vmem>>, vector<2x128xf32>,
    %c0_75 = arith.constant 0 : index
    %c0_76 = arith.constant 0 : index
    %134 = vector.load %arg8[%c0_75, %c0_76] : memref<2x128xf32, #tpu.memory_space<vmem>>, vector<2x128xf32>
    tpu.vector_store %arg8[%c0_75, %c0_76], %132 {strides = array<i32>} : memref<2x128xf32, #tpu.memory_space<vmem>>, vector<2x128xf32>,
    %135 = arith.truncf %132 : vector<2x128xf32> to vector<2x128xbf16>
    %c0_77 = arith.constant 0 : index
    %c1_78 = arith.constant 1 : index
    %c0_79 = arith.constant 0 : index
    %c0_80 = arith.constant 0 : index
    %136 = vector.load %arg6[%c0_77, %c1_78, %c0_79, %c0_80] : memref<1x8x2x128xbf16, #tpu.memory_space<vmem>>, vector<1x1x2x128xbf16>
    %137 = vector.shape_cast %136 : vector<1x1x2x128xbf16> to vector<2x128xbf16>
    %138 = vector.shape_cast %135 : vector<2x128xbf16> to vector<1x1x2x128xbf16>
    tpu.vector_store %arg6[%c0_77, %c1_78, %c0_79, %c0_80], %138 {strides = array<i32>} : memref<1x8x2x128xbf16, #tpu.memory_space<vmem>>, vector<1x1x2x128xbf16>,
    %c0_81 = arith.constant 0 : index
    %c6 = arith.constant 6 : index
    %c0_82 = arith.constant 0 : index
    %c0_83 = arith.constant 0 : index
    %139 = vector.load %arg3[%c0_81, %c6, %c0_82, %c0_83] : memref<1x8x2x512xf32, #tpu.memory_space<vmem>>, vector<1x1x2x512xf32>
    %140 = vector.shape_cast %139 : vector<1x1x2x512xf32> to vector<2x512xf32>
    %c0_84 = arith.constant 0 : index
    %c0_85 = arith.constant 0 : index
    %141 = vector.load %arg10[%c0_84, %c0_85] : memref<2x128xf32, #tpu.memory_space<vmem>>, vector<2x128xf32>
    %142 = arith.truncf %141 : vector<2x128xf32> to vector<2x128xbf16>
    %cst_86 = arith.constant dense<0.000000e+00> : vector<2x512xf32>
    %143 = tpu.matmul %142, %6, %cst_86 {dimension_numbers = #tpu.dot_dimension_numbers<[1], [0], [0], [1], [0, 0, 1, 1], [], []>} : vector<2x128xbf16>, vector<128x512xbf16>, vector<2x512xf32> -> vector<2x512xf32>
    %144 = arith.addf %140, %143 : vector<2x512xf32>
    %145 = vector.extract_strided_slice %144 {offsets = [0, 0], sizes = [2, 128], strides = [1, 1]} : vector<2x512xf32> to vector<2x128xf32>
    %cst_87 = arith.constant 0.000000e+00 : f32
    %146 = vector.broadcast %cst_87 : f32 to vector<2x128xf32>
    %147 = arith.subf %146, %145 : vector<2x128xf32>
    %148 = math.exp %147 : vector<2x128xf32>
    %cst_88 = arith.constant 1.000000e+00 : f32
    %149 = vector.broadcast %cst_88 : f32 to vector<2x128xf32>
    %150 = arith.addf %149, %148 : vector<2x128xf32>
    %cst_89 = arith.constant 1.000000e+00 : f32
    %151 = vector.broadcast %cst_89 : f32 to vector<2x128xf32>
    %152 = arith.divf %151, %150 : vector<2x128xf32>
    %153 = vector.extract_strided_slice %144 {offsets = [0, 128], sizes = [2, 128], strides = [1, 1]} : vector<2x512xf32> to vector<2x128xf32>
    %cst_90 = arith.constant 0.000000e+00 : f32
    %154 = vector.broadcast %cst_90 : f32 to vector<2x128xf32>
    %155 = arith.subf %154, %153 : vector<2x128xf32>
    %156 = math.exp %155 : vector<2x128xf32>
    %cst_91 = arith.constant 1.000000e+00 : f32
    %157 = vector.broadcast %cst_91 : f32 to vector<2x128xf32>
    %158 = arith.addf %157, %156 : vector<2x128xf32>
    %cst_92 = arith.constant 1.000000e+00 : f32
    %159 = vector.broadcast %cst_92 : f32 to vector<2x128xf32>
    %160 = arith.divf %159, %158 : vector<2x128xf32>
    %161 = vector.extract_strided_slice %144 {offsets = [0, 256], sizes = [2, 128], strides = [1, 1]} : vector<2x512xf32> to vector<2x128xf32>
    %162 = math.tanh %161 : vector<2x128xf32>
    %163 = vector.extract_strided_slice %144 {offsets = [0, 384], sizes = [2, 128], strides = [1, 1]} : vector<2x512xf32> to vector<2x128xf32>
    %cst_93 = arith.constant 0.000000e+00 : f32
    %164 = vector.broadcast %cst_93 : f32 to vector<2x128xf32>
    %165 = arith.subf %164, %163 : vector<2x128xf32>
    %166 = math.exp %165 : vector<2x128xf32>
    %cst_94 = arith.constant 1.000000e+00 : f32
    %167 = vector.broadcast %cst_94 : f32 to vector<2x128xf32>
    %168 = arith.addf %167, %166 : vector<2x128xf32>
    %cst_95 = arith.constant 1.000000e+00 : f32
    %169 = vector.broadcast %cst_95 : f32 to vector<2x128xf32>
    %170 = arith.divf %169, %168 : vector<2x128xf32>
    %c0_96 = arith.constant 0 : index
    %c0_97 = arith.constant 0 : index
    %171 = vector.load %arg11[%c0_96, %c0_97] : memref<2x128xf32, #tpu.memory_space<vmem>>, vector<2x128xf32>
    %172 = arith.mulf %160, %171 : vector<2x128xf32>
    %173 = arith.mulf %152, %162 : vector<2x128xf32>
    %174 = arith.addf %172, %173 : vector<2x128xf32>
    %175 = math.tanh %174 : vector<2x128xf32>
    %176 = arith.mulf %170, %175 : vector<2x128xf32>
    %c0_98 = arith.constant 0 : index
    %c0_99 = arith.constant 0 : index
    %177 = vector.load %arg11[%c0_98, %c0_99] : memref<2x128xf32, #tpu.memory_space<vmem>>, vector<2x128xf32>
    tpu.vector_store %arg11[%c0_98, %c0_99], %174 {strides = array<i32>} : memref<2x128xf32, #tpu.memory_space<vmem>>, vector<2x128xf32>,
    %c0_100 = arith.constant 0 : index
    %c0_101 = arith.constant 0 : index
    %178 = vector.load %arg10[%c0_100, %c0_101] : memref<2x128xf32, #tpu.memory_space<vmem>>, vector<2x128xf32>
    tpu.vector_store %arg10[%c0_100, %c0_101], %176 {strides = array<i32>} : memref<2x128xf32, #tpu.memory_space<vmem>>, vector<2x128xf32>,
    %179 = arith.truncf %176 : vector<2x128xf32> to vector<2x128xbf16>
    %c0_102 = arith.constant 0 : index
    %c6_103 = arith.constant 6 : index
    %c0_104 = arith.constant 0 : index
    %c0_105 = arith.constant 0 : index
    %180 = vector.load %arg7[%c0_102, %c6_103, %c0_104, %c0_105] : memref<1x8x2x128xbf16, #tpu.memory_space<vmem>>, vector<1x1x2x128xbf16>
    %181 = vector.shape_cast %180 : vector<1x1x2x128xbf16> to vector<2x128xbf16>
    %182 = vector.shape_cast %179 : vector<2x128xbf16> to vector<1x1x2x128xbf16>
    tpu.vector_store %arg7[%c0_102, %c6_103, %c0_104, %c0_105], %182 {strides = array<i32>} : memref<1x8x2x128xbf16, #tpu.memory_space<vmem>>, vector<1x1x2x128xbf16>,
    %c0_106 = arith.constant 0 : index
    %c2 = arith.constant 2 : index
    %c0_107 = arith.constant 0 : index
    %c0_108 = arith.constant 0 : index
    %183 = vector.load %arg2[%c0_106, %c2, %c0_107, %c0_108] : memref<1x8x2x512xf32, #tpu.memory_space<vmem>>, vector<1x1x2x512xf32>
    %184 = vector.shape_cast %183 : vector<1x1x2x512xf32> to vector<2x512xf32>
    %c0_109 = arith.constant 0 : index
    %c0_110 = arith.constant 0 : index
    %185 = vector.load %arg8[%c0_109, %c0_110] : memref<2x128xf32, #tpu.memory_space<vmem>>, vector<2x128xf32>
    %186 = arith.truncf %185 : vector<2x128xf32> to vector<2x128xbf16>
    %cst_111 = arith.constant dense<0.000000e+00> : vector<2x512xf32>
    %187 = tpu.matmul %186, %4, %cst_111 {dimension_numbers = #tpu.dot_dimension_numbers<[1], [0], [0], [1], [0, 0, 1, 1], [], []>} : vector<2x128xbf16>, vector<128x512xbf16>, vector<2x512xf32> -> vector<2x512xf32>
    %188 = arith.addf %184, %187 : vector<2x512xf32>
    %189 = vector.extract_strided_slice %188 {offsets = [0, 0], sizes = [2, 128], strides = [1, 1]} : vector<2x512xf32> to vector<2x128xf32>
    %cst_112 = arith.constant 0.000000e+00 : f32
    %190 = vector.broadcast %cst_112 : f32 to vector<2x128xf32>
    %191 = arith.subf %190, %189 : vector<2x128xf32>
    %192 = math.exp %191 : vector<2x128xf32>
    %cst_113 = arith.constant 1.000000e+00 : f32
    %193 = vector.broadcast %cst_113 : f32 to vector<2x128xf32>
    %194 = arith.addf %193, %192 : vector<2x128xf32>
    %cst_114 = arith.constant 1.000000e+00 : f32
    %195 = vector.broadcast %cst_114 : f32 to vector<2x128xf32>
    %196 = arith.divf %195, %194 : vector<2x128xf32>
    %197 = vector.extract_strided_slice %188 {offsets = [0, 128], sizes = [2, 128], strides = [1, 1]} : vector<2x512xf32> to vector<2x128xf32>
    %cst_115 = arith.constant 0.000000e+00 : f32
    %198 = vector.broadcast %cst_115 : f32 to vector<2x128xf32>
    %199 = arith.subf %198, %197 : vector<2x128xf32>
    %200 = math.exp %199 : vector<2x128xf32>
    %cst_116 = arith.constant 1.000000e+00 : f32
    %201 = vector.broadcast %cst_116 : f32 to vector<2x128xf32>
    %202 = arith.addf %201, %200 : vector<2x128xf32>
    %cst_117 = arith.constant 1.000000e+00 : f32
    %203 = vector.broadcast %cst_117 : f32 to vector<2x128xf32>
    %204 = arith.divf %203, %202 : vector<2x128xf32>
    %205 = vector.extract_strided_slice %188 {offsets = [0, 256], sizes = [2, 128], strides = [1, 1]} : vector<2x512xf32> to vector<2x128xf32>
    %206 = math.tanh %205 : vector<2x128xf32>
    %207 = vector.extract_strided_slice %188 {offsets = [0, 384], sizes = [2, 128], strides = [1, 1]} : vector<2x512xf32> to vector<2x128xf32>
    %cst_118 = arith.constant 0.000000e+00 : f32
    %208 = vector.broadcast %cst_118 : f32 to vector<2x128xf32>
    %209 = arith.subf %208, %207 : vector<2x128xf32>
    %210 = math.exp %209 : vector<2x128xf32>
    %cst_119 = arith.constant 1.000000e+00 : f32
    %211 = vector.broadcast %cst_119 : f32 to vector<2x128xf32>
    %212 = arith.addf %211, %210 : vector<2x128xf32>
    %cst_120 = arith.constant 1.000000e+00 : f32
    %213 = vector.broadcast %cst_120 : f32 to vector<2x128xf32>
    %214 = arith.divf %213, %212 : vector<2x128xf32>
    %c0_121 = arith.constant 0 : index
    %c0_122 = arith.constant 0 : index
    %215 = vector.load %arg9[%c0_121, %c0_122] : memref<2x128xf32, #tpu.memory_space<vmem>>, vector<2x128xf32>
    %216 = arith.mulf %204, %215 : vector<2x128xf32>
    %217 = arith.mulf %196, %206 : vector<2x128xf32>
    %218 = arith.addf %216, %217 : vector<2x128xf32>
    %219 = math.tanh %218 : vector<2x128xf32>
    %220 = arith.mulf %214, %219 : vector<2x128xf32>
    %c0_123 = arith.constant 0 : index
    %c0_124 = arith.constant 0 : index
    %221 = vector.load %arg9[%c0_123, %c0_124] : memref<2x128xf32, #tpu.memory_space<vmem>>, vector<2x128xf32>
    tpu.vector_store %arg9[%c0_123, %c0_124], %218 {strides = array<i32>} : memref<2x128xf32, #tpu.memory_space<vmem>>, vector<2x128xf32>,
    %c0_125 = arith.constant 0 : index
    %c0_126 = arith.constant 0 : index
    %222 = vector.load %arg8[%c0_125, %c0_126] : memref<2x128xf32, #tpu.memory_space<vmem>>, vector<2x128xf32>
    tpu.vector_store %arg8[%c0_125, %c0_126], %220 {strides = array<i32>} : memref<2x128xf32, #tpu.memory_space<vmem>>, vector<2x128xf32>,
    %223 = arith.truncf %220 : vector<2x128xf32> to vector<2x128xbf16>
    %c0_127 = arith.constant 0 : index
    %c2_128 = arith.constant 2 : index
    %c0_129 = arith.constant 0 : index
    %c0_130 = arith.constant 0 : index
    %224 = vector.load %arg6[%c0_127, %c2_128, %c0_129, %c0_130] : memref<1x8x2x128xbf16, #tpu.memory_space<vmem>>, vector<1x1x2x128xbf16>
    %225 = vector.shape_cast %224 : vector<1x1x2x128xbf16> to vector<2x128xbf16>
    %226 = vector.shape_cast %223 : vector<2x128xbf16> to vector<1x1x2x128xbf16>
    tpu.vector_store %arg6[%c0_127, %c2_128, %c0_129, %c0_130], %226 {strides = array<i32>} : memref<1x8x2x128xbf16, #tpu.memory_space<vmem>>, vector<1x1x2x128xbf16>,
    %c0_131 = arith.constant 0 : index
    %c5 = arith.constant 5 : index
    %c0_132 = arith.constant 0 : index
    %c0_133 = arith.constant 0 : index
    %227 = vector.load %arg3[%c0_131, %c5, %c0_132, %c0_133] : memref<1x8x2x512xf32, #tpu.memory_space<vmem>>, vector<1x1x2x512xf32>
    %228 = vector.shape_cast %227 : vector<1x1x2x512xf32> to vector<2x512xf32>
    %c0_134 = arith.constant 0 : index
    %c0_135 = arith.constant 0 : index
    %229 = vector.load %arg10[%c0_134, %c0_135] : memref<2x128xf32, #tpu.memory_space<vmem>>, vector<2x128xf32>
    %230 = arith.truncf %229 : vector<2x128xf32> to vector<2x128xbf16>
    %cst_136 = arith.constant dense<0.000000e+00> : vector<2x512xf32>
    %231 = tpu.matmul %230, %6, %cst_136 {dimension_numbers = #tpu.dot_dimension_numbers<[1], [0], [0], [1], [0, 0, 1, 1], [], []>} : vector<2x128xbf16>, vector<128x512xbf16>, vector<2x512xf32> -> vector<2x512xf32>
    %232 = arith.addf %228, %231 : vector<2x512xf32>
    %233 = vector.extract_strided_slice %232 {offsets = [0, 0], sizes = [2, 128], strides = [1, 1]} : vector<2x512xf32> to vector<2x128xf32>
    %cst_137 = arith.constant 0.000000e+00 : f32
    %234 = vector.broadcast %cst_137 : f32 to vector<2x128xf32>
    %235 = arith.subf %234, %233 : vector<2x128xf32>
    %236 = math.exp %235 : vector<2x128xf32>
    %cst_138 = arith.constant 1.000000e+00 : f32
    %237 = vector.broadcast %cst_138 : f32 to vector<2x128xf32>
    %238 = arith.addf %237, %236 : vector<2x128xf32>
    %cst_139 = arith.constant 1.000000e+00 : f32
    %239 = vector.broadcast %cst_139 : f32 to vector<2x128xf32>
    %240 = arith.divf %239, %238 : vector<2x128xf32>
    %241 = vector.extract_strided_slice %232 {offsets = [0, 128], sizes = [2, 128], strides = [1, 1]} : vector<2x512xf32> to vector<2x128xf32>
    %cst_140 = arith.constant 0.000000e+00 : f32
    %242 = vector.broadcast %cst_140 : f32 to vector<2x128xf32>
    %243 = arith.subf %242, %241 : vector<2x128xf32>
    %244 = math.exp %243 : vector<2x128xf32>
    %cst_141 = arith.constant 1.000000e+00 : f32
    %245 = vector.broadcast %cst_141 : f32 to vector<2x128xf32>
    %246 = arith.addf %245, %244 : vector<2x128xf32>
    %cst_142 = arith.constant 1.000000e+00 : f32
    %247 = vector.broadcast %cst_142 : f32 to vector<2x128xf32>
    %248 = arith.divf %247, %246 : vector<2x128xf32>
    %249 = vector.extract_strided_slice %232 {offsets = [0, 256], sizes = [2, 128], strides = [1, 1]} : vector<2x512xf32> to vector<2x128xf32>
    %250 = math.tanh %249 : vector<2x128xf32>
    %251 = vector.extract_strided_slice %232 {offsets = [0, 384], sizes = [2, 128], strides = [1, 1]} : vector<2x512xf32> to vector<2x128xf32>
    %cst_143 = arith.constant 0.000000e+00 : f32
    %252 = vector.broadcast %cst_143 : f32 to vector<2x128xf32>
    %253 = arith.subf %252, %251 : vector<2x128xf32>
    %254 = math.exp %253 : vector<2x128xf32>
    %cst_144 = arith.constant 1.000000e+00 : f32
    %255 = vector.broadcast %cst_144 : f32 to vector<2x128xf32>
    %256 = arith.addf %255, %254 : vector<2x128xf32>
    %cst_145 = arith.constant 1.000000e+00 : f32
    %257 = vector.broadcast %cst_145 : f32 to vector<2x128xf32>
    %258 = arith.divf %257, %256 : vector<2x128xf32>
    %c0_146 = arith.constant 0 : index
    %c0_147 = arith.constant 0 : index
    %259 = vector.load %arg11[%c0_146, %c0_147] : memref<2x128xf32, #tpu.memory_space<vmem>>, vector<2x128xf32>
    %260 = arith.mulf %248, %259 : vector<2x128xf32>
    %261 = arith.mulf %240, %250 : vector<2x128xf32>
    %262 = arith.addf %260, %261 : vector<2x128xf32>
    %263 = math.tanh %262 : vector<2x128xf32>
    %264 = arith.mulf %258, %263 : vector<2x128xf32>
    %c0_148 = arith.constant 0 : index
    %c0_149 = arith.constant 0 : index
    %265 = vector.load %arg11[%c0_148, %c0_149] : memref<2x128xf32, #tpu.memory_space<vmem>>, vector<2x128xf32>
    tpu.vector_store %arg11[%c0_148, %c0_149], %262 {strides = array<i32>} : memref<2x128xf32, #tpu.memory_space<vmem>>, vector<2x128xf32>,
    %c0_150 = arith.constant 0 : index
    %c0_151 = arith.constant 0 : index
    %266 = vector.load %arg10[%c0_150, %c0_151] : memref<2x128xf32, #tpu.memory_space<vmem>>, vector<2x128xf32>
    tpu.vector_store %arg10[%c0_150, %c0_151], %264 {strides = array<i32>} : memref<2x128xf32, #tpu.memory_space<vmem>>, vector<2x128xf32>,
    %267 = arith.truncf %264 : vector<2x128xf32> to vector<2x128xbf16>
    %c0_152 = arith.constant 0 : index
    %c5_153 = arith.constant 5 : index
    %c0_154 = arith.constant 0 : index
    %c0_155 = arith.constant 0 : index
    %268 = vector.load %arg7[%c0_152, %c5_153, %c0_154, %c0_155] : memref<1x8x2x128xbf16, #tpu.memory_space<vmem>>, vector<1x1x2x128xbf16>
    %269 = vector.shape_cast %268 : vector<1x1x2x128xbf16> to vector<2x128xbf16>
    %270 = vector.shape_cast %267 : vector<2x128xbf16> to vector<1x1x2x128xbf16>
    tpu.vector_store %arg7[%c0_152, %c5_153, %c0_154, %c0_155], %270 {strides = array<i32>} : memref<1x8x2x128xbf16, #tpu.memory_space<vmem>>, vector<1x1x2x128xbf16>,
    %c0_156 = arith.constant 0 : index
    %c3 = arith.constant 3 : index
    %c0_157 = arith.constant 0 : index
    %c0_158 = arith.constant 0 : index
    %271 = vector.load %arg2[%c0_156, %c3, %c0_157, %c0_158] : memref<1x8x2x512xf32, #tpu.memory_space<vmem>>, vector<1x1x2x512xf32>
    %272 = vector.shape_cast %271 : vector<1x1x2x512xf32> to vector<2x512xf32>
    %c0_159 = arith.constant 0 : index
    %c0_160 = arith.constant 0 : index
    %273 = vector.load %arg8[%c0_159, %c0_160] : memref<2x128xf32, #tpu.memory_space<vmem>>, vector<2x128xf32>
    %274 = arith.truncf %273 : vector<2x128xf32> to vector<2x128xbf16>
    %cst_161 = arith.constant dense<0.000000e+00> : vector<2x512xf32>
    %275 = tpu.matmul %274, %4, %cst_161 {dimension_numbers = #tpu.dot_dimension_numbers<[1], [0], [0], [1], [0, 0, 1, 1], [], []>} : vector<2x128xbf16>, vector<128x512xbf16>, vector<2x512xf32> -> vector<2x512xf32>
    %276 = arith.addf %272, %275 : vector<2x512xf32>
    %277 = vector.extract_strided_slice %276 {offsets = [0, 0], sizes = [2, 128], strides = [1, 1]} : vector<2x512xf32> to vector<2x128xf32>
    %cst_162 = arith.constant 0.000000e+00 : f32
    %278 = vector.broadcast %cst_162 : f32 to vector<2x128xf32>
    %279 = arith.subf %278, %277 : vector<2x128xf32>
    %280 = math.exp %279 : vector<2x128xf32>
    %cst_163 = arith.constant 1.000000e+00 : f32
    %281 = vector.broadcast %cst_163 : f32 to vector<2x128xf32>
    %282 = arith.addf %281, %280 : vector<2x128xf32>
    %cst_164 = arith.constant 1.000000e+00 : f32
    %283 = vector.broadcast %cst_164 : f32 to vector<2x128xf32>
    %284 = arith.divf %283, %282 : vector<2x128xf32>
    %285 = vector.extract_strided_slice %276 {offsets = [0, 128], sizes = [2, 128], strides = [1, 1]} : vector<2x512xf32> to vector<2x128xf32>
    %cst_165 = arith.constant 0.000000e+00 : f32
    %286 = vector.broadcast %cst_165 : f32 to vector<2x128xf32>
    %287 = arith.subf %286, %285 : vector<2x128xf32>
    %288 = math.exp %287 : vector<2x128xf32>
    %cst_166 = arith.constant 1.000000e+00 : f32
    %289 = vector.broadcast %cst_166 : f32 to vector<2x128xf32>
    %290 = arith.addf %289, %288 : vector<2x128xf32>
    %cst_167 = arith.constant 1.000000e+00 : f32
    %291 = vector.broadcast %cst_167 : f32 to vector<2x128xf32>
    %292 = arith.divf %291, %290 : vector<2x128xf32>
    %293 = vector.extract_strided_slice %276 {offsets = [0, 256], sizes = [2, 128], strides = [1, 1]} : vector<2x512xf32> to vector<2x128xf32>
    %294 = math.tanh %293 : vector<2x128xf32>
    %295 = vector.extract_strided_slice %276 {offsets = [0, 384], sizes = [2, 128], strides = [1, 1]} : vector<2x512xf32> to vector<2x128xf32>
    %cst_168 = arith.constant 0.000000e+00 : f32
    %296 = vector.broadcast %cst_168 : f32 to vector<2x128xf32>
    %297 = arith.subf %296, %295 : vector<2x128xf32>
    %298 = math.exp %297 : vector<2x128xf32>
    %cst_169 = arith.constant 1.000000e+00 : f32
    %299 = vector.broadcast %cst_169 : f32 to vector<2x128xf32>
    %300 = arith.addf %299, %298 : vector<2x128xf32>
    %cst_170 = arith.constant 1.000000e+00 : f32
    %301 = vector.broadcast %cst_170 : f32 to vector<2x128xf32>
    %302 = arith.divf %301, %300 : vector<2x128xf32>
    %c0_171 = arith.constant 0 : index
    %c0_172 = arith.constant 0 : index
    %303 = vector.load %arg9[%c0_171, %c0_172] : memref<2x128xf32, #tpu.memory_space<vmem>>, vector<2x128xf32>
    %304 = arith.mulf %292, %303 : vector<2x128xf32>
    %305 = arith.mulf %284, %294 : vector<2x128xf32>
    %306 = arith.addf %304, %305 : vector<2x128xf32>
    %307 = math.tanh %306 : vector<2x128xf32>
    %308 = arith.mulf %302, %307 : vector<2x128xf32>
    %c0_173 = arith.constant 0 : index
    %c0_174 = arith.constant 0 : index
    %309 = vector.load %arg9[%c0_173, %c0_174] : memref<2x128xf32, #tpu.memory_space<vmem>>, vector<2x128xf32>
    tpu.vector_store %arg9[%c0_173, %c0_174], %306 {strides = array<i32>} : memref<2x128xf32, #tpu.memory_space<vmem>>, vector<2x128xf32>,
    %c0_175 = arith.constant 0 : index
    %c0_176 = arith.constant 0 : index
    %310 = vector.load %arg8[%c0_175, %c0_176] : memref<2x128xf32, #tpu.memory_space<vmem>>, vector<2x128xf32>
    tpu.vector_store %arg8[%c0_175, %c0_176], %308 {strides = array<i32>} : memref<2x128xf32, #tpu.memory_space<vmem>>, vector<2x128xf32>,
    %311 = arith.truncf %308 : vector<2x128xf32> to vector<2x128xbf16>
    %c0_177 = arith.constant 0 : index
    %c3_178 = arith.constant 3 : index
    %c0_179 = arith.constant 0 : index
    %c0_180 = arith.constant 0 : index
    %312 = vector.load %arg6[%c0_177, %c3_178, %c0_179, %c0_180] : memref<1x8x2x128xbf16, #tpu.memory_space<vmem>>, vector<1x1x2x128xbf16>
    %313 = vector.shape_cast %312 : vector<1x1x2x128xbf16> to vector<2x128xbf16>
    %314 = vector.shape_cast %311 : vector<2x128xbf16> to vector<1x1x2x128xbf16>
    tpu.vector_store %arg6[%c0_177, %c3_178, %c0_179, %c0_180], %314 {strides = array<i32>} : memref<1x8x2x128xbf16, #tpu.memory_space<vmem>>, vector<1x1x2x128xbf16>,
    %c0_181 = arith.constant 0 : index
    %c4 = arith.constant 4 : index
    %c0_182 = arith.constant 0 : index
    %c0_183 = arith.constant 0 : index
    %315 = vector.load %arg3[%c0_181, %c4, %c0_182, %c0_183] : memref<1x8x2x512xf32, #tpu.memory_space<vmem>>, vector<1x1x2x512xf32>
    %316 = vector.shape_cast %315 : vector<1x1x2x512xf32> to vector<2x512xf32>
    %c0_184 = arith.constant 0 : index
    %c0_185 = arith.constant 0 : index
    %317 = vector.load %arg10[%c0_184, %c0_185] : memref<2x128xf32, #tpu.memory_space<vmem>>, vector<2x128xf32>
    %318 = arith.truncf %317 : vector<2x128xf32> to vector<2x128xbf16>
    %cst_186 = arith.constant dense<0.000000e+00> : vector<2x512xf32>
    %319 = tpu.matmul %318, %6, %cst_186 {dimension_numbers = #tpu.dot_dimension_numbers<[1], [0], [0], [1], [0, 0, 1, 1], [], []>} : vector<2x128xbf16>, vector<128x512xbf16>, vector<2x512xf32> -> vector<2x512xf32>
    %320 = arith.addf %316, %319 : vector<2x512xf32>
    %321 = vector.extract_strided_slice %320 {offsets = [0, 0], sizes = [2, 128], strides = [1, 1]} : vector<2x512xf32> to vector<2x128xf32>
    %cst_187 = arith.constant 0.000000e+00 : f32
    %322 = vector.broadcast %cst_187 : f32 to vector<2x128xf32>
    %323 = arith.subf %322, %321 : vector<2x128xf32>
    %324 = math.exp %323 : vector<2x128xf32>
    %cst_188 = arith.constant 1.000000e+00 : f32
    %325 = vector.broadcast %cst_188 : f32 to vector<2x128xf32>
    %326 = arith.addf %325, %324 : vector<2x128xf32>
    %cst_189 = arith.constant 1.000000e+00 : f32
    %327 = vector.broadcast %cst_189 : f32 to vector<2x128xf32>
    %328 = arith.divf %327, %326 : vector<2x128xf32>
    %329 = vector.extract_strided_slice %320 {offsets = [0, 128], sizes = [2, 128], strides = [1, 1]} : vector<2x512xf32> to vector<2x128xf32>
    %cst_190 = arith.constant 0.000000e+00 : f32
    %330 = vector.broadcast %cst_190 : f32 to vector<2x128xf32>
    %331 = arith.subf %330, %329 : vector<2x128xf32>
    %332 = math.exp %331 : vector<2x128xf32>
    %cst_191 = arith.constant 1.000000e+00 : f32
    %333 = vector.broadcast %cst_191 : f32 to vector<2x128xf32>
    %334 = arith.addf %333, %332 : vector<2x128xf32>
    %cst_192 = arith.constant 1.000000e+00 : f32
    %335 = vector.broadcast %cst_192 : f32 to vector<2x128xf32>
    %336 = arith.divf %335, %334 : vector<2x128xf32>
    %337 = vector.extract_strided_slice %320 {offsets = [0, 256], sizes = [2, 128], strides = [1, 1]} : vector<2x512xf32> to vector<2x128xf32>
    %338 = math.tanh %337 : vector<2x128xf32>
    %339 = vector.extract_strided_slice %320 {offsets = [0, 384], sizes = [2, 128], strides = [1, 1]} : vector<2x512xf32> to vector<2x128xf32>
    %cst_193 = arith.constant 0.000000e+00 : f32
    %340 = vector.broadcast %cst_193 : f32 to vector<2x128xf32>
    %341 = arith.subf %340, %339 : vector<2x128xf32>
    %342 = math.exp %341 : vector<2x128xf32>
    %cst_194 = arith.constant 1.000000e+00 : f32
    %343 = vector.broadcast %cst_194 : f32 to vector<2x128xf32>
    %344 = arith.addf %343, %342 : vector<2x128xf32>
    %cst_195 = arith.constant 1.000000e+00 : f32
    %345 = vector.broadcast %cst_195 : f32 to vector<2x128xf32>
    %346 = arith.divf %345, %344 : vector<2x128xf32>
    %c0_196 = arith.constant 0 : index
    %c0_197 = arith.constant 0 : index
    %347 = vector.load %arg11[%c0_196, %c0_197] : memref<2x128xf32, #tpu.memory_space<vmem>>, vector<2x128xf32>
    %348 = arith.mulf %336, %347 : vector<2x128xf32>
    %349 = arith.mulf %328, %338 : vector<2x128xf32>
    %350 = arith.addf %348, %349 : vector<2x128xf32>
    %351 = math.tanh %350 : vector<2x128xf32>
    %352 = arith.mulf %346, %351 : vector<2x128xf32>
    %c0_198 = arith.constant 0 : index
    %c0_199 = arith.constant 0 : index
    %353 = vector.load %arg11[%c0_198, %c0_199] : memref<2x128xf32, #tpu.memory_space<vmem>>, vector<2x128xf32>
    tpu.vector_store %arg11[%c0_198, %c0_199], %350 {strides = array<i32>} : memref<2x128xf32, #tpu.memory_space<vmem>>, vector<2x128xf32>,
    %c0_200 = arith.constant 0 : index
    %c0_201 = arith.constant 0 : index
    %354 = vector.load %arg10[%c0_200, %c0_201] : memref<2x128xf32, #tpu.memory_space<vmem>>, vector<2x128xf32>
    tpu.vector_store %arg10[%c0_200, %c0_201], %352 {strides = array<i32>} : memref<2x128xf32, #tpu.memory_space<vmem>>, vector<2x128xf32>,
    %355 = arith.truncf %352 : vector<2x128xf32> to vector<2x128xbf16>
    %c0_202 = arith.constant 0 : index
    %c4_203 = arith.constant 4 : index
    %c0_204 = arith.constant 0 : index
    %c0_205 = arith.constant 0 : index
    %356 = vector.load %arg7[%c0_202, %c4_203, %c0_204, %c0_205] : memref<1x8x2x128xbf16, #tpu.memory_space<vmem>>, vector<1x1x2x128xbf16>
    %357 = vector.shape_cast %356 : vector<1x1x2x128xbf16> to vector<2x128xbf16>
    %358 = vector.shape_cast %355 : vector<2x128xbf16> to vector<1x1x2x128xbf16>
    tpu.vector_store %arg7[%c0_202, %c4_203, %c0_204, %c0_205], %358 {strides = array<i32>} : memref<1x8x2x128xbf16, #tpu.memory_space<vmem>>, vector<1x1x2x128xbf16>,
    %c0_206 = arith.constant 0 : index
    %c4_207 = arith.constant 4 : index
    %c0_208 = arith.constant 0 : index
    %c0_209 = arith.constant 0 : index
    %359 = vector.load %arg2[%c0_206, %c4_207, %c0_208, %c0_209] : memref<1x8x2x512xf32, #tpu.memory_space<vmem>>, vector<1x1x2x512xf32>
    %360 = vector.shape_cast %359 : vector<1x1x2x512xf32> to vector<2x512xf32>
    %c0_210 = arith.constant 0 : index
    %c0_211 = arith.constant 0 : index
    %361 = vector.load %arg8[%c0_210, %c0_211] : memref<2x128xf32, #tpu.memory_space<vmem>>, vector<2x128xf32>
    %362 = arith.truncf %361 : vector<2x128xf32> to vector<2x128xbf16>
    %cst_212 = arith.constant dense<0.000000e+00> : vector<2x512xf32>
    %363 = tpu.matmul %362, %4, %cst_212 {dimension_numbers = #tpu.dot_dimension_numbers<[1], [0], [0], [1], [0, 0, 1, 1], [], []>} : vector<2x128xbf16>, vector<128x512xbf16>, vector<2x512xf32> -> vector<2x512xf32>
    %364 = arith.addf %360, %363 : vector<2x512xf32>
    %365 = vector.extract_strided_slice %364 {offsets = [0, 0], sizes = [2, 128], strides = [1, 1]} : vector<2x512xf32> to vector<2x128xf32>
    %cst_213 = arith.constant 0.000000e+00 : f32
    %366 = vector.broadcast %cst_213 : f32 to vector<2x128xf32>
    %367 = arith.subf %366, %365 : vector<2x128xf32>
    %368 = math.exp %367 : vector<2x128xf32>
    %cst_214 = arith.constant 1.000000e+00 : f32
    %369 = vector.broadcast %cst_214 : f32 to vector<2x128xf32>
    %370 = arith.addf %369, %368 : vector<2x128xf32>
    %cst_215 = arith.constant 1.000000e+00 : f32
    %371 = vector.broadcast %cst_215 : f32 to vector<2x128xf32>
    %372 = arith.divf %371, %370 : vector<2x128xf32>
    %373 = vector.extract_strided_slice %364 {offsets = [0, 128], sizes = [2, 128], strides = [1, 1]} : vector<2x512xf32> to vector<2x128xf32>
    %cst_216 = arith.constant 0.000000e+00 : f32
    %374 = vector.broadcast %cst_216 : f32 to vector<2x128xf32>
    %375 = arith.subf %374, %373 : vector<2x128xf32>
    %376 = math.exp %375 : vector<2x128xf32>
    %cst_217 = arith.constant 1.000000e+00 : f32
    %377 = vector.broadcast %cst_217 : f32 to vector<2x128xf32>
    %378 = arith.addf %377, %376 : vector<2x128xf32>
    %cst_218 = arith.constant 1.000000e+00 : f32
    %379 = vector.broadcast %cst_218 : f32 to vector<2x128xf32>
    %380 = arith.divf %379, %378 : vector<2x128xf32>
    %381 = vector.extract_strided_slice %364 {offsets = [0, 256], sizes = [2, 128], strides = [1, 1]} : vector<2x512xf32> to vector<2x128xf32>
    %382 = math.tanh %381 : vector<2x128xf32>
    %383 = vector.extract_strided_slice %364 {offsets = [0, 384], sizes = [2, 128], strides = [1, 1]} : vector<2x512xf32> to vector<2x128xf32>
    %cst_219 = arith.constant 0.000000e+00 : f32
    %384 = vector.broadcast %cst_219 : f32 to vector<2x128xf32>
    %385 = arith.subf %384, %383 : vector<2x128xf32>
    %386 = math.exp %385 : vector<2x128xf32>
    %cst_220 = arith.constant 1.000000e+00 : f32
    %387 = vector.broadcast %cst_220 : f32 to vector<2x128xf32>
    %388 = arith.addf %387, %386 : vector<2x128xf32>
    %cst_221 = arith.constant 1.000000e+00 : f32
    %389 = vector.broadcast %cst_221 : f32 to vector<2x128xf32>
    %390 = arith.divf %389, %388 : vector<2x128xf32>
    %c0_222 = arith.constant 0 : index
    %c0_223 = arith.constant 0 : index
    %391 = vector.load %arg9[%c0_222, %c0_223] : memref<2x128xf32, #tpu.memory_space<vmem>>, vector<2x128xf32>
    %392 = arith.mulf %380, %391 : vector<2x128xf32>
    %393 = arith.mulf %372, %382 : vector<2x128xf32>
    %394 = arith.addf %392, %393 : vector<2x128xf32>
    %395 = math.tanh %394 : vector<2x128xf32>
    %396 = arith.mulf %390, %395 : vector<2x128xf32>
    %c0_224 = arith.constant 0 : index
    %c0_225 = arith.constant 0 : index
    %397 = vector.load %arg9[%c0_224, %c0_225] : memref<2x128xf32, #tpu.memory_space<vmem>>, vector<2x128xf32>
    tpu.vector_store %arg9[%c0_224, %c0_225], %394 {strides = array<i32>} : memref<2x128xf32, #tpu.memory_space<vmem>>, vector<2x128xf32>,
    %c0_226 = arith.constant 0 : index
    %c0_227 = arith.constant 0 : index
    %398 = vector.load %arg8[%c0_226, %c0_227] : memref<2x128xf32, #tpu.memory_space<vmem>>, vector<2x128xf32>
    tpu.vector_store %arg8[%c0_226, %c0_227], %396 {strides = array<i32>} : memref<2x128xf32, #tpu.memory_space<vmem>>, vector<2x128xf32>,
    %399 = arith.truncf %396 : vector<2x128xf32> to vector<2x128xbf16>
    %c0_228 = arith.constant 0 : index
    %c4_229 = arith.constant 4 : index
    %c0_230 = arith.constant 0 : index
    %c0_231 = arith.constant 0 : index
    %400 = vector.load %arg6[%c0_228, %c4_229, %c0_230, %c0_231] : memref<1x8x2x128xbf16, #tpu.memory_space<vmem>>, vector<1x1x2x128xbf16>
    %401 = vector.shape_cast %400 : vector<1x1x2x128xbf16> to vector<2x128xbf16>
    %402 = vector.shape_cast %399 : vector<2x128xbf16> to vector<1x1x2x128xbf16>
    tpu.vector_store %arg6[%c0_228, %c4_229, %c0_230, %c0_231], %402 {strides = array<i32>} : memref<1x8x2x128xbf16, #tpu.memory_space<vmem>>, vector<1x1x2x128xbf16>,
    %c0_232 = arith.constant 0 : index
    %c3_233 = arith.constant 3 : index
    %c0_234 = arith.constant 0 : index
    %c0_235 = arith.constant 0 : index
    %403 = vector.load %arg3[%c0_232, %c3_233, %c0_234, %c0_235] : memref<1x8x2x512xf32, #tpu.memory_space<vmem>>, vector<1x1x2x512xf32>
    %404 = vector.shape_cast %403 : vector<1x1x2x512xf32> to vector<2x512xf32>
    %c0_236 = arith.constant 0 : index
    %c0_237 = arith.constant 0 : index
    %405 = vector.load %arg10[%c0_236, %c0_237] : memref<2x128xf32, #tpu.memory_space<vmem>>, vector<2x128xf32>
    %406 = arith.truncf %405 : vector<2x128xf32> to vector<2x128xbf16>
    %cst_238 = arith.constant dense<0.000000e+00> : vector<2x512xf32>
    %407 = tpu.matmul %406, %6, %cst_238 {dimension_numbers = #tpu.dot_dimension_numbers<[1], [0], [0], [1], [0, 0, 1, 1], [], []>} : vector<2x128xbf16>, vector<128x512xbf16>, vector<2x512xf32> -> vector<2x512xf32>
    %408 = arith.addf %404, %407 : vector<2x512xf32>
    %409 = vector.extract_strided_slice %408 {offsets = [0, 0], sizes = [2, 128], strides = [1, 1]} : vector<2x512xf32> to vector<2x128xf32>
    %cst_239 = arith.constant 0.000000e+00 : f32
    %410 = vector.broadcast %cst_239 : f32 to vector<2x128xf32>
    %411 = arith.subf %410, %409 : vector<2x128xf32>
    %412 = math.exp %411 : vector<2x128xf32>
    %cst_240 = arith.constant 1.000000e+00 : f32
    %413 = vector.broadcast %cst_240 : f32 to vector<2x128xf32>
    %414 = arith.addf %413, %412 : vector<2x128xf32>
    %cst_241 = arith.constant 1.000000e+00 : f32
    %415 = vector.broadcast %cst_241 : f32 to vector<2x128xf32>
    %416 = arith.divf %415, %414 : vector<2x128xf32>
    %417 = vector.extract_strided_slice %408 {offsets = [0, 128], sizes = [2, 128], strides = [1, 1]} : vector<2x512xf32> to vector<2x128xf32>
    %cst_242 = arith.constant 0.000000e+00 : f32
    %418 = vector.broadcast %cst_242 : f32 to vector<2x128xf32>
    %419 = arith.subf %418, %417 : vector<2x128xf32>
    %420 = math.exp %419 : vector<2x128xf32>
    %cst_243 = arith.constant 1.000000e+00 : f32
    %421 = vector.broadcast %cst_243 : f32 to vector<2x128xf32>
    %422 = arith.addf %421, %420 : vector<2x128xf32>
    %cst_244 = arith.constant 1.000000e+00 : f32
    %423 = vector.broadcast %cst_244 : f32 to vector<2x128xf32>
    %424 = arith.divf %423, %422 : vector<2x128xf32>
    %425 = vector.extract_strided_slice %408 {offsets = [0, 256], sizes = [2, 128], strides = [1, 1]} : vector<2x512xf32> to vector<2x128xf32>
    %426 = math.tanh %425 : vector<2x128xf32>
    %427 = vector.extract_strided_slice %408 {offsets = [0, 384], sizes = [2, 128], strides = [1, 1]} : vector<2x512xf32> to vector<2x128xf32>
    %cst_245 = arith.constant 0.000000e+00 : f32
    %428 = vector.broadcast %cst_245 : f32 to vector<2x128xf32>
    %429 = arith.subf %428, %427 : vector<2x128xf32>
    %430 = math.exp %429 : vector<2x128xf32>
    %cst_246 = arith.constant 1.000000e+00 : f32
    %431 = vector.broadcast %cst_246 : f32 to vector<2x128xf32>
    %432 = arith.addf %431, %430 : vector<2x128xf32>
    %cst_247 = arith.constant 1.000000e+00 : f32
    %433 = vector.broadcast %cst_247 : f32 to vector<2x128xf32>
    %434 = arith.divf %433, %432 : vector<2x128xf32>
    %c0_248 = arith.constant 0 : index
    %c0_249 = arith.constant 0 : index
    %435 = vector.load %arg11[%c0_248, %c0_249] : memref<2x128xf32, #tpu.memory_space<vmem>>, vector<2x128xf32>
    %436 = arith.mulf %424, %435 : vector<2x128xf32>
    %437 = arith.mulf %416, %426 : vector<2x128xf32>
    %438 = arith.addf %436, %437 : vector<2x128xf32>
    %439 = math.tanh %438 : vector<2x128xf32>
    %440 = arith.mulf %434, %439 : vector<2x128xf32>
    %c0_250 = arith.constant 0 : index
    %c0_251 = arith.constant 0 : index
    %441 = vector.load %arg11[%c0_250, %c0_251] : memref<2x128xf32, #tpu.memory_space<vmem>>, vector<2x128xf32>
    tpu.vector_store %arg11[%c0_250, %c0_251], %438 {strides = array<i32>} : memref<2x128xf32, #tpu.memory_space<vmem>>, vector<2x128xf32>,
    %c0_252 = arith.constant 0 : index
    %c0_253 = arith.constant 0 : index
    %442 = vector.load %arg10[%c0_252, %c0_253] : memref<2x128xf32, #tpu.memory_space<vmem>>, vector<2x128xf32>
    tpu.vector_store %arg10[%c0_252, %c0_253], %440 {strides = array<i32>} : memref<2x128xf32, #tpu.memory_space<vmem>>, vector<2x128xf32>,
    %443 = arith.truncf %440 : vector<2x128xf32> to vector<2x128xbf16>
    %c0_254 = arith.constant 0 : index
    %c3_255 = arith.constant 3 : index
    %c0_256 = arith.constant 0 : index
    %c0_257 = arith.constant 0 : index
    %444 = vector.load %arg7[%c0_254, %c3_255, %c0_256, %c0_257] : memref<1x8x2x128xbf16, #tpu.memory_space<vmem>>, vector<1x1x2x128xbf16>
    %445 = vector.shape_cast %444 : vector<1x1x2x128xbf16> to vector<2x128xbf16>
    %446 = vector.shape_cast %443 : vector<2x128xbf16> to vector<1x1x2x128xbf16>
    tpu.vector_store %arg7[%c0_254, %c3_255, %c0_256, %c0_257], %446 {strides = array<i32>} : memref<1x8x2x128xbf16, #tpu.memory_space<vmem>>, vector<1x1x2x128xbf16>,
    %c0_258 = arith.constant 0 : index
    %c5_259 = arith.constant 5 : index
    %c0_260 = arith.constant 0 : index
    %c0_261 = arith.constant 0 : index
    %447 = vector.load %arg2[%c0_258, %c5_259, %c0_260, %c0_261] : memref<1x8x2x512xf32, #tpu.memory_space<vmem>>, vector<1x1x2x512xf32>
    %448 = vector.shape_cast %447 : vector<1x1x2x512xf32> to vector<2x512xf32>
    %c0_262 = arith.constant 0 : index
    %c0_263 = arith.constant 0 : index
    %449 = vector.load %arg8[%c0_262, %c0_263] : memref<2x128xf32, #tpu.memory_space<vmem>>, vector<2x128xf32>
    %450 = arith.truncf %449 : vector<2x128xf32> to vector<2x128xbf16>
    %cst_264 = arith.constant dense<0.000000e+00> : vector<2x512xf32>
    %451 = tpu.matmul %450, %4, %cst_264 {dimension_numbers = #tpu.dot_dimension_numbers<[1], [0], [0], [1], [0, 0, 1, 1], [], []>} : vector<2x128xbf16>, vector<128x512xbf16>, vector<2x512xf32> -> vector<2x512xf32>
    %452 = arith.addf %448, %451 : vector<2x512xf32>
    %453 = vector.extract_strided_slice %452 {offsets = [0, 0], sizes = [2, 128], strides = [1, 1]} : vector<2x512xf32> to vector<2x128xf32>
    %cst_265 = arith.constant 0.000000e+00 : f32
    %454 = vector.broadcast %cst_265 : f32 to vector<2x128xf32>
    %455 = arith.subf %454, %453 : vector<2x128xf32>
    %456 = math.exp %455 : vector<2x128xf32>
    %cst_266 = arith.constant 1.000000e+00 : f32
    %457 = vector.broadcast %cst_266 : f32 to vector<2x128xf32>
    %458 = arith.addf %457, %456 : vector<2x128xf32>
    %cst_267 = arith.constant 1.000000e+00 : f32
    %459 = vector.broadcast %cst_267 : f32 to vector<2x128xf32>
    %460 = arith.divf %459, %458 : vector<2x128xf32>
    %461 = vector.extract_strided_slice %452 {offsets = [0, 128], sizes = [2, 128], strides = [1, 1]} : vector<2x512xf32> to vector<2x128xf32>
    %cst_268 = arith.constant 0.000000e+00 : f32
    %462 = vector.broadcast %cst_268 : f32 to vector<2x128xf32>
    %463 = arith.subf %462, %461 : vector<2x128xf32>
    %464 = math.exp %463 : vector<2x128xf32>
    %cst_269 = arith.constant 1.000000e+00 : f32
    %465 = vector.broadcast %cst_269 : f32 to vector<2x128xf32>
    %466 = arith.addf %465, %464 : vector<2x128xf32>
    %cst_270 = arith.constant 1.000000e+00 : f32
    %467 = vector.broadcast %cst_270 : f32 to vector<2x128xf32>
    %468 = arith.divf %467, %466 : vector<2x128xf32>
    %469 = vector.extract_strided_slice %452 {offsets = [0, 256], sizes = [2, 128], strides = [1, 1]} : vector<2x512xf32> to vector<2x128xf32>
    %470 = math.tanh %469 : vector<2x128xf32>
    %471 = vector.extract_strided_slice %452 {offsets = [0, 384], sizes = [2, 128], strides = [1, 1]} : vector<2x512xf32> to vector<2x128xf32>
    %cst_271 = arith.constant 0.000000e+00 : f32
    %472 = vector.broadcast %cst_271 : f32 to vector<2x128xf32>
    %473 = arith.subf %472, %471 : vector<2x128xf32>
    %474 = math.exp %473 : vector<2x128xf32>
    %cst_272 = arith.constant 1.000000e+00 : f32
    %475 = vector.broadcast %cst_272 : f32 to vector<2x128xf32>
    %476 = arith.addf %475, %474 : vector<2x128xf32>
    %cst_273 = arith.constant 1.000000e+00 : f32
    %477 = vector.broadcast %cst_273 : f32 to vector<2x128xf32>
    %478 = arith.divf %477, %476 : vector<2x128xf32>
    %c0_274 = arith.constant 0 : index
    %c0_275 = arith.constant 0 : index
    %479 = vector.load %arg9[%c0_274, %c0_275] : memref<2x128xf32, #tpu.memory_space<vmem>>, vector<2x128xf32>
    %480 = arith.mulf %468, %479 : vector<2x128xf32>
    %481 = arith.mulf %460, %470 : vector<2x128xf32>
    %482 = arith.addf %480, %481 : vector<2x128xf32>
    %483 = math.tanh %482 : vector<2x128xf32>
    %484 = arith.mulf %478, %483 : vector<2x128xf32>
    %c0_276 = arith.constant 0 : index
    %c0_277 = arith.constant 0 : index
    %485 = vector.load %arg9[%c0_276, %c0_277] : memref<2x128xf32, #tpu.memory_space<vmem>>, vector<2x128xf32>
    tpu.vector_store %arg9[%c0_276, %c0_277], %482 {strides = array<i32>} : memref<2x128xf32, #tpu.memory_space<vmem>>, vector<2x128xf32>,
    %c0_278 = arith.constant 0 : index
    %c0_279 = arith.constant 0 : index
    %486 = vector.load %arg8[%c0_278, %c0_279] : memref<2x128xf32, #tpu.memory_space<vmem>>, vector<2x128xf32>
    tpu.vector_store %arg8[%c0_278, %c0_279], %484 {strides = array<i32>} : memref<2x128xf32, #tpu.memory_space<vmem>>, vector<2x128xf32>,
    %487 = arith.truncf %484 : vector<2x128xf32> to vector<2x128xbf16>
    %c0_280 = arith.constant 0 : index
    %c5_281 = arith.constant 5 : index
    %c0_282 = arith.constant 0 : index
    %c0_283 = arith.constant 0 : index
    %488 = vector.load %arg6[%c0_280, %c5_281, %c0_282, %c0_283] : memref<1x8x2x128xbf16, #tpu.memory_space<vmem>>, vector<1x1x2x128xbf16>
    %489 = vector.shape_cast %488 : vector<1x1x2x128xbf16> to vector<2x128xbf16>
    %490 = vector.shape_cast %487 : vector<2x128xbf16> to vector<1x1x2x128xbf16>
    tpu.vector_store %arg6[%c0_280, %c5_281, %c0_282, %c0_283], %490 {strides = array<i32>} : memref<1x8x2x128xbf16, #tpu.memory_space<vmem>>, vector<1x1x2x128xbf16>,
    %c0_284 = arith.constant 0 : index
    %c2_285 = arith.constant 2 : index
    %c0_286 = arith.constant 0 : index
    %c0_287 = arith.constant 0 : index
    %491 = vector.load %arg3[%c0_284, %c2_285, %c0_286, %c0_287] : memref<1x8x2x512xf32, #tpu.memory_space<vmem>>, vector<1x1x2x512xf32>
    %492 = vector.shape_cast %491 : vector<1x1x2x512xf32> to vector<2x512xf32>
    %c0_288 = arith.constant 0 : index
    %c0_289 = arith.constant 0 : index
    %493 = vector.load %arg10[%c0_288, %c0_289] : memref<2x128xf32, #tpu.memory_space<vmem>>, vector<2x128xf32>
    %494 = arith.truncf %493 : vector<2x128xf32> to vector<2x128xbf16>
    %cst_290 = arith.constant dense<0.000000e+00> : vector<2x512xf32>
    %495 = tpu.matmul %494, %6, %cst_290 {dimension_numbers = #tpu.dot_dimension_numbers<[1], [0], [0], [1], [0, 0, 1, 1], [], []>} : vector<2x128xbf16>, vector<128x512xbf16>, vector<2x512xf32> -> vector<2x512xf32>
    %496 = arith.addf %492, %495 : vector<2x512xf32>
    %497 = vector.extract_strided_slice %496 {offsets = [0, 0], sizes = [2, 128], strides = [1, 1]} : vector<2x512xf32> to vector<2x128xf32>
    %cst_291 = arith.constant 0.000000e+00 : f32
    %498 = vector.broadcast %cst_291 : f32 to vector<2x128xf32>
    %499 = arith.subf %498, %497 : vector<2x128xf32>
    %500 = math.exp %499 : vector<2x128xf32>
    %cst_292 = arith.constant 1.000000e+00 : f32
    %501 = vector.broadcast %cst_292 : f32 to vector<2x128xf32>
    %502 = arith.addf %501, %500 : vector<2x128xf32>
    %cst_293 = arith.constant 1.000000e+00 : f32
    %503 = vector.broadcast %cst_293 : f32 to vector<2x128xf32>
    %504 = arith.divf %503, %502 : vector<2x128xf32>
    %505 = vector.extract_strided_slice %496 {offsets = [0, 128], sizes = [2, 128], strides = [1, 1]} : vector<2x512xf32> to vector<2x128xf32>
    %cst_294 = arith.constant 0.000000e+00 : f32
    %506 = vector.broadcast %cst_294 : f32 to vector<2x128xf32>
    %507 = arith.subf %506, %505 : vector<2x128xf32>
    %508 = math.exp %507 : vector<2x128xf32>
    %cst_295 = arith.constant 1.000000e+00 : f32
    %509 = vector.broadcast %cst_295 : f32 to vector<2x128xf32>
    %510 = arith.addf %509, %508 : vector<2x128xf32>
    %cst_296 = arith.constant 1.000000e+00 : f32
    %511 = vector.broadcast %cst_296 : f32 to vector<2x128xf32>
    %512 = arith.divf %511, %510 : vector<2x128xf32>
    %513 = vector.extract_strided_slice %496 {offsets = [0, 256], sizes = [2, 128], strides = [1, 1]} : vector<2x512xf32> to vector<2x128xf32>
    %514 = math.tanh %513 : vector<2x128xf32>
    %515 = vector.extract_strided_slice %496 {offsets = [0, 384], sizes = [2, 128], strides = [1, 1]} : vector<2x512xf32> to vector<2x128xf32>
    %cst_297 = arith.constant 0.000000e+00 : f32
    %516 = vector.broadcast %cst_297 : f32 to vector<2x128xf32>
    %517 = arith.subf %516, %515 : vector<2x128xf32>
    %518 = math.exp %517 : vector<2x128xf32>
    %cst_298 = arith.constant 1.000000e+00 : f32
    %519 = vector.broadcast %cst_298 : f32 to vector<2x128xf32>
    %520 = arith.addf %519, %518 : vector<2x128xf32>
    %cst_299 = arith.constant 1.000000e+00 : f32
    %521 = vector.broadcast %cst_299 : f32 to vector<2x128xf32>
    %522 = arith.divf %521, %520 : vector<2x128xf32>
    %c0_300 = arith.constant 0 : index
    %c0_301 = arith.constant 0 : index
    %523 = vector.load %arg11[%c0_300, %c0_301] : memref<2x128xf32, #tpu.memory_space<vmem>>, vector<2x128xf32>
    %524 = arith.mulf %512, %523 : vector<2x128xf32>
    %525 = arith.mulf %504, %514 : vector<2x128xf32>
    %526 = arith.addf %524, %525 : vector<2x128xf32>
    %527 = math.tanh %526 : vector<2x128xf32>
    %528 = arith.mulf %522, %527 : vector<2x128xf32>
    %c0_302 = arith.constant 0 : index
    %c0_303 = arith.constant 0 : index
    %529 = vector.load %arg11[%c0_302, %c0_303] : memref<2x128xf32, #tpu.memory_space<vmem>>, vector<2x128xf32>
    tpu.vector_store %arg11[%c0_302, %c0_303], %526 {strides = array<i32>} : memref<2x128xf32, #tpu.memory_space<vmem>>, vector<2x128xf32>,
    %c0_304 = arith.constant 0 : index
    %c0_305 = arith.constant 0 : index
    %530 = vector.load %arg10[%c0_304, %c0_305] : memref<2x128xf32, #tpu.memory_space<vmem>>, vector<2x128xf32>
    tpu.vector_store %arg10[%c0_304, %c0_305], %528 {strides = array<i32>} : memref<2x128xf32, #tpu.memory_space<vmem>>, vector<2x128xf32>,
    %531 = arith.truncf %528 : vector<2x128xf32> to vector<2x128xbf16>
    %c0_306 = arith.constant 0 : index
    %c2_307 = arith.constant 2 : index
    %c0_308 = arith.constant 0 : index
    %c0_309 = arith.constant 0 : index
    %532 = vector.load %arg7[%c0_306, %c2_307, %c0_308, %c0_309] : memref<1x8x2x128xbf16, #tpu.memory_space<vmem>>, vector<1x1x2x128xbf16>
    %533 = vector.shape_cast %532 : vector<1x1x2x128xbf16> to vector<2x128xbf16>
    %534 = vector.shape_cast %531 : vector<2x128xbf16> to vector<1x1x2x128xbf16>
    tpu.vector_store %arg7[%c0_306, %c2_307, %c0_308, %c0_309], %534 {strides = array<i32>} : memref<1x8x2x128xbf16, #tpu.memory_space<vmem>>, vector<1x1x2x128xbf16>,
    %c0_310 = arith.constant 0 : index
    %c6_311 = arith.constant 6 : index
    %c0_312 = arith.constant 0 : index
    %c0_313 = arith.constant 0 : index
    %535 = vector.load %arg2[%c0_310, %c6_311, %c0_312, %c0_313] : memref<1x8x2x512xf32, #tpu.memory_space<vmem>>, vector<1x1x2x512xf32>
    %536 = vector.shape_cast %535 : vector<1x1x2x512xf32> to vector<2x512xf32>
    %c0_314 = arith.constant 0 : index
    %c0_315 = arith.constant 0 : index
    %537 = vector.load %arg8[%c0_314, %c0_315] : memref<2x128xf32, #tpu.memory_space<vmem>>, vector<2x128xf32>
    %538 = arith.truncf %537 : vector<2x128xf32> to vector<2x128xbf16>
    %cst_316 = arith.constant dense<0.000000e+00> : vector<2x512xf32>
    %539 = tpu.matmul %538, %4, %cst_316 {dimension_numbers = #tpu.dot_dimension_numbers<[1], [0], [0], [1], [0, 0, 1, 1], [], []>} : vector<2x128xbf16>, vector<128x512xbf16>, vector<2x512xf32> -> vector<2x512xf32>
    %540 = arith.addf %536, %539 : vector<2x512xf32>
    %541 = vector.extract_strided_slice %540 {offsets = [0, 0], sizes = [2, 128], strides = [1, 1]} : vector<2x512xf32> to vector<2x128xf32>
    %cst_317 = arith.constant 0.000000e+00 : f32
    %542 = vector.broadcast %cst_317 : f32 to vector<2x128xf32>
    %543 = arith.subf %542, %541 : vector<2x128xf32>
    %544 = math.exp %543 : vector<2x128xf32>
    %cst_318 = arith.constant 1.000000e+00 : f32
    %545 = vector.broadcast %cst_318 : f32 to vector<2x128xf32>
    %546 = arith.addf %545, %544 : vector<2x128xf32>
    %cst_319 = arith.constant 1.000000e+00 : f32
    %547 = vector.broadcast %cst_319 : f32 to vector<2x128xf32>
    %548 = arith.divf %547, %546 : vector<2x128xf32>
    %549 = vector.extract_strided_slice %540 {offsets = [0, 128], sizes = [2, 128], strides = [1, 1]} : vector<2x512xf32> to vector<2x128xf32>
    %cst_320 = arith.constant 0.000000e+00 : f32
    %550 = vector.broadcast %cst_320 : f32 to vector<2x128xf32>
    %551 = arith.subf %550, %549 : vector<2x128xf32>
    %552 = math.exp %551 : vector<2x128xf32>
    %cst_321 = arith.constant 1.000000e+00 : f32
    %553 = vector.broadcast %cst_321 : f32 to vector<2x128xf32>
    %554 = arith.addf %553, %552 : vector<2x128xf32>
    %cst_322 = arith.constant 1.000000e+00 : f32
    %555 = vector.broadcast %cst_322 : f32 to vector<2x128xf32>
    %556 = arith.divf %555, %554 : vector<2x128xf32>
    %557 = vector.extract_strided_slice %540 {offsets = [0, 256], sizes = [2, 128], strides = [1, 1]} : vector<2x512xf32> to vector<2x128xf32>
    %558 = math.tanh %557 : vector<2x128xf32>
    %559 = vector.extract_strided_slice %540 {offsets = [0, 384], sizes = [2, 128], strides = [1, 1]} : vector<2x512xf32> to vector<2x128xf32>
    %cst_323 = arith.constant 0.000000e+00 : f32
    %560 = vector.broadcast %cst_323 : f32 to vector<2x128xf32>
    %561 = arith.subf %560, %559 : vector<2x128xf32>
    %562 = math.exp %561 : vector<2x128xf32>
    %cst_324 = arith.constant 1.000000e+00 : f32
    %563 = vector.broadcast %cst_324 : f32 to vector<2x128xf32>
    %564 = arith.addf %563, %562 : vector<2x128xf32>
    %cst_325 = arith.constant 1.000000e+00 : f32
    %565 = vector.broadcast %cst_325 : f32 to vector<2x128xf32>
    %566 = arith.divf %565, %564 : vector<2x128xf32>
    %c0_326 = arith.constant 0 : index
    %c0_327 = arith.constant 0 : index
    %567 = vector.load %arg9[%c0_326, %c0_327] : memref<2x128xf32, #tpu.memory_space<vmem>>, vector<2x128xf32>
    %568 = arith.mulf %556, %567 : vector<2x128xf32>
    %569 = arith.mulf %548, %558 : vector<2x128xf32>
    %570 = arith.addf %568, %569 : vector<2x128xf32>
    %571 = math.tanh %570 : vector<2x128xf32>
    %572 = arith.mulf %566, %571 : vector<2x128xf32>
    %c0_328 = arith.constant 0 : index
    %c0_329 = arith.constant 0 : index
    %573 = vector.load %arg9[%c0_328, %c0_329] : memref<2x128xf32, #tpu.memory_space<vmem>>, vector<2x128xf32>
    tpu.vector_store %arg9[%c0_328, %c0_329], %570 {strides = array<i32>} : memref<2x128xf32, #tpu.memory_space<vmem>>, vector<2x128xf32>,
    %c0_330 = arith.constant 0 : index
    %c0_331 = arith.constant 0 : index
    %574 = vector.load %arg8[%c0_330, %c0_331] : memref<2x128xf32, #tpu.memory_space<vmem>>, vector<2x128xf32>
    tpu.vector_store %arg8[%c0_330, %c0_331], %572 {strides = array<i32>} : memref<2x128xf32, #tpu.memory_space<vmem>>, vector<2x128xf32>,
    %575 = arith.truncf %572 : vector<2x128xf32> to vector<2x128xbf16>
    %c0_332 = arith.constant 0 : index
    %c6_333 = arith.constant 6 : index
    %c0_334 = arith.constant 0 : index
    %c0_335 = arith.constant 0 : index
    %576 = vector.load %arg6[%c0_332, %c6_333, %c0_334, %c0_335] : memref<1x8x2x128xbf16, #tpu.memory_space<vmem>>, vector<1x1x2x128xbf16>
    %577 = vector.shape_cast %576 : vector<1x1x2x128xbf16> to vector<2x128xbf16>
    %578 = vector.shape_cast %575 : vector<2x128xbf16> to vector<1x1x2x128xbf16>
    tpu.vector_store %arg6[%c0_332, %c6_333, %c0_334, %c0_335], %578 {strides = array<i32>} : memref<1x8x2x128xbf16, #tpu.memory_space<vmem>>, vector<1x1x2x128xbf16>,
    %c0_336 = arith.constant 0 : index
    %c1_337 = arith.constant 1 : index
    %c0_338 = arith.constant 0 : index
    %c0_339 = arith.constant 0 : index
    %579 = vector.load %arg3[%c0_336, %c1_337, %c0_338, %c0_339] : memref<1x8x2x512xf32, #tpu.memory_space<vmem>>, vector<1x1x2x512xf32>
    %580 = vector.shape_cast %579 : vector<1x1x2x512xf32> to vector<2x512xf32>
    %c0_340 = arith.constant 0 : index
    %c0_341 = arith.constant 0 : index
    %581 = vector.load %arg10[%c0_340, %c0_341] : memref<2x128xf32, #tpu.memory_space<vmem>>, vector<2x128xf32>
    %582 = arith.truncf %581 : vector<2x128xf32> to vector<2x128xbf16>
    %cst_342 = arith.constant dense<0.000000e+00> : vector<2x512xf32>
    %583 = tpu.matmul %582, %6, %cst_342 {dimension_numbers = #tpu.dot_dimension_numbers<[1], [0], [0], [1], [0, 0, 1, 1], [], []>} : vector<2x128xbf16>, vector<128x512xbf16>, vector<2x512xf32> -> vector<2x512xf32>
    %584 = arith.addf %580, %583 : vector<2x512xf32>
    %585 = vector.extract_strided_slice %584 {offsets = [0, 0], sizes = [2, 128], strides = [1, 1]} : vector<2x512xf32> to vector<2x128xf32>
    %cst_343 = arith.constant 0.000000e+00 : f32
    %586 = vector.broadcast %cst_343 : f32 to vector<2x128xf32>
    %587 = arith.subf %586, %585 : vector<2x128xf32>
    %588 = math.exp %587 : vector<2x128xf32>
    %cst_344 = arith.constant 1.000000e+00 : f32
    %589 = vector.broadcast %cst_344 : f32 to vector<2x128xf32>
    %590 = arith.addf %589, %588 : vector<2x128xf32>
    %cst_345 = arith.constant 1.000000e+00 : f32
    %591 = vector.broadcast %cst_345 : f32 to vector<2x128xf32>
    %592 = arith.divf %591, %590 : vector<2x128xf32>
    %593 = vector.extract_strided_slice %584 {offsets = [0, 128], sizes = [2, 128], strides = [1, 1]} : vector<2x512xf32> to vector<2x128xf32>
    %cst_346 = arith.constant 0.000000e+00 : f32
    %594 = vector.broadcast %cst_346 : f32 to vector<2x128xf32>
    %595 = arith.subf %594, %593 : vector<2x128xf32>
    %596 = math.exp %595 : vector<2x128xf32>
    %cst_347 = arith.constant 1.000000e+00 : f32
    %597 = vector.broadcast %cst_347 : f32 to vector<2x128xf32>
    %598 = arith.addf %597, %596 : vector<2x128xf32>
    %cst_348 = arith.constant 1.000000e+00 : f32
    %599 = vector.broadcast %cst_348 : f32 to vector<2x128xf32>
    %600 = arith.divf %599, %598 : vector<2x128xf32>
    %601 = vector.extract_strided_slice %584 {offsets = [0, 256], sizes = [2, 128], strides = [1, 1]} : vector<2x512xf32> to vector<2x128xf32>
    %602 = math.tanh %601 : vector<2x128xf32>
    %603 = vector.extract_strided_slice %584 {offsets = [0, 384], sizes = [2, 128], strides = [1, 1]} : vector<2x512xf32> to vector<2x128xf32>
    %cst_349 = arith.constant 0.000000e+00 : f32
    %604 = vector.broadcast %cst_349 : f32 to vector<2x128xf32>
    %605 = arith.subf %604, %603 : vector<2x128xf32>
    %606 = math.exp %605 : vector<2x128xf32>
    %cst_350 = arith.constant 1.000000e+00 : f32
    %607 = vector.broadcast %cst_350 : f32 to vector<2x128xf32>
    %608 = arith.addf %607, %606 : vector<2x128xf32>
    %cst_351 = arith.constant 1.000000e+00 : f32
    %609 = vector.broadcast %cst_351 : f32 to vector<2x128xf32>
    %610 = arith.divf %609, %608 : vector<2x128xf32>
    %c0_352 = arith.constant 0 : index
    %c0_353 = arith.constant 0 : index
    %611 = vector.load %arg11[%c0_352, %c0_353] : memref<2x128xf32, #tpu.memory_space<vmem>>, vector<2x128xf32>
    %612 = arith.mulf %600, %611 : vector<2x128xf32>
    %613 = arith.mulf %592, %602 : vector<2x128xf32>
    %614 = arith.addf %612, %613 : vector<2x128xf32>
    %615 = math.tanh %614 : vector<2x128xf32>
    %616 = arith.mulf %610, %615 : vector<2x128xf32>
    %c0_354 = arith.constant 0 : index
    %c0_355 = arith.constant 0 : index
    %617 = vector.load %arg11[%c0_354, %c0_355] : memref<2x128xf32, #tpu.memory_space<vmem>>, vector<2x128xf32>
    tpu.vector_store %arg11[%c0_354, %c0_355], %614 {strides = array<i32>} : memref<2x128xf32, #tpu.memory_space<vmem>>, vector<2x128xf32>,
    %c0_356 = arith.constant 0 : index
    %c0_357 = arith.constant 0 : index
    %618 = vector.load %arg10[%c0_356, %c0_357] : memref<2x128xf32, #tpu.memory_space<vmem>>, vector<2x128xf32>
    tpu.vector_store %arg10[%c0_356, %c0_357], %616 {strides = array<i32>} : memref<2x128xf32, #tpu.memory_space<vmem>>, vector<2x128xf32>,
    %619 = arith.truncf %616 : vector<2x128xf32> to vector<2x128xbf16>
    %c0_358 = arith.constant 0 : index
    %c1_359 = arith.constant 1 : index
    %c0_360 = arith.constant 0 : index
    %c0_361 = arith.constant 0 : index
    %620 = vector.load %arg7[%c0_358, %c1_359, %c0_360, %c0_361] : memref<1x8x2x128xbf16, #tpu.memory_space<vmem>>, vector<1x1x2x128xbf16>
    %621 = vector.shape_cast %620 : vector<1x1x2x128xbf16> to vector<2x128xbf16>
    %622 = vector.shape_cast %619 : vector<2x128xbf16> to vector<1x1x2x128xbf16>
    tpu.vector_store %arg7[%c0_358, %c1_359, %c0_360, %c0_361], %622 {strides = array<i32>} : memref<1x8x2x128xbf16, #tpu.memory_space<vmem>>, vector<1x1x2x128xbf16>,
    %c0_362 = arith.constant 0 : index
    %c7_363 = arith.constant 7 : index
    %c0_364 = arith.constant 0 : index
    %c0_365 = arith.constant 0 : index
    %623 = vector.load %arg2[%c0_362, %c7_363, %c0_364, %c0_365] : memref<1x8x2x512xf32, #tpu.memory_space<vmem>>, vector<1x1x2x512xf32>
    %624 = vector.shape_cast %623 : vector<1x1x2x512xf32> to vector<2x512xf32>
    %c0_366 = arith.constant 0 : index
    %c0_367 = arith.constant 0 : index
    %625 = vector.load %arg8[%c0_366, %c0_367] : memref<2x128xf32, #tpu.memory_space<vmem>>, vector<2x128xf32>
    %626 = arith.truncf %625 : vector<2x128xf32> to vector<2x128xbf16>
    %cst_368 = arith.constant dense<0.000000e+00> : vector<2x512xf32>
    %627 = tpu.matmul %626, %4, %cst_368 {dimension_numbers = #tpu.dot_dimension_numbers<[1], [0], [0], [1], [0, 0, 1, 1], [], []>} : vector<2x128xbf16>, vector<128x512xbf16>, vector<2x512xf32> -> vector<2x512xf32>
    %628 = arith.addf %624, %627 : vector<2x512xf32>
    %629 = vector.extract_strided_slice %628 {offsets = [0, 0], sizes = [2, 128], strides = [1, 1]} : vector<2x512xf32> to vector<2x128xf32>
    %cst_369 = arith.constant 0.000000e+00 : f32
    %630 = vector.broadcast %cst_369 : f32 to vector<2x128xf32>
    %631 = arith.subf %630, %629 : vector<2x128xf32>
    %632 = math.exp %631 : vector<2x128xf32>
    %cst_370 = arith.constant 1.000000e+00 : f32
    %633 = vector.broadcast %cst_370 : f32 to vector<2x128xf32>
    %634 = arith.addf %633, %632 : vector<2x128xf32>
    %cst_371 = arith.constant 1.000000e+00 : f32
    %635 = vector.broadcast %cst_371 : f32 to vector<2x128xf32>
    %636 = arith.divf %635, %634 : vector<2x128xf32>
    %637 = vector.extract_strided_slice %628 {offsets = [0, 128], sizes = [2, 128], strides = [1, 1]} : vector<2x512xf32> to vector<2x128xf32>
    %cst_372 = arith.constant 0.000000e+00 : f32
    %638 = vector.broadcast %cst_372 : f32 to vector<2x128xf32>
    %639 = arith.subf %638, %637 : vector<2x128xf32>
    %640 = math.exp %639 : vector<2x128xf32>
    %cst_373 = arith.constant 1.000000e+00 : f32
    %641 = vector.broadcast %cst_373 : f32 to vector<2x128xf32>
    %642 = arith.addf %641, %640 : vector<2x128xf32>
    %cst_374 = arith.constant 1.000000e+00 : f32
    %643 = vector.broadcast %cst_374 : f32 to vector<2x128xf32>
    %644 = arith.divf %643, %642 : vector<2x128xf32>
    %645 = vector.extract_strided_slice %628 {offsets = [0, 256], sizes = [2, 128], strides = [1, 1]} : vector<2x512xf32> to vector<2x128xf32>
    %646 = math.tanh %645 : vector<2x128xf32>
    %647 = vector.extract_strided_slice %628 {offsets = [0, 384], sizes = [2, 128], strides = [1, 1]} : vector<2x512xf32> to vector<2x128xf32>
    %cst_375 = arith.constant 0.000000e+00 : f32
    %648 = vector.broadcast %cst_375 : f32 to vector<2x128xf32>
    %649 = arith.subf %648, %647 : vector<2x128xf32>
    %650 = math.exp %649 : vector<2x128xf32>
    %cst_376 = arith.constant 1.000000e+00 : f32
    %651 = vector.broadcast %cst_376 : f32 to vector<2x128xf32>
    %652 = arith.addf %651, %650 : vector<2x128xf32>
    %cst_377 = arith.constant 1.000000e+00 : f32
    %653 = vector.broadcast %cst_377 : f32 to vector<2x128xf32>
    %654 = arith.divf %653, %652 : vector<2x128xf32>
    %c0_378 = arith.constant 0 : index
    %c0_379 = arith.constant 0 : index
    %655 = vector.load %arg9[%c0_378, %c0_379] : memref<2x128xf32, #tpu.memory_space<vmem>>, vector<2x128xf32>
    %656 = arith.mulf %644, %655 : vector<2x128xf32>
    %657 = arith.mulf %636, %646 : vector<2x128xf32>
    %658 = arith.addf %656, %657 : vector<2x128xf32>
    %659 = math.tanh %658 : vector<2x128xf32>
    %660 = arith.mulf %654, %659 : vector<2x128xf32>
    %c0_380 = arith.constant 0 : index
    %c0_381 = arith.constant 0 : index
    %661 = vector.load %arg9[%c0_380, %c0_381] : memref<2x128xf32, #tpu.memory_space<vmem>>, vector<2x128xf32>
    tpu.vector_store %arg9[%c0_380, %c0_381], %658 {strides = array<i32>} : memref<2x128xf32, #tpu.memory_space<vmem>>, vector<2x128xf32>,
    %c0_382 = arith.constant 0 : index
    %c0_383 = arith.constant 0 : index
    %662 = vector.load %arg8[%c0_382, %c0_383] : memref<2x128xf32, #tpu.memory_space<vmem>>, vector<2x128xf32>
    tpu.vector_store %arg8[%c0_382, %c0_383], %660 {strides = array<i32>} : memref<2x128xf32, #tpu.memory_space<vmem>>, vector<2x128xf32>,
    %663 = arith.truncf %660 : vector<2x128xf32> to vector<2x128xbf16>
    %c0_384 = arith.constant 0 : index
    %c7_385 = arith.constant 7 : index
    %c0_386 = arith.constant 0 : index
    %c0_387 = arith.constant 0 : index
    %664 = vector.load %arg6[%c0_384, %c7_385, %c0_386, %c0_387] : memref<1x8x2x128xbf16, #tpu.memory_space<vmem>>, vector<1x1x2x128xbf16>
    %665 = vector.shape_cast %664 : vector<1x1x2x128xbf16> to vector<2x128xbf16>
    %666 = vector.shape_cast %663 : vector<2x128xbf16> to vector<1x1x2x128xbf16>
    tpu.vector_store %arg6[%c0_384, %c7_385, %c0_386, %c0_387], %666 {strides = array<i32>} : memref<1x8x2x128xbf16, #tpu.memory_space<vmem>>, vector<1x1x2x128xbf16>,
    %c0_388 = arith.constant 0 : index
    %c0_389 = arith.constant 0 : index
    %c0_390 = arith.constant 0 : index
    %c0_391 = arith.constant 0 : index
    %667 = vector.load %arg3[%c0_388, %c0_389, %c0_390, %c0_391] : memref<1x8x2x512xf32, #tpu.memory_space<vmem>>, vector<1x1x2x512xf32>
    %668 = vector.shape_cast %667 : vector<1x1x2x512xf32> to vector<2x512xf32>
    %c0_392 = arith.constant 0 : index
    %c0_393 = arith.constant 0 : index
    %669 = vector.load %arg10[%c0_392, %c0_393] : memref<2x128xf32, #tpu.memory_space<vmem>>, vector<2x128xf32>
    %670 = arith.truncf %669 : vector<2x128xf32> to vector<2x128xbf16>
    %cst_394 = arith.constant dense<0.000000e+00> : vector<2x512xf32>
    %671 = tpu.matmul %670, %6, %cst_394 {dimension_numbers = #tpu.dot_dimension_numbers<[1], [0], [0], [1], [0, 0, 1, 1], [], []>} : vector<2x128xbf16>, vector<128x512xbf16>, vector<2x512xf32> -> vector<2x512xf32>
    %672 = arith.addf %668, %671 : vector<2x512xf32>
    %673 = vector.extract_strided_slice %672 {offsets = [0, 0], sizes = [2, 128], strides = [1, 1]} : vector<2x512xf32> to vector<2x128xf32>
    %cst_395 = arith.constant 0.000000e+00 : f32
    %674 = vector.broadcast %cst_395 : f32 to vector<2x128xf32>
    %675 = arith.subf %674, %673 : vector<2x128xf32>
    %676 = math.exp %675 : vector<2x128xf32>
    %cst_396 = arith.constant 1.000000e+00 : f32
    %677 = vector.broadcast %cst_396 : f32 to vector<2x128xf32>
    %678 = arith.addf %677, %676 : vector<2x128xf32>
    %cst_397 = arith.constant 1.000000e+00 : f32
    %679 = vector.broadcast %cst_397 : f32 to vector<2x128xf32>
    %680 = arith.divf %679, %678 : vector<2x128xf32>
    %681 = vector.extract_strided_slice %672 {offsets = [0, 128], sizes = [2, 128], strides = [1, 1]} : vector<2x512xf32> to vector<2x128xf32>
    %cst_398 = arith.constant 0.000000e+00 : f32
    %682 = vector.broadcast %cst_398 : f32 to vector<2x128xf32>
    %683 = arith.subf %682, %681 : vector<2x128xf32>
    %684 = math.exp %683 : vector<2x128xf32>
    %cst_399 = arith.constant 1.000000e+00 : f32
    %685 = vector.broadcast %cst_399 : f32 to vector<2x128xf32>
    %686 = arith.addf %685, %684 : vector<2x128xf32>
    %cst_400 = arith.constant 1.000000e+00 : f32
    %687 = vector.broadcast %cst_400 : f32 to vector<2x128xf32>
    %688 = arith.divf %687, %686 : vector<2x128xf32>
    %689 = vector.extract_strided_slice %672 {offsets = [0, 256], sizes = [2, 128], strides = [1, 1]} : vector<2x512xf32> to vector<2x128xf32>
    %690 = math.tanh %689 : vector<2x128xf32>
    %691 = vector.extract_strided_slice %672 {offsets = [0, 384], sizes = [2, 128], strides = [1, 1]} : vector<2x512xf32> to vector<2x128xf32>
    %cst_401 = arith.constant 0.000000e+00 : f32
    %692 = vector.broadcast %cst_401 : f32 to vector<2x128xf32>
    %693 = arith.subf %692, %691 : vector<2x128xf32>
    %694 = math.exp %693 : vector<2x128xf32>
    %cst_402 = arith.constant 1.000000e+00 : f32
    %695 = vector.broadcast %cst_402 : f32 to vector<2x128xf32>
    %696 = arith.addf %695, %694 : vector<2x128xf32>
    %cst_403 = arith.constant 1.000000e+00 : f32
    %697 = vector.broadcast %cst_403 : f32 to vector<2x128xf32>
    %698 = arith.divf %697, %696 : vector<2x128xf32>
    %c0_404 = arith.constant 0 : index
    %c0_405 = arith.constant 0 : index
    %699 = vector.load %arg11[%c0_404, %c0_405] : memref<2x128xf32, #tpu.memory_space<vmem>>, vector<2x128xf32>
    %700 = arith.mulf %688, %699 : vector<2x128xf32>
    %701 = arith.mulf %680, %690 : vector<2x128xf32>
    %702 = arith.addf %700, %701 : vector<2x128xf32>
    %703 = math.tanh %702 : vector<2x128xf32>
    %704 = arith.mulf %698, %703 : vector<2x128xf32>
    %c0_406 = arith.constant 0 : index
    %c0_407 = arith.constant 0 : index
    %705 = vector.load %arg11[%c0_406, %c0_407] : memref<2x128xf32, #tpu.memory_space<vmem>>, vector<2x128xf32>
    tpu.vector_store %arg11[%c0_406, %c0_407], %702 {strides = array<i32>} : memref<2x128xf32, #tpu.memory_space<vmem>>, vector<2x128xf32>,
    %c0_408 = arith.constant 0 : index
    %c0_409 = arith.constant 0 : index
    %706 = vector.load %arg10[%c0_408, %c0_409] : memref<2x128xf32, #tpu.memory_space<vmem>>, vector<2x128xf32>
    tpu.vector_store %arg10[%c0_408, %c0_409], %704 {strides = array<i32>} : memref<2x128xf32, #tpu.memory_space<vmem>>, vector<2x128xf32>,
    %707 = arith.truncf %704 : vector<2x128xf32> to vector<2x128xbf16>
    %c0_410 = arith.constant 0 : index
    %c0_411 = arith.constant 0 : index
    %c0_412 = arith.constant 0 : index
    %c0_413 = arith.constant 0 : index
    %708 = vector.load %arg7[%c0_410, %c0_411, %c0_412, %c0_413] : memref<1x8x2x128xbf16, #tpu.memory_space<vmem>>, vector<1x1x2x128xbf16>
    %709 = vector.shape_cast %708 : vector<1x1x2x128xbf16> to vector<2x128xbf16>
    %710 = vector.shape_cast %707 : vector<2x128xbf16> to vector<1x1x2x128xbf16>
    tpu.vector_store %arg7[%c0_410, %c0_411, %c0_412, %c0_413], %710 {strides = array<i32>} : memref<1x8x2x128xbf16, #tpu.memory_space<vmem>>, vector<1x1x2x128xbf16>,
    return
  }
  func.func @transform_0(%arg0: i32, %arg1: i32) -> (i32, i32, i32, i32) {
    %c0_i32 = arith.constant 0 : i32
    %c0_i32_0 = arith.constant 0 : i32
    %c0_i32_1 = arith.constant 0 : i32
    return %arg0, %arg1, %c0_i32, %c0_i32_0 : i32, i32, i32, i32
  }
  func.func @transform_1(%arg0: i32, %arg1: i32) -> (i32, i32, i32, i32) {
    %c0_i32 = arith.constant 0 : i32
    %0 = arith.subi %c0_i32, %arg1 : i32
    %c0_i32_0 = arith.constant 0 : i32
    %c1_i32 = arith.constant 1 : i32
    %c0_i32_1 = arith.constant 0 : i32
    return %arg0, %0, %c0_i32_0, %c1_i32 : i32, i32, i32, i32
  }
  func.func @transform_2(%arg0: i32, %arg1: i32) -> (i32, i32, i32) {
    %c0_i32 = arith.constant 0 : i32
    %c0_i32_0 = arith.constant 0 : i32
    %c0_i32_1 = arith.constant 0 : i32
    return %arg0, %c0_i32, %c0_i32_0 : i32, i32, i32
  }
  func.func @transform_3(%arg0: i32, %arg1: i32) -> (i32, i32, i32) {
    %c0_i32 = arith.constant 0 : i32
    %c0_i32_0 = arith.constant 0 : i32
    %c0_i32_1 = arith.constant 0 : i32
    return %arg0, %c0_i32, %c0_i32_0 : i32, i32, i32
  }
  func.func @transform_4(%arg0: i32, %arg1: i32) -> (i32, i32, i32, i32) {
    %c0_i32 = arith.constant 0 : i32
    %c0_i32_0 = arith.constant 0 : i32
    %c0_i32_1 = arith.constant 0 : i32
    return %arg0, %arg1, %c0_i32, %c0_i32_0 : i32, i32, i32, i32
  }
  func.func @transform_5(%arg0: i32, %arg1: i32) -> (i32, i32, i32, i32) {
    %c0_i32 = arith.constant 0 : i32
    %0 = arith.subi %c0_i32, %arg1 : i32
    %c0_i32_0 = arith.constant 0 : i32
    %c0_i32_1 = arith.constant 0 : i32
    %c0_i32_2 = arith.constant 0 : i32
    return %arg0, %0, %c0_i32_0, %c0_i32_1 : i32, i32, i32, i32
  }
}

module attributes {stable_mosaic.version = 11 : i64} {
  func.func @dense2_kernel(%arg0: i32, %arg1: i32, %arg2: memref<1x16x128xbf16, #tpu.memory_space<vmem>>, %arg3: memref<1x16x128xbf16, #tpu.memory_space<vmem>>, %arg4: memref<1x128x128xbf16, #tpu.memory_space<vmem>>, %arg5: memref<1x128x128xbf16, #tpu.memory_space<vmem>>, %arg6: memref<1x1x128xf32, #tpu.memory_space<vmem>>, %arg7: memref<1x16x128xf32, #tpu.memory_space<vmem>>) attributes {dimension_semantics = [#tpu.dimension_semantics<parallel>, #tpu.dimension_semantics<parallel>], iteration_bounds = array<i64: 2, 1>, scalar_prefetch = 0 : i64, scratch_operands = 0 : i64, tpu.core_type = #tpu.core_type<tc>, window_params = [{transform_indices = @transform_0, window_bounds = array<i64: 1, 16, 128>}, {transform_indices = @transform_1, window_bounds = array<i64: 1, 16, 128>}, {transform_indices = @transform_2, window_bounds = array<i64: 1, 128, 128>}, {transform_indices = @transform_3, window_bounds = array<i64: 1, 128, 128>}, {transform_indices = @transform_4, window_bounds = array<i64: 1, 1, 128>}, {transform_indices = @transform_5, window_bounds = array<i64: 1, 16, 128>}]} {
    %c0 = arith.constant 0 : index
    %c0_0 = arith.constant 0 : index
    %c0_1 = arith.constant 0 : index
    %0 = vector.load %arg2[%c0, %c0_0, %c0_1] : memref<1x16x128xbf16, #tpu.memory_space<vmem>>, vector<1x16x128xbf16>
    %1 = vector.shape_cast %0 : vector<1x16x128xbf16> to vector<16x128xbf16>
    %c0_2 = arith.constant 0 : index
    %c0_3 = arith.constant 0 : index
    %c0_4 = arith.constant 0 : index
    %2 = vector.load %arg4[%c0_2, %c0_3, %c0_4] : memref<1x128x128xbf16, #tpu.memory_space<vmem>>, vector<1x128x128xbf16>
    %3 = vector.shape_cast %2 : vector<1x128x128xbf16> to vector<128x128xbf16>
    %cst = arith.constant dense<0.000000e+00> : vector<16x128xf32>
    %4 = tpu.matmul %1, %3, %cst {dimension_numbers = #tpu.dot_dimension_numbers<[1], [0], [0], [1], [0, 0, 1, 1], [], []>} : vector<16x128xbf16>, vector<128x128xbf16>, vector<16x128xf32> -> vector<16x128xf32>
    %c0_5 = arith.constant 0 : index
    %c0_6 = arith.constant 0 : index
    %c0_7 = arith.constant 0 : index
    %5 = vector.load %arg3[%c0_5, %c0_6, %c0_7] : memref<1x16x128xbf16, #tpu.memory_space<vmem>>, vector<1x16x128xbf16>
    %6 = vector.shape_cast %5 : vector<1x16x128xbf16> to vector<16x128xbf16>
    %c0_8 = arith.constant 0 : index
    %c0_9 = arith.constant 0 : index
    %c0_10 = arith.constant 0 : index
    %7 = vector.load %arg5[%c0_8, %c0_9, %c0_10] : memref<1x128x128xbf16, #tpu.memory_space<vmem>>, vector<1x128x128xbf16>
    %8 = vector.shape_cast %7 : vector<1x128x128xbf16> to vector<128x128xbf16>
    %cst_11 = arith.constant dense<0.000000e+00> : vector<16x128xf32>
    %9 = tpu.matmul %6, %8, %cst_11 {dimension_numbers = #tpu.dot_dimension_numbers<[1], [0], [0], [1], [0, 0, 1, 1], [], []>} : vector<16x128xbf16>, vector<128x128xbf16>, vector<16x128xf32> -> vector<16x128xf32>
    %10 = arith.addf %4, %9 : vector<16x128xf32>
    %c0_12 = arith.constant 0 : index
    %c0_13 = arith.constant 0 : index
    %c0_14 = arith.constant 0 : index
    %11 = vector.load %arg6[%c0_12, %c0_13, %c0_14] : memref<1x1x128xf32, #tpu.memory_space<vmem>>, vector<1x1x128xf32>
    %12 = vector.shape_cast %11 : vector<1x1x128xf32> to vector<1x128xf32>
    %13 = vector.broadcast %12 : vector<1x128xf32> to vector<16x128xf32>
    %14 = arith.addf %10, %13 : vector<16x128xf32>
    %c0_15 = arith.constant 0 : index
    %c0_16 = arith.constant 0 : index
    %c0_17 = arith.constant 0 : index
    %15 = vector.load %arg7[%c0_15, %c0_16, %c0_17] : memref<1x16x128xf32, #tpu.memory_space<vmem>>, vector<1x16x128xf32>
    %16 = vector.shape_cast %15 : vector<1x16x128xf32> to vector<16x128xf32>
    %17 = vector.shape_cast %14 : vector<16x128xf32> to vector<1x16x128xf32>
    tpu.vector_store %arg7[%c0_15, %c0_16, %c0_17], %17 {strides = array<i32>} : memref<1x16x128xf32, #tpu.memory_space<vmem>>, vector<1x16x128xf32>,
    return
  }
  func.func @transform_0(%arg0: i32, %arg1: i32) -> (i32, i32, i32) {
    %c0_i32 = arith.constant 0 : i32
    %c0_i32_0 = arith.constant 0 : i32
    return %arg0, %arg1, %c0_i32 : i32, i32, i32
  }
  func.func @transform_1(%arg0: i32, %arg1: i32) -> (i32, i32, i32) {
    %c0_i32 = arith.constant 0 : i32
    %c0_i32_0 = arith.constant 0 : i32
    return %arg0, %arg1, %c0_i32 : i32, i32, i32
  }
  func.func @transform_2(%arg0: i32, %arg1: i32) -> (i32, i32, i32) {
    %c0_i32 = arith.constant 0 : i32
    %c0_i32_0 = arith.constant 0 : i32
    %c0_i32_1 = arith.constant 0 : i32
    return %arg0, %c0_i32, %c0_i32_0 : i32, i32, i32
  }
  func.func @transform_3(%arg0: i32, %arg1: i32) -> (i32, i32, i32) {
    %c0_i32 = arith.constant 0 : i32
    %c0_i32_0 = arith.constant 0 : i32
    %c0_i32_1 = arith.constant 0 : i32
    return %arg0, %c0_i32, %c0_i32_0 : i32, i32, i32
  }
  func.func @transform_4(%arg0: i32, %arg1: i32) -> (i32, i32, i32) {
    %c0_i32 = arith.constant 0 : i32
    %c0_i32_0 = arith.constant 0 : i32
    %c0_i32_1 = arith.constant 0 : i32
    return %arg0, %c0_i32, %c0_i32_0 : i32, i32, i32
  }
  func.func @transform_5(%arg0: i32, %arg1: i32) -> (i32, i32, i32) {
    %c0_i32 = arith.constant 0 : i32
    %c0_i32_0 = arith.constant 0 : i32
    return %arg0, %arg1, %c0_i32 : i32, i32, i32
  }
}

</mosaic_0001>

<bundles_post_ra>
// kernel: transcriber_forward.5
= control target key start
LH: loop header
LB: loop body
LE: loop exit
PB: predicated region body
PF: predicated region fallthrough
CT: control target
= control target key end

     0   :  { %s1578_s12 = smov 0   ;;  %s1580_s13 = smov 0   ;;  %s1785_s0 = inlined_call_operand.vmem [shape: bf16[1,16,256], index: 0, kind: input, shape index: {}]   ;;  %s1786_s1 = inlined_call_operand.vmem [shape: bf16[2,256,1024], index: 1, kind: input, shape index: {}]   ;;  %s1787_s2 = inlined_call_operand.vmem [shape: f32[2,1,1024], index: 2, kind: input, shape index: {}]   ;;  %s1788_s3 = inlined_call_operand.vmem [shape: f32[2,16,1024], index: 3, kind: output, shape index: {}]  }
   0x1   :  { %s1582_s14 = smov 0  }
   0x2 LB: > { %s25_s15 = sadd.s32 1, %s1552_s13  ;;  %p1367_p0 = scmp.ge.s32.totalorder %s1556_s14, 1  ;;  %s1556_s14 = sphi %s1582_s14, %s13_s14   ;;  %s1552_s13 = sphi %s1580_s13, %s1790_s13   ;;  %s1548_s12 = sphi %s1578_s12, %s1789_s12  }
   0x3   : > { %p27_p1 = scmp.ge.s32.totalorder %s25_s15, 2  ;;  %p172_p2 = scmp.lt.s32.totalorder %s1556_s14, 3 }
   0x5   : > { %s1792_s15 = smov (%p27_p1, %s25_s15), 0  ;;  %p173_p3 = pnand %p1367_p0, %p172_p2 }
   0x6   : > { %p218_p4 = scmp.lt.s32.totalorder (!%p173_p3), %s1548_s12, 1  ;;  %v1599_v0 = vld [vmem:[%s1785_s0 + $0x4] ss:$8 sps:$4 sm:$0xff] (!%p173_p3)  }
   0x7   : > { %176 = sbr.rel (%p173_p3) target bundleno = 367 (0x16f), region = 32  ;;  %1092 = vmatprep.mubr.bf16.mxu0 (!%p173_p3), %v1599_v0  ;;  %1135 = vmatprep.mubr.bf16.mxu1 (!%p173_p3), %v1599_v0 }
   0xe   : > { %s1794_s12 = smov (!%p218_p4, %s1548_s12), 1 }
   0xf   : > { %s1505_s18 = sshll.u32 %s1794_s12, 10  ;;  %s1370_s24 = sshll.u32 %s1794_s12, 3 }
  0x10   : > { %s1609_s21 = scalar_lea.vmem %s1786_s1, %s1505_s18  ;;  %s226_s27 = scalar_lea.vmem %s1787_s2, %s1370_s24 }
  0x11   : > { %v240_v1 = vld [vmem:[%s1609_s21] sm:$0xff]  ;;  %v241_v3 = vld [vmem:[%s1609_s21 + $0x8] sm:$0xff]  ;;  %s1506_s28 = sshll.u32 %s1794_s12, 7 }
  0x12   : > { %v244_v2 = vld [vmem:[%s1609_s21 + $0x20] sm:$0xff]  ;;  %v245_v5 = vld [vmem:[%s1609_s21 + $0x28] sm:$0xff]  ;;  %s1758_s4 = scalar_lea.vmem %s1788_s3, %s1506_s28 }
  0x13   : > { %v1376_v4 = vcombine.high %v240_v1, %v244_v2  ;;  %v1375_v6 = vcombine.low %v240_v1, %v244_v2  ;;  %v248_v7 = vld [vmem:[%s1609_s21 + $0x40] sm:$0xff]  ;;  %v1378_v9 = vcombine.high %v241_v3, %v245_v5  ;;  %v1377_v10 = vcombine.low %v241_v3, %v245_v5  ;;  %v249_v12 = vld [vmem:[%s1609_s21 + $0x48] sm:$0xff] }
  0x14   : > { %v252_v8 = vld [vmem:[%s1609_s21 + $0x60] sm:$0xff]  ;;  %v253_v13 = vld [vmem:[%s1609_s21 + $0x68] sm:$0xff] }
  0x15   : > { %v1384_v11 = vcombine.high %v248_v7, %v252_v8  ;;  %v256_v14 = vld [vmem:[%s1609_s21 + $0x80] sm:$0xff]  ;;  %1060 = vmatprep.subr.bf16.mxu0 %v1376_v4  ;;  %v1386_v15 = vcombine.high %v249_v12, %v253_v13  ;;  %v257_v17 = vld [vmem:[%s1609_s21 + $0x88] sm:$0xff]  ;;  %1103 = vmatprep.subr.bf16.mxu1 %v1378_v9  ;;  %v1383_v19 = vcombine.low %v248_v7, %v252_v8 }
  0x16   : > { %v260_v16 = vld [vmem:[%s1609_s21 + $0xa0] sm:$0xff]  ;;  %v261_v18 = vld [vmem:[%s1609_s21 + $0xa8] sm:$0xff]  ;;  %1061 = vmatpush1.bf16.msra.mxu0 %v1375_v6  ;;  %1104 = vmatpush1.bf16.msra.mxu1 %v1377_v10  ;;  %v1385_v20 = vcombine.low %v249_v12, %v253_v13 }
  0x17   : > { %1062 = vmatprep.subr.bf16.mxu0 %v1384_v11  ;;  %v1392_v21 = vcombine.high %v256_v14, %v260_v16  ;;  %1105 = vmatprep.subr.bf16.mxu1 %v1386_v15  ;;  %v1394_v22 = vcombine.high %v257_v17, %v261_v18  ;;  %v264_v23 = vld [vmem:[%s1609_s21 + $0xc0] sm:$0xff]  ;;  %v265_v25 = vld [vmem:[%s1609_s21 + $0xc8] sm:$0xff]  ;;  %v1391_v27 = vcombine.low %v256_v14, %v260_v16 }
  0x18   : > { %v268_v24 = vld [vmem:[%s1609_s21 + $0xe0] sm:$0xff]  ;;  %v269_v26 = vld [vmem:[%s1609_s21 + $0xe8] sm:$0xff]  ;;  %v1393_v28 = vcombine.low %v257_v17, %v261_v18 }
  0x19   : > { %v1400_v29 = vcombine.high %v264_v23, %v268_v24  ;;  %v1402_v30 = vcombine.high %v265_v25, %v269_v26  ;;  %v272_v31 = vld [vmem:[%s1609_s21 + $0x100] sm:$0xff]  ;;  %v273_v33 = vld [vmem:[%s1609_s21 + $0x108] sm:$0xff]  ;;  %v1399_v35 = vcombine.low %v264_v23, %v268_v24  ;;  %v1401_v36 = vcombine.low %v265_v25, %v269_v26 }
  0x1a   : > { %1063 = vmatpush1.bf16.msra.mxu0 %v1383_v19  ;;  %1106 = vmatpush1.bf16.msra.mxu1 %v1385_v20  ;;  %v276_v32 = vld [vmem:[%s1609_s21 + $0x120] sm:$0xff]  ;;  %v277_v34 = vld [vmem:[%s1609_s21 + $0x128] sm:$0xff] }
  0x1b   : > { %1064 = vmatprep.subr.bf16.mxu0 %v1392_v21  ;;  %1107 = vmatprep.subr.bf16.mxu1 %v1394_v22  ;;  %v1408_v37 = vcombine.high %v272_v31, %v276_v32  ;;  %v1410_v38 = vcombine.high %v273_v33, %v277_v34  ;;  %v280_v39 = vld [vmem:[%s1609_s21 + $0x140] sm:$0xff]  ;;  %v281_v41 = vld [vmem:[%s1609_s21 + $0x148] sm:$0xff]  ;;  %v1407_v43 = vcombine.low %v272_v31, %v276_v32 }
  0x1c   : > { %v284_v40 = vld [vmem:[%s1609_s21 + $0x160] sm:$0xff]  ;;  %v285_v42 = vld [vmem:[%s1609_s21 + $0x168] sm:$0xff]  ;;  %v1409_v44 = vcombine.low %v273_v33, %v277_v34 }
  0x1d   : > { %v1416_v45 = vcombine.high %v280_v39, %v284_v40  ;;  %v1418_v46 = vcombine.high %v281_v41, %v285_v42  ;;  %v288_v47 = vld [vmem:[%s1609_s21 + $0x180] sm:$0xff]  ;;  %v289_v49 = vld [vmem:[%s1609_s21 + $0x188] sm:$0xff]  ;;  %v1415_v51 = vcombine.low %v280_v39, %v284_v40  ;;  %v1417_v52 = vcombine.low %v281_v41, %v285_v42 }
  0x1e   : > { %1065 = vmatpush1.bf16.msra.mxu0 %v1391_v27  ;;  %1108 = vmatpush1.bf16.msra.mxu1 %v1393_v28  ;;  %v292_v48 = vld [vmem:[%s1609_s21 + $0x1a0] sm:$0xff]  ;;  %v293_v50 = vld [vmem:[%s1609_s21 + $0x1a8] sm:$0xff] }
  0x1f   : > { %1066 = vmatprep.subr.bf16.mxu0 %v1400_v29  ;;  %1109 = vmatprep.subr.bf16.mxu1 %v1402_v30  ;;  %v1424_v53 = vcombine.high %v288_v47, %v292_v48  ;;  %v1426_v54 = vcombine.high %v289_v49, %v293_v50  ;;  %v296_v55 = vld [vmem:[%s1609_s21 + $0x1c0] sm:$0xff]  ;;  %v297_v57 = vld [vmem:[%s1609_s21 + $0x1c8] sm:$0xff]  ;;  %v1423_v59 = vcombine.low %v288_v47, %v292_v48 }
  0x20   : > { %v300_v56 = vld [vmem:[%s1609_s21 + $0x1e0] sm:$0xff]  ;;  %v301_v58 = vld [vmem:[%s1609_s21 + $0x1e8] sm:$0xff]  ;;  %v1425_v60 = vcombine.low %v289_v49, %v293_v50 }
  0x21   : > { %v1432_v61 = vcombine.high %v296_v55, %v300_v56  ;;  %v1434_v62 = vcombine.high %v297_v57, %v301_v58  ;;  %v304_v63 = vld [vmem:[%s1609_s21 + $0x200] sm:$0xff]  ;;  %v305_v2 = vld [vmem:[%s1609_s21 + $0x208] sm:$0xff]  ;;  %v1431_v4 = vcombine.low %v296_v55, %v300_v56  ;;  %v1433_v5 = vcombine.low %v297_v57, %v301_v58 }
  0x22   : > { %1067 = vmatpush1.bf16.msra.mxu0 %v1399_v35  ;;  %1110 = vmatpush1.bf16.msra.mxu1 %v1401_v36  ;;  %v308_v1 = vld [vmem:[%s1609_s21 + $0x220] sm:$0xff]  ;;  %v309_v3 = vld [vmem:[%s1609_s21 + $0x228] sm:$0xff] }
  0x23   : > { %1068 = vmatprep.subr.bf16.mxu0 %v1408_v37  ;;  %1111 = vmatprep.subr.bf16.mxu1 %v1410_v38  ;;  %v1440_v6 = vcombine.high %v304_v63, %v308_v1  ;;  %v1442_v7 = vcombine.high %v305_v2, %v309_v3  ;;  %v312_v8 = vld [vmem:[%s1609_s21 + $0x240] sm:$0xff]  ;;  %v313_v10 = vld [vmem:[%s1609_s21 + $0x248] sm:$0xff]  ;;  %v1439_v12 = vcombine.low %v304_v63, %v308_v1  ;;  %v242_v1 = vld [vmem:[%s1609_s21 + $0x10] sm:$0xff] }
  0x24   : > { %v316_v9 = vld [vmem:[%s1609_s21 + $0x260] sm:$0xff]  ;;  %v317_v11 = vld [vmem:[%s1609_s21 + $0x268] sm:$0xff]  ;;  %v1441_v13 = vcombine.low %v305_v2, %v309_v3  ;;  %v246_v2 = vld [vmem:[%s1609_s21 + $0x30] sm:$0xff] }
  0x25   : > { %v1448_v14 = vcombine.high %v312_v8, %v316_v9  ;;  %v1450_v15 = vcombine.high %v313_v10, %v317_v11  ;;  %v320_v16 = vld [vmem:[%s1609_s21 + $0x280] sm:$0xff]  ;;  %v321_v18 = vld [vmem:[%s1609_s21 + $0x288] sm:$0xff]  ;;  %v1447_v20 = vcombine.low %v312_v8, %v316_v9  ;;  %v1449_v21 = vcombine.low %v313_v10, %v317_v11  ;;  %v243_v3 = vld [vmem:[%s1609_s21 + $0x18] sm:$0xff] }
  0x26   : > { %1069 = vmatpush1.bf16.msra.mxu0 %v1407_v43  ;;  %1112 = vmatpush1.bf16.msra.mxu1 %v1409_v44  ;;  %v324_v17 = vld [vmem:[%s1609_s21 + $0x2a0] sm:$0xff]  ;;  %v325_v19 = vld [vmem:[%s1609_s21 + $0x2a8] sm:$0xff]  ;;  %v250_v9 = vld [vmem:[%s1609_s21 + $0x50] sm:$0xff] }
  0x27   : > { %1070 = vmatprep.subr.bf16.mxu0 %v1416_v45  ;;  %1113 = vmatprep.subr.bf16.mxu1 %v1418_v46  ;;  %v1456_v22 = vcombine.high %v320_v16, %v324_v17  ;;  %v1458_v23 = vcombine.high %v321_v18, %v325_v19  ;;  %v328_v24 = vld [vmem:[%s1609_s21 + $0x2c0] sm:$0xff]  ;;  %v329_v26 = vld [vmem:[%s1609_s21 + $0x2c8] sm:$0xff]  ;;  %v1455_v28 = vcombine.low %v320_v16, %v324_v17  ;;  %v254_v10 = vld [vmem:[%s1609_s21 + $0x70] sm:$0xff] }
  0x28   : > { %v332_v25 = vld [vmem:[%s1609_s21 + $0x2e0] sm:$0xff]  ;;  %v333_v27 = vld [vmem:[%s1609_s21 + $0x2e8] sm:$0xff]  ;;  %v1457_v29 = vcombine.low %v321_v18, %v325_v19  ;;  %v1388_v16 = vcombine.high %v250_v9, %v254_v10  ;;  %v258_v18 = vld [vmem:[%s1609_s21 + $0x90] sm:$0xff] }
  0x29   : > { %v1464_v30 = vcombine.high %v328_v24, %v332_v25  ;;  %v1466_v31 = vcombine.high %v329_v26, %v333_v27  ;;  %v336_v32 = vld [vmem:[%s1609_s21 + $0x300] sm:$0xff]  ;;  %v337_v34 = vld [vmem:[%s1609_s21 + $0x308] sm:$0xff]  ;;  %v1463_v36 = vcombine.low %v328_v24, %v332_v25  ;;  %v1465_v37 = vcombine.low %v329_v26, %v333_v27  ;;  %v262_v19 = vld [vmem:[%s1609_s21 + $0xb0] sm:$0xff] }
  0x2a   : > { %1071 = vmatpush1.bf16.msra.mxu0 %v1415_v51  ;;  %1114 = vmatpush1.bf16.msra.mxu1 %v1417_v52  ;;  %v340_v33 = vld [vmem:[%s1609_s21 + $0x320] sm:$0xff]  ;;  %v341_v35 = vld [vmem:[%s1609_s21 + $0x328] sm:$0xff]  ;;  %v1396_v24 = vcombine.high %v258_v18, %v262_v19  ;;  %v266_v26 = vld [vmem:[%s1609_s21 + $0xd0] sm:$0xff] }
  0x2b   : > { %1072 = vmatprep.subr.bf16.mxu0 %v1424_v53  ;;  %1115 = vmatprep.subr.bf16.mxu1 %v1426_v54  ;;  %v1472_v38 = vcombine.high %v336_v32, %v340_v33  ;;  %v1474_v39 = vcombine.high %v337_v34, %v341_v35  ;;  %v344_v40 = vld [vmem:[%s1609_s21 + $0x340] sm:$0xff]  ;;  %v345_v42 = vld [vmem:[%s1609_s21 + $0x348] sm:$0xff]  ;;  %v1471_v44 = vcombine.low %v336_v32, %v340_v33  ;;  %v270_v27 = vld [vmem:[%s1609_s21 + $0xf0] sm:$0xff] }
  0x2c   : > { %v348_v41 = vld [vmem:[%s1609_s21 + $0x360] sm:$0xff]  ;;  %v349_v43 = vld [vmem:[%s1609_s21 + $0x368] sm:$0xff]  ;;  %v1473_v45 = vcombine.low %v337_v34, %v341_v35  ;;  %v1404_v32 = vcombine.high %v266_v26, %v270_v27  ;;  %v274_v34 = vld [vmem:[%s1609_s21 + $0x110] sm:$0xff] }
  0x2d   : > { %v1480_v46 = vcombine.high %v344_v40, %v348_v41  ;;  %v1482_v47 = vcombine.high %v345_v42, %v349_v43  ;;  %v352_v48 = vld [vmem:[%s1609_s21 + $0x380] sm:$0xff]  ;;  %v353_v50 = vld [vmem:[%s1609_s21 + $0x388] sm:$0xff]  ;;  %v1479_v52 = vcombine.low %v344_v40, %v348_v41  ;;  %v1481_v53 = vcombine.low %v345_v42, %v349_v43  ;;  %v278_v35 = vld [vmem:[%s1609_s21 + $0x130] sm:$0xff] }
  0x2e   : > { %1073 = vmatpush1.bf16.msra.mxu0 %v1423_v59  ;;  %1116 = vmatpush1.bf16.msra.mxu1 %v1425_v60  ;;  %v356_v49 = vld [vmem:[%s1609_s21 + $0x3a0] sm:$0xff]  ;;  %v357_v51 = vld [vmem:[%s1609_s21 + $0x3a8] sm:$0xff]  ;;  %v282_v41 = vld [vmem:[%s1609_s21 + $0x150] sm:$0xff] }
  0x2f   : > { %1074 = vmatprep.subr.bf16.mxu0 %v1432_v61  ;;  %1117 = vmatprep.subr.bf16.mxu1 %v1434_v62  ;;  %v1488_v54 = vcombine.high %v352_v48, %v356_v49  ;;  %v1490_v55 = vcombine.high %v353_v50, %v357_v51  ;;  %v360_v56 = vld [vmem:[%s1609_s21 + $0x3c0] sm:$0xff]  ;;  %v361_v58 = vld [vmem:[%s1609_s21 + $0x3c8] sm:$0xff]  ;;  %v1487_v60 = vcombine.low %v352_v48, %v356_v49  ;;  %v286_v42 = vld [vmem:[%s1609_s21 + $0x170] sm:$0xff] }
  0x30   : > { %v364_v57 = vld [vmem:[%s1609_s21 + $0x3e0] sm:$0xff]  ;;  %v365_v59 = vld [vmem:[%s1609_s21 + $0x3e8] sm:$0xff]  ;;  %v1489_v61 = vcombine.low %v353_v50, %v357_v51  ;;  %v283_v43 = vld [vmem:[%s1609_s21 + $0x158] sm:$0xff] }
  0x31   : > { %v1496_v62 = vcombine.high %v360_v56, %v364_v57  ;;  %v1498_v63 = vcombine.high %v361_v58, %v365_v59  ;;  %v1684_v11 = vld [vmem:[%s1785_s0] ss:$8 sps:$4 sm:$0xff]   ;;  %v290_v49 = vld [vmem:[%s1609_s21 + $0x190] sm:$0xff]  ;;  %v291_v51 = vld [vmem:[%s1609_s21 + $0x198] sm:$0xff] }
  0x32   : > { %1075 = vmatpush1.bf16.msra.mxu0 %v1431_v4  ;;  %1118 = vmatpush1.bf16.msra.mxu1 %v1433_v5  ;;  %v247_v4 = vld [vmem:[%s1609_s21 + $0x38] sm:$0xff]  ;;  %v1495_v5 = vcombine.low %v360_v56, %v364_v57  ;;  %v294_v50 = vld [vmem:[%s1609_s21 + $0x1b0] sm:$0xff] }
  0x33   : > { %1076 = vmatprep.subr.bf16.mxu0 %v1440_v6  ;;  %1119 = vmatprep.subr.bf16.mxu1 %v1442_v7  ;;  %v1497_v6 = vcombine.low %v361_v58, %v365_v59  ;;  %v1380_v7 = vcombine.high %v242_v1, %v246_v2  ;;  %v1382_v8 = vcombine.high %v243_v3, %v247_v4  ;;  %v298_v57 = vld [vmem:[%s1609_s21 + $0x1d0] sm:$0xff]  ;;  %v299_v59 = vld [vmem:[%s1609_s21 + $0x1d8] sm:$0xff] }
  0x34   : > { %v302_v58 = vld [vmem:[%s1609_s21 + $0x1f0] sm:$0xff] }
  0x36   : > { %1077 = vmatpush1.bf16.msra.mxu0 %v1439_v12  ;;  %1120 = vmatpush1.bf16.msra.mxu1 %v1441_v13  ;;  %v251_v12 = vld [vmem:[%s1609_s21 + $0x58] sm:$0xff] }
  0x37   : > { %1078 = vmatprep.subr.bf16.mxu0 %v1448_v14  ;;  %1121 = vmatprep.subr.bf16.mxu1 %v1450_v15  ;;  %v255_v13 = vld [vmem:[%s1609_s21 + $0x78] sm:$0xff]  ;;  %v1379_v14 = vcombine.low %v242_v1, %v246_v2  ;;  %v1381_v15 = vcombine.low %v243_v3, %v247_v4  ;;  %v306_v2 = vld [vmem:[%s1609_s21 + $0x210] sm:$0xff] }
  0x38   : > { %v1390_v17 = vcombine.high %v251_v12, %v255_v13  ;;  %v310_v3 = vld [vmem:[%s1609_s21 + $0x230] sm:$0xff]  ;;  %v307_v4 = vld [vmem:[%s1609_s21 + $0x218] sm:$0xff] }
  0x3a   : > { %1079 = vmatpush1.bf16.msra.mxu0 %v1447_v20  ;;  %1122 = vmatpush1.bf16.msra.mxu1 %v1449_v21  ;;  %v259_v20 = vld [vmem:[%s1609_s21 + $0x98] sm:$0xff] }
  0x3b   : > { %1080 = vmatprep.subr.bf16.mxu0 %v1456_v22  ;;  %1123 = vmatprep.subr.bf16.mxu1 %v1458_v23  ;;  %v263_v21 = vld [vmem:[%s1609_s21 + $0xb8] sm:$0xff]  ;;  %v1387_v22 = vcombine.low %v250_v9, %v254_v10  ;;  %v1389_v23 = vcombine.low %v251_v12, %v255_v13  ;;  %v314_v10 = vld [vmem:[%s1609_s21 + $0x250] sm:$0xff] }
  0x3c   : > { %v1398_v25 = vcombine.high %v259_v20, %v263_v21  ;;  %v318_v12 = vld [vmem:[%s1609_s21 + $0x270] sm:$0xff]  ;;  %v315_v13 = vld [vmem:[%s1609_s21 + $0x258] sm:$0xff] }
  0x3e   : > { %1081 = vmatpush1.bf16.msra.mxu0 %v1455_v28  ;;  %1124 = vmatpush1.bf16.msra.mxu1 %v1457_v29  ;;  %v267_v28 = vld [vmem:[%s1609_s21 + $0xd8] sm:$0xff] }
  0x3f   : > { %1082 = vmatprep.subr.bf16.mxu0 %v1464_v30  ;;  %1125 = vmatprep.subr.bf16.mxu1 %v1466_v31  ;;  %v271_v29 = vld [vmem:[%s1609_s21 + $0xf8] sm:$0xff]  ;;  %v1395_v30 = vcombine.low %v258_v18, %v262_v19  ;;  %v1397_v31 = vcombine.low %v259_v20, %v263_v21  ;;  %v322_v19 = vld [vmem:[%s1609_s21 + $0x290] sm:$0xff] }
  0x40   : > { %v1406_v33 = vcombine.high %v267_v28, %v271_v29  ;;  %v326_v20 = vld [vmem:[%s1609_s21 + $0x2b0] sm:$0xff]  ;;  %v323_v21 = vld [vmem:[%s1609_s21 + $0x298] sm:$0xff] }
  0x42   : > { %1083 = vmatpush1.bf16.msra.mxu0 %v1463_v36  ;;  %1126 = vmatpush1.bf16.msra.mxu1 %v1465_v37  ;;  %v275_v36 = vld [vmem:[%s1609_s21 + $0x118] sm:$0xff] }
  0x43   : > { %1084 = vmatprep.subr.bf16.mxu0 %v1472_v38  ;;  %1127 = vmatprep.subr.bf16.mxu1 %v1474_v39  ;;  %v279_v37 = vld [vmem:[%s1609_s21 + $0x138] sm:$0xff]  ;;  %v1403_v38 = vcombine.low %v266_v26, %v270_v27  ;;  %v1412_v39 = vcombine.high %v274_v34, %v278_v35  ;;  %v330_v27 = vld [vmem:[%s1609_s21 + $0x2d0] sm:$0xff] }
  0x44   : > { %v1414_v40 = vcombine.high %v275_v36, %v279_v37 }
  0x46   : > { %1085 = vmatpush1.bf16.msra.mxu0 %v1471_v44  ;;  %1128 = vmatpush1.bf16.msra.mxu1 %v1473_v45  ;;  %v287_v44 = vld [vmem:[%s1609_s21 + $0x178] sm:$0xff]  ;;  %v1411_v45 = vcombine.low %v274_v34, %v278_v35  ;;  %v338_v35 = vld [vmem:[%s1609_s21 + $0x310] sm:$0xff] }
  0x47   : > { %1086 = vmatprep.subr.bf16.mxu0 %v1480_v46  ;;  %1129 = vmatprep.subr.bf16.mxu1 %v1482_v47  ;;  %v1413_v46 = vcombine.low %v275_v36, %v279_v37  ;;  %v1420_v47 = vcombine.high %v282_v41, %v286_v42  ;;  %v1422_v48 = vcombine.high %v283_v43, %v287_v44  ;;  %v342_v36 = vld [vmem:[%s1609_s21 + $0x330] sm:$0xff]  ;;  %v339_v37 = vld [vmem:[%s1609_s21 + $0x318] sm:$0xff] }
  0x4a   : > { %1087 = vmatpush1.bf16.msra.mxu0 %v1479_v52  ;;  %1130 = vmatpush1.bf16.msra.mxu1 %v1481_v53  ;;  %v295_v52 = vld [vmem:[%s1609_s21 + $0x1b8] sm:$0xff]  ;;  %v1419_v53 = vcombine.low %v282_v41, %v286_v42  ;;  %v346_v42 = vld [vmem:[%s1609_s21 + $0x350] sm:$0xff] }
  0x4b   : > { %1088 = vmatprep.subr.bf16.mxu0 %v1488_v54  ;;  %1131 = vmatprep.subr.bf16.mxu1 %v1490_v55  ;;  %v1421_v54 = vcombine.low %v283_v43, %v287_v44  ;;  %v1428_v55 = vcombine.high %v290_v49, %v294_v50  ;;  %v1430_v56 = vcombine.high %v291_v51, %v295_v52  ;;  %v350_v43 = vld [vmem:[%s1609_s21 + $0x370] sm:$0xff]  ;;  %v347_v44 = vld [vmem:[%s1609_s21 + $0x358] sm:$0xff] }
  0x4e   : > { %1089 = vmatpush1.bf16.msra.mxu0 %v1487_v60  ;;  %1132 = vmatpush1.bf16.msra.mxu1 %v1489_v61  ;;  %v303_v60 = vld [vmem:[%s1609_s21 + $0x1f8] sm:$0xff]  ;;  %v1427_v61 = vcombine.low %v290_v49, %v294_v50  ;;  %v354_v50 = vld [vmem:[%s1609_s21 + $0x390] sm:$0xff] }
  0x4f   : > { %1090 = vmatprep.subr.bf16.mxu0 %v1496_v62  ;;  %1133 = vmatprep.subr.bf16.mxu1 %v1498_v63  ;;  %v1429_v62 = vcombine.low %v291_v51, %v295_v52  ;;  %v1436_v63 = vcombine.high %v298_v57, %v302_v58  ;;  %v1438_v1 = vcombine.high %v299_v59, %v303_v60  ;;  %v358_v51 = vld [vmem:[%s1609_s21 + $0x3b0] sm:$0xff]  ;;  %v355_v52 = vld [vmem:[%s1609_s21 + $0x398] sm:$0xff] }
  0x52   : > { %1091 = vmatpush1.bf16.msra.mxu0 %v1495_v5  ;;  %1134 = vmatpush1.bf16.msra.mxu1 %v1497_v6  ;;  %v311_v5 = vld [vmem:[%s1609_s21 + $0x238] sm:$0xff]  ;;  %v1435_v6 = vcombine.low %v298_v57, %v302_v58  ;;  %v362_v58 = vld [vmem:[%s1609_s21 + $0x3d0] sm:$0xff] }
  0x53   : > { %1146 = vmatprep.subr.bf16.mxu0 %v1380_v7  ;;  %1189 = vmatprep.subr.bf16.mxu1 %v1382_v8  ;;  %v1437_v7 = vcombine.low %v299_v59, %v303_v60  ;;  %v1444_v8 = vcombine.high %v306_v2, %v310_v3  ;;  %v1446_v9 = vcombine.high %v307_v4, %v311_v5  ;;  %v366_v59 = vld [vmem:[%s1609_s21 + $0x3f0] sm:$0xff]  ;;  %v363_v60 = vld [vmem:[%s1609_s21 + $0x3d8] sm:$0xff] }
  0x55   : > { %1093 = vmatmul.mubr.bf16.vlgmr.msra.gmra.mrb[0].mxu0 %v1684_v11  ;;  %1136 = vmatmul.mubr.bf16.vlgmr.msra.gmra.mrb[0].mxu1 %v1684_v11 }
  0x56   : > { %1147 = vmatpush1.bf16.msra.mxu0 %v1379_v14  ;;  %1190 = vmatpush1.bf16.msra.mxu1 %v1381_v15  ;;  %v319_v14 = vld [vmem:[%s1609_s21 + $0x278] sm:$0xff]  ;;  %v1443_v15 = vcombine.low %v306_v2, %v310_v3  ;;  %v1499_v3 = vcombine.low %v362_v58, %v366_v59 }
  0x57   : > { %1148 = vmatprep.subr.bf16.mxu0 %v1388_v16  ;;  %1191 = vmatprep.subr.bf16.mxu1 %v1390_v17  ;;  %v1445_v16 = vcombine.low %v307_v4, %v311_v5  ;;  %v1452_v17 = vcombine.high %v314_v10, %v318_v12  ;;  %v1454_v18 = vcombine.high %v315_v13, %v319_v14  ;;  %v370_v5 = vlaneseq }
  0x58   : > { %1178 = vmatprep.mubr.bf16.mxu0 %v1599_v0  ;;  %1221 = vmatprep.mubr.bf16.mxu1 %v1599_v0  ;;  %v1405_v0 = vcombine.low %v267_v28, %v271_v29  ;;  %v334_v28 = vld [vmem:[%s1609_s21 + $0x2f0] sm:$0xff]  ;;  %v331_v29 = vld [vmem:[%s1609_s21 + $0x2d8] sm:$0xff] }
  0x5a   : > { %1149 = vmatpush1.bf16.msra.mxu0 %v1387_v22  ;;  %1192 = vmatpush1.bf16.msra.mxu1 %v1389_v23  ;;  %v327_v22 = vld [vmem:[%s1609_s21 + $0x2b8] sm:$0xff]  ;;  %v1451_v23 = vcombine.low %v314_v10, %v318_v12 }
  0x5b   : > { %1150 = vmatprep.subr.bf16.mxu0 %v1396_v24  ;;  %1193 = vmatprep.subr.bf16.mxu1 %v1398_v25  ;;  %v1453_v24 = vcombine.low %v315_v13, %v319_v14  ;;  %v1460_v25 = vcombine.high %v322_v19, %v326_v20  ;;  %v1462_v26 = vcombine.high %v323_v21, %v327_v22 }
  0x5e   : > { %1151 = vmatpush1.bf16.msra.mxu0 %v1395_v30  ;;  %1194 = vmatpush1.bf16.msra.mxu1 %v1397_v31  ;;  %v335_v30 = vld [vmem:[%s1609_s21 + $0x2f8] sm:$0xff]  ;;  %v1459_v31 = vcombine.low %v322_v19, %v326_v20 }
  0x5f   : > { %1152 = vmatprep.subr.bf16.mxu0 %v1404_v32  ;;  %1195 = vmatprep.subr.bf16.mxu1 %v1406_v33  ;;  %v1461_v32 = vcombine.low %v323_v21, %v327_v22  ;;  %v1468_v33 = vcombine.high %v330_v27, %v334_v28  ;;  %v1470_v34 = vcombine.high %v331_v29, %v335_v30 }
  0x62   : > { %1153 = vmatpush1.bf16.msra.mxu0 %v1403_v38  ;;  %1196 = vmatpush1.bf16.msra.mxu1 %v1405_v0  ;;  %v343_v38 = vld [vmem:[%s1609_s21 + $0x338] sm:$0xff]  ;;  %v1467_v0 = vcombine.low %v330_v27, %v334_v28 }
  0x63   : > { %1154 = vmatprep.subr.bf16.mxu0 %v1412_v39  ;;  %1197 = vmatprep.subr.bf16.mxu1 %v1414_v40  ;;  %v1469_v39 = vcombine.low %v331_v29, %v335_v30  ;;  %v1476_v40 = vcombine.high %v338_v35, %v342_v36  ;;  %v1478_v41 = vcombine.high %v339_v37, %v343_v38 }
  0x66   : > { %1155 = vmatpush1.bf16.msra.mxu0 %v1411_v45  ;;  %1198 = vmatpush1.bf16.msra.mxu1 %v1413_v46  ;;  %v351_v45 = vld [vmem:[%s1609_s21 + $0x378] sm:$0xff]  ;;  %v1475_v46 = vcombine.low %v338_v35, %v342_v36 }
  0x67   : > { %1156 = vmatprep.subr.bf16.mxu0 %v1420_v47  ;;  %1199 = vmatprep.subr.bf16.mxu1 %v1422_v48  ;;  %v1477_v47 = vcombine.low %v339_v37, %v343_v38  ;;  %v1484_v48 = vcombine.high %v346_v42, %v350_v43  ;;  %v1486_v49 = vcombine.high %v347_v44, %v351_v45 }
  0x6a   : > { %1157 = vmatpush1.bf16.msra.mxu0 %v1419_v53  ;;  %1200 = vmatpush1.bf16.msra.mxu1 %v1421_v54  ;;  %v359_v53 = vld [vmem:[%s1609_s21 + $0x3b8] sm:$0xff]  ;;  %v1483_v54 = vcombine.low %v346_v42, %v350_v43 }
  0x6b   : > { %1158 = vmatprep.subr.bf16.mxu0 %v1428_v55  ;;  %1201 = vmatprep.subr.bf16.mxu1 %v1430_v56  ;;  %v1485_v55 = vcombine.low %v347_v44, %v351_v45  ;;  %v1492_v56 = vcombine.high %v354_v50, %v358_v51  ;;  %v1494_v57 = vcombine.high %v355_v52, %v359_v53 }
  0x6e   : > { %1159 = vmatpush1.bf16.msra.mxu0 %v1427_v61  ;;  %1202 = vmatpush1.bf16.msra.mxu1 %v1429_v62  ;;  %v367_v61 = vld [vmem:[%s1609_s21 + $0x3f8] sm:$0xff]  ;;  %v1491_v62 = vcombine.low %v354_v50, %v358_v51 }
  0x6f   : > { %1160 = vmatprep.subr.bf16.mxu0 %v1436_v63  ;;  %1203 = vmatprep.subr.bf16.mxu1 %v1438_v1  ;;  %v1493_v63 = vcombine.low %v355_v52, %v359_v53  ;;  %v1500_v1 = vcombine.high %v362_v58, %v366_v59  ;;  %v1502_v2 = vcombine.high %v363_v60, %v367_v61 }
  0x70   : > { %v1501_v4 = vcombine.low %v363_v60, %v367_v61 }
  0x72   : > { %1161 = vmatpush1.bf16.msra.mxu0 %v1435_v6  ;;  %1204 = vmatpush1.bf16.msra.mxu1 %v1437_v7  ;;  %v371_v6 = vshrl.u32 %v370_v5, 7 }
  0x73   : > { %1162 = vmatprep.subr.bf16.mxu0 %v1444_v8  ;;  %1205 = vmatprep.subr.bf16.mxu1 %v1446_v9  ;;  %v368_v8 = vld [vmem:[%s226_s27] sm:$0xff] }
  0x74   : > { %v372_v7 = vsub.s32 0, %v371_v6  ;;  %v380_v9 = vsub.s32 2, %v371_v6  ;;  %v376_v10 = vsub.s32 1, %v371_v6  ;;  %v384_v12 = vsub.s32 3, %v371_v6 }
  0x75   : > { %v400_v35 = vsub.s32 7, %v371_v6 }
  0x76   : > { %1163 = vmatpush1.bf16.msra.mxu0 %v1443_v15  ;;  %1206 = vmatpush1.bf16.msra.mxu1 %v1445_v16  ;;  %v373_v13 = vrot.slane %v368_v8, %v372_v7  ;;  %v381_v14 = vrot.slane %v368_v8, %v380_v9  ;;  %v377_v15 = vrot.slane %v368_v8, %v376_v10 }
  0x77   : > { %1164 = vmatprep.subr.bf16.mxu0 %v1452_v17  ;;  %1207 = vmatprep.subr.bf16.mxu1 %v1454_v18  ;;  %v385_v16 = vrot.slane %v368_v8, %v384_v12 }
  0x7a   : > { %1165 = vmatpush1.bf16.msra.mxu0 %v1451_v23  ;;  %1208 = vmatpush1.bf16.msra.mxu1 %v1453_v24 }
  0x7b   : > { %1166 = vmatprep.subr.bf16.mxu0 %v1460_v25  ;;  %1209 = vmatprep.subr.bf16.mxu1 %v1462_v26 }
  0x7e   : > { %1167 = vmatpush1.bf16.msra.mxu0 %v1459_v31  ;;  %1210 = vmatpush1.bf16.msra.mxu1 %v1461_v32  ;;  %v388_v32 = vsub.s32 4, %v371_v6 }
  0x7f   : > { %1168 = vmatprep.subr.bf16.mxu0 %v1468_v33  ;;  %1211 = vmatprep.subr.bf16.mxu1 %v1470_v34  ;;  %v396_v33 = vsub.s32 6, %v371_v6  ;;  %v392_v34 = vsub.s32 5, %v371_v6 }
  0x80   : > { %v389_v36 = vrot.slane %v368_v8, %v388_v32 }
  0x81   : > { %v397_v37 = vrot.slane %v368_v8, %v396_v33  ;;  %v393_v38 = vrot.slane %v368_v8, %v392_v34 }
  0x82   : > { %1169 = vmatpush1.bf16.msra.mxu0 %v1467_v0  ;;  %1212 = vmatpush1.bf16.msra.mxu1 %v1469_v39  ;;  %v401_v0 = vrot.slane %v368_v8, %v400_v35 }
  0x83   : > { %1170 = vmatprep.subr.bf16.mxu0 %v1476_v40  ;;  %1213 = vmatprep.subr.bf16.mxu1 %v1478_v41 }
  0x86   : > { %1171 = vmatpush1.bf16.msra.mxu0 %v1475_v46  ;;  %1214 = vmatpush1.bf16.msra.mxu1 %v1477_v47 }
  0x87   : > { %1172 = vmatprep.subr.bf16.mxu0 %v1484_v48  ;;  %1215 = vmatprep.subr.bf16.mxu1 %v1486_v49 }
  0x8a   : > { %1173 = vmatpush1.bf16.msra.mxu0 %v1483_v54  ;;  %1216 = vmatpush1.bf16.msra.mxu1 %v1485_v55 }
  0x8b   : > { %1174 = vmatprep.subr.bf16.mxu0 %v1492_v56  ;;  %1217 = vmatprep.subr.bf16.mxu1 %v1494_v57 }
  0x8e   : > { %1175 = vmatpush1.bf16.msra.mxu0 %v1491_v62  ;;  %1218 = vmatpush1.bf16.msra.mxu1 %v1493_v63 }
  0x8f   : > { %1176 = vmatprep.subr.bf16.mxu0 %v1500_v1  ;;  %1219 = vmatprep.subr.bf16.mxu1 %v1502_v2 }
  0x92   : > { %1177 = vmatpush1.bf16.msra.mxu0 %v1499_v3  ;;  %1220 = vmatpush1.bf16.msra.mxu1 %v1501_v4 }
  0x95   : > { %1179 = vmatmul.mubr.bf16.vlgmr.msra.gmra.mrb[4].mxu0 %v1684_v11  ;;  %1222 = vmatmul.mubr.bf16.vlgmr.msra.gmra.mrb[4].mxu1 %v1684_v11 }
 0x128   : > { %v1094_v11 = vpop.f32.mrb[0].mxu0  ;;  %v1137_v18 = vpop.f32.mrb[0].mxu1 }
 0x129   : > { %v1095_v17 = vadd.f32 %v1094_v11, %v373_v13  ;;  %v1096_v19 = vpop.f32.mrb[1].mxu0  ;;  %v1138_v20 = vadd.f32 %v1137_v18, %v381_v14  ;;  %v1139_v22 = vpop.f32.mrb[1].mxu1 }
 0x12a   : > { %v1097_v21 = vadd.f32 %v1096_v19, %v377_v15  ;;  %v1098_v23 = vpop.f32.mrb[2].mxu0  ;;  %v1140_v24 = vadd.f32 %v1139_v22, %v385_v16  ;;  %v1141_v26 = vpop.f32.mrb[2].mxu1 }
 0x12b   : > { %1232 = vst [vmem:[%s1758_s4] sm:$0xff] %v1095_v17  ;;  %v1099_v25 = vadd.f32 %v1098_v23, %v373_v13  ;;  %v1100_v27 = vpop.f32.mrb[3].mxu0  ;;  %1234 = vst [vmem:[%s1758_s4 + $0x10] sm:$0xff] %v1138_v20  ;;  %v1142_v28 = vadd.f32 %v1141_v26, %v381_v14  ;;  %v1143_v30 = vpop.f32.mrb[3].mxu1 }
 0x12c   : > { %1233 = vst [vmem:[%s1758_s4 + $0x8] sm:$0xff] %v1097_v21  ;;  %v1101_v29 = vadd.f32 %v1100_v27, %v377_v15  ;;  %1235 = vst [vmem:[%s1758_s4 + $0x18] sm:$0xff] %v1140_v24  ;;  %v1144_v31 = vadd.f32 %v1143_v30, %v385_v16 }
 0x12d   : > { %1240 = vst [vmem:[%s1758_s4 + $0x40] sm:$0xff] %v1099_v25  ;;  %1242 = vst [vmem:[%s1758_s4 + $0x50] sm:$0xff] %v1142_v28 }
 0x12e   : > { %1241 = vst [vmem:[%s1758_s4 + $0x48] sm:$0xff] %v1101_v29  ;;  %1243 = vst [vmem:[%s1758_s4 + $0x58] sm:$0xff] %v1144_v31 }
 0x168   : > { %v1180_v39 = vpop.f32.mrb[4].mxu0  ;;  %v1223_v41 = vpop.f32.mrb[4].mxu1 }
 0x169   : > { %v1181_v40 = vadd.f32 %v1180_v39, %v389_v36  ;;  %v1182_v42 = vpop.f32.mrb[5].mxu0  ;;  %v1224_v43 = vadd.f32 %v1223_v41, %v397_v37  ;;  %v1225_v45 = vpop.f32.mrb[5].mxu1 }
 0x16a   : > { %v1183_v44 = vadd.f32 %v1182_v42, %v393_v38  ;;  %v1184_v46 = vpop.f32.mrb[6].mxu0  ;;  %v1226_v47 = vadd.f32 %v1225_v45, %v401_v0  ;;  %v1227_v49 = vpop.f32.mrb[6].mxu1 }
 0x16b   : > { %1236 = vst [vmem:[%s1758_s4 + $0x20] sm:$0xff] %v1181_v40  ;;  %v1185_v48 = vadd.f32 %v1184_v46, %v389_v36  ;;  %v1186_v50 = vpop.f32.mrb[7].mxu0  ;;  %1238 = vst [vmem:[%s1758_s4 + $0x30] sm:$0xff] %v1224_v43  ;;  %v1228_v51 = vadd.f32 %v1227_v49, %v397_v37  ;;  %v1229_v53 = vpop.f32.mrb[7].mxu1 }
 0x16c   : > { %1237 = vst [vmem:[%s1758_s4 + $0x28] sm:$0xff] %v1183_v44  ;;  %v1187_v52 = vadd.f32 %v1186_v50, %v393_v38  ;;  %1239 = vst [vmem:[%s1758_s4 + $0x38] sm:$0xff] %v1226_v47  ;;  %v1230_v54 = vadd.f32 %v1229_v53, %v401_v0 }
 0x16d   : > { %1244 = vst [vmem:[%s1758_s4 + $0x60] sm:$0xff] %v1185_v48  ;;  %1246 = vst [vmem:[%s1758_s4 + $0x70] sm:$0xff] %v1228_v51 }
 0x16e   : > { %1245 = vst [vmem:[%s1758_s4 + $0x68] sm:$0xff] %v1187_v52  ;;  %1247 = vst [vmem:[%s1758_s4 + $0x78] sm:$0xff] %v1230_v54 }
 0x16f PF: > { %s13_s14 = sadd.s32 1, %s1556_s14   ;;  %s1789_s12 = smov %s1552_s13 }
 0x170   : > { %p10_p5 = scmp.ge.s32.totalorder %s13_s14, 4   ;;  %s1790_s13 = smov %s1792_s15 }
 0x172   :  { %12 = sbr.rel (!%p10_p5) target bundleno = 2 (0x2), region = 68 }

// kernel: transcriber_forward.7
= control target key start
LH: loop header
LB: loop body
LE: loop exit
PB: predicated region body
PF: predicated region fallthrough
CT: control target
= control target key end

     0   :  { %s1960_s18 = smov 0   ;;  %s1962_s19 = smov 0   ;;  %s2199_s0 = inlined_call_operand.vmem [shape: bf16[2,16,128], index: 0, kind: input, shape index: {}]   ;;  %s2200_s1 = inlined_call_operand.vmem [shape: bf16[2,16,128], index: 1, kind: input, shape index: {}]   ;;  %s2201_s2 = inlined_call_operand.vmem [shape: bf16[2,128,1024], index: 2, kind: input, shape index: {}]   ;;  %s2202_s3 = inlined_call_operand.vmem [shape: bf16[2,128,1024], index: 3, kind: input, shape index: {}]   ;;  %s2203_s4 = inlined_call_operand.vmem [shape: f32[2,1,1024], index: 4, kind: input, shape index: {}]   ;;  %s2204_s5 = inlined_call_operand.vmem [shape: f32[2,16,1024], index: 5, kind: output, shape index: {}]  }
   0x1   :  { %s1964_s20 = smov 0  }
   0x2 LB: > { %s27_s21 = sadd.s32 1, %s1923_s19  ;;  %p1713_p0 = scmp.ge.s32.totalorder %s1927_s20, 1  ;;  %s1927_s20 = sphi %s1964_s20, %s15_s20   ;;  %s1923_s19 = sphi %s1962_s19, %s2206_s19   ;;  %s1919_s18 = sphi %s1960_s18, %s2205_s18  }
   0x3   : > { %p29_p1 = scmp.ge.s32.totalorder %s27_s21, 2  ;;  %p254_p2 = scmp.lt.s32.totalorder %s1927_s20, 3 }
   0x5   : > { %s2208_s21 = smov (%p29_p1, %s27_s21), 0  ;;  %p255_p3 = pnand %p1713_p0, %p254_p2 }
   0x6   : > { %p315_p4 = scmp.lt.s32.totalorder (!%p255_p3), %s1919_s18, 1  ;;  %v1929_v0 = vmov (!%p255_p3), 0  }
   0x7   : > { %258 = sbr.rel (%p255_p3) target bundleno = 367 (0x16f), region = 40  ;;  %850 = vmatprep.mubr.bf16.mxu0 (!%p255_p3), %v1929_v0  ;;  %893 = vmatprep.mubr.bf16.mxu1 (!%p255_p3), %v1929_v0 }
   0xe   : > { %s2210_s18 = smov (!%p315_p4, %s1919_s18), 1 }
   0xf   : > { %s1859_s22 = sshll.u32 %s2210_s18, 9  ;;  %s2007_s26 = sshll.u32 %s2210_s18, 3 }
  0x10   : > { %s1988_s25 = scalar_lea.vmem %s2202_s3, %s1859_s22  ;;  %s332_s29 = scalar_lea.vmem %s2200_s1, %s2007_s26 }
  0x11   : > { %v428_v1 = vld [vmem:[%s1988_s25] sm:$0xff]  ;;  %v429_v3 = vld [vmem:[%s1988_s25 + $0x8] sm:$0xff]  ;;  %v430_v63 = vld [vmem:[%s1988_s25 + $0x10] sm:$0xff]  ;;  %s322_s9 = scalar_lea.vmem %s2199_s0, %s2007_s26  ;;  %s2079_s12 = scalar_lea.vmem %s2201_s2, %s1859_s22 }
  0x12   : > { %v432_v2 = vld [vmem:[%s1988_s25 + $0x20] sm:$0xff]  ;;  %v433_v5 = vld [vmem:[%s1988_s25 + $0x28] sm:$0xff]  ;;  %s347_s17 = scalar_lea.vmem %s2203_s4, %s2007_s26  ;;  %s1861_s22 = sshll.u32 %s2210_s18, 7 }
  0x13   : > { %v1727_v4 = vcombine.high %v428_v1, %v432_v2  ;;  %v1726_v6 = vcombine.low %v428_v1, %v432_v2  ;;  %v436_v7 = vld [vmem:[%s1988_s25 + $0x40] sm:$0xff]  ;;  %v1729_v9 = vcombine.high %v429_v3, %v433_v5  ;;  %v1728_v10 = vcombine.low %v429_v3, %v433_v5  ;;  %v437_v12 = vld [vmem:[%s1988_s25 + $0x48] sm:$0xff]  ;;  %v434_v1 = vld [vmem:[%s1988_s25 + $0x30] sm:$0xff] }
  0x14   : > { %v440_v8 = vld [vmem:[%s1988_s25 + $0x60] sm:$0xff]  ;;  %v441_v13 = vld [vmem:[%s1988_s25 + $0x68] sm:$0xff]  ;;  %v431_v2 = vld [vmem:[%s1988_s25 + $0x18] sm:$0xff] }
  0x15   : > { %v1735_v11 = vcombine.high %v436_v7, %v440_v8  ;;  %v444_v14 = vld [vmem:[%s1988_s25 + $0x80] sm:$0xff]  ;;  %818 = vmatprep.subr.bf16.mxu0 %v1727_v4  ;;  %v1737_v15 = vcombine.high %v437_v12, %v441_v13  ;;  %v445_v17 = vld [vmem:[%s1988_s25 + $0x88] sm:$0xff]  ;;  %861 = vmatprep.subr.bf16.mxu1 %v1729_v9  ;;  %v1734_v19 = vcombine.low %v436_v7, %v440_v8  ;;  %v435_v3 = vld [vmem:[%s1988_s25 + $0x38] sm:$0xff] }
  0x16   : > { %v448_v16 = vld [vmem:[%s1988_s25 + $0xa0] sm:$0xff]  ;;  %v449_v18 = vld [vmem:[%s1988_s25 + $0xa8] sm:$0xff]  ;;  %819 = vmatpush1.bf16.msra.mxu0 %v1726_v6  ;;  %862 = vmatpush1.bf16.msra.mxu1 %v1728_v10  ;;  %v1736_v20 = vcombine.low %v437_v12, %v441_v13  ;;  %v1731_v6 = vcombine.high %v430_v63, %v434_v1  ;;  %v1733_v7 = vcombine.high %v431_v2, %v435_v3  ;;  %v438_v8 = vld [vmem:[%s1988_s25 + $0x50] sm:$0xff] }
  0x17   : > { %820 = vmatprep.subr.bf16.mxu0 %v1735_v11  ;;  %v1743_v21 = vcombine.high %v444_v14, %v448_v16  ;;  %863 = vmatprep.subr.bf16.mxu1 %v1737_v15  ;;  %v1745_v22 = vcombine.high %v445_v17, %v449_v18  ;;  %v452_v23 = vld [vmem:[%s1988_s25 + $0xc0] sm:$0xff]  ;;  %v453_v25 = vld [vmem:[%s1988_s25 + $0xc8] sm:$0xff]  ;;  %v1742_v27 = vcombine.low %v444_v14, %v448_v16  ;;  %v442_v9 = vld [vmem:[%s1988_s25 + $0x70] sm:$0xff] }
  0x18   : > { %v456_v24 = vld [vmem:[%s1988_s25 + $0xe0] sm:$0xff]  ;;  %v457_v26 = vld [vmem:[%s1988_s25 + $0xe8] sm:$0xff]  ;;  %v1744_v28 = vcombine.low %v445_v17, %v449_v18  ;;  %v439_v11 = vld [vmem:[%s1988_s25 + $0x58] sm:$0xff]  ;;  %v1730_v13 = vcombine.low %v430_v63, %v434_v1  ;;  %v1732_v14 = vcombine.low %v431_v2, %v435_v3  ;;  %v1739_v15 = vcombine.high %v438_v8, %v442_v9 }
  0x19   : > { %v1751_v29 = vcombine.high %v452_v23, %v456_v24  ;;  %v1753_v30 = vcombine.high %v453_v25, %v457_v26  ;;  %v460_v31 = vld [vmem:[%s1988_s25 + $0x100] sm:$0xff]  ;;  %v461_v33 = vld [vmem:[%s1988_s25 + $0x108] sm:$0xff]  ;;  %v1750_v35 = vcombine.low %v452_v23, %v456_v24  ;;  %v1752_v36 = vcombine.low %v453_v25, %v457_v26  ;;  %v443_v12 = vld [vmem:[%s1988_s25 + $0x78] sm:$0xff] }
  0x1a   : > { %821 = vmatpush1.bf16.msra.mxu0 %v1734_v19  ;;  %864 = vmatpush1.bf16.msra.mxu1 %v1736_v20  ;;  %v464_v32 = vld [vmem:[%s1988_s25 + $0x120] sm:$0xff]  ;;  %v465_v34 = vld [vmem:[%s1988_s25 + $0x128] sm:$0xff]  ;;  %v1741_v16 = vcombine.high %v439_v11, %v443_v12  ;;  %v446_v17 = vld [vmem:[%s1988_s25 + $0x90] sm:$0xff] }
  0x1b   : > { %822 = vmatprep.subr.bf16.mxu0 %v1743_v21  ;;  %865 = vmatprep.subr.bf16.mxu1 %v1745_v22  ;;  %v1759_v37 = vcombine.high %v460_v31, %v464_v32  ;;  %v1761_v38 = vcombine.high %v461_v33, %v465_v34  ;;  %v468_v39 = vld [vmem:[%s1988_s25 + $0x140] sm:$0xff]  ;;  %v469_v41 = vld [vmem:[%s1988_s25 + $0x148] sm:$0xff]  ;;  %v1758_v43 = vcombine.low %v460_v31, %v464_v32  ;;  %v450_v18 = vld [vmem:[%s1988_s25 + $0xb0] sm:$0xff] }
  0x1c   : > { %v472_v40 = vld [vmem:[%s1988_s25 + $0x160] sm:$0xff]  ;;  %v473_v42 = vld [vmem:[%s1988_s25 + $0x168] sm:$0xff]  ;;  %v1760_v44 = vcombine.low %v461_v33, %v465_v34  ;;  %v447_v19 = vld [vmem:[%s1988_s25 + $0x98] sm:$0xff]  ;;  %v1738_v21 = vcombine.low %v438_v8, %v442_v9  ;;  %v1740_v22 = vcombine.low %v439_v11, %v443_v12  ;;  %v1747_v23 = vcombine.high %v446_v17, %v450_v18 }
  0x1d   : > { %v1767_v45 = vcombine.high %v468_v39, %v472_v40  ;;  %v1769_v46 = vcombine.high %v469_v41, %v473_v42  ;;  %v476_v47 = vld [vmem:[%s1988_s25 + $0x180] sm:$0xff]  ;;  %v477_v49 = vld [vmem:[%s1988_s25 + $0x188] sm:$0xff]  ;;  %v1766_v51 = vcombine.low %v468_v39, %v472_v40  ;;  %v1768_v52 = vcombine.low %v469_v41, %v473_v42  ;;  %v451_v20 = vld [vmem:[%s1988_s25 + $0xb8] sm:$0xff] }
  0x1e   : > { %823 = vmatpush1.bf16.msra.mxu0 %v1742_v27  ;;  %866 = vmatpush1.bf16.msra.mxu1 %v1744_v28  ;;  %v480_v48 = vld [vmem:[%s1988_s25 + $0x1a0] sm:$0xff]  ;;  %v481_v50 = vld [vmem:[%s1988_s25 + $0x1a8] sm:$0xff]  ;;  %v1749_v24 = vcombine.high %v447_v19, %v451_v20  ;;  %v454_v25 = vld [vmem:[%s1988_s25 + $0xd0] sm:$0xff] }
  0x1f   : > { %824 = vmatprep.subr.bf16.mxu0 %v1751_v29  ;;  %867 = vmatprep.subr.bf16.mxu1 %v1753_v30  ;;  %v1775_v53 = vcombine.high %v476_v47, %v480_v48  ;;  %v1777_v54 = vcombine.high %v477_v49, %v481_v50  ;;  %v484_v55 = vld [vmem:[%s1988_s25 + $0x1c0] sm:$0xff]  ;;  %v485_v57 = vld [vmem:[%s1988_s25 + $0x1c8] sm:$0xff]  ;;  %v1774_v59 = vcombine.low %v476_v47, %v480_v48  ;;  %v458_v26 = vld [vmem:[%s1988_s25 + $0xf0] sm:$0xff] }
  0x20   : > { %v488_v56 = vld [vmem:[%s1988_s25 + $0x1e0] sm:$0xff]  ;;  %v489_v58 = vld [vmem:[%s1988_s25 + $0x1e8] sm:$0xff]  ;;  %v1776_v60 = vcombine.low %v477_v49, %v481_v50  ;;  %v455_v27 = vld [vmem:[%s1988_s25 + $0xd8] sm:$0xff]  ;;  %v1746_v29 = vcombine.low %v446_v17, %v450_v18  ;;  %v1748_v30 = vcombine.low %v447_v19, %v451_v20  ;;  %v1755_v31 = vcombine.high %v454_v25, %v458_v26 }
  0x21   : > { %v1783_v61 = vcombine.high %v484_v55, %v488_v56  ;;  %v1785_v62 = vcombine.high %v485_v57, %v489_v58  ;;  %v1782_v4 = vcombine.low %v484_v55, %v488_v56  ;;  %v1784_v5 = vcombine.low %v485_v57, %v489_v58  ;;  %v2040_v10 = vld [vmem:[%s332_s29] sm:$0xff]   ;;  %v459_v28 = vld [vmem:[%s1988_s25 + $0xf8] sm:$0xff]  ;;  %v462_v33 = vld [vmem:[%s1988_s25 + $0x110] sm:$0xff] }
  0x22   : > { %825 = vmatpush1.bf16.msra.mxu0 %v1750_v35  ;;  %868 = vmatpush1.bf16.msra.mxu1 %v1752_v36  ;;  %v1757_v32 = vcombine.high %v455_v27, %v459_v28  ;;  %v466_v34 = vld [vmem:[%s1988_s25 + $0x130] sm:$0xff]  ;;  %v463_v35 = vld [vmem:[%s1988_s25 + $0x118] sm:$0xff]  ;;  %v362_v2 = vld [vmem:[%s2079_s12] sm:$0xff] }
  0x23   : > { %826 = vmatprep.subr.bf16.mxu0 %v1759_v37  ;;  %869 = vmatprep.subr.bf16.mxu1 %v1761_v38  ;;  %v467_v36 = vld [vmem:[%s1988_s25 + $0x138] sm:$0xff]  ;;  %v1754_v37 = vcombine.low %v454_v25, %v458_v26  ;;  %v1756_v38 = vcombine.low %v455_v27, %v459_v28  ;;  %v1763_v39 = vcombine.high %v462_v33, %v466_v34  ;;  %v470_v41 = vld [vmem:[%s1988_s25 + $0x150] sm:$0xff]  ;;  %v366_v3 = vld [vmem:[%s2079_s12 + $0x20] sm:$0xff] }
  0x24   : > { %v1765_v40 = vcombine.high %v463_v35, %v467_v36  ;;  %v474_v42 = vld [vmem:[%s1988_s25 + $0x170] sm:$0xff]  ;;  %v1792_v8 = vcombine.high %v362_v2, %v366_v3  ;;  %v370_v11 = vld [vmem:[%s2079_s12 + $0x40] sm:$0xff] }
  0x25   : > { %v1771_v47 = vcombine.high %v470_v41, %v474_v42  ;;  %v478_v49 = vld [vmem:[%s1988_s25 + $0x190] sm:$0xff]  ;;  %v374_v12 = vld [vmem:[%s2079_s12 + $0x60] sm:$0xff] }
  0x26   : > { %827 = vmatpush1.bf16.msra.mxu0 %v1758_v43  ;;  %870 = vmatpush1.bf16.msra.mxu1 %v1760_v44  ;;  %v471_v43 = vld [vmem:[%s1988_s25 + $0x158] sm:$0xff]  ;;  %v482_v50 = vld [vmem:[%s1988_s25 + $0x1b0] sm:$0xff]  ;;  %v1800_v17 = vcombine.high %v370_v11, %v374_v12  ;;  %v378_v19 = vld [vmem:[%s2079_s12 + $0x80] sm:$0xff] }
  0x27   : > { %828 = vmatprep.subr.bf16.mxu0 %v1767_v45  ;;  %871 = vmatprep.subr.bf16.mxu1 %v1769_v46  ;;  %v475_v44 = vld [vmem:[%s1988_s25 + $0x178] sm:$0xff]  ;;  %v1762_v45 = vcombine.low %v462_v33, %v466_v34  ;;  %v1764_v46 = vcombine.low %v463_v35, %v467_v36  ;;  %v1779_v55 = vcombine.high %v478_v49, %v482_v50  ;;  %v486_v57 = vld [vmem:[%s1988_s25 + $0x1d0] sm:$0xff]  ;;  %v382_v20 = vld [vmem:[%s2079_s12 + $0xa0] sm:$0xff] }
  0x28   : > { %v1773_v48 = vcombine.high %v471_v43, %v475_v44  ;;  %v490_v58 = vld [vmem:[%s1988_s25 + $0x1f0] sm:$0xff]  ;;  %v1808_v25 = vcombine.high %v378_v19, %v382_v20  ;;  %v386_v27 = vld [vmem:[%s2079_s12 + $0xc0] sm:$0xff]  ;;  %v395_v36 = vld [vmem:[%s2079_s12 + $0x108] sm:$0xff] }
  0x29   : > { %v1787_v63 = vcombine.high %v486_v57, %v490_v58  ;;  %v390_v28 = vld [vmem:[%s2079_s12 + $0xe0] sm:$0xff] }
  0x2a   : > { %829 = vmatpush1.bf16.msra.mxu0 %v1766_v51  ;;  %872 = vmatpush1.bf16.msra.mxu1 %v1768_v52  ;;  %v479_v51 = vld [vmem:[%s1988_s25 + $0x198] sm:$0xff]  ;;  %v394_v34 = vld [vmem:[%s2079_s12 + $0x100] sm:$0xff] }
  0x2b   : > { %830 = vmatprep.subr.bf16.mxu0 %v1775_v53  ;;  %873 = vmatprep.subr.bf16.mxu1 %v1777_v54  ;;  %v483_v52 = vld [vmem:[%s1988_s25 + $0x1b8] sm:$0xff]  ;;  %v1770_v53 = vcombine.low %v470_v41, %v474_v42  ;;  %v1772_v54 = vcombine.low %v471_v43, %v475_v44  ;;  %v398_v35 = vld [vmem:[%s2079_s12 + $0x120] sm:$0xff]  ;;  %v403_v44 = vld [vmem:[%s2079_s12 + $0x148] sm:$0xff] }
  0x2c   : > { %v1781_v56 = vcombine.high %v479_v51, %v483_v52  ;;  %v402_v42 = vld [vmem:[%s2079_s12 + $0x140] sm:$0xff] }
  0x2d   : > { %v406_v43 = vld [vmem:[%s2079_s12 + $0x160] sm:$0xff] }
  0x2e   : > { %831 = vmatpush1.bf16.msra.mxu0 %v1774_v59  ;;  %874 = vmatpush1.bf16.msra.mxu1 %v1776_v60  ;;  %v487_v59 = vld [vmem:[%s1988_s25 + $0x1d8] sm:$0xff] }
  0x2f   : > { %832 = vmatprep.subr.bf16.mxu0 %v1783_v61  ;;  %875 = vmatprep.subr.bf16.mxu1 %v1785_v62  ;;  %v491_v60 = vld [vmem:[%s1988_s25 + $0x1f8] sm:$0xff]  ;;  %v1778_v61 = vcombine.low %v478_v49, %v482_v50  ;;  %v1780_v62 = vcombine.low %v479_v51, %v483_v52  ;;  %v410_v50 = vld [vmem:[%s2079_s12 + $0x180] sm:$0xff]  ;;  %v411_v52 = vld [vmem:[%s2079_s12 + $0x188] sm:$0xff]  ;;  %s2172_s25 = scalar_lea.vmem %s2204_s5, %s1861_s22 }
  0x30   : > { %v1789_v1 = vcombine.high %v487_v59, %v491_v60  ;;  %v414_v51 = vld [vmem:[%s2079_s12 + $0x1a0] sm:$0xff] }
  0x32   : > { %833 = vmatpush1.bf16.msra.mxu0 %v1782_v4  ;;  %876 = vmatpush1.bf16.msra.mxu1 %v1784_v5  ;;  %v363_v4 = vld [vmem:[%s2079_s12 + $0x8] sm:$0xff] }
  0x33   : > { %904 = vmatprep.subr.bf16.mxu0 %v1731_v6  ;;  %947 = vmatprep.subr.bf16.mxu1 %v1733_v7  ;;  %v367_v5 = vld [vmem:[%s2079_s12 + $0x28] sm:$0xff]  ;;  %v1786_v6 = vcombine.low %v486_v57, %v490_v58  ;;  %v1788_v7 = vcombine.low %v487_v59, %v491_v60  ;;  %v418_v58 = vld [vmem:[%s2079_s12 + $0x1c0] sm:$0xff] }
  0x34   : > { %v1794_v9 = vcombine.high %v363_v4, %v367_v5  ;;  %v422_v59 = vld [vmem:[%s2079_s12 + $0x1e0] sm:$0xff]  ;;  %v419_v60 = vld [vmem:[%s2079_s12 + $0x1c8] sm:$0xff] }
  0x35   : > { %851 = vmatmul.mubr.bf16.vlgmr.msra.gmra.mrb[0].mxu0 %v2040_v10  ;;  %894 = vmatmul.mubr.bf16.vlgmr.msra.gmra.mrb[0].mxu1 %v2040_v10 }
  0x36   : > { %905 = vmatpush1.bf16.msra.mxu0 %v1730_v13  ;;  %948 = vmatpush1.bf16.msra.mxu1 %v1732_v14  ;;  %v371_v13 = vld [vmem:[%s2079_s12 + $0x48] sm:$0xff] }
  0x37   : > { %906 = vmatprep.subr.bf16.mxu0 %v1739_v15  ;;  %949 = vmatprep.subr.bf16.mxu1 %v1741_v16  ;;  %v375_v14 = vld [vmem:[%s2079_s12 + $0x68] sm:$0xff]  ;;  %v1791_v15 = vcombine.low %v362_v2, %v366_v3  ;;  %v1793_v16 = vcombine.low %v363_v4, %v367_v5  ;;  %v364_v3 = vld [vmem:[%s2079_s12 + $0x10] sm:$0xff]  ;;  %v365_v5 = vld [vmem:[%s2079_s12 + $0x18] sm:$0xff] }
  0x38   : > { %936 = vmatprep.mubr.bf16.mxu0 %v1929_v0  ;;  %979 = vmatprep.mubr.bf16.mxu1 %v1929_v0  ;;  %v1802_v18 = vcombine.high %v371_v13, %v375_v14  ;;  %v368_v4 = vld [vmem:[%s2079_s12 + $0x30] sm:$0xff] }
  0x3a   : > { %907 = vmatpush1.bf16.msra.mxu0 %v1738_v21  ;;  %950 = vmatpush1.bf16.msra.mxu1 %v1740_v22  ;;  %v379_v21 = vld [vmem:[%s2079_s12 + $0x88] sm:$0xff] }
  0x3b   : > { %908 = vmatprep.subr.bf16.mxu0 %v1747_v23  ;;  %951 = vmatprep.subr.bf16.mxu1 %v1749_v24  ;;  %v383_v22 = vld [vmem:[%s2079_s12 + $0xa8] sm:$0xff]  ;;  %v1799_v23 = vcombine.low %v370_v11, %v374_v12  ;;  %v1801_v24 = vcombine.low %v371_v13, %v375_v14  ;;  %v372_v12 = vld [vmem:[%s2079_s12 + $0x50] sm:$0xff]  ;;  %v2130_v14 = vld [vmem:[%s322_s9] sm:$0xff]  }
  0x3c   : > { %v1810_v26 = vcombine.high %v379_v21, %v383_v22  ;;  %v376_v13 = vld [vmem:[%s2079_s12 + $0x70] sm:$0xff] }
  0x3e   : > { %909 = vmatpush1.bf16.msra.mxu0 %v1746_v29  ;;  %952 = vmatpush1.bf16.msra.mxu1 %v1748_v30  ;;  %v387_v29 = vld [vmem:[%s2079_s12 + $0xc8] sm:$0xff] }
  0x3f   : > { %910 = vmatprep.subr.bf16.mxu0 %v1755_v31  ;;  %953 = vmatprep.subr.bf16.mxu1 %v1757_v32  ;;  %v391_v30 = vld [vmem:[%s2079_s12 + $0xe8] sm:$0xff]  ;;  %v1809_v31 = vcombine.low %v379_v21, %v383_v22  ;;  %v1816_v32 = vcombine.high %v386_v27, %v390_v28  ;;  %v380_v21 = vld [vmem:[%s2079_s12 + $0x90] sm:$0xff] }
  0x40   : > { %v1818_v33 = vcombine.high %v387_v29, %v391_v30  ;;  %v384_v22 = vld [vmem:[%s2079_s12 + $0xb0] sm:$0xff] }
  0x42   : > { %911 = vmatpush1.bf16.msra.mxu0 %v1754_v37  ;;  %954 = vmatpush1.bf16.msra.mxu1 %v1756_v38  ;;  %v399_v37 = vld [vmem:[%s2079_s12 + $0x128] sm:$0xff]  ;;  %v1815_v38 = vcombine.low %v386_v27, %v390_v28  ;;  %v1812_v27 = vcombine.high %v380_v21, %v384_v22 }
  0x43   : > { %912 = vmatprep.subr.bf16.mxu0 %v1763_v39  ;;  %955 = vmatprep.subr.bf16.mxu1 %v1765_v40  ;;  %v1817_v39 = vcombine.low %v387_v29, %v391_v30  ;;  %v1824_v40 = vcombine.high %v394_v34, %v398_v35  ;;  %v1826_v41 = vcombine.high %v395_v36, %v399_v37  ;;  %v388_v29 = vld [vmem:[%s2079_s12 + $0xd0] sm:$0xff] }
  0x44   : > { %v392_v30 = vld [vmem:[%s2079_s12 + $0xf0] sm:$0xff] }
  0x46   : > { %913 = vmatpush1.bf16.msra.mxu0 %v1762_v45  ;;  %956 = vmatpush1.bf16.msra.mxu1 %v1764_v46  ;;  %v407_v45 = vld [vmem:[%s2079_s12 + $0x168] sm:$0xff]  ;;  %v1823_v46 = vcombine.low %v394_v34, %v398_v35  ;;  %v1820_v34 = vcombine.high %v388_v29, %v392_v30 }
  0x47   : > { %914 = vmatprep.subr.bf16.mxu0 %v1771_v47  ;;  %957 = vmatprep.subr.bf16.mxu1 %v1773_v48  ;;  %v1825_v47 = vcombine.low %v395_v36, %v399_v37  ;;  %v1832_v48 = vcombine.high %v402_v42, %v406_v43  ;;  %v1834_v49 = vcombine.high %v403_v44, %v407_v45  ;;  %v396_v36 = vld [vmem:[%s2079_s12 + $0x110] sm:$0xff] }
  0x48   : > { %v400_v37 = vld [vmem:[%s2079_s12 + $0x130] sm:$0xff] }
  0x4a   : > { %915 = vmatpush1.bf16.msra.mxu0 %v1770_v53  ;;  %958 = vmatpush1.bf16.msra.mxu1 %v1772_v54  ;;  %v415_v53 = vld [vmem:[%s2079_s12 + $0x1a8] sm:$0xff]  ;;  %v1831_v54 = vcombine.low %v402_v42, %v406_v43  ;;  %v404_v43 = vld [vmem:[%s2079_s12 + $0x150] sm:$0xff] }
  0x4b   : > { %916 = vmatprep.subr.bf16.mxu0 %v1779_v55  ;;  %959 = vmatprep.subr.bf16.mxu1 %v1781_v56  ;;  %v1833_v55 = vcombine.low %v403_v44, %v407_v45  ;;  %v1840_v56 = vcombine.high %v410_v50, %v414_v51  ;;  %v1842_v57 = vcombine.high %v411_v52, %v415_v53  ;;  %v408_v44 = vld [vmem:[%s2079_s12 + $0x170] sm:$0xff]  ;;  %v405_v45 = vld [vmem:[%s2079_s12 + $0x158] sm:$0xff] }
  0x4e   : > { %917 = vmatpush1.bf16.msra.mxu0 %v1778_v61  ;;  %960 = vmatpush1.bf16.msra.mxu1 %v1780_v62  ;;  %v423_v61 = vld [vmem:[%s2079_s12 + $0x1e8] sm:$0xff]  ;;  %v1839_v62 = vcombine.low %v410_v50, %v414_v51  ;;  %v412_v51 = vld [vmem:[%s2079_s12 + $0x190] sm:$0xff] }
  0x4f   : > { %918 = vmatprep.subr.bf16.mxu0 %v1787_v63  ;;  %961 = vmatprep.subr.bf16.mxu1 %v1789_v1  ;;  %v1841_v63 = vcombine.low %v411_v52, %v415_v53  ;;  %v1848_v1 = vcombine.high %v418_v58, %v422_v59  ;;  %v1850_v2 = vcombine.high %v419_v60, %v423_v61  ;;  %v416_v52 = vld [vmem:[%s2079_s12 + $0x1b0] sm:$0xff]  ;;  %v413_v53 = vld [vmem:[%s2079_s12 + $0x198] sm:$0xff] }
  0x52   : > { %919 = vmatpush1.bf16.msra.mxu0 %v1786_v6  ;;  %962 = vmatpush1.bf16.msra.mxu1 %v1788_v7  ;;  %v369_v6 = vld [vmem:[%s2079_s12 + $0x38] sm:$0xff]  ;;  %v1847_v7 = vcombine.low %v418_v58, %v422_v59  ;;  %v420_v59 = vld [vmem:[%s2079_s12 + $0x1d0] sm:$0xff] }
  0x53   : > { %1316 = vmatprep.subr.bf16.mxu0 %v1792_v8  ;;  %1359 = vmatprep.subr.bf16.mxu1 %v1794_v9  ;;  %v1849_v8 = vcombine.low %v419_v60, %v423_v61  ;;  %v1796_v9 = vcombine.high %v364_v3, %v368_v4  ;;  %v1798_v11 = vcombine.high %v365_v5, %v369_v6  ;;  %v424_v60 = vld [vmem:[%s2079_s12 + $0x1f0] sm:$0xff]  ;;  %v421_v61 = vld [vmem:[%s2079_s12 + $0x1d8] sm:$0xff] }
  0x55   : > { %937 = vmatmul.mubr.bf16.vlgmr.msra.gmra.mrb[4].mxu0 %v2040_v10  ;;  %980 = vmatmul.mubr.bf16.vlgmr.msra.gmra.mrb[4].mxu1 %v2040_v10  ;;  %v1807_v10 = vcombine.low %v378_v19, %v382_v20  ;;  %v1804_v19 = vcombine.high %v372_v12, %v376_v13 }
  0x56   : > { %1317 = vmatpush1.bf16.msra.mxu0 %v1791_v15  ;;  %1360 = vmatpush1.bf16.msra.mxu1 %v1793_v16  ;;  %v373_v15 = vld [vmem:[%s2079_s12 + $0x58] sm:$0xff] }
  0x57   : > { %1318 = vmatprep.subr.bf16.mxu0 %v1800_v17  ;;  %1361 = vmatprep.subr.bf16.mxu1 %v1802_v18  ;;  %v377_v16 = vld [vmem:[%s2079_s12 + $0x78] sm:$0xff]  ;;  %v1795_v17 = vcombine.low %v364_v3, %v368_v4  ;;  %v1797_v18 = vcombine.low %v365_v5, %v369_v6  ;;  %v1851_v4 = vcombine.low %v420_v59, %v424_v60  ;;  %v1490_v6 = vlaneseq }
  0x58   : > { %1348 = vmatprep.mubr.bf16.mxu0 %v1929_v0  ;;  %1391 = vmatprep.mubr.bf16.mxu1 %v1929_v0  ;;  %v1806_v20 = vcombine.high %v373_v15, %v377_v16 }
  0x5a   : > { %1319 = vmatpush1.bf16.msra.mxu0 %v1799_v23  ;;  %1362 = vmatpush1.bf16.msra.mxu1 %v1801_v24  ;;  %v381_v23 = vld [vmem:[%s2079_s12 + $0x98] sm:$0xff] }
  0x5b   : > { %1320 = vmatprep.subr.bf16.mxu0 %v1808_v25  ;;  %1363 = vmatprep.subr.bf16.mxu1 %v1810_v26  ;;  %v385_v24 = vld [vmem:[%s2079_s12 + $0xb8] sm:$0xff]  ;;  %v1803_v25 = vcombine.low %v372_v12, %v376_v13  ;;  %v1805_v26 = vcombine.low %v373_v15, %v377_v16 }
  0x5c   : > { %v1814_v28 = vcombine.high %v381_v23, %v385_v24 }
  0x5e   : > { %1321 = vmatpush1.bf16.msra.mxu0 %v1807_v10  ;;  %1364 = vmatpush1.bf16.msra.mxu1 %v1809_v31  ;;  %v389_v10 = vld [vmem:[%s2079_s12 + $0xd8] sm:$0xff] }
  0x5f   : > { %1322 = vmatprep.subr.bf16.mxu0 %v1816_v32  ;;  %1365 = vmatprep.subr.bf16.mxu1 %v1818_v33  ;;  %v393_v31 = vld [vmem:[%s2079_s12 + $0xf8] sm:$0xff]  ;;  %v1811_v32 = vcombine.low %v380_v21, %v384_v22  ;;  %v1813_v33 = vcombine.low %v381_v23, %v385_v24 }
  0x60   : > { %v1822_v35 = vcombine.high %v389_v10, %v393_v31 }
  0x62   : > { %1323 = vmatpush1.bf16.msra.mxu0 %v1815_v38  ;;  %1366 = vmatpush1.bf16.msra.mxu1 %v1817_v39  ;;  %v397_v38 = vld [vmem:[%s2079_s12 + $0x118] sm:$0xff] }
  0x63   : > { %1324 = vmatprep.subr.bf16.mxu0 %v1824_v40  ;;  %1367 = vmatprep.subr.bf16.mxu1 %v1826_v41  ;;  %v401_v39 = vld [vmem:[%s2079_s12 + $0x138] sm:$0xff]  ;;  %v1819_v40 = vcombine.low %v388_v29, %v392_v30  ;;  %v1828_v41 = vcombine.high %v396_v36, %v400_v37 }
  0x64   : > { %v1830_v42 = vcombine.high %v397_v38, %v401_v39 }
  0x66   : > { %1325 = vmatpush1.bf16.msra.mxu0 %v1823_v46  ;;  %1368 = vmatpush1.bf16.msra.mxu1 %v1825_v47  ;;  %v409_v46 = vld [vmem:[%s2079_s12 + $0x178] sm:$0xff]  ;;  %v1827_v47 = vcombine.low %v396_v36, %v400_v37 }
  0x67   : > { %1326 = vmatprep.subr.bf16.mxu0 %v1832_v48  ;;  %1369 = vmatprep.subr.bf16.mxu1 %v1834_v49  ;;  %v1829_v48 = vcombine.low %v397_v38, %v401_v39  ;;  %v1836_v49 = vcombine.high %v404_v43, %v408_v44  ;;  %v1838_v50 = vcombine.high %v405_v45, %v409_v46 }
  0x6a   : > { %1327 = vmatpush1.bf16.msra.mxu0 %v1831_v54  ;;  %1370 = vmatpush1.bf16.msra.mxu1 %v1833_v55  ;;  %v417_v54 = vld [vmem:[%s2079_s12 + $0x1b8] sm:$0xff]  ;;  %v1835_v55 = vcombine.low %v404_v43, %v408_v44 }
  0x6b   : > { %1328 = vmatprep.subr.bf16.mxu0 %v1840_v56  ;;  %1371 = vmatprep.subr.bf16.mxu1 %v1842_v57  ;;  %v1837_v56 = vcombine.low %v405_v45, %v409_v46  ;;  %v1844_v57 = vcombine.high %v412_v51, %v416_v52  ;;  %v1846_v58 = vcombine.high %v413_v53, %v417_v54 }
  0x6e   : > { %1329 = vmatpush1.bf16.msra.mxu0 %v1839_v62  ;;  %1372 = vmatpush1.bf16.msra.mxu1 %v1841_v63  ;;  %v425_v62 = vld [vmem:[%s2079_s12 + $0x1f8] sm:$0xff]  ;;  %v1843_v63 = vcombine.low %v412_v51, %v416_v52 }
  0x6f   : > { %1330 = vmatprep.subr.bf16.mxu0 %v1848_v1  ;;  %1373 = vmatprep.subr.bf16.mxu1 %v1850_v2  ;;  %v1845_v1 = vcombine.low %v413_v53, %v417_v54  ;;  %v1852_v2 = vcombine.high %v420_v59, %v424_v60  ;;  %v1854_v3 = vcombine.high %v421_v61, %v425_v62 }
  0x70   : > { %v1853_v5 = vcombine.low %v421_v61, %v425_v62 }
  0x72   : > { %1331 = vmatpush1.bf16.msra.mxu0 %v1847_v7  ;;  %1374 = vmatpush1.bf16.msra.mxu1 %v1849_v8  ;;  %v1491_v7 = vshrl.u32 %v1490_v6, 7 }
  0x73   : > { %1402 = vmatprep.subr.bf16.mxu0 %v1796_v9  ;;  %1445 = vmatprep.subr.bf16.mxu1 %v1798_v11  ;;  %v1488_v9 = vld [vmem:[%s347_s17] sm:$0xff] }
  0x74   : > { %v1492_v8 = vsub.s32 0, %v1491_v7  ;;  %v1500_v11 = vsub.s32 2, %v1491_v7  ;;  %v1496_v12 = vsub.s32 1, %v1491_v7  ;;  %v1504_v13 = vsub.s32 3, %v1491_v7 }
  0x75   : > { %1349 = vmatmul.mubr.bf16.vlgmr.msra.gmra.mrb[0].mxu0 %v2130_v14  ;;  %1392 = vmatmul.mubr.bf16.vlgmr.msra.gmra.mrb[0].mxu1 %v2130_v14  ;;  %v1520_v36 = vsub.s32 7, %v1491_v7 }
  0x76   : > { %1403 = vmatpush1.bf16.msra.mxu0 %v1795_v17  ;;  %1446 = vmatpush1.bf16.msra.mxu1 %v1797_v18  ;;  %v1493_v15 = vrot.slane %v1488_v9, %v1492_v8  ;;  %v1501_v16 = vrot.slane %v1488_v9, %v1500_v11  ;;  %v1497_v17 = vrot.slane %v1488_v9, %v1496_v12 }
  0x77   : > { %1404 = vmatprep.subr.bf16.mxu0 %v1804_v19  ;;  %1447 = vmatprep.subr.bf16.mxu1 %v1806_v20  ;;  %v1505_v18 = vrot.slane %v1488_v9, %v1504_v13 }
  0x78   : > { %1434 = vmatprep.mubr.bf16.mxu0 %v1929_v0  ;;  %1477 = vmatprep.mubr.bf16.mxu1 %v1929_v0  ;;  %v1821_v0 = vcombine.low %v389_v10, %v393_v31 }
  0x7a   : > { %1405 = vmatpush1.bf16.msra.mxu0 %v1803_v25  ;;  %1448 = vmatpush1.bf16.msra.mxu1 %v1805_v26 }
  0x7b   : > { %1406 = vmatprep.subr.bf16.mxu0 %v1812_v27  ;;  %1449 = vmatprep.subr.bf16.mxu1 %v1814_v28 }
  0x7e   : > { %1407 = vmatpush1.bf16.msra.mxu0 %v1811_v32  ;;  %1450 = vmatpush1.bf16.msra.mxu1 %v1813_v33  ;;  %v1508_v33 = vsub.s32 4, %v1491_v7 }
  0x7f   : > { %1408 = vmatprep.subr.bf16.mxu0 %v1820_v34  ;;  %1451 = vmatprep.subr.bf16.mxu1 %v1822_v35  ;;  %v1516_v34 = vsub.s32 6, %v1491_v7  ;;  %v1512_v35 = vsub.s32 5, %v1491_v7 }
  0x80   : > { %v1509_v37 = vrot.slane %v1488_v9, %v1508_v33 }
  0x81   : > { %v1517_v38 = vrot.slane %v1488_v9, %v1516_v34  ;;  %v1513_v39 = vrot.slane %v1488_v9, %v1512_v35 }
  0x82   : > { %1409 = vmatpush1.bf16.msra.mxu0 %v1819_v40  ;;  %1452 = vmatpush1.bf16.msra.mxu1 %v1821_v0  ;;  %v1521_v40 = vrot.slane %v1488_v9, %v1520_v36 }
  0x83   : > { %1410 = vmatprep.subr.bf16.mxu0 %v1828_v41  ;;  %1453 = vmatprep.subr.bf16.mxu1 %v1830_v42 }
  0x86   : > { %1411 = vmatpush1.bf16.msra.mxu0 %v1827_v47  ;;  %1454 = vmatpush1.bf16.msra.mxu1 %v1829_v48 }
  0x87   : > { %1412 = vmatprep.subr.bf16.mxu0 %v1836_v49  ;;  %1455 = vmatprep.subr.bf16.mxu1 %v1838_v50 }
  0x8a   : > { %1413 = vmatpush1.bf16.msra.mxu0 %v1835_v55  ;;  %1456 = vmatpush1.bf16.msra.mxu1 %v1837_v56 }
  0x8b   : > { %1414 = vmatprep.subr.bf16.mxu0 %v1844_v57  ;;  %1457 = vmatprep.subr.bf16.mxu1 %v1846_v58 }
  0x8e   : > { %1415 = vmatpush1.bf16.msra.mxu0 %v1843_v63  ;;  %1458 = vmatpush1.bf16.msra.mxu1 %v1845_v1 }
  0x8f   : > { %1416 = vmatprep.subr.bf16.mxu0 %v1852_v2  ;;  %1459 = vmatprep.subr.bf16.mxu1 %v1854_v3 }
  0x92   : > { %1417 = vmatpush1.bf16.msra.mxu0 %v1851_v4  ;;  %1460 = vmatpush1.bf16.msra.mxu1 %v1853_v5 }
  0x95   : > { %1435 = vmatmul.mubr.bf16.vlgmr.msra.gmra.mrb[4].mxu0 %v2130_v14  ;;  %1478 = vmatmul.mubr.bf16.vlgmr.msra.gmra.mrb[4].mxu1 %v2130_v14 }
 0x148   : > { %v1350_v14 = vpop.f32.mrb[0].mxu0  ;;  %v1393_v20 = vpop.f32.mrb[0].mxu1 }
 0x149   : > { %v1530_v19 = vadd.f32 %v1493_v15, %v1350_v14  ;;  %v1352_v21 = vpop.f32.mrb[1].mxu0  ;;  %v1532_v22 = vadd.f32 %v1501_v16, %v1393_v20  ;;  %v1395_v24 = vpop.f32.mrb[1].mxu1 }
 0x14a   : > { %v1531_v23 = vadd.f32 %v1497_v17, %v1352_v21  ;;  %v1354_v25 = vpop.f32.mrb[2].mxu0  ;;  %v1533_v26 = vadd.f32 %v1505_v18, %v1395_v24  ;;  %v1397_v28 = vpop.f32.mrb[2].mxu1 }
 0x14b   : > { %1546 = vst [vmem:[%s2172_s25] sm:$0xff] %v1530_v19  ;;  %v1538_v27 = vadd.f32 %v1493_v15, %v1354_v25  ;;  %v1356_v29 = vpop.f32.mrb[3].mxu0  ;;  %1548 = vst [vmem:[%s2172_s25 + $0x10] sm:$0xff] %v1532_v22  ;;  %v1540_v30 = vadd.f32 %v1501_v16, %v1397_v28  ;;  %v1399_v31 = vpop.f32.mrb[3].mxu1 }
 0x14c   : > { %1547 = vst [vmem:[%s2172_s25 + $0x8] sm:$0xff] %v1531_v23  ;;  %v1539_v10 = vadd.f32 %v1497_v17, %v1356_v29  ;;  %1549 = vst [vmem:[%s2172_s25 + $0x18] sm:$0xff] %v1533_v26  ;;  %v1541_v32 = vadd.f32 %v1505_v18, %v1399_v31 }
 0x14d   : > { %1554 = vst [vmem:[%s2172_s25 + $0x40] sm:$0xff] %v1538_v27  ;;  %1556 = vst [vmem:[%s2172_s25 + $0x50] sm:$0xff] %v1540_v30 }
 0x14e   : > { %1555 = vst [vmem:[%s2172_s25 + $0x48] sm:$0xff] %v1539_v10  ;;  %1557 = vst [vmem:[%s2172_s25 + $0x58] sm:$0xff] %v1541_v32 }
 0x168   : > { %v1436_v0 = vpop.f32.mrb[4].mxu0  ;;  %v1479_v42 = vpop.f32.mrb[4].mxu1 }
 0x169   : > { %v1534_v41 = vadd.f32 %v1509_v37, %v1436_v0  ;;  %v1438_v43 = vpop.f32.mrb[5].mxu0  ;;  %v1536_v44 = vadd.f32 %v1517_v38, %v1479_v42  ;;  %v1481_v46 = vpop.f32.mrb[5].mxu1 }
 0x16a   : > { %v1535_v45 = vadd.f32 %v1513_v39, %v1438_v43  ;;  %v1440_v47 = vpop.f32.mrb[6].mxu0  ;;  %v1537_v48 = vadd.f32 %v1521_v40, %v1481_v46  ;;  %v1483_v50 = vpop.f32.mrb[6].mxu1 }
 0x16b   : > { %1550 = vst [vmem:[%s2172_s25 + $0x20] sm:$0xff] %v1534_v41  ;;  %v1542_v49 = vadd.f32 %v1509_v37, %v1440_v47  ;;  %v1442_v51 = vpop.f32.mrb[7].mxu0  ;;  %1552 = vst [vmem:[%s2172_s25 + $0x30] sm:$0xff] %v1536_v44  ;;  %v1544_v52 = vadd.f32 %v1517_v38, %v1483_v50  ;;  %v1485_v54 = vpop.f32.mrb[7].mxu1 }
 0x16c   : > { %1551 = vst [vmem:[%s2172_s25 + $0x28] sm:$0xff] %v1535_v45  ;;  %v1543_v53 = vadd.f32 %v1513_v39, %v1442_v51  ;;  %1553 = vst [vmem:[%s2172_s25 + $0x38] sm:$0xff] %v1537_v48  ;;  %v1545_v55 = vadd.f32 %v1521_v40, %v1485_v54 }
 0x16d   : > { %1558 = vst [vmem:[%s2172_s25 + $0x60] sm:$0xff] %v1542_v49  ;;  %1560 = vst [vmem:[%s2172_s25 + $0x70] sm:$0xff] %v1544_v52 }
 0x16e   : > { %1559 = vst [vmem:[%s2172_s25 + $0x68] sm:$0xff] %v1543_v53  ;;  %1561 = vst [vmem:[%s2172_s25 + $0x78] sm:$0xff] %v1545_v55 }
 0x16f PF: > { %s15_s20 = sadd.s32 1, %s1927_s20   ;;  %s2205_s18 = smov %s1923_s19 }
 0x170   : > { %p12_p5 = scmp.ge.s32.totalorder %s15_s20, 4   ;;  %s2206_s19 = smov %s2208_s21 }
 0x172   :  { %14 = sbr.rel (!%p12_p5) target bundleno = 2 (0x2), region = 82 }

// kernel: transcriber_forward.9
= control target key start
LH: loop header
LB: loop body
LE: loop exit
PB: predicated region body
PF: predicated region fallthrough
CT: control target
= control target key end

     0   :  { %s929_s18 = smov 0   ;;  %s931_s19 = smov 0   ;;  %s1000_s0 = inlined_call_operand.vmem [shape: bf16[2,16,128], index: 0, kind: input, shape index: {}]   ;;  %s1001_s1 = inlined_call_operand.vmem [shape: bf16[2,16,128], index: 1, kind: input, shape index: {}]   ;;  %s1002_s2 = inlined_call_operand.vmem [shape: bf16[2,128,128], index: 2, kind: input, shape index: {}]   ;;  %s1003_s3 = inlined_call_operand.vmem [shape: bf16[2,128,128], index: 3, kind: input, shape index: {}]   ;;  %s1004_s4 = inlined_call_operand.vmem [shape: f32[2,1,128], index: 4, kind: input, shape index: {}]   ;;  %s1005_s5 = inlined_call_operand.vmem [shape: f32[2,16,128], index: 5, kind: output, shape index: {}]  }
   0x1   :  { %s933_s20 = smov 0  }
   0x2 LB: > { %s27_s21 = sadd.s32 1, %s891_s19  ;;  %p734_p0 = scmp.ge.s32.totalorder %s895_s20, 1  ;;  %s895_s20 = sphi %s933_s20, %s15_s20   ;;  %s891_s19 = sphi %s931_s19, %s1007_s19   ;;  %s887_s18 = sphi %s929_s18, %s1006_s18  }
   0x3   : > { %p29_p1 = scmp.ge.s32.totalorder %s27_s21, 2  ;;  %p253_p2 = scmp.lt.s32.totalorder %s895_s20, 3 }
   0x5   : > { %s1009_s21 = smov (%p29_p1, %s27_s21), 0  ;;  %p254_p3 = pnand %p734_p0, %p253_p2 }
   0x6   : > { %p312_p4 = scmp.lt.s32.totalorder (!%p254_p3), %s887_s18, 1  ;;  %v897_v0 = vmov (!%p254_p3), 0.0   ;;  %vm898_vm0 = vmmov (!%p254_p3), 0  }
   0x7   : > { %257 = sbr.rel (%p254_p3) target bundleno = 269 (0x10d), region = 40  ;;  %789 = vmatprep.subr.bf16.mxu0 (!%p254_p3), %v897_v0  ;;  %809 = vmatprep.subr.bf16.mxu1 (!%p254_p3), %v897_v0 }
   0x8   : > { %805 = vmatprep.mubr.msk.bf16.mxu0 (!%p254_p3), %vm898_vm0, %v897_v0  ;;  %825 = vmatprep.mubr.msk.bf16.mxu1 (!%p254_p3), %vm898_vm0, %v897_v0 }
   0xe   : > { %s1011_s18 = smov (!%p312_p4, %s887_s18), 1 }
   0xf   : > { %s768_s22 = sshll.u32 %s1011_s18, 6  ;;  %s766_s29 = sshll.u32 %s1011_s18, 3 }
  0x10   : > { %s953_s25 = scalar_lea.vmem %s1003_s3, %s768_s22  ;;  %s958_s28 = scalar_lea.vmem %s1002_s2, %s768_s22 }
  0x11   : > { %v855_v1 = vld [vmem:[%s953_s25] sm:$0xff]   ;;  %v857_v3 = vld [vmem:[%s953_s25 + $0x8] sm:$0xff]   ;;  %v859_v5 = vld [vmem:[%s953_s25 + $0x10] sm:$0xff]   ;;  %s329_s7 = scalar_lea.vmem %s1001_s1, %s766_s29  ;;  %s319_s10 = scalar_lea.vmem %s1000_s0, %s766_s29 }
  0x12   : > { %v856_v2 = vld [vmem:[%s958_s28] sm:$0xff]   ;;  %790 = vmatpush3.bf16.msra.mxu0 %v855_v1  ;;  %v858_v4 = vld [vmem:[%s958_s28 + $0x8] sm:$0xff]   ;;  %v860_v6 = vld [vmem:[%s958_s28 + $0x10] sm:$0xff]   ;;  %s343_s13 = scalar_lea.vmem %s1004_s4, %s1011_s18  ;;  %s770_s14 = sshll.u32 %s1011_s18, 4 }
  0x13   : > { %810 = vmatpush3.bf16.msra.mxu1 %v856_v2  ;;  %791 = vmatprep.subr.bf16.mxu0 %v897_v0  ;;  %v861_v7 = vld [vmem:[%s953_s25 + $0x18] sm:$0xff]   ;;  %v863_v9 = vld [vmem:[%s953_s25 + $0x20] sm:$0xff]   ;;  %v865_v11 = vld [vmem:[%s953_s25 + $0x28] sm:$0xff]   ;;  %s352_s17 = scalar_lea.vmem %s1005_s5, %s770_s14 }
  0x14   : > { %811 = vmatprep.subr.bf16.mxu1 %v897_v0  ;;  %v862_v8 = vld [vmem:[%s958_s28 + $0x18] sm:$0xff]   ;;  %v864_v10 = vld [vmem:[%s958_s28 + $0x20] sm:$0xff]   ;;  %v866_v12 = vld [vmem:[%s958_s28 + $0x28] sm:$0xff]  }
  0x15   : > { %v867_v13 = vld [vmem:[%s953_s25 + $0x30] sm:$0xff]   ;;  %v869_v15 = vld [vmem:[%s953_s25 + $0x38] sm:$0xff]   ;;  %v871_v17 = vld [vmem:[%s329_s7] sm:$0xff]  }
  0x16   : > { %792 = vmatpush3.bf16.msra.mxu0 %v857_v3  ;;  %v868_v14 = vld [vmem:[%s958_s28 + $0x30] sm:$0xff]   ;;  %v870_v16 = vld [vmem:[%s958_s28 + $0x38] sm:$0xff]   ;;  %v872_v18 = vld [vmem:[%s319_s10] sm:$0xff]  }
  0x17   : > { %812 = vmatpush3.bf16.msra.mxu1 %v858_v4  ;;  %793 = vmatprep.subr.bf16.mxu0 %v897_v0  ;;  %v763_v21 = vld [vmem:[%s343_s13] ss:$0 sm:$0xff] }
  0x18   : > { %813 = vmatprep.subr.bf16.mxu1 %v897_v0 }
  0x1a   : > { %794 = vmatpush3.bf16.msra.mxu0 %v859_v5 }
  0x1b   : > { %814 = vmatpush3.bf16.msra.mxu1 %v860_v6  ;;  %795 = vmatprep.subr.bf16.mxu0 %v897_v0 }
  0x1c   : > { %815 = vmatprep.subr.bf16.mxu1 %v897_v0 }
  0x1e   : > { %796 = vmatpush3.bf16.msra.mxu0 %v861_v7 }
  0x1f   : > { %816 = vmatpush3.bf16.msra.mxu1 %v862_v8  ;;  %797 = vmatprep.subr.bf16.mxu0 %v897_v0 }
  0x20   : > { %817 = vmatprep.subr.bf16.mxu1 %v897_v0 }
  0x22   : > { %798 = vmatpush3.bf16.msra.mxu0 %v863_v9 }
  0x23   : > { %818 = vmatpush3.bf16.msra.mxu1 %v864_v10  ;;  %799 = vmatprep.subr.bf16.mxu0 %v897_v0 }
  0x24   : > { %819 = vmatprep.subr.bf16.mxu1 %v897_v0 }
  0x26   : > { %800 = vmatpush3.bf16.msra.mxu0 %v865_v11 }
  0x27   : > { %820 = vmatpush3.bf16.msra.mxu1 %v866_v12  ;;  %801 = vmatprep.subr.bf16.mxu0 %v897_v0 }
  0x28   : > { %821 = vmatprep.subr.bf16.mxu1 %v897_v0 }
  0x2a   : > { %802 = vmatpush3.bf16.msra.mxu0 %v867_v13 }
  0x2b   : > { %822 = vmatpush3.bf16.msra.mxu1 %v868_v14  ;;  %803 = vmatprep.subr.bf16.mxu0 %v897_v0 }
  0x2c   : > { %823 = vmatprep.subr.bf16.mxu1 %v897_v0 }
  0x2e   : > { %804 = vmatpush3.bf16.msra.mxu0 %v869_v15 }
  0x2f   : > { %824 = vmatpush3.bf16.msra.mxu1 %v870_v16 }
  0x31   : > { %806 = vmatmul.mubr.bf16.vlgmr.msra.gmra.mrb[0].mxu0 %v871_v17 }
  0x32   : > { %826 = vmatmul.mubr.bf16.vlgmr.msra.gmra.mrb[0].mxu1 %v872_v18 }
 0x104   : > { %v479_v19 = vpop.f32.mrb[0].mxu0 }
 0x105   : > { %v574_v20 = vpop.f32.mrb[0].mxu1  ;;  %v807_v22 = vpop.f32.mrb[1].mxu0 }
 0x106   : > { %v575_v23 = vadd.f32 %v574_v20, %v479_v19  ;;  %v827_v24 = vpop.f32.mrb[1].mxu1  ;;  %v482_v25 = vpop.f32.mrb[2].mxu0 }
 0x107   : > { %v577_v26 = vpop.f32.mrb[2].mxu1  ;;  %v808_v27 = vpop.f32.mrb[3].mxu0 }
 0x108   : > { %v588_v28 = vadd.f32 %v763_v21, %v575_v23  ;;  %v578_v29 = vadd.f32 %v577_v26, %v482_v25  ;;  %v828_v30 = vpop.f32.mrb[3].mxu1 }
 0x10a   : > { %590 = vst [vmem:[%s352_s17] sm:$0xff] %v588_v28  ;;  %v589_v31 = vadd.f32 %v763_v21, %v578_v29 }
 0x10c   : > { %591 = vst [vmem:[%s352_s17 + $0x8] sm:$0xff] %v589_v31 }
 0x10d PF: > { %s15_s20 = sadd.s32 1, %s895_s20   ;;  %s1006_s18 = smov %s891_s19 }
 0x10e   : > { %p12_p5 = scmp.ge.s32.totalorder %s15_s20, 4   ;;  %s1007_s19 = smov %s1009_s21 }
 0x110   :  { %14 = sbr.rel (!%p12_p5) target bundleno = 2 (0x2), region = 82 }

// kernel: transcriber_forward.6
= control target key start
LH: loop header
LB: loop body
LE: loop exit
PB: predicated region body
PF: predicated region fallthrough
CT: control target
= control target key end

     0   :  { %s4099_s18 = smov 0   ;;  %s4101_s19 = smov 0   ;;  %s5389_s0 = inlined_call_operand.vmem [shape: f32[2,8,2,1024], index: 0, kind: input, shape index: {}, may-alias: {0,1}]   ;;  %s5390_s1 = inlined_call_operand.vmem [shape: f32[2,8,2,1024], index: 1, kind: input, shape index: {}, may-alias: {0,1}]   ;;  %s5391_s2 = inlined_call_operand.vmem [shape: bf16[2,128,512], index: 2, kind: input, shape index: {}]   ;;  %s5392_s3 = inlined_call_operand.vmem [shape: bf16[2,128,512], index: 3, kind: input, shape index: {}]   ;;  %s5393_s4 = inlined_call_operand.vmem [shape: bf16[2,8,2,128], index: 4, kind: output, shape index: {0}]   ;;  %s5394_s5 = inlined_call_operand.vmem [shape: bf16[2,8,2,128], index: 5, kind: output, shape index: {1}]  }
   0x1   :  { %s4103_s20 = smov 0   ;;  %s4105_s21 = smov 0  }
   0x2   :  { %s4107_s22 = smov 0  }
   0x3 LB: > { %s28_s23 = sadd.s32 1, %s4060_s21  ;;  %p44_p1 = scmp.ne.s32.totalorder %s4052_s19, %s4048_s18  ;;  %s4064_s22 = sphi %s4107_s22, %s16_s22   ;;  %s4060_s21 = sphi %s4105_s21, %s5552_s21   ;;  %s4056_s20 = sphi %s4103_s20, %s5551_s20   ;;  %s4052_s19 = sphi %s4101_s19, %s5550_s19   ;;  %s4048_s18 = sphi %s4099_s18, %s5549_s18  }
   0x4   : > { %p30_p0 = scmp.ge.s32.totalorder %s28_s23, 2  ;;  %p45_p2 = scmp.eq.s32.totalorder %s4064_s22, 0 }
   0x5   : > { %s37_s26 = sadd.s32 1, %s4052_s19  ;;  %p3381_p5 = scmp.ge.s32.totalorder %s4064_s22, 2 }
   0x6   : > { %s5554_s23 = smov (%p30_p0, %s28_s23), 0  ;;  %p4130_p3 = por %p45_p2, %p44_p1 }
   0x7   : > { %s32_s25 = ssub.s32 %s4060_s21, %s5554_s23  ;;  %210 = sbr.rel (%p3381_p5) target bundleno = 30 (0x1e), region = 16 }
   0x8   : > { %p35_p4 = scmp.eq.s32.totalorder %s32_s25, 0 }
   0xa   : > { %s4138_s27 = scalar_select %p35_p4, %s4052_s19, %s37_s26  }
   0xe   : > { %213 = sbr.rel (!%p4130_p3) target bundleno = 22 (0x16), region = 20  ;;  %s215_s28 = sand.u32 (%p4130_p3), 1, %s4052_s19  }
   0xf   : > { %s3499_s29 = sshll.u32 (%p4130_p3), %s4060_s21, 7  ;;  %s3382_s30 = sshll.u32 (%p4130_p3), %s215_s28, 6 }
  0x10   : > { %s223_s8 = scalar_lea.vmem (%p4130_p3), %s5389_s0, %s3499_s29  ;;  %s217_s9 = scalar_lea.vmem (%p4130_p3), [#allocation6], %s3382_s30 }
  0x11   : > { %v265_v0 = vld [vmem:[%s223_s8] sm:$0xff] (%p4130_p3)  ;;  %v267_v1 = vld [vmem:[%s223_s8 + $0x10] sm:$0xff] (%p4130_p3) }
  0x12   : > { %v269_v2 = vld [vmem:[%s223_s8 + $0x20] sm:$0xff] (%p4130_p3)  ;;  %266 = vst [vmem:[%s217_s9] sm:$0xff] (%p4130_p3), %v265_v0  ;;  %268 = vst [vmem:[%s217_s9 + $0x8] sm:$0xff] (%p4130_p3), %v267_v1  ;;  %v271_v3 = vld [vmem:[%s223_s8 + $0x30] sm:$0xff] (%p4130_p3) }
  0x13   : > { %270 = vst [vmem:[%s217_s9 + $0x10] sm:$0xff] (%p4130_p3), %v269_v2  ;;  %v273_v4 = vld [vmem:[%s223_s8 + $0x40] sm:$0xff] (%p4130_p3)  ;;  %v275_v5 = vld [vmem:[%s223_s8 + $0x50] sm:$0xff] (%p4130_p3)  ;;  %272 = vst [vmem:[%s217_s9 + $0x18] sm:$0xff] (%p4130_p3), %v271_v3 }
  0x14   : > { %274 = vst [vmem:[%s217_s9 + $0x20] sm:$0xff] (%p4130_p3), %v273_v4  ;;  %276 = vst [vmem:[%s217_s9 + $0x28] sm:$0xff] (%p4130_p3), %v275_v5  ;;  %v277_v6 = vld [vmem:[%s223_s8 + $0x60] sm:$0xff] (%p4130_p3)  ;;  %v279_v7 = vld [vmem:[%s223_s8 + $0x70] sm:$0xff] (%p4130_p3) }
  0x15   : > { %278 = vst [vmem:[%s217_s9 + $0x30] sm:$0xff] %v277_v6  ;;  %280 = vst [vmem:[%s217_s9 + $0x38] sm:$0xff] %v279_v7 }
  0x16 PF: > { %286 = sbr.rel (!%p4130_p3) target bundleno = 30 (0x1e), region = 58  ;;  %s288_s10 = sand.u32 (%p4130_p3), 1, %s4052_s19  }
  0x17   : > { %s3500_s11 = sshll.u32 (%p4130_p3), %s4060_s21, 7  ;;  %s3385_s12 = sshll.u32 (%p4130_p3), %s288_s10, 6 }
  0x18   : > { %s3268_s15 = scalar_lea.vmem (%p4130_p3), %s5390_s1, %s3500_s11  ;;  %s290_s16 = scalar_lea.vmem (%p4130_p3), [#allocation7], %s3385_s12 }
  0x19   : > { %v3388_v8 = vld [vmem:[%s3268_s15 + $0x8] sm:$0xff] (%p4130_p3)  ;;  %v3389_v9 = vld [vmem:[%s3268_s15 + $0x18] sm:$0xff] (%p4130_p3) }
  0x1a   : > { %v3390_v10 = vld [vmem:[%s3268_s15 + $0x28] sm:$0xff] (%p4130_p3)  ;;  %341 = vst [vmem:[%s290_s16] sm:$0xff] (%p4130_p3), %v3388_v8  ;;  %343 = vst [vmem:[%s290_s16 + $0x8] sm:$0xff] (%p4130_p3), %v3389_v9  ;;  %v3391_v11 = vld [vmem:[%s3268_s15 + $0x38] sm:$0xff] (%p4130_p3) }
  0x1b   : > { %345 = vst [vmem:[%s290_s16 + $0x10] sm:$0xff] (%p4130_p3), %v3390_v10  ;;  %v3392_v12 = vld [vmem:[%s3268_s15 + $0x48] sm:$0xff] (%p4130_p3)  ;;  %v3393_v13 = vld [vmem:[%s3268_s15 + $0x58] sm:$0xff] (%p4130_p3)  ;;  %347 = vst [vmem:[%s290_s16 + $0x18] sm:$0xff] (%p4130_p3), %v3391_v11 }
  0x1c   : > { %349 = vst [vmem:[%s290_s16 + $0x20] sm:$0xff] (%p4130_p3), %v3392_v12  ;;  %351 = vst [vmem:[%s290_s16 + $0x28] sm:$0xff] (%p4130_p3), %v3393_v13  ;;  %v3394_v14 = vld [vmem:[%s3268_s15 + $0x68] sm:$0xff] (%p4130_p3)  ;;  %v3395_v15 = vld [vmem:[%s3268_s15 + $0x78] sm:$0xff] (%p4130_p3) }
  0x1d   : > { %353 = vst [vmem:[%s290_s16 + $0x30] sm:$0xff] %v3394_v14  ;;  %355 = vst [vmem:[%s290_s16 + $0x38] sm:$0xff] %v3395_v15 }
  0x1e PF: > { %p3396_p6 = scmp.ge.s32.totalorder %s4064_s22, 1  ;;  %p376_p7 = scmp.lt.s32.totalorder %s4064_s22, 3 }
  0x20   : > { %p377_p8 = pnand %p3396_p6, %p376_p7 }
  0x22   : > { %380 = sbr.rel (%p377_p8) target bundleno = 2328 (0x918), region = 104 }
  0x29   : > { %p446_p9 = scmp.lt.s32.totalorder %s4056_s20, 1  ;;  %v5395_v16 = vmov 0   ;;  %v4067_v17 = vmov 0.0   ;;  %s383_s6 = sand.u32 1, %s4048_s18  }
  0x2a   : > { %744 = vmatprep.mubr.bf16.mxu0 %v5395_v16  ;;  %785 = vmatprep.mubr.bf16.mxu1 %v5395_v16  ;;  %481 = vst [vmem:[#allocation2] sm:$0x3] %v4067_v17  ;;  %482 = vst [vmem:[#allocation3] sm:$0x3] %v4067_v17  ;;  %s4473_s7 = sshll.u32 %s383_s6, 6 }
  0x2b   : > { %483 = vst [vmem:[#allocation4] sm:$0x3] %v4067_v17  ;;  %484 = vst [vmem:[#allocation5] sm:$0x3] %v4067_v17  ;;  %s5556_s20 = smov (!%p446_p9, %s4056_s20), 1  ;;  %s4480_s18 = scalar_lea.vmem [#allocation6], %s4473_s7 }
  0x2c   : > { %s3501_s17 = sshll.u32 %s5556_s20, 8  ;;  %s4486_s8 = scalar_lea.vmem [#allocation7], %s4473_s7 }
  0x2d   : > { %s4169_s26 = scalar_lea.vmem %s5391_s2, %s3501_s17  ;;  %s4268_s30 = scalar_lea.vmem %s5392_s3, %s3501_s17 }
  0x2e   : > { %v4172_v18 = vld [vmem:[%s4169_s26 + $0x4] ss:$16 sps:$4 sm:$0xff]   ;;  %v4175_v19 = vld [vmem:[%s4169_s26 + $0xc] ss:$16 sps:$4 sm:$0xff]   ;;  %v4179_v20 = vld [vmem:[%s4169_s26] ss:$16 sps:$4 sm:$0xff]  }
  0x2f   : > { %712 = vmatprep.subr.bf16.mxu0 %v4172_v18  ;;  %v4182_v21 = vld [vmem:[%s4169_s26 + $0x8] ss:$16 sps:$4 sm:$0xff]   ;;  %753 = vmatprep.subr.bf16.mxu1 %v4175_v19  ;;  %v4186_v22 = vld [vmem:[%s4169_s26 + $0x24] ss:$16 sps:$4 sm:$0xff]   ;;  %v4191_v23 = vld [vmem:[%s4169_s26 + $0x2c] ss:$16 sps:$4 sm:$0xff]  }
  0x30   : > { %713 = vmatpush1.bf16.msra.mxu0 %v4179_v20  ;;  %754 = vmatpush1.bf16.msra.mxu1 %v4182_v21  ;;  %v4194_v24 = vld [vmem:[%s4169_s26 + $0x20] ss:$16 sps:$4 sm:$0xff]   ;;  %v4198_v25 = vld [vmem:[%s4169_s26 + $0x28] ss:$16 sps:$4 sm:$0xff]   ;;  %v4202_v26 = vld [vmem:[%s4169_s26 + $0x44] ss:$16 sps:$4 sm:$0xff]  }
  0x31   : > { %714 = vmatprep.subr.bf16.mxu0 %v4186_v22  ;;  %755 = vmatprep.subr.bf16.mxu1 %v4191_v23  ;;  %v4205_v27 = vld [vmem:[%s4169_s26 + $0x4c] ss:$16 sps:$4 sm:$0xff]   ;;  %v4208_v28 = vld [vmem:[%s4169_s26 + $0x40] ss:$16 sps:$4 sm:$0xff]   ;;  %v4211_v29 = vld [vmem:[%s4169_s26 + $0x48] ss:$16 sps:$4 sm:$0xff]  }
  0x32   : > { %v4216_v30 = vld [vmem:[%s4169_s26 + $0x64] ss:$16 sps:$4 sm:$0xff]   ;;  %v4221_v31 = vld [vmem:[%s4169_s26 + $0x6c] ss:$16 sps:$4 sm:$0xff]   ;;  %v4224_v32 = vld [vmem:[%s4169_s26 + $0x60] ss:$16 sps:$4 sm:$0xff]  }
  0x33   : > { %v4229_v33 = vld [vmem:[%s4169_s26 + $0x68] ss:$16 sps:$4 sm:$0xff]   ;;  %v4232_v34 = vld [vmem:[%s4169_s26 + $0x84] ss:$16 sps:$4 sm:$0xff]   ;;  %v4237_v35 = vld [vmem:[%s4169_s26 + $0x8c] ss:$16 sps:$4 sm:$0xff]  }
  0x34   : > { %715 = vmatpush1.bf16.msra.mxu0 %v4194_v24  ;;  %756 = vmatpush1.bf16.msra.mxu1 %v4198_v25  ;;  %5456 = vst [vmem:[#allocation8_spill] sm:$0xff] %v4232_v34  ;;  %5457 = vst [vmem:[#allocation9_spill] sm:$0xff] %v4237_v35  ;;  %v4240_v36 = vld [vmem:[%s4169_s26 + $0x80] ss:$16 sps:$4 sm:$0xff]   ;;  %v4243_v37 = vld [vmem:[%s4169_s26 + $0x88] ss:$16 sps:$4 sm:$0xff]  }
  0x35   : > { %716 = vmatprep.subr.bf16.mxu0 %v4202_v26  ;;  %757 = vmatprep.subr.bf16.mxu1 %v4205_v27  ;;  %5458 = vst [vmem:[#allocation10_spill] sm:$0xff] %v4240_v36  ;;  %5459 = vst [vmem:[#allocation11_spill] sm:$0xff] %v4243_v37  ;;  %v4248_v38 = vld [vmem:[%s4169_s26 + $0xa4] ss:$16 sps:$4 sm:$0xff]   ;;  %v4253_v39 = vld [vmem:[%s4169_s26 + $0xac] ss:$16 sps:$4 sm:$0xff]  }
  0x36   : > { %5460 = vst [vmem:[#allocation12_spill] sm:$0xff] %v4248_v38  ;;  %5461 = vst [vmem:[#allocation13_spill] sm:$0xff] %v4253_v39  ;;  %v4258_v40 = vld [vmem:[%s4169_s26 + $0xa0] ss:$16 sps:$4 sm:$0xff]   ;;  %v4261_v41 = vld [vmem:[%s4169_s26 + $0xa8] ss:$16 sps:$4 sm:$0xff]  }
  0x37   : > { %5462 = vst [vmem:[#allocation14_spill] sm:$0xff] %v4258_v40  ;;  %5463 = vst [vmem:[#allocation15_spill] sm:$0xff] %v4261_v41  ;;  %v4273_v42 = vld [vmem:[%s4169_s26 + $0xc4] ss:$16 sps:$4 sm:$0xff]   ;;  %v4276_v43 = vld [vmem:[%s4169_s26 + $0xcc] ss:$16 sps:$4 sm:$0xff]  }
  0x38   : > { %717 = vmatpush1.bf16.msra.mxu0 %v4208_v28  ;;  %758 = vmatpush1.bf16.msra.mxu1 %v4211_v29  ;;  %5464 = vst [vmem:[#allocation16_spill] sm:$0xff] %v4273_v42  ;;  %5465 = vst [vmem:[#allocation17_spill] sm:$0xff] %v4276_v43  ;;  %v4279_v44 = vld [vmem:[%s4169_s26 + $0xc0] ss:$16 sps:$4 sm:$0xff]   ;;  %v4282_v45 = vld [vmem:[%s4169_s26 + $0xc8] ss:$16 sps:$4 sm:$0xff]  }
  0x39   : > { %718 = vmatprep.subr.bf16.mxu0 %v4216_v30  ;;  %759 = vmatprep.subr.bf16.mxu1 %v4221_v31  ;;  %5466 = vst [vmem:[#allocation18_spill] sm:$0xff] %v4279_v44  ;;  %5467 = vst [vmem:[#allocation19_spill] sm:$0xff] %v4282_v45  ;;  %v4287_v46 = vld [vmem:[%s4169_s26 + $0xe4] ss:$16 sps:$4 sm:$0xff]   ;;  %v4292_v47 = vld [vmem:[%s4169_s26 + $0xec] ss:$16 sps:$4 sm:$0xff]  }
  0x3a   : > { %5468 = vst [vmem:[#allocation20_spill] sm:$0xff] %v4287_v46  ;;  %5469 = vst [vmem:[#allocation21_spill] sm:$0xff] %v4292_v47  ;;  %v4295_v48 = vld [vmem:[%s4169_s26 + $0xe0] ss:$16 sps:$4 sm:$0xff]   ;;  %v4298_v49 = vld [vmem:[%s4169_s26 + $0xe8] ss:$16 sps:$4 sm:$0xff]  }
  0x3b   : > { %5470 = vst [vmem:[#allocation22_spill] sm:$0xff] %v4295_v48  ;;  %5471 = vst [vmem:[#allocation23_spill] sm:$0xff] %v4298_v49  ;;  %v550_v50 = vld [vmem:[#allocation2] sm:$0x3]  ;;  %v4305_v51 = vld [vmem:[%s4268_s30 + $0x4] ss:$16 sps:$4 sm:$0xff]  }
  0x3c   : > { %719 = vmatpush1.bf16.msra.mxu0 %v4224_v32  ;;  %760 = vmatpush1.bf16.msra.mxu1 %v4229_v33  ;;  %5472 = vst [vmem:[#allocation24_spill] sm:$0xff] %v4305_v51  ;;  %v4308_v52 = vld [vmem:[%s4268_s30 + $0xc] ss:$16 sps:$4 sm:$0xff]   ;;  %v551_v53 = vpack.c.bf16 %v550_v50, %v550_v50  ;;  %v4311_v54 = vld [vmem:[%s4268_s30] ss:$16 sps:$4 sm:$0xff]   ;;  %s3403_s9 = sshll.u32 %s5556_s20, 3 }
  0x3d   : > { %720 = vmatprep.subr.bf16.mxu0 %v4232_v34  ;;  %761 = vmatprep.subr.bf16.mxu1 %v4237_v35  ;;  %5473 = vst [vmem:[#allocation25_spill] sm:$0xff] %v4308_v52  ;;  %v4314_v55 = vld [vmem:[%s4268_s30 + $0x8] ss:$16 sps:$4 sm:$0xff]   ;;  %v4319_v56 = vld [vmem:[%s4268_s30 + $0x24] ss:$16 sps:$4 sm:$0xff]   ;;  %s4495_s12 = scalar_lea.vmem %s5393_s4, %s3403_s9  ;;  %s4525_s15 = scalar_lea.vmem %s5394_s5, %s3403_s9 }
  0x3e   : > { %v4324_v57 = vld [vmem:[%s4268_s30 + $0x2c] ss:$16 sps:$4 sm:$0xff]   ;;  %v4327_v58 = vld [vmem:[%s4268_s30 + $0x20] ss:$16 sps:$4 sm:$0xff]   ;;  %v4332_v59 = vld [vmem:[%s4268_s30 + $0x28] ss:$16 sps:$4 sm:$0xff]  }
  0x3f   : > { %v4337_v60 = vld [vmem:[%s4268_s30 + $0x44] ss:$16 sps:$4 sm:$0xff]   ;;  %v4340_v61 = vld [vmem:[%s4268_s30 + $0x4c] ss:$16 sps:$4 sm:$0xff]   ;;  %v4345_v62 = vld [vmem:[%s4268_s30 + $0x40] ss:$16 sps:$4 sm:$0xff]  }
  0x40   : > { %721 = vmatpush1.bf16.msra.mxu0 %v4240_v36  ;;  %762 = vmatpush1.bf16.msra.mxu1 %v4243_v37  ;;  %v4348_v63 = vld [vmem:[%s4268_s30 + $0x48] ss:$16 sps:$4 sm:$0xff]   ;;  %v4353_v0 = vld [vmem:[%s4268_s30 + $0x64] ss:$16 sps:$4 sm:$0xff]   ;;  %v4358_v1 = vld [vmem:[%s4268_s30 + $0x6c] ss:$16 sps:$4 sm:$0xff]  }
  0x41   : > { %722 = vmatprep.subr.bf16.mxu0 %v4248_v38  ;;  %763 = vmatprep.subr.bf16.mxu1 %v4253_v39  ;;  %v4363_v2 = vld [vmem:[%s4268_s30 + $0x60] ss:$16 sps:$4 sm:$0xff]   ;;  %v4366_v3 = vld [vmem:[%s4268_s30 + $0x68] ss:$16 sps:$4 sm:$0xff]   ;;  %v4371_v4 = vld [vmem:[%s4268_s30 + $0x84] ss:$16 sps:$4 sm:$0xff]  }
  0x42   : > { %v4374_v5 = vld [vmem:[%s4268_s30 + $0x8c] ss:$16 sps:$4 sm:$0xff]   ;;  %v4379_v6 = vld [vmem:[%s4268_s30 + $0x80] ss:$16 sps:$4 sm:$0xff]   ;;  %v4382_v7 = vld [vmem:[%s4268_s30 + $0x88] ss:$16 sps:$4 sm:$0xff]  }
  0x43   : > { %v4387_v8 = vld [vmem:[%s4268_s30 + $0xa4] ss:$16 sps:$4 sm:$0xff]   ;;  %v4390_v9 = vld [vmem:[%s4268_s30 + $0xac] ss:$16 sps:$4 sm:$0xff]   ;;  %v4395_v10 = vld [vmem:[%s4268_s30 + $0xa0] ss:$16 sps:$4 sm:$0xff]  }
  0x44   : > { %723 = vmatpush1.bf16.msra.mxu0 %v4258_v40  ;;  %764 = vmatpush1.bf16.msra.mxu1 %v4261_v41  ;;  %v4398_v11 = vld [vmem:[%s4268_s30 + $0xa8] ss:$16 sps:$4 sm:$0xff]   ;;  %v4403_v12 = vld [vmem:[%s4268_s30 + $0xc4] ss:$16 sps:$4 sm:$0xff]   ;;  %v4406_v13 = vld [vmem:[%s4268_s30 + $0xcc] ss:$16 sps:$4 sm:$0xff]  }
  0x45   : > { %724 = vmatprep.subr.bf16.mxu0 %v4273_v42  ;;  %765 = vmatprep.subr.bf16.mxu1 %v4276_v43  ;;  %5474 = vst [vmem:[#allocation26_spill] sm:$0xff] %v4398_v11  ;;  %5475 = vst [vmem:[#allocation27_spill] sm:$0xff] %v4403_v12  ;;  %v4411_v14 = vld [vmem:[%s4268_s30 + $0xc0] ss:$16 sps:$4 sm:$0xff]   ;;  %v4414_v15 = vld [vmem:[%s4268_s30 + $0xc8] ss:$16 sps:$4 sm:$0xff]  }
  0x46   : > { %v4419_v17 = vld [vmem:[%s4268_s30 + $0xe4] ss:$16 sps:$4 sm:$0xff]   ;;  %v4422_v50 = vld [vmem:[%s4268_s30 + $0xec] ss:$16 sps:$4 sm:$0xff]  }
  0x47   : > { %5476 = vst [vmem:[#allocation28_spill] sm:$0xff] %v4422_v50 }
  0x48   : > { %725 = vmatpush1.bf16.msra.mxu0 %v4279_v44  ;;  %766 = vmatpush1.bf16.msra.mxu1 %v4282_v45 }
  0x49   : > { %726 = vmatprep.subr.bf16.mxu0 %v4287_v46  ;;  %767 = vmatprep.subr.bf16.mxu1 %v4292_v47 }
  0x4c   : > { %727 = vmatpush1.bf16.msra.mxu0 %v4295_v48  ;;  %768 = vmatpush1.bf16.msra.mxu1 %v4298_v49 }
  0x4d   : > { %1017 = vmatprep.subr.bf16.mxu0 %v4305_v51  ;;  %1058 = vmatprep.subr.bf16.mxu1 %v4308_v52 }
  0x4f   : > { %745 = vmatmul.mubr.bf16.vlgmr.msra.gmra.mrb[0].mxu0 %v551_v53  ;;  %786 = vmatmul.mubr.bf16.vlgmr.msra.gmra.mrb[0].mxu1 %v551_v53  ;;  %v4427_v53 = vld [vmem:[%s4268_s30 + $0xe0] ss:$16 sps:$4 sm:$0xff]  }
  0x50   : > { %1018 = vmatpush1.bf16.msra.mxu0 %v4311_v54  ;;  %1059 = vmatpush1.bf16.msra.mxu1 %v4314_v55 }
  0x51   : > { %1019 = vmatprep.subr.bf16.mxu0 %v4319_v56  ;;  %1060 = vmatprep.subr.bf16.mxu1 %v4324_v57 }
  0x52   : > { %1049 = vmatprep.mubr.bf16.mxu0 %v5395_v16  ;;  %1090 = vmatprep.mubr.bf16.mxu1 %v5395_v16  ;;  %v4430_v16 = vld [vmem:[%s4268_s30 + $0xe8] ss:$16 sps:$4 sm:$0xff]  }
  0x54   : > { %1020 = vmatpush1.bf16.msra.mxu0 %v4327_v58  ;;  %1061 = vmatpush1.bf16.msra.mxu1 %v4332_v59 }
  0x55   : > { %1021 = vmatprep.subr.bf16.mxu0 %v4337_v60  ;;  %1062 = vmatprep.subr.bf16.mxu1 %v4340_v61 }
  0x58   : > { %1022 = vmatpush1.bf16.msra.mxu0 %v4345_v62  ;;  %1063 = vmatpush1.bf16.msra.mxu1 %v4348_v63 }
  0x59   : > { %1023 = vmatprep.subr.bf16.mxu0 %v4353_v0  ;;  %1064 = vmatprep.subr.bf16.mxu1 %v4358_v1 }
  0x5c   : > { %1024 = vmatpush1.bf16.msra.mxu0 %v4363_v2  ;;  %1065 = vmatpush1.bf16.msra.mxu1 %v4366_v3 }
  0x5d   : > { %1025 = vmatprep.subr.bf16.mxu0 %v4371_v4  ;;  %1066 = vmatprep.subr.bf16.mxu1 %v4374_v5 }
  0x60   : > { %1026 = vmatpush1.bf16.msra.mxu0 %v4379_v6  ;;  %1067 = vmatpush1.bf16.msra.mxu1 %v4382_v7 }
  0x61   : > { %1027 = vmatprep.subr.bf16.mxu0 %v4387_v8  ;;  %1068 = vmatprep.subr.bf16.mxu1 %v4390_v9 }
  0x64   : > { %1028 = vmatpush1.bf16.msra.mxu0 %v4395_v10  ;;  %1069 = vmatpush1.bf16.msra.mxu1 %v4398_v11  ;;  %v855_v11 = vld [vmem:[#allocation4] sm:$0x3] }
  0x65   : > { %1029 = vmatprep.subr.bf16.mxu0 %v4403_v12  ;;  %1070 = vmatprep.subr.bf16.mxu1 %v4406_v13  ;;  %v856_v12 = vpack.c.bf16 %v855_v11, %v855_v11  ;;  %v4068_v11 = vmov 1983009808  }
  0x68   : > { %1030 = vmatpush1.bf16.msra.mxu0 %v4411_v14  ;;  %1071 = vmatpush1.bf16.msra.mxu1 %v4414_v15 }
  0x69   : > { %1031 = vmatprep.subr.bf16.mxu0 %v4419_v17  ;;  %1072 = vmatprep.subr.bf16.mxu1 %v4422_v50  ;;  %v5477_v50 = vmov 0  }
  0x6c   : > { %1032 = vmatpush1.bf16.msra.mxu0 %v4427_v53  ;;  %1073 = vmatpush1.bf16.msra.mxu1 %v4430_v16 }
  0x6d   : > { %1163 = vmatprep.subr.bf16.mxu0 %v4172_v18  ;;  %1204 = vmatprep.subr.bf16.mxu1 %v4175_v19 }
  0x6f   : > { %1050 = vmatmul.mubr.bf16.vlgmr.msra.gmra.mrb[4].mxu0 %v856_v12  ;;  %1091 = vmatmul.mubr.bf16.vlgmr.msra.gmra.mrb[4].mxu1 %v856_v12  ;;  %v801_v12 = vunpack.c.l.s4 %v4068_v11 }
  0x70   : > { %1164 = vmatpush1.bf16.msra.mxu0 %v4179_v20  ;;  %1205 = vmatpush1.bf16.msra.mxu1 %v4182_v21 }
  0x71   : > { %1165 = vmatprep.subr.bf16.mxu0 %v4186_v22  ;;  %1206 = vmatprep.subr.bf16.mxu1 %v4191_v23 }
  0x72   : > { %1195 = vmatprep.mubr.bf16.mxu0 %v5477_v50  ;;  %1236 = vmatprep.mubr.bf16.mxu1 %v5477_v50 }
  0x74   : > { %1166 = vmatpush1.bf16.msra.mxu0 %v4194_v24  ;;  %1207 = vmatpush1.bf16.msra.mxu1 %v4198_v25 }
  0x75   : > { %1167 = vmatprep.subr.bf16.mxu0 %v4202_v26  ;;  %1208 = vmatprep.subr.bf16.mxu1 %v4205_v27 }
  0x78   : > { %1168 = vmatpush1.bf16.msra.mxu0 %v4208_v28  ;;  %1209 = vmatpush1.bf16.msra.mxu1 %v4211_v29 }
  0x79   : > { %1169 = vmatprep.subr.bf16.mxu0 %v4216_v30  ;;  %1210 = vmatprep.subr.bf16.mxu1 %v4221_v31 }
  0x7c   : > { %1170 = vmatpush1.bf16.msra.mxu0 %v4224_v32  ;;  %1211 = vmatpush1.bf16.msra.mxu1 %v4229_v33 }
  0x7d   : > { %1171 = vmatprep.subr.bf16.mxu0 %v4232_v34  ;;  %1212 = vmatprep.subr.bf16.mxu1 %v4237_v35 }
  0x80   : > { %1172 = vmatpush1.bf16.msra.mxu0 %v4240_v36  ;;  %1213 = vmatpush1.bf16.msra.mxu1 %v4243_v37 }
  0x81   : > { %1173 = vmatprep.subr.bf16.mxu0 %v4248_v38  ;;  %1214 = vmatprep.subr.bf16.mxu1 %v4253_v39 }
  0x84   : > { %1174 = vmatpush1.bf16.msra.mxu0 %v4258_v40  ;;  %1215 = vmatpush1.bf16.msra.mxu1 %v4261_v41 }
  0x85   : > { %1175 = vmatprep.subr.bf16.mxu0 %v4273_v42  ;;  %1216 = vmatprep.subr.bf16.mxu1 %v4276_v43  ;;  %v803_v42 = vlaneseq  ;;  %v802_v43 = vunpack.c.0.s8 %v801_v12  ;;  %v549_v12 = vld [vmem:[%s4480_s18] sm:$0xff] }
  0x87   : > { %v804_v41 = vshrl.u32 %v803_v42, 7 }
  0x88   : > { %1176 = vmatpush1.bf16.msra.mxu0 %v4279_v44  ;;  %1217 = vmatpush1.bf16.msra.mxu1 %v4282_v45 }
  0x89   : > { %1177 = vmatprep.subr.bf16.mxu0 %v4287_v46  ;;  %1218 = vmatprep.subr.bf16.mxu1 %v4292_v47  ;;  %v4475_v47 = vsub.s32 %v802_v43, %v804_v41 }
  0x8b   : > { %5478 = vst [vmem:[#allocation29_spill] sm:$0xff] %v4475_v47 }
  0x8c   : > { %1178 = vmatpush1.bf16.msra.mxu0 %v4295_v48  ;;  %1219 = vmatpush1.bf16.msra.mxu1 %v4298_v49 }
  0x8d   : > { %1309 = vmatprep.subr.bf16.mxu0 %v4305_v51  ;;  %1350 = vmatprep.subr.bf16.mxu1 %v4308_v52 }
 0x122   : > { %v746_v46 = vpop.f32.mrb[0].mxu0  ;;  %v787_v45 = vpop.f32.mrb[0].mxu1 }
 0x123   : > { %v748_v48 = vpop.f32.mrb[1].mxu0  ;;  %v789_v44 = vpop.f32.mrb[1].mxu1 }
 0x124   : > { %v798_v49 = vcombine.low %v746_v46, %v748_v48  ;;  %v799_v40 = vcombine.low %v787_v45, %v789_v44  ;;  %v750_v51 = vpop.f32.mrb[2].mxu0  ;;  %v791_v39 = vpop.f32.mrb[2].mxu1 }
 0x125   : > { %v751_v52 = vpop.f32.mrb[3].mxu0  ;;  %v792_v38 = vpop.f32.mrb[3].mxu1 }
 0x126   : > { %v806_v11 = vrot.slane %v798_v49, %v4475_v47  ;;  %v813_v42 = vrot.slane %v799_v40, %v4475_v47 }
 0x128   : > { %v814_v37 = vcombine.low %v806_v11, %v813_v42 }
 0x12a   : > { %v816_v36 = vadd.f32 %v814_v37, %v549_v12 }
 0x12c   : > { %v817_v41 = vsub.f32 0.0, %v816_v36  ;;  %v824_v43 = vrot.slane %v816_v36, 2  ;;  %v835_v45 = vrot.slane %v816_v36, 6  ;;  %v832_v48 = vrot.slane %v816_v36, 4 }
 0x12e   : > { %v818_v35 = vmul.f32 1.442695, %v817_v41  ;;  %v826_v34 = vsub.f32 0.0, %v824_v43  ;;  %v837_v39 = vsub.f32 0.0, %v835_v45 }
 0x130   : > { %3642 = vpow2.f32 %v818_v35  ;;  %v827_v44 = vmul.f32 1.442695, %v826_v34  ;;  %v838_v38 = vmul.f32 1.442695, %v837_v39 }
 0x132   : > { %3644 = vpow2.f32 %v827_v44 }
 0x133   : > { %3646 = vpow2.f32 %v838_v38 }
 0x13a   : > { %v3643_v46 = vpop.eup %3642 }
 0x13b   : > { %v820_v49 = vadd.f32 1.0, %v3643_v46  ;;  %v843_v46 = vld [vmem:[#allocation3] sm:$0x3] }
 0x13c   : > { %v3645_v40 = vpop.eup %3644 }
 0x13d   : > { %3648 = vrcp.f32 %v820_v49  ;;  %v829_v51 = vadd.f32 1.0, %v3645_v40  ;;  %v3647_v45 = vpop.eup %3646 }
 0x13e   : > { %3650 = vtanh.f32 %v832_v48  ;;  %v3437_v48 = vld [vmem:[%s4486_s8 + $0x38] sm:$0xff] }
 0x13f   : > { %3652 = vrcp.f32 %v829_v51 }
 0x142   : > { %v1051_v37 = vpop.f32.mrb[4].mxu0  ;;  %v1092_v52 = vpop.f32.mrb[4].mxu1 }
 0x143   : > { %v1053_v11 = vpop.f32.mrb[5].mxu0  ;;  %v1094_v42 = vpop.f32.mrb[5].mxu1 }
 0x144   : > { %v1103_v35 = vcombine.low %v1051_v37, %v1053_v11  ;;  %v1104_v34 = vcombine.low %v1092_v52, %v1094_v42  ;;  %v1055_v12 = vpop.f32.mrb[6].mxu0  ;;  %v1096_v41 = vpop.f32.mrb[6].mxu1  ;;  %v840_v37 = vadd.f32 1.0, %v3647_v45 }
 0x145   : > { %v1056_v43 = vpop.f32.mrb[7].mxu0  ;;  %v1097_v44 = vpop.f32.mrb[7].mxu1 }
 0x146   : > { %v1111_v36 = vrot.slane %v1103_v35, %v4475_v47  ;;  %v1118_v39 = vrot.slane %v1104_v34, %v4475_v47  ;;  %3654 = vrcp.f32 %v840_v37 }
 0x147   : > { %v3649_v38 = vpop.eup %3648 }
 0x148   : > { %v3651_v49 = vpop.eup %3650  ;;  %v1119_v40 = vcombine.low %v1111_v36, %v1118_v39 }
 0x149   : > { %v3653_v51 = vpop.eup %3652  ;;  %v845_v11 = vmul.f32 %v3651_v49, %v3649_v38 }
 0x14a   : > { %v844_v52 = vmul.f32 %v3653_v51, %v843_v46  ;;  %v1121_v42 = vadd.f32 %v3437_v48, %v1119_v40 }
 0x14c   : > { %v846_v12 = vadd.f32 %v845_v11, %v844_v52  ;;  %v1122_v41 = vsub.f32 0.0, %v1121_v42  ;;  %v1129_v43 = vrot.slane %v1121_v42, 2  ;;  %v1140_v47 = vrot.slane %v1121_v42, 6 }
 0x14d   : > { %v1137_v49 = vrot.slane %v1121_v42, 4 }
 0x14e   : > { %3656 = vtanh.f32 %v846_v12  ;;  %849 = vst [vmem:[#allocation3] sm:$0x3] %v846_v12  ;;  %v1123_v35 = vmul.f32 1.442695, %v1122_v41  ;;  %v1131_v34 = vsub.f32 0.0, %v1129_v43  ;;  %v1142_v36 = vsub.f32 0.0, %v1140_v47 }
 0x14f   : > { %v1148_v41 = vld [vmem:[#allocation5] sm:$0x3] }
 0x150   : > { %3658 = vpow2.f32 %v1123_v35  ;;  %v1132_v44 = vmul.f32 1.442695, %v1131_v34  ;;  %v3655_v39 = vpop.eup %3654  ;;  %v1143_v38 = vmul.f32 1.442695, %v1142_v36 }
 0x152   : > { %3660 = vpow2.f32 %v1132_v44 }
 0x153   : > { %3662 = vpow2.f32 %v1143_v38 }
 0x158   : > { %v3657_v45 = vpop.eup %3656 }
 0x159   : > { %v848_v46 = vmul.f32 %v3657_v45, %v3655_v39 }
 0x15a   : > { %v3659_v48 = vpop.eup %3658 }
 0x15b   : > { %850 = vst [vmem:[#allocation2] sm:$0x3] %v848_v46  ;;  %v851_v40 = vpack.c.bf16 %v848_v46, %v848_v46  ;;  %v1125_v51 = vadd.f32 1.0, %v3659_v48  ;;  %v5479_v48 = vld [vmem:[#allocation26_spill] sm:$0xff] }
 0x15c   : > { %v3661_v37 = vpop.eup %3660 }
 0x15d   : > { %852 = vst [vmem:[%s4495_s12] sm:$0x1] %v851_v40  ;;  %3664 = vrcp.f32 %v1125_v51  ;;  %v1134_v47 = vadd.f32 1.0, %v3661_v37  ;;  %v3663_v12 = vpop.eup %3662  ;;  %v5480_v40 = vld [vmem:[#allocation27_spill] sm:$0xff]  ;;  %v5481_v51 = vld [vmem:[#allocation28_spill] sm:$0xff] }
 0x15e   : > { %3666 = vtanh.f32 %v1137_v49  ;;  %v1145_v34 = vadd.f32 1.0, %v3663_v12 }
 0x15f   : > { %3668 = vrcp.f32 %v1134_v47 }
 0x160   : > { %3670 = vrcp.f32 %v1145_v34 }
 0x162   : > { %v1161_v52 = vld [vmem:[#allocation2] sm:$0x3] }
 0x163   : > { %v1162_v11 = vpack.c.bf16 %v1161_v52, %v1161_v52  ;;  %v5498_v52 = vld [vmem:[#allocation24_spill] sm:$0xff] }
 0x165   : > { %1196 = vmatmul.mubr.bf16.vlgmr.msra.gmra.mrb[8].mxu0 %v1162_v11  ;;  %1237 = vmatmul.mubr.bf16.vlgmr.msra.gmra.mrb[8].mxu1 %v1162_v11  ;;  %v5499_v11 = vld [vmem:[#allocation25_spill] sm:$0xff] }
 0x166   : > { %1310 = vmatpush1.bf16.msra.mxu0 %v4311_v54  ;;  %1351 = vmatpush1.bf16.msra.mxu1 %v4314_v55 }
 0x167   : > { %v3665_v42 = vpop.eup %3664  ;;  %1311 = vmatprep.subr.bf16.mxu0 %v4319_v56  ;;  %1352 = vmatprep.subr.bf16.mxu1 %v4324_v57 }
 0x168   : > { %v3667_v43 = vpop.eup %3666  ;;  %1341 = vmatprep.mubr.bf16.mxu0 %v5477_v50  ;;  %1382 = vmatprep.mubr.bf16.mxu1 %v5477_v50 }
 0x169   : > { %v3669_v35 = vpop.eup %3668  ;;  %v1150_v36 = vmul.f32 %v3667_v43, %v3665_v42 }
 0x16a   : > { %v1149_v44 = vmul.f32 %v3669_v35, %v1148_v41  ;;  %1312 = vmatpush1.bf16.msra.mxu0 %v4327_v58  ;;  %1353 = vmatpush1.bf16.msra.mxu1 %v4332_v59  ;;  %v3671_v45 = vpop.eup %3670 }
 0x16b   : > { %1313 = vmatprep.subr.bf16.mxu0 %v4337_v60  ;;  %1354 = vmatprep.subr.bf16.mxu1 %v4340_v61 }
 0x16c   : > { %v1151_v39 = vadd.f32 %v1150_v36, %v1149_v44 }
 0x16e   : > { %3672 = vtanh.f32 %v1151_v39  ;;  %1154 = vst [vmem:[#allocation5] sm:$0x3] %v1151_v39  ;;  %1314 = vmatpush1.bf16.msra.mxu0 %v4345_v62  ;;  %1355 = vmatpush1.bf16.msra.mxu1 %v4348_v63 }
 0x16f   : > { %1315 = vmatprep.subr.bf16.mxu0 %v4353_v0  ;;  %1356 = vmatprep.subr.bf16.mxu1 %v4358_v1 }
 0x172   : > { %1316 = vmatpush1.bf16.msra.mxu0 %v4363_v2  ;;  %1357 = vmatpush1.bf16.msra.mxu1 %v4366_v3 }
 0x173   : > { %1317 = vmatprep.subr.bf16.mxu0 %v4371_v4  ;;  %1358 = vmatprep.subr.bf16.mxu1 %v4374_v5 }
 0x176   : > { %1318 = vmatpush1.bf16.msra.mxu0 %v4379_v6  ;;  %1359 = vmatpush1.bf16.msra.mxu1 %v4382_v7 }
 0x177   : > { %1319 = vmatprep.subr.bf16.mxu0 %v4387_v8  ;;  %1360 = vmatprep.subr.bf16.mxu1 %v4390_v9 }
 0x178   : > { %v3673_v38 = vpop.eup %3672 }
 0x179   : > { %v1153_v46 = vmul.f32 %v3673_v38, %v3671_v45  ;;  %v5500_v38 = vld [vmem:[#allocation29_spill] sm:$0xff] }
 0x17a   : > { %1320 = vmatpush1.bf16.msra.mxu0 %v4395_v10  ;;  %1361 = vmatpush1.bf16.msra.mxu1 %v5479_v48 }
 0x17b   : > { %1155 = vst [vmem:[#allocation4] sm:$0x3] %v1153_v46  ;;  %v1156_v49 = vpack.c.bf16 %v1153_v46, %v1153_v46  ;;  %1321 = vmatprep.subr.bf16.mxu0 %v5480_v40  ;;  %1362 = vmatprep.subr.bf16.mxu1 %v4406_v13 }
 0x17d   : > { %3470 = vst [vmem:[%s4525_s15 + $0x7] sm:$0x1] %v1156_v49 }
 0x17e   : > { %1322 = vmatpush1.bf16.msra.mxu0 %v4411_v14  ;;  %1363 = vmatpush1.bf16.msra.mxu1 %v4414_v15 }
 0x17f   : > { %1323 = vmatprep.subr.bf16.mxu0 %v4419_v17  ;;  %1364 = vmatprep.subr.bf16.mxu1 %v5481_v51 }
 0x182   : > { %1324 = vmatpush1.bf16.msra.mxu0 %v4427_v53  ;;  %1365 = vmatpush1.bf16.msra.mxu1 %v4430_v16  ;;  %v1307_v37 = vld [vmem:[#allocation4] sm:$0x3] }
 0x183   : > { %v1308_v47 = vpack.c.bf16 %v1307_v37, %v1307_v37  ;;  %1455 = vmatprep.subr.bf16.mxu0 %v4172_v18  ;;  %1496 = vmatprep.subr.bf16.mxu1 %v4175_v19  ;;  %v5482_v18 = vld [vmem:[#allocation8_spill] sm:$0xff]  ;;  %v5483_v19 = vld [vmem:[#allocation9_spill] sm:$0xff] }
 0x184   : > { %v3471_v37 = vld [vmem:[%s4480_s18 + $0x8] sm:$0xff] }
 0x185   : > { %1342 = vmatmul.mubr.bf16.vlgmr.msra.gmra.mrb[12].mxu0 %v1308_v47  ;;  %1383 = vmatmul.mubr.bf16.vlgmr.msra.gmra.mrb[12].mxu1 %v1308_v47 }
 0x186   : > { %1456 = vmatpush1.bf16.msra.mxu0 %v4179_v20  ;;  %1497 = vmatpush1.bf16.msra.mxu1 %v4182_v21  ;;  %v5484_v20 = vld [vmem:[#allocation10_spill] sm:$0xff]  ;;  %v5485_v21 = vld [vmem:[#allocation11_spill] sm:$0xff] }
 0x187   : > { %1457 = vmatprep.subr.bf16.mxu0 %v4186_v22  ;;  %1498 = vmatprep.subr.bf16.mxu1 %v4191_v23  ;;  %v5486_v22 = vld [vmem:[#allocation12_spill] sm:$0xff]  ;;  %v5487_v23 = vld [vmem:[#allocation13_spill] sm:$0xff] }
 0x188   : > { %1487 = vmatprep.mubr.bf16.mxu0 %v5477_v50  ;;  %1528 = vmatprep.mubr.bf16.mxu1 %v5477_v50 }
 0x18a   : > { %1458 = vmatpush1.bf16.msra.mxu0 %v4194_v24  ;;  %1499 = vmatpush1.bf16.msra.mxu1 %v4198_v25  ;;  %v5488_v24 = vld [vmem:[#allocation14_spill] sm:$0xff]  ;;  %v5489_v25 = vld [vmem:[#allocation15_spill] sm:$0xff] }
 0x18b   : > { %1459 = vmatprep.subr.bf16.mxu0 %v4202_v26  ;;  %1500 = vmatprep.subr.bf16.mxu1 %v4205_v27  ;;  %v5490_v26 = vld [vmem:[#allocation16_spill] sm:$0xff]  ;;  %v5491_v27 = vld [vmem:[#allocation17_spill] sm:$0xff] }
 0x18e   : > { %1460 = vmatpush1.bf16.msra.mxu0 %v4208_v28  ;;  %1501 = vmatpush1.bf16.msra.mxu1 %v4211_v29  ;;  %v5492_v28 = vld [vmem:[#allocation18_spill] sm:$0xff]  ;;  %v5493_v29 = vld [vmem:[#allocation19_spill] sm:$0xff] }
 0x18f   : > { %1461 = vmatprep.subr.bf16.mxu0 %v4216_v30  ;;  %1502 = vmatprep.subr.bf16.mxu1 %v4221_v31  ;;  %v5494_v30 = vld [vmem:[#allocation20_spill] sm:$0xff]  ;;  %v5495_v31 = vld [vmem:[#allocation21_spill] sm:$0xff] }
 0x192   : > { %1462 = vmatpush1.bf16.msra.mxu0 %v4224_v32  ;;  %1503 = vmatpush1.bf16.msra.mxu1 %v4229_v33  ;;  %v5496_v32 = vld [vmem:[#allocation22_spill] sm:$0xff]  ;;  %v5497_v33 = vld [vmem:[#allocation23_spill] sm:$0xff] }
 0x193   : > { %1463 = vmatprep.subr.bf16.mxu0 %v5482_v18  ;;  %1504 = vmatprep.subr.bf16.mxu1 %v5483_v19 }
 0x196   : > { %1464 = vmatpush1.bf16.msra.mxu0 %v5484_v20  ;;  %1505 = vmatpush1.bf16.msra.mxu1 %v5485_v21 }
 0x197   : > { %1465 = vmatprep.subr.bf16.mxu0 %v5486_v22  ;;  %1506 = vmatprep.subr.bf16.mxu1 %v5487_v23 }
 0x19a   : > { %1466 = vmatpush1.bf16.msra.mxu0 %v5488_v24  ;;  %1507 = vmatpush1.bf16.msra.mxu1 %v5489_v25 }
 0x19b   : > { %1467 = vmatprep.subr.bf16.mxu0 %v5490_v26  ;;  %1508 = vmatprep.subr.bf16.mxu1 %v5491_v27 }
 0x19e   : > { %1468 = vmatpush1.bf16.msra.mxu0 %v5492_v28  ;;  %1509 = vmatpush1.bf16.msra.mxu1 %v5493_v29 }
 0x19f   : > { %1469 = vmatprep.subr.bf16.mxu0 %v5494_v30  ;;  %1510 = vmatprep.subr.bf16.mxu1 %v5495_v31 }
 0x1a2   : > { %1470 = vmatpush1.bf16.msra.mxu0 %v5496_v32  ;;  %1511 = vmatpush1.bf16.msra.mxu1 %v5497_v33 }
 0x1a3   : > { %1601 = vmatprep.subr.bf16.mxu0 %v5498_v52  ;;  %1642 = vmatprep.subr.bf16.mxu1 %v5499_v11 }
 0x238   : > { %v1197_v12 = vpop.f32.mrb[8].mxu0  ;;  %v1238_v42 = vpop.f32.mrb[8].mxu1 }
 0x239   : > { %v1199_v41 = vpop.f32.mrb[9].mxu0  ;;  %v1240_v43 = vpop.f32.mrb[9].mxu1 }
 0x23a   : > { %v1249_v35 = vcombine.low %v1197_v12, %v1199_v41  ;;  %v1250_v34 = vcombine.low %v1238_v42, %v1240_v43  ;;  %v1201_v44 = vpop.f32.mrb[10].mxu0  ;;  %v1242_v36 = vpop.f32.mrb[10].mxu1 }
 0x23b   : > { %v1202_v39 = vpop.f32.mrb[11].mxu0  ;;  %v1243_v45 = vpop.f32.mrb[11].mxu1 }
 0x23c   : > { %v1257_v46 = vrot.slane %v1249_v35, %v5500_v38  ;;  %v1264_v49 = vrot.slane %v1250_v34, %v5500_v38 }
 0x23e   : > { %v1265_v47 = vcombine.low %v1257_v46, %v1264_v49 }
 0x240   : > { %v1267_v18 = vadd.f32 %v3471_v37, %v1265_v47 }
 0x242   : > { %v1268_v19 = vsub.f32 0.0, %v1267_v18  ;;  %v1275_v20 = vrot.slane %v1267_v18, 2  ;;  %v1286_v24 = vrot.slane %v1267_v18, 6  ;;  %v1283_v28 = vrot.slane %v1267_v18, 4  ;;  %v3473_v18 = vld [vmem:[%s4486_s8 + $0x30] sm:$0xff] }
 0x244   : > { %v1269_v21 = vmul.f32 1.442695, %v1268_v19  ;;  %v1277_v22 = vsub.f32 0.0, %v1275_v20  ;;  %v1288_v25 = vsub.f32 0.0, %v1286_v24 }
 0x246   : > { %3674 = vpow2.f32 %v1269_v21  ;;  %v1278_v23 = vmul.f32 1.442695, %v1277_v22  ;;  %v1289_v26 = vmul.f32 1.442695, %v1288_v25 }
 0x248   : > { %3676 = vpow2.f32 %v1278_v23  ;;  %v1294_v23 = vld [vmem:[#allocation3] sm:$0x3] }
 0x249   : > { %3678 = vpow2.f32 %v1289_v26 }
 0x250   : > { %v3675_v27 = vpop.eup %3674 }
 0x251   : > { %v1271_v29 = vadd.f32 1.0, %v3675_v27 }
 0x252   : > { %v3677_v30 = vpop.eup %3676 }
 0x253   : > { %3680 = vrcp.f32 %v1271_v29  ;;  %v1280_v31 = vadd.f32 1.0, %v3677_v30  ;;  %v3679_v46 = vpop.eup %3678 }
 0x254   : > { %3682 = vtanh.f32 %v1283_v28  ;;  %v1291_v22 = vadd.f32 1.0, %v3679_v46 }
 0x255   : > { %3684 = vrcp.f32 %v1280_v31 }
 0x256   : > { %3686 = vrcp.f32 %v1291_v22 }
 0x258   : > { %v1343_v12 = vpop.f32.mrb[12].mxu0  ;;  %v1384_v42 = vpop.f32.mrb[12].mxu1 }
 0x259   : > { %v1345_v41 = vpop.f32.mrb[13].mxu0  ;;  %v1386_v43 = vpop.f32.mrb[13].mxu1 }
 0x25a   : > { %v1395_v35 = vcombine.low %v1343_v12, %v1345_v41  ;;  %v1396_v34 = vcombine.low %v1384_v42, %v1386_v43  ;;  %v1347_v44 = vpop.f32.mrb[14].mxu0  ;;  %v1388_v36 = vpop.f32.mrb[14].mxu1 }
 0x25b   : > { %v1348_v39 = vpop.f32.mrb[15].mxu0  ;;  %v1389_v45 = vpop.f32.mrb[15].mxu1 }
 0x25c   : > { %v1403_v49 = vrot.slane %v1395_v35, %v5500_v38  ;;  %v1410_v37 = vrot.slane %v1396_v34, %v5500_v38 }
 0x25d   : > { %v3681_v47 = vpop.eup %3680 }
 0x25e   : > { %v3683_v19 = vpop.eup %3682  ;;  %v1411_v20 = vcombine.low %v1403_v49, %v1410_v37 }
 0x25f   : > { %v3685_v21 = vpop.eup %3684  ;;  %v1296_v25 = vmul.f32 %v3683_v19, %v3681_v47 }
 0x260   : > { %v1295_v24 = vmul.f32 %v3685_v21, %v1294_v23  ;;  %v1413_v26 = vadd.f32 %v3473_v18, %v1411_v20  ;;  %v3687_v43 = vpop.eup %3686 }
 0x262   : > { %v1297_v27 = vadd.f32 %v1296_v25, %v1295_v24  ;;  %v1414_v28 = vsub.f32 0.0, %v1413_v26  ;;  %v1421_v29 = vrot.slane %v1413_v26, 2  ;;  %v1432_v42 = vrot.slane %v1413_v26, 6  ;;  %v1440_v24 = vld [vmem:[#allocation5] sm:$0x3] }
 0x263   : > { %v1429_v39 = vrot.slane %v1413_v26, 4 }
 0x264   : > { %3688 = vtanh.f32 %v1297_v27  ;;  %1300 = vst [vmem:[#allocation3] sm:$0x3] %v1297_v27  ;;  %v1415_v30 = vmul.f32 1.442695, %v1414_v28  ;;  %v1423_v31 = vsub.f32 0.0, %v1421_v29  ;;  %v1434_v41 = vsub.f32 0.0, %v1432_v42 }
 0x265   : > { %v4709_v27 = vld [vmem:[%s4169_s26 + $0xa8] ss:$16 sps:$4 sm:$0xff]   ;;  %v4713_v28 = vld [vmem:[%s4169_s26 + $0xc4] ss:$16 sps:$4 sm:$0xff]   ;;  %v4717_v29 = vld [vmem:[%s4169_s26 + $0xcc] ss:$16 sps:$4 sm:$0xff]  }
 0x266   : > { %3690 = vpow2.f32 %v1415_v30  ;;  %v1424_v12 = vmul.f32 1.442695, %v1423_v31  ;;  %v1435_v34 = vmul.f32 1.442695, %v1434_v41  ;;  %5514 = vst [vmem:[#allocation18_spill] sm:$0xff] %v4709_v27  ;;  %5515 = vst [vmem:[#allocation19_spill] sm:$0xff] %v4713_v28 }
 0x267   : > { %5516 = vst [vmem:[#allocation20_spill] sm:$0xff] %v4717_v29  ;;  %v4721_v30 = vld [vmem:[%s4169_s26 + $0xc0] ss:$16 sps:$4 sm:$0xff]   ;;  %v4725_v31 = vld [vmem:[%s4169_s26 + $0xc8] ss:$16 sps:$4 sm:$0xff]  }
 0x268   : > { %3692 = vpow2.f32 %v1424_v12  ;;  %5517 = vst [vmem:[#allocation21_spill] sm:$0xff] %v4721_v30  ;;  %5518 = vst [vmem:[#allocation22_spill] sm:$0xff] %v4725_v31  ;;  %v4729_v12 = vld [vmem:[%s4169_s26 + $0xe4] ss:$16 sps:$4 sm:$0xff]   ;;  %v4733_v42 = vld [vmem:[%s4169_s26 + $0xec] ss:$16 sps:$4 sm:$0xff]  }
 0x269   : > { %3694 = vpow2.f32 %v1435_v34  ;;  %5519 = vst [vmem:[#allocation23_spill] sm:$0xff] %v4729_v12  ;;  %5520 = vst [vmem:[#allocation24_spill] sm:$0xff] %v4733_v42 }
 0x26e   : > { %v3689_v35 = vpop.eup %3688 }
 0x26f   : > { %v1299_v44 = vmul.f32 %v3689_v35, %v3687_v43 }
 0x270   : > { %v3691_v36 = vpop.eup %3690 }
 0x271   : > { %1301 = vst [vmem:[#allocation2] sm:$0x3] %v1299_v44  ;;  %v1302_v45 = vpack.c.bf16 %v1299_v44, %v1299_v44  ;;  %v1417_v46 = vadd.f32 1.0, %v3691_v36 }
 0x272   : > { %v3693_v49 = vpop.eup %3692 }
 0x273   : > { %3472 = vst [vmem:[%s4495_s12 + $0x1] sm:$0x1] %v1302_v45  ;;  %3696 = vrcp.f32 %v1417_v46  ;;  %v1426_v37 = vadd.f32 1.0, %v3693_v49  ;;  %v3695_v19 = vpop.eup %3694 }
 0x274   : > { %3698 = vtanh.f32 %v1429_v39  ;;  %v1437_v23 = vadd.f32 1.0, %v3695_v19 }
 0x275   : > { %3700 = vrcp.f32 %v1426_v37 }
 0x276   : > { %3702 = vrcp.f32 %v1437_v23 }
 0x278   : > { %v1453_v47 = vld [vmem:[#allocation2] sm:$0x3] }
 0x279   : > { %v1454_v18 = vpack.c.bf16 %v1453_v47, %v1453_v47  ;;  %v3475_v47 = vld [vmem:[%s4480_s18 + $0x10] sm:$0xff] }
 0x27b   : > { %1488 = vmatmul.mubr.bf16.vlgmr.msra.gmra.mrb[16].mxu0 %v1454_v18  ;;  %1529 = vmatmul.mubr.bf16.vlgmr.msra.gmra.mrb[16].mxu1 %v1454_v18 }
 0x27c   : > { %1602 = vmatpush1.bf16.msra.mxu0 %v4311_v54  ;;  %1643 = vmatpush1.bf16.msra.mxu1 %v4314_v55 }
 0x27d   : > { %v3697_v20 = vpop.eup %3696  ;;  %1603 = vmatprep.subr.bf16.mxu0 %v4319_v56  ;;  %1644 = vmatprep.subr.bf16.mxu1 %v4324_v57 }
 0x27e   : > { %v3699_v21 = vpop.eup %3698  ;;  %1633 = vmatprep.mubr.bf16.mxu0 %v5477_v50  ;;  %1674 = vmatprep.mubr.bf16.mxu1 %v5477_v50 }
 0x27f   : > { %v3701_v22 = vpop.eup %3700  ;;  %v1442_v26 = vmul.f32 %v3699_v21, %v3697_v20 }
 0x280   : > { %v1441_v25 = vmul.f32 %v3701_v22, %v1440_v24  ;;  %1604 = vmatpush1.bf16.msra.mxu0 %v4327_v58  ;;  %1645 = vmatpush1.bf16.msra.mxu1 %v4332_v59  ;;  %v3703_v55 = vpop.eup %3702 }
 0x281   : > { %1605 = vmatprep.subr.bf16.mxu0 %v4337_v60  ;;  %1646 = vmatprep.subr.bf16.mxu1 %v4340_v61  ;;  %v4615_v61 = vld [vmem:[%s4169_s26 + $0x4] ss:$16 sps:$4 sm:$0xff]  }
 0x282   : > { %v1443_v54 = vadd.f32 %v1442_v26, %v1441_v25 }
 0x284   : > { %3704 = vtanh.f32 %v1443_v54  ;;  %1446 = vst [vmem:[#allocation5] sm:$0x3] %v1443_v54  ;;  %1606 = vmatpush1.bf16.msra.mxu0 %v4345_v62  ;;  %1647 = vmatpush1.bf16.msra.mxu1 %v4348_v63  ;;  %v4619_v62 = vld [vmem:[%s4169_s26 + $0xc] ss:$16 sps:$4 sm:$0xff]   ;;  %v4623_v63 = vld [vmem:[%s4169_s26] ss:$16 sps:$4 sm:$0xff]  }
 0x285   : > { %1607 = vmatprep.subr.bf16.mxu0 %v4353_v0  ;;  %1648 = vmatprep.subr.bf16.mxu1 %v4358_v1  ;;  %v4631_v0 = vld [vmem:[%s4169_s26 + $0x24] ss:$16 sps:$4 sm:$0xff]   ;;  %v4635_v1 = vld [vmem:[%s4169_s26 + $0x2c] ss:$16 sps:$4 sm:$0xff]  }
 0x288   : > { %1608 = vmatpush1.bf16.msra.mxu0 %v4363_v2  ;;  %1649 = vmatpush1.bf16.msra.mxu1 %v4366_v3  ;;  %v4641_v2 = vld [vmem:[%s4169_s26 + $0x20] ss:$16 sps:$4 sm:$0xff]   ;;  %v4645_v3 = vld [vmem:[%s4169_s26 + $0x28] ss:$16 sps:$4 sm:$0xff]  }
 0x289   : > { %1609 = vmatprep.subr.bf16.mxu0 %v4371_v4  ;;  %1650 = vmatprep.subr.bf16.mxu1 %v4374_v5  ;;  %v4649_v4 = vld [vmem:[%s4169_s26 + $0x44] ss:$16 sps:$4 sm:$0xff]   ;;  %v4653_v5 = vld [vmem:[%s4169_s26 + $0x4c] ss:$16 sps:$4 sm:$0xff]  }
 0x28c   : > { %1610 = vmatpush1.bf16.msra.mxu0 %v4379_v6  ;;  %1651 = vmatpush1.bf16.msra.mxu1 %v4382_v7  ;;  %v4657_v6 = vld [vmem:[%s4169_s26 + $0x40] ss:$16 sps:$4 sm:$0xff]   ;;  %v4661_v7 = vld [vmem:[%s4169_s26 + $0x48] ss:$16 sps:$4 sm:$0xff]  }
 0x28d   : > { %1611 = vmatprep.subr.bf16.mxu0 %v4387_v8  ;;  %1652 = vmatprep.subr.bf16.mxu1 %v4390_v9  ;;  %5501 = vst [vmem:[#allocation26_spill] sm:$0xff] %v4657_v6  ;;  %5502 = vst [vmem:[#allocation27_spill] sm:$0xff] %v4661_v7  ;;  %v4665_v8 = vld [vmem:[%s4169_s26 + $0x64] ss:$16 sps:$4 sm:$0xff]   ;;  %v4669_v9 = vld [vmem:[%s4169_s26 + $0x6c] ss:$16 sps:$4 sm:$0xff]  }
 0x28e   : > { %v3705_v56 = vpop.eup %3704  ;;  %5503 = vst [vmem:[#allocation28_spill] sm:$0xff] %v4665_v8  ;;  %5504 = vst [vmem:[#allocation8_spill] sm:$0xff] %v4669_v9 }
 0x28f   : > { %v1445_v57 = vmul.f32 %v3705_v56, %v3703_v55 }
 0x290   : > { %1612 = vmatpush1.bf16.msra.mxu0 %v4395_v10  ;;  %1653 = vmatpush1.bf16.msra.mxu1 %v5479_v48  ;;  %v4673_v10 = vld [vmem:[%s4169_s26 + $0x60] ss:$16 sps:$4 sm:$0xff]   ;;  %v4697_v48 = vld [vmem:[%s4169_s26 + $0xa4] ss:$16 sps:$4 sm:$0xff]  }
 0x291   : > { %1447 = vst [vmem:[#allocation4] sm:$0x3] %v1445_v57  ;;  %v1448_v58 = vpack.c.bf16 %v1445_v57, %v1445_v57  ;;  %1613 = vmatprep.subr.bf16.mxu0 %v5480_v40  ;;  %1654 = vmatprep.subr.bf16.mxu1 %v4406_v13  ;;  %5505 = vst [vmem:[#allocation9_spill] sm:$0xff] %v4673_v10  ;;  %v4677_v13 = vld [vmem:[%s4169_s26 + $0x68] ss:$16 sps:$4 sm:$0xff]  }
 0x292   : > { %5506 = vst [vmem:[#allocation10_spill] sm:$0xff] %v4677_v13  ;;  %5511 = vst [vmem:[#allocation15_spill] sm:$0xff] %v4697_v48  ;;  %v4701_v40 = vld [vmem:[%s4169_s26 + $0xac] ss:$16 sps:$4 sm:$0xff]  }
 0x293   : > { %3474 = vst [vmem:[%s4525_s15 + $0x6] sm:$0x1] %v1448_v58  ;;  %5512 = vst [vmem:[#allocation16_spill] sm:$0xff] %v4701_v40 }
 0x294   : > { %1614 = vmatpush1.bf16.msra.mxu0 %v4411_v14  ;;  %1655 = vmatpush1.bf16.msra.mxu1 %v4414_v15  ;;  %v4681_v14 = vld [vmem:[%s4169_s26 + $0x84] ss:$16 sps:$4 sm:$0xff]   ;;  %v4685_v15 = vld [vmem:[%s4169_s26 + $0x8c] ss:$16 sps:$4 sm:$0xff]  }
 0x295   : > { %1615 = vmatprep.subr.bf16.mxu0 %v4419_v17  ;;  %1656 = vmatprep.subr.bf16.mxu1 %v5481_v51  ;;  %5507 = vst [vmem:[#allocation11_spill] sm:$0xff] %v4681_v14  ;;  %5508 = vst [vmem:[#allocation12_spill] sm:$0xff] %v4685_v15  ;;  %v4689_v17 = vld [vmem:[%s4169_s26 + $0x80] ss:$16 sps:$4 sm:$0xff]  }
 0x296   : > { %5509 = vst [vmem:[#allocation13_spill] sm:$0xff] %v4689_v17  ;;  %v4705_v51 = vld [vmem:[%s4169_s26 + $0xa0] ss:$16 sps:$4 sm:$0xff]  }
 0x297   : > { %5513 = vst [vmem:[#allocation17_spill] sm:$0xff] %v4705_v51 }
 0x298   : > { %1616 = vmatpush1.bf16.msra.mxu0 %v4427_v53  ;;  %1657 = vmatpush1.bf16.msra.mxu1 %v4430_v16  ;;  %v1599_v59 = vld [vmem:[#allocation4] sm:$0x3]  ;;  %v4627_v16 = vld [vmem:[%s4169_s26 + $0x8] ss:$16 sps:$4 sm:$0xff]  }
 0x299   : > { %v1600_v60 = vpack.c.bf16 %v1599_v59, %v1599_v59  ;;  %1747 = vmatprep.subr.bf16.mxu0 %v4615_v61  ;;  %1788 = vmatprep.subr.bf16.mxu1 %v4619_v62  ;;  %v4693_v53 = vld [vmem:[%s4169_s26 + $0x88] ss:$16 sps:$4 sm:$0xff]  }
 0x29a   : > { %5510 = vst [vmem:[#allocation14_spill] sm:$0xff] %v4693_v53 }
 0x29b   : > { %1634 = vmatmul.mubr.bf16.vlgmr.msra.gmra.mrb[20].mxu0 %v1600_v60  ;;  %1675 = vmatmul.mubr.bf16.vlgmr.msra.gmra.mrb[20].mxu1 %v1600_v60 }
 0x29c   : > { %1748 = vmatpush1.bf16.msra.mxu0 %v4623_v63  ;;  %1789 = vmatpush1.bf16.msra.mxu1 %v4627_v16 }
 0x29d   : > { %1749 = vmatprep.subr.bf16.mxu0 %v4631_v0  ;;  %1790 = vmatprep.subr.bf16.mxu1 %v4635_v1 }
 0x29e   : > { %1779 = vmatprep.mubr.bf16.mxu0 %v5477_v50  ;;  %1820 = vmatprep.mubr.bf16.mxu1 %v5477_v50 }
 0x2a0   : > { %1750 = vmatpush1.bf16.msra.mxu0 %v4641_v2  ;;  %1791 = vmatpush1.bf16.msra.mxu1 %v4645_v3 }
 0x2a1   : > { %1751 = vmatprep.subr.bf16.mxu0 %v4649_v4  ;;  %1792 = vmatprep.subr.bf16.mxu1 %v4653_v5 }
 0x2a4   : > { %1752 = vmatpush1.bf16.msra.mxu0 %v4657_v6  ;;  %1793 = vmatpush1.bf16.msra.mxu1 %v4661_v7 }
 0x2a5   : > { %1753 = vmatprep.subr.bf16.mxu0 %v4665_v8  ;;  %1794 = vmatprep.subr.bf16.mxu1 %v4669_v9 }
 0x2a8   : > { %1754 = vmatpush1.bf16.msra.mxu0 %v4673_v10  ;;  %1795 = vmatpush1.bf16.msra.mxu1 %v4677_v13 }
 0x2a9   : > { %1755 = vmatprep.subr.bf16.mxu0 %v4681_v14  ;;  %1796 = vmatprep.subr.bf16.mxu1 %v4685_v15 }
 0x2ac   : > { %1756 = vmatpush1.bf16.msra.mxu0 %v4689_v17  ;;  %1797 = vmatpush1.bf16.msra.mxu1 %v4693_v53 }
 0x2ad   : > { %1757 = vmatprep.subr.bf16.mxu0 %v4697_v48  ;;  %1798 = vmatprep.subr.bf16.mxu1 %v4701_v40 }
 0x2b0   : > { %1758 = vmatpush1.bf16.msra.mxu0 %v4705_v51  ;;  %1799 = vmatpush1.bf16.msra.mxu1 %v4709_v27 }
 0x2b1   : > { %1759 = vmatprep.subr.bf16.mxu0 %v4713_v28  ;;  %1800 = vmatprep.subr.bf16.mxu1 %v4717_v29 }
 0x2b4   : > { %1760 = vmatpush1.bf16.msra.mxu0 %v4721_v30  ;;  %1801 = vmatpush1.bf16.msra.mxu1 %v4725_v31 }
 0x2b5   : > { %1761 = vmatprep.subr.bf16.mxu0 %v4729_v12  ;;  %1802 = vmatprep.subr.bf16.mxu1 %v4733_v42 }
 0x2b8   : > { %1762 = vmatpush1.bf16.msra.mxu0 %v5496_v32  ;;  %1803 = vmatpush1.bf16.msra.mxu1 %v5497_v33 }
 0x2b9   : > { %1893 = vmatprep.subr.bf16.mxu0 %v5498_v52  ;;  %1934 = vmatprep.subr.bf16.mxu1 %v5499_v11 }
 0x34e   : > { %v1489_v41 = vpop.f32.mrb[16].mxu0  ;;  %v1530_v43 = vpop.f32.mrb[16].mxu1 }
 0x34f   : > { %v1491_v35 = vpop.f32.mrb[17].mxu0  ;;  %v1532_v34 = vpop.f32.mrb[17].mxu1 }
 0x350   : > { %v1541_v44 = vcombine.low %v1489_v41, %v1491_v35  ;;  %v1542_v36 = vcombine.low %v1530_v43, %v1532_v34  ;;  %v1493_v39 = vpop.f32.mrb[18].mxu0  ;;  %v1534_v45 = vpop.f32.mrb[18].mxu1 }
 0x351   : > { %v1494_v46 = vpop.f32.mrb[19].mxu0  ;;  %v1535_v49 = vpop.f32.mrb[19].mxu1 }
 0x352   : > { %v1549_v37 = vrot.slane %v1541_v44, %v5500_v38  ;;  %v1556_v32 = vrot.slane %v1542_v36, %v5500_v38 }
 0x354   : > { %v1557_v33 = vcombine.low %v1549_v37, %v1556_v32  ;;  %v3477_v37 = vld [vmem:[%s4486_s8 + $0x28] sm:$0xff] }
 0x356   : > { %v1559_v18 = vadd.f32 %v3475_v47, %v1557_v33 }
 0x358   : > { %v1560_v52 = vsub.f32 0.0, %v1559_v18  ;;  %v1567_v19 = vrot.slane %v1559_v18, 2  ;;  %v1578_v22 = vrot.slane %v1559_v18, 6  ;;  %v1575_v26 = vrot.slane %v1559_v18, 4 }
 0x35a   : > { %v1561_v11 = vmul.f32 1.442695, %v1560_v52  ;;  %v1569_v20 = vsub.f32 0.0, %v1567_v19  ;;  %v1580_v23 = vsub.f32 0.0, %v1578_v22  ;;  %v1586_v52 = vld [vmem:[#allocation3] sm:$0x3] }
 0x35c   : > { %3706 = vpow2.f32 %v1561_v11  ;;  %v1570_v21 = vmul.f32 1.442695, %v1569_v20  ;;  %v1581_v24 = vmul.f32 1.442695, %v1580_v23 }
 0x35e   : > { %3708 = vpow2.f32 %v1570_v21 }
 0x35f   : > { %3710 = vpow2.f32 %v1581_v24 }
 0x366   : > { %v3707_v25 = vpop.eup %3706 }
 0x367   : > { %v1563_v54 = vadd.f32 1.0, %v3707_v25 }
 0x368   : > { %v3709_v55 = vpop.eup %3708 }
 0x369   : > { %3712 = vrcp.f32 %v1563_v54  ;;  %v1572_v56 = vadd.f32 1.0, %v3709_v55  ;;  %v3711_v39 = vpop.eup %3710 }
 0x36a   : > { %3714 = vtanh.f32 %v1575_v26  ;;  %v1583_v18 = vadd.f32 1.0, %v3711_v39 }
 0x36b   : > { %3716 = vrcp.f32 %v1572_v56 }
 0x36c   : > { %3718 = vrcp.f32 %v1583_v18 }
 0x36e   : > { %v1635_v57 = vpop.f32.mrb[20].mxu0  ;;  %v1676_v58 = vpop.f32.mrb[20].mxu1 }
 0x36f   : > { %v1637_v59 = vpop.f32.mrb[21].mxu0  ;;  %v1678_v60 = vpop.f32.mrb[21].mxu1 }
 0x370   : > { %v1687_v41 = vcombine.low %v1635_v57, %v1637_v59  ;;  %v1688_v43 = vcombine.low %v1676_v58, %v1678_v60  ;;  %v1639_v35 = vpop.f32.mrb[22].mxu0  ;;  %v1680_v34 = vpop.f32.mrb[22].mxu1 }
 0x371   : > { %v1640_v44 = vpop.f32.mrb[23].mxu0  ;;  %v1681_v36 = vpop.f32.mrb[23].mxu1 }
 0x372   : > { %v1695_v45 = vrot.slane %v1687_v41, %v5500_v38  ;;  %v1702_v46 = vrot.slane %v1688_v43, %v5500_v38 }
 0x373   : > { %v3713_v49 = vpop.eup %3712 }
 0x374   : > { %v3715_v32 = vpop.eup %3714  ;;  %v1703_v47 = vcombine.low %v1695_v45, %v1702_v46  ;;  %v4748_v46 = vld [vmem:[%s4268_s30] ss:$16 sps:$4 sm:$0xff]  }
 0x375   : > { %v3717_v33 = vpop.eup %3716  ;;  %v1588_v11 = vmul.f32 %v3715_v32, %v3713_v49  ;;  %v4752_v49 = vld [vmem:[%s4268_s30 + $0x8] ss:$16 sps:$4 sm:$0xff]   ;;  %v4756_v32 = vld [vmem:[%s4268_s30 + $0x24] ss:$16 sps:$4 sm:$0xff]  }
 0x376   : > { %v1587_v19 = vmul.f32 %v3717_v33, %v1586_v52  ;;  %v1705_v20 = vadd.f32 %v3477_v37, %v1703_v47  ;;  %v3719_v56 = vpop.eup %3718  ;;  %v4760_v47 = vld [vmem:[%s4268_s30 + $0x2c] ss:$16 sps:$4 sm:$0xff]  }
 0x378   : > { %v1589_v21 = vadd.f32 %v1588_v11, %v1587_v19  ;;  %v1706_v22 = vsub.f32 0.0, %v1705_v20  ;;  %v1713_v23 = vrot.slane %v1705_v20, 2  ;;  %v1724_v54 = vrot.slane %v1705_v20, 6  ;;  %v1732_v19 = vld [vmem:[#allocation5] sm:$0x3] }
 0x379   : > { %v1721_v41 = vrot.slane %v1705_v20, 4 }
 0x37a   : > { %3720 = vtanh.f32 %v1589_v21  ;;  %1592 = vst [vmem:[#allocation3] sm:$0x3] %v1589_v21  ;;  %v1707_v24 = vmul.f32 1.442695, %v1706_v22  ;;  %v1715_v25 = vsub.f32 0.0, %v1713_v23  ;;  %v1726_v55 = vsub.f32 0.0, %v1724_v54 }
 0x37b   : > { %v4766_v21 = vld [vmem:[%s4268_s30 + $0x20] ss:$16 sps:$4 sm:$0xff]   ;;  %v4770_v22 = vld [vmem:[%s4268_s30 + $0x28] ss:$16 sps:$4 sm:$0xff]   ;;  %v4774_v23 = vld [vmem:[%s4268_s30 + $0x44] ss:$16 sps:$4 sm:$0xff]  }
 0x37c   : > { %3722 = vpow2.f32 %v1707_v24  ;;  %v1716_v26 = vmul.f32 1.442695, %v1715_v25  ;;  %v1727_v58 = vmul.f32 1.442695, %v1726_v55  ;;  %v4778_v24 = vld [vmem:[%s4268_s30 + $0x4c] ss:$16 sps:$4 sm:$0xff]  }
 0x37d   : > { %v4786_v54 = vld [vmem:[%s4268_s30 + $0x48] ss:$16 sps:$4 sm:$0xff]   ;;  %v4790_v55 = vld [vmem:[%s4268_s30 + $0x64] ss:$16 sps:$4 sm:$0xff]  }
 0x37e   : > { %3724 = vpow2.f32 %v1716_v26  ;;  %v4782_v26 = vld [vmem:[%s4268_s30 + $0x40] ss:$16 sps:$4 sm:$0xff]  }
 0x37f   : > { %3726 = vpow2.f32 %v1727_v58  ;;  %v4802_v58 = vld [vmem:[%s4268_s30 + $0x68] ss:$16 sps:$4 sm:$0xff]  }
 0x384   : > { %v3721_v57 = vpop.eup %3720 }
 0x385   : > { %v1591_v59 = vmul.f32 %v3721_v57, %v3719_v56  ;;  %v4794_v56 = vld [vmem:[%s4268_s30 + $0x6c] ss:$16 sps:$4 sm:$0xff]   ;;  %v4798_v57 = vld [vmem:[%s4268_s30 + $0x60] ss:$16 sps:$4 sm:$0xff]  }
 0x386   : > { %v3723_v60 = vpop.eup %3722 }
 0x387   : > { %1593 = vst [vmem:[#allocation2] sm:$0x3] %v1591_v59  ;;  %v1594_v43 = vpack.c.bf16 %v1591_v59, %v1591_v59  ;;  %v1709_v35 = vadd.f32 1.0, %v3723_v60  ;;  %v4806_v59 = vld [vmem:[%s4268_s30 + $0x84] ss:$16 sps:$4 sm:$0xff]  }
 0x388   : > { %v3725_v34 = vpop.eup %3724  ;;  %v4810_v60 = vld [vmem:[%s4268_s30 + $0x8c] ss:$16 sps:$4 sm:$0xff]  }
 0x389   : > { %3476 = vst [vmem:[%s4495_s12 + $0x2] sm:$0x1] %v1594_v43  ;;  %3728 = vrcp.f32 %v1709_v35  ;;  %v1718_v44 = vadd.f32 1.0, %v3725_v34  ;;  %v3727_v45 = vpop.eup %3726  ;;  %v4818_v43 = vld [vmem:[%s4268_s30 + $0x88] ss:$16 sps:$4 sm:$0xff]  }
 0x38a   : > { %3730 = vtanh.f32 %v1721_v41  ;;  %v1729_v52 = vadd.f32 1.0, %v3727_v45  ;;  %v4814_v41 = vld [vmem:[%s4268_s30 + $0x80] ss:$16 sps:$4 sm:$0xff]   ;;  %v4822_v34 = vld [vmem:[%s4268_s30 + $0xa4] ss:$16 sps:$4 sm:$0xff]  }
 0x38b   : > { %3732 = vrcp.f32 %v1718_v44  ;;  %v4826_v44 = vld [vmem:[%s4268_s30 + $0xac] ss:$16 sps:$4 sm:$0xff]   ;;  %v4830_v45 = vld [vmem:[%s4268_s30 + $0xa0] ss:$16 sps:$4 sm:$0xff]  }
 0x38c   : > { %3734 = vrcp.f32 %v1729_v52  ;;  %v4842_v52 = vld [vmem:[%s4268_s30 + $0xcc] ss:$16 sps:$4 sm:$0xff]  }
 0x38e   : > { %v1745_v36 = vld [vmem:[#allocation2] sm:$0x3] }
 0x38f   : > { %v1746_v39 = vpack.c.bf16 %v1745_v36, %v1745_v36 }
 0x391   : > { %1780 = vmatmul.mubr.bf16.vlgmr.msra.gmra.mrb[24].mxu0 %v1746_v39  ;;  %1821 = vmatmul.mubr.bf16.vlgmr.msra.gmra.mrb[24].mxu1 %v1746_v39 }
 0x392   : > { %1894 = vmatpush1.bf16.msra.mxu0 %v4748_v46  ;;  %1935 = vmatpush1.bf16.msra.mxu1 %v4752_v49 }
 0x393   : > { %v3729_v37 = vpop.eup %3728  ;;  %1895 = vmatprep.subr.bf16.mxu0 %v4756_v32  ;;  %1936 = vmatprep.subr.bf16.mxu1 %v4760_v47 }
 0x394   : > { %v3731_v33 = vpop.eup %3730  ;;  %1925 = vmatprep.mubr.bf16.mxu0 %v5477_v50  ;;  %1966 = vmatprep.mubr.bf16.mxu1 %v5477_v50 }
 0x395   : > { %v3733_v18 = vpop.eup %3732  ;;  %v1734_v20 = vmul.f32 %v3731_v33, %v3729_v37  ;;  %v4834_v37 = vld [vmem:[%s4268_s30 + $0xa8] ss:$16 sps:$4 sm:$0xff]  }
 0x396   : > { %v1733_v11 = vmul.f32 %v3733_v18, %v1732_v19  ;;  %1896 = vmatpush1.bf16.msra.mxu0 %v4766_v21  ;;  %1937 = vmatpush1.bf16.msra.mxu1 %v4770_v22  ;;  %v3735_v35 = vpop.eup %3734  ;;  %v4838_v18 = vld [vmem:[%s4268_s30 + $0xc4] ss:$16 sps:$4 sm:$0xff]   ;;  %v4847_v19 = vld [vmem:[%s4268_s30 + $0xc0] ss:$16 sps:$4 sm:$0xff]  }
 0x397   : > { %1897 = vmatprep.subr.bf16.mxu0 %v4774_v23  ;;  %1938 = vmatprep.subr.bf16.mxu1 %v4778_v24 }
 0x398   : > { %v1735_v25 = vadd.f32 %v1734_v20, %v1733_v11  ;;  %v4851_v11 = vld [vmem:[%s4268_s30 + $0xc8] ss:$16 sps:$4 sm:$0xff]   ;;  %v4855_v20 = vld [vmem:[%s4268_s30 + $0xe4] ss:$16 sps:$4 sm:$0xff]  }
 0x39a   : > { %3736 = vtanh.f32 %v1735_v25  ;;  %1738 = vst [vmem:[#allocation5] sm:$0x3] %v1735_v25  ;;  %1898 = vmatpush1.bf16.msra.mxu0 %v4782_v26  ;;  %1939 = vmatpush1.bf16.msra.mxu1 %v4786_v54  ;;  %v4859_v25 = vld [vmem:[%s4268_s30 + $0xec] ss:$16 sps:$4 sm:$0xff]  }
 0x39b   : > { %1899 = vmatprep.subr.bf16.mxu0 %v4790_v55  ;;  %1940 = vmatprep.subr.bf16.mxu1 %v4794_v56 }
 0x39e   : > { %1900 = vmatpush1.bf16.msra.mxu0 %v4798_v57  ;;  %1941 = vmatpush1.bf16.msra.mxu1 %v4802_v58 }
 0x39f   : > { %1901 = vmatprep.subr.bf16.mxu0 %v4806_v59  ;;  %1942 = vmatprep.subr.bf16.mxu1 %v4810_v60 }
 0x3a2   : > { %1902 = vmatpush1.bf16.msra.mxu0 %v4814_v41  ;;  %1943 = vmatpush1.bf16.msra.mxu1 %v4818_v43 }
 0x3a3   : > { %1903 = vmatprep.subr.bf16.mxu0 %v4822_v34  ;;  %1944 = vmatprep.subr.bf16.mxu1 %v4826_v44 }
 0x3a4   : > { %v3737_v36 = vpop.eup %3736 }
 0x3a5   : > { %v1737_v39 = vmul.f32 %v3737_v36, %v3735_v35  ;;  %v4863_v35 = vld [vmem:[%s4268_s30 + $0xe0] ss:$16 sps:$4 sm:$0xff]   ;;  %v4867_v36 = vld [vmem:[%s4268_s30 + $0xe8] ss:$16 sps:$4 sm:$0xff]  }
 0x3a6   : > { %1904 = vmatpush1.bf16.msra.mxu0 %v4830_v45  ;;  %1945 = vmatpush1.bf16.msra.mxu1 %v4834_v37 }
 0x3a7   : > { %1739 = vst [vmem:[#allocation4] sm:$0x3] %v1737_v39  ;;  %v1740_v33 = vpack.c.bf16 %v1737_v39, %v1737_v39  ;;  %1905 = vmatprep.subr.bf16.mxu0 %v4838_v18  ;;  %1946 = vmatprep.subr.bf16.mxu1 %v4842_v52 }
 0x3a9   : > { %3478 = vst [vmem:[%s4525_s15 + $0x5] sm:$0x1] %v1740_v33 }
 0x3aa   : > { %1906 = vmatpush1.bf16.msra.mxu0 %v4847_v19  ;;  %1947 = vmatpush1.bf16.msra.mxu1 %v4851_v11 }
 0x3ab   : > { %1907 = vmatprep.subr.bf16.mxu0 %v4855_v20  ;;  %1948 = vmatprep.subr.bf16.mxu1 %v4859_v25 }
 0x3ae   : > { %1908 = vmatpush1.bf16.msra.mxu0 %v4863_v35  ;;  %1949 = vmatpush1.bf16.msra.mxu1 %v4867_v36  ;;  %v1891_v39 = vld [vmem:[#allocation4] sm:$0x3] }
 0x3af   : > { %v1892_v33 = vpack.c.bf16 %v1891_v39, %v1891_v39  ;;  %2039 = vmatprep.subr.bf16.mxu0 %v4615_v61  ;;  %2080 = vmatprep.subr.bf16.mxu1 %v4619_v62  ;;  %v4903_v39 = vld [vmem:[%s4169_s26 + $0xe0] ss:$16 sps:$4 sm:$0xff]  }
 0x3b0   : > { %5521 = vst [vmem:[#allocation25_spill] sm:$0xff] %v4903_v39 }
 0x3b1   : > { %1926 = vmatmul.mubr.bf16.vlgmr.msra.gmra.mrb[28].mxu0 %v1892_v33  ;;  %1967 = vmatmul.mubr.bf16.vlgmr.msra.gmra.mrb[28].mxu1 %v1892_v33  ;;  %v4907_v33 = vld [vmem:[%s4169_s26 + $0xe8] ss:$16 sps:$4 sm:$0xff]  }
 0x3b2   : > { %2040 = vmatpush1.bf16.msra.mxu0 %v4623_v63  ;;  %2081 = vmatpush1.bf16.msra.mxu1 %v4627_v16  ;;  %5522 = vst [vmem:[#allocation29_spill] sm:$0xff] %v4907_v33 }
 0x3b3   : > { %2041 = vmatprep.subr.bf16.mxu0 %v4631_v0  ;;  %2082 = vmatprep.subr.bf16.mxu1 %v4635_v1 }
 0x3b4   : > { %2071 = vmatprep.mubr.bf16.mxu0 %v5477_v50  ;;  %2112 = vmatprep.mubr.bf16.mxu1 %v5477_v50 }
 0x3b6   : > { %2042 = vmatpush1.bf16.msra.mxu0 %v4641_v2  ;;  %2083 = vmatpush1.bf16.msra.mxu1 %v4645_v3 }
 0x3b7   : > { %2043 = vmatprep.subr.bf16.mxu0 %v4649_v4  ;;  %2084 = vmatprep.subr.bf16.mxu1 %v4653_v5 }
 0x3ba   : > { %2044 = vmatpush1.bf16.msra.mxu0 %v4657_v6  ;;  %2085 = vmatpush1.bf16.msra.mxu1 %v4661_v7 }
 0x3bb   : > { %2045 = vmatprep.subr.bf16.mxu0 %v4665_v8  ;;  %2086 = vmatprep.subr.bf16.mxu1 %v4669_v9 }
 0x3be   : > { %2046 = vmatpush1.bf16.msra.mxu0 %v4673_v10  ;;  %2087 = vmatpush1.bf16.msra.mxu1 %v4677_v13 }
 0x3bf   : > { %2047 = vmatprep.subr.bf16.mxu0 %v4681_v14  ;;  %2088 = vmatprep.subr.bf16.mxu1 %v4685_v15  ;;  %v3479_v15 = vld [vmem:[%s4480_s18 + $0x18] sm:$0xff] }
 0x3c2   : > { %2048 = vmatpush1.bf16.msra.mxu0 %v4689_v17  ;;  %2089 = vmatpush1.bf16.msra.mxu1 %v4693_v53 }
 0x3c3   : > { %2049 = vmatprep.subr.bf16.mxu0 %v4697_v48  ;;  %2090 = vmatprep.subr.bf16.mxu1 %v4701_v40 }
 0x3c6   : > { %2050 = vmatpush1.bf16.msra.mxu0 %v4705_v51  ;;  %2091 = vmatpush1.bf16.msra.mxu1 %v4709_v27  ;;  %v4911_v27 = vld [vmem:[%s4268_s30 + $0x4] ss:$16 sps:$4 sm:$0xff]  }
 0x3c7   : > { %2051 = vmatprep.subr.bf16.mxu0 %v4713_v28  ;;  %2092 = vmatprep.subr.bf16.mxu1 %v4717_v29  ;;  %5523 = vst [vmem:[#allocation30_spill] sm:$0xff] %v4911_v27 }
 0x3ca   : > { %2052 = vmatpush1.bf16.msra.mxu0 %v4721_v30  ;;  %2093 = vmatpush1.bf16.msra.mxu1 %v4725_v31  ;;  %v4915_v30 = vld [vmem:[%s4268_s30 + $0xc] ss:$16 sps:$4 sm:$0xff]  }
 0x3cb   : > { %2053 = vmatprep.subr.bf16.mxu0 %v4729_v12  ;;  %2094 = vmatprep.subr.bf16.mxu1 %v4733_v42  ;;  %5524 = vst [vmem:[#allocation31_spill] sm:$0xff] %v4915_v30 }
 0x3ce   : > { %2054 = vmatpush1.bf16.msra.mxu0 %v4903_v39  ;;  %2095 = vmatpush1.bf16.msra.mxu1 %v4907_v33 }
 0x3cf   : > { %2185 = vmatprep.subr.bf16.mxu0 %v4911_v27  ;;  %2226 = vmatprep.subr.bf16.mxu1 %v4915_v30 }
 0x464   : > { %v1781_v12 = vpop.f32.mrb[24].mxu0  ;;  %v1822_v31 = vpop.f32.mrb[24].mxu1 }
 0x465   : > { %v1783_v42 = vpop.f32.mrb[25].mxu0  ;;  %v1824_v29 = vpop.f32.mrb[25].mxu1 }
 0x466   : > { %v1833_v28 = vcombine.low %v1781_v12, %v1783_v42  ;;  %v1834_v51 = vcombine.low %v1822_v31, %v1824_v29  ;;  %v1785_v39 = vpop.f32.mrb[26].mxu0  ;;  %v1826_v40 = vpop.f32.mrb[26].mxu1 }
 0x467   : > { %v1786_v48 = vpop.f32.mrb[27].mxu0  ;;  %v1827_v53 = vpop.f32.mrb[27].mxu1 }
 0x468   : > { %v1841_v33 = vrot.slane %v1833_v28, %v5500_v38  ;;  %v1848_v17 = vrot.slane %v1834_v51, %v5500_v38 }
 0x46a   : > { %v1849_v27 = vcombine.low %v1841_v33, %v1848_v17 }
 0x46c   : > { %v1851_v14 = vadd.f32 %v3479_v15, %v1849_v27 }
 0x46e   : > { %v1852_v13 = vsub.f32 0.0, %v1851_v14  ;;  %v1859_v10 = vrot.slane %v1851_v14, 2  ;;  %v1870_v7 = vrot.slane %v1851_v14, 6  ;;  %v1867_v48 = vrot.slane %v1851_v14, 4 }
 0x470   : > { %v1853_v30 = vmul.f32 1.442695, %v1852_v13  ;;  %v1861_v9 = vsub.f32 0.0, %v1859_v10  ;;  %v1872_v29 = vsub.f32 0.0, %v1870_v7 }
 0x472   : > { %3738 = vpow2.f32 %v1853_v30  ;;  %v1862_v8 = vmul.f32 1.442695, %v1861_v9  ;;  %v1873_v31 = vmul.f32 1.442695, %v1872_v29  ;;  %v3481_v29 = vld [vmem:[%s4486_s8 + $0x20] sm:$0xff] }
 0x474   : > { %3740 = vpow2.f32 %v1862_v8 }
 0x475   : > { %3742 = vpow2.f32 %v1873_v31 }
 0x47c   : > { %v3739_v40 = vpop.eup %3738 }
 0x47d   : > { %v1855_v53 = vadd.f32 1.0, %v3739_v40 }
 0x47e   : > { %v3741_v12 = vpop.eup %3740 }
 0x47f   : > { %3744 = vrcp.f32 %v1855_v53  ;;  %v1864_v51 = vadd.f32 1.0, %v3741_v12  ;;  %v3743_v42 = vpop.eup %3742  ;;  %v1878_v12 = vld [vmem:[#allocation3] sm:$0x3] }
 0x480   : > { %3746 = vtanh.f32 %v1867_v48  ;;  %v1875_v53 = vadd.f32 1.0, %v3743_v42 }
 0x481   : > { %3748 = vrcp.f32 %v1864_v51 }
 0x482   : > { %3750 = vrcp.f32 %v1875_v53 }
 0x484   : > { %v1927_v15 = vpop.f32.mrb[28].mxu0  ;;  %v1968_v17 = vpop.f32.mrb[28].mxu1 }
 0x485   : > { %v1929_v13 = vpop.f32.mrb[29].mxu0  ;;  %v1970_v10 = vpop.f32.mrb[29].mxu1 }
 0x486   : > { %v1979_v27 = vcombine.low %v1927_v15, %v1929_v13  ;;  %v1980_v9 = vcombine.low %v1968_v17, %v1970_v10  ;;  %v1931_v28 = vpop.f32.mrb[30].mxu0  ;;  %v1972_v8 = vpop.f32.mrb[30].mxu1 }
 0x487   : > { %v1932_v7 = vpop.f32.mrb[31].mxu0  ;;  %v1973_v30 = vpop.f32.mrb[31].mxu1 }
 0x488   : > { %v1987_v14 = vrot.slane %v1979_v27, %v5500_v38  ;;  %v1994_v39 = vrot.slane %v1980_v9, %v5500_v38 }
 0x489   : > { %v3745_v33 = vpop.eup %3744 }
 0x48a   : > { %v3747_v31 = vpop.eup %3746  ;;  %v1995_v40 = vcombine.low %v1987_v14, %v1994_v39 }
 0x48b   : > { %v3749_v48 = vpop.eup %3748  ;;  %v1880_v6 = vmul.f32 %v3747_v31, %v3745_v33 }
 0x48c   : > { %v1879_v51 = vmul.f32 %v3749_v48, %v1878_v12  ;;  %v1997_v15 = vadd.f32 %v3481_v29, %v1995_v40  ;;  %v3751_v30 = vpop.eup %3750 }
 0x48e   : > { %v1881_v17 = vadd.f32 %v1880_v6, %v1879_v51  ;;  %v1998_v13 = vsub.f32 0.0, %v1997_v15  ;;  %v2005_v10 = vrot.slane %v1997_v15, 2  ;;  %v2016_v8 = vrot.slane %v1997_v15, 6 }
 0x48f   : > { %v2013_v29 = vrot.slane %v1997_v15, 4 }
 0x490   : > { %3752 = vtanh.f32 %v1881_v17  ;;  %1884 = vst [vmem:[#allocation3] sm:$0x3] %v1881_v17  ;;  %v1999_v28 = vmul.f32 1.442695, %v1998_v13  ;;  %v2007_v27 = vsub.f32 0.0, %v2005_v10  ;;  %v2018_v7 = vsub.f32 0.0, %v2016_v8 }
 0x492   : > { %3754 = vpow2.f32 %v1999_v28  ;;  %v2008_v9 = vmul.f32 1.442695, %v2007_v27  ;;  %v2019_v14 = vmul.f32 1.442695, %v2018_v7  ;;  %v2024_v28 = vld [vmem:[#allocation5] sm:$0x3] }
 0x494   : > { %3756 = vpow2.f32 %v2008_v9 }
 0x495   : > { %3758 = vpow2.f32 %v2019_v14 }
 0x49a   : > { %v3753_v42 = vpop.eup %3752 }
 0x49b   : > { %v1883_v39 = vmul.f32 %v3753_v42, %v3751_v30 }
 0x49c   : > { %v3755_v33 = vpop.eup %3754 }
 0x49d   : > { %v1886_v6 = vpack.c.bf16 %v1883_v39, %v1883_v39  ;;  %1885 = vst [vmem:[#allocation2] sm:$0x3] %v1883_v39  ;;  %v2001_v31 = vadd.f32 1.0, %v3755_v33 }
 0x49e   : > { %v3757_v40 = vpop.eup %3756 }
 0x49f   : > { %3480 = vst [vmem:[%s4495_s12 + $0x3] sm:$0x1] %v1886_v6  ;;  %3760 = vrcp.f32 %v2001_v31  ;;  %v2010_v48 = vadd.f32 1.0, %v3757_v40  ;;  %v3759_v51 = vpop.eup %3758  ;;  %v5536_v6 = vld [vmem:[#allocation16_spill] sm:$0xff]  ;;  %v5537_v31 = vld [vmem:[#allocation17_spill] sm:$0xff]  ;;  %v5538_v40 = vld [vmem:[#allocation18_spill] sm:$0xff] }
 0x4a0   : > { %3762 = vtanh.f32 %v2013_v29  ;;  %v2021_v10 = vadd.f32 1.0, %v3759_v51  ;;  %v5531_v29 = vld [vmem:[#allocation11_spill] sm:$0xff]  ;;  %v5542_v51 = vld [vmem:[#allocation22_spill] sm:$0xff] }
 0x4a1   : > { %3764 = vrcp.f32 %v2010_v48  ;;  %v5539_v48 = vld [vmem:[#allocation19_spill] sm:$0xff] }
 0x4a2   : > { %3766 = vrcp.f32 %v2021_v10  ;;  %v5546_v10 = vld [vmem:[#allocation29_spill] sm:$0xff] }
 0x4a4   : > { %v2037_v53 = vld [vmem:[#allocation2] sm:$0x3] }
 0x4a5   : > { %v2038_v12 = vpack.c.bf16 %v2037_v53, %v2037_v53  ;;  %v5540_v53 = vld [vmem:[#allocation20_spill] sm:$0xff] }
 0x4a7   : > { %2072 = vmatmul.mubr.bf16.vlgmr.msra.gmra.mrb[32].mxu0 %v2038_v12  ;;  %2113 = vmatmul.mubr.bf16.vlgmr.msra.gmra.mrb[32].mxu1 %v2038_v12  ;;  %v5541_v12 = vld [vmem:[#allocation21_spill] sm:$0xff] }
 0x4a8   : > { %2186 = vmatpush1.bf16.msra.mxu0 %v4748_v46  ;;  %2227 = vmatpush1.bf16.msra.mxu1 %v4752_v49 }
 0x4a9   : > { %v3761_v15 = vpop.eup %3760  ;;  %2187 = vmatprep.subr.bf16.mxu0 %v4756_v32  ;;  %2228 = vmatprep.subr.bf16.mxu1 %v4760_v47 }
 0x4aa   : > { %v3763_v17 = vpop.eup %3762  ;;  %2217 = vmatprep.mubr.bf16.mxu0 %v5477_v50  ;;  %2258 = vmatprep.mubr.bf16.mxu1 %v5477_v50 }
 0x4ab   : > { %v3765_v13 = vpop.eup %3764  ;;  %v2026_v9 = vmul.f32 %v3763_v17, %v3761_v15  ;;  %v5543_v15 = vld [vmem:[#allocation23_spill] sm:$0xff]  ;;  %v5544_v17 = vld [vmem:[#allocation24_spill] sm:$0xff] }
 0x4ac   : > { %v2025_v27 = vmul.f32 %v3765_v13, %v2024_v28  ;;  %2188 = vmatpush1.bf16.msra.mxu0 %v4766_v21  ;;  %2229 = vmatpush1.bf16.msra.mxu1 %v4770_v22  ;;  %v3767_v7 = vpop.eup %3766  ;;  %v5545_v13 = vld [vmem:[#allocation25_spill] sm:$0xff]  ;;  %v5547_v28 = vld [vmem:[#allocation30_spill] sm:$0xff] }
 0x4ad   : > { %2189 = vmatprep.subr.bf16.mxu0 %v4774_v23  ;;  %2230 = vmatprep.subr.bf16.mxu1 %v4778_v24 }
 0x4ae   : > { %v2027_v8 = vadd.f32 %v2026_v9, %v2025_v27  ;;  %v5548_v27 = vld [vmem:[#allocation31_spill] sm:$0xff] }
 0x4b0   : > { %3768 = vtanh.f32 %v2027_v8  ;;  %2030 = vst [vmem:[#allocation5] sm:$0x3] %v2027_v8  ;;  %2190 = vmatpush1.bf16.msra.mxu0 %v4782_v26  ;;  %2231 = vmatpush1.bf16.msra.mxu1 %v4786_v54 }
 0x4b1   : > { %2191 = vmatprep.subr.bf16.mxu0 %v4790_v55  ;;  %2232 = vmatprep.subr.bf16.mxu1 %v4794_v56 }
 0x4b4   : > { %2192 = vmatpush1.bf16.msra.mxu0 %v4798_v57  ;;  %2233 = vmatpush1.bf16.msra.mxu1 %v4802_v58 }
 0x4b5   : > { %2193 = vmatprep.subr.bf16.mxu0 %v4806_v59  ;;  %2234 = vmatprep.subr.bf16.mxu1 %v4810_v60 }
 0x4b8   : > { %2194 = vmatpush1.bf16.msra.mxu0 %v4814_v41  ;;  %2235 = vmatpush1.bf16.msra.mxu1 %v4818_v43 }
 0x4b9   : > { %2195 = vmatprep.subr.bf16.mxu0 %v4822_v34  ;;  %2236 = vmatprep.subr.bf16.mxu1 %v4826_v44 }
 0x4ba   : > { %v3769_v30 = vpop.eup %3768 }
 0x4bb   : > { %v2029_v42 = vmul.f32 %v3769_v30, %v3767_v7 }
 0x4bc   : > { %2196 = vmatpush1.bf16.msra.mxu0 %v4830_v45  ;;  %2237 = vmatpush1.bf16.msra.mxu1 %v4834_v37 }
 0x4bd   : > { %v2032_v14 = vpack.c.bf16 %v2029_v42, %v2029_v42  ;;  %2031 = vst [vmem:[#allocation4] sm:$0x3] %v2029_v42  ;;  %2197 = vmatprep.subr.bf16.mxu0 %v4838_v18  ;;  %2238 = vmatprep.subr.bf16.mxu1 %v4842_v52 }
 0x4bf   : > { %3482 = vst [vmem:[%s4525_s15 + $0x4] sm:$0x1] %v2032_v14 }
 0x4c0   : > { %2198 = vmatpush1.bf16.msra.mxu0 %v4847_v19  ;;  %2239 = vmatpush1.bf16.msra.mxu1 %v4851_v11 }
 0x4c1   : > { %2199 = vmatprep.subr.bf16.mxu0 %v4855_v20  ;;  %2240 = vmatprep.subr.bf16.mxu1 %v4859_v25 }
 0x4c4   : > { %2200 = vmatpush1.bf16.msra.mxu0 %v4863_v35  ;;  %2241 = vmatpush1.bf16.msra.mxu1 %v4867_v36  ;;  %v2183_v39 = vld [vmem:[#allocation4] sm:$0x3] }
 0x4c5   : > { %v2184_v33 = vpack.c.bf16 %v2183_v39, %v2183_v39  ;;  %2331 = vmatprep.subr.bf16.mxu0 %v4615_v61  ;;  %2372 = vmatprep.subr.bf16.mxu1 %v4619_v62  ;;  %v5525_v61 = vld [vmem:[#allocation26_spill] sm:$0xff]  ;;  %v5526_v62 = vld [vmem:[#allocation27_spill] sm:$0xff] }
 0x4c7   : > { %2218 = vmatmul.mubr.bf16.vlgmr.msra.gmra.mrb[36].mxu0 %v2184_v33  ;;  %2259 = vmatmul.mubr.bf16.vlgmr.msra.gmra.mrb[36].mxu1 %v2184_v33 }
 0x4c8   : > { %2332 = vmatpush1.bf16.msra.mxu0 %v4623_v63  ;;  %2373 = vmatpush1.bf16.msra.mxu1 %v4627_v16  ;;  %v5527_v63 = vld [vmem:[#allocation28_spill] sm:$0xff] }
 0x4c9   : > { %2333 = vmatprep.subr.bf16.mxu0 %v4631_v0  ;;  %2374 = vmatprep.subr.bf16.mxu1 %v4635_v1  ;;  %v5528_v16 = vld [vmem:[#allocation8_spill] sm:$0xff]  ;;  %v5529_v0 = vld [vmem:[#allocation9_spill] sm:$0xff]  ;;  %v5530_v1 = vld [vmem:[#allocation10_spill] sm:$0xff] }
 0x4ca   : > { %2363 = vmatprep.mubr.bf16.mxu0 %v5477_v50  ;;  %2404 = vmatprep.mubr.bf16.mxu1 %v5477_v50 }
 0x4cc   : > { %2334 = vmatpush1.bf16.msra.mxu0 %v4641_v2  ;;  %2375 = vmatpush1.bf16.msra.mxu1 %v4645_v3  ;;  %v5532_v2 = vld [vmem:[#allocation12_spill] sm:$0xff]  ;;  %v5533_v3 = vld [vmem:[#allocation13_spill] sm:$0xff] }
 0x4cd   : > { %2335 = vmatprep.subr.bf16.mxu0 %v4649_v4  ;;  %2376 = vmatprep.subr.bf16.mxu1 %v4653_v5  ;;  %v5534_v4 = vld [vmem:[#allocation14_spill] sm:$0xff]  ;;  %v5535_v5 = vld [vmem:[#allocation15_spill] sm:$0xff] }
 0x4d0   : > { %2336 = vmatpush1.bf16.msra.mxu0 %v5525_v61  ;;  %2377 = vmatpush1.bf16.msra.mxu1 %v5526_v62 }
 0x4d1   : > { %2337 = vmatprep.subr.bf16.mxu0 %v5527_v63  ;;  %2378 = vmatprep.subr.bf16.mxu1 %v5528_v16 }
 0x4d4   : > { %2338 = vmatpush1.bf16.msra.mxu0 %v5529_v0  ;;  %2379 = vmatpush1.bf16.msra.mxu1 %v5530_v1  ;;  %v3483_v0 = vld [vmem:[%s4480_s18 + $0x20] sm:$0xff] }
 0x4d5   : > { %2339 = vmatprep.subr.bf16.mxu0 %v5531_v29  ;;  %2380 = vmatprep.subr.bf16.mxu1 %v5532_v2 }
 0x4d8   : > { %2340 = vmatpush1.bf16.msra.mxu0 %v5533_v3  ;;  %2381 = vmatpush1.bf16.msra.mxu1 %v5534_v4 }
 0x4d9   : > { %2341 = vmatprep.subr.bf16.mxu0 %v5535_v5  ;;  %2382 = vmatprep.subr.bf16.mxu1 %v5536_v6 }
 0x4dc   : > { %2342 = vmatpush1.bf16.msra.mxu0 %v5537_v31  ;;  %2383 = vmatpush1.bf16.msra.mxu1 %v5538_v40 }
 0x4dd   : > { %2343 = vmatprep.subr.bf16.mxu0 %v5539_v48  ;;  %2384 = vmatprep.subr.bf16.mxu1 %v5540_v53 }
 0x4e0   : > { %2344 = vmatpush1.bf16.msra.mxu0 %v5541_v12  ;;  %2385 = vmatpush1.bf16.msra.mxu1 %v5542_v51 }
 0x4e1   : > { %2345 = vmatprep.subr.bf16.mxu0 %v5543_v15  ;;  %2386 = vmatprep.subr.bf16.mxu1 %v5544_v17 }
 0x4e4   : > { %2346 = vmatpush1.bf16.msra.mxu0 %v5545_v13  ;;  %2387 = vmatpush1.bf16.msra.mxu1 %v5546_v10 }
 0x4e5   : > { %2477 = vmatprep.subr.bf16.mxu0 %v5547_v28  ;;  %2518 = vmatprep.subr.bf16.mxu1 %v5548_v27 }
 0x57a   : > { %v2073_v9 = vpop.f32.mrb[32].mxu0  ;;  %v2114_v8 = vpop.f32.mrb[32].mxu1 }
 0x57b   : > { %v2075_v7 = vpop.f32.mrb[33].mxu0  ;;  %v2116_v30 = vpop.f32.mrb[33].mxu1 }
 0x57c   : > { %v2125_v42 = vcombine.low %v2073_v9, %v2075_v7  ;;  %v2126_v14 = vcombine.low %v2114_v8, %v2116_v30  ;;  %v2077_v39 = vpop.f32.mrb[34].mxu0  ;;  %v2118_v33 = vpop.f32.mrb[34].mxu1 }
 0x57d   : > { %v2078_v61 = vpop.f32.mrb[35].mxu0  ;;  %v2119_v62 = vpop.f32.mrb[35].mxu1 }
 0x57e   : > { %v2133_v63 = vrot.slane %v2125_v42, %v5500_v38  ;;  %v2140_v16 = vrot.slane %v2126_v14, %v5500_v38 }
 0x580   : > { %v2141_v1 = vcombine.low %v2133_v63, %v2140_v16 }
 0x582   : > { %v2143_v29 = vadd.f32 %v3483_v0, %v2141_v1 }
 0x584   : > { %v2144_v2 = vsub.f32 0.0, %v2143_v29  ;;  %v2151_v3 = vrot.slane %v2143_v29, 2  ;;  %v2162_v31 = vrot.slane %v2143_v29, 6  ;;  %v2159_v12 = vrot.slane %v2143_v29, 4  ;;  %v3485_v29 = vld [vmem:[%s4486_s8 + $0x18] sm:$0xff] }
 0x586   : > { %v2145_v4 = vmul.f32 1.442695, %v2144_v2  ;;  %v2153_v5 = vsub.f32 0.0, %v2151_v3  ;;  %v2164_v40 = vsub.f32 0.0, %v2162_v31 }
 0x588   : > { %3770 = vpow2.f32 %v2145_v4  ;;  %v2154_v6 = vmul.f32 1.442695, %v2153_v5  ;;  %v2165_v48 = vmul.f32 1.442695, %v2164_v40 }
 0x58a   : > { %3772 = vpow2.f32 %v2154_v6  ;;  %v2170_v6 = vld [vmem:[#allocation3] sm:$0x3] }
 0x58b   : > { %3774 = vpow2.f32 %v2165_v48 }
 0x592   : > { %v3771_v53 = vpop.eup %3770 }
 0x593   : > { %v2147_v51 = vadd.f32 1.0, %v3771_v53 }
 0x594   : > { %v3773_v15 = vpop.eup %3772 }
 0x595   : > { %3776 = vrcp.f32 %v2147_v51  ;;  %v2156_v17 = vadd.f32 1.0, %v3773_v15  ;;  %v3775_v63 = vpop.eup %3774 }
 0x596   : > { %3778 = vtanh.f32 %v2159_v12  ;;  %v2167_v5 = vadd.f32 1.0, %v3775_v63 }
 0x597   : > { %3780 = vrcp.f32 %v2156_v17 }
 0x598   : > { %3782 = vrcp.f32 %v2167_v5 }
 0x59a   : > { %v2219_v9 = vpop.f32.mrb[36].mxu0  ;;  %v2260_v8 = vpop.f32.mrb[36].mxu1 }
 0x59b   : > { %v2221_v7 = vpop.f32.mrb[37].mxu0  ;;  %v2262_v30 = vpop.f32.mrb[37].mxu1 }
 0x59c   : > { %v2271_v42 = vcombine.low %v2219_v9, %v2221_v7  ;;  %v2272_v14 = vcombine.low %v2260_v8, %v2262_v30  ;;  %v2223_v39 = vpop.f32.mrb[38].mxu0  ;;  %v2264_v33 = vpop.f32.mrb[38].mxu1 }
 0x59d   : > { %v2224_v61 = vpop.f32.mrb[39].mxu0  ;;  %v2265_v62 = vpop.f32.mrb[39].mxu1 }
 0x59e   : > { %v2279_v16 = vrot.slane %v2271_v42, %v5500_v38  ;;  %v2286_v0 = vrot.slane %v2272_v14, %v5500_v38 }
 0x59f   : > { %v3777_v1 = vpop.eup %3776 }
 0x5a0   : > { %v3779_v2 = vpop.eup %3778  ;;  %v2287_v3 = vcombine.low %v2279_v16, %v2286_v0 }
 0x5a1   : > { %v3781_v4 = vpop.eup %3780  ;;  %v2172_v40 = vmul.f32 %v3779_v2, %v3777_v1 }
 0x5a2   : > { %v2171_v31 = vmul.f32 %v3781_v4, %v2170_v6  ;;  %v2289_v48 = vadd.f32 %v3485_v29, %v2287_v3  ;;  %v3783_v30 = vpop.eup %3782 }
 0x5a4   : > { %v2173_v53 = vadd.f32 %v2172_v40, %v2171_v31  ;;  %v2290_v12 = vsub.f32 0.0, %v2289_v48  ;;  %v2297_v51 = vrot.slane %v2289_v48, 2  ;;  %v2308_v8 = vrot.slane %v2289_v48, 6  ;;  %v2316_v31 = vld [vmem:[#allocation5] sm:$0x3] }
 0x5a5   : > { %v2305_v61 = vrot.slane %v2289_v48, 4 }
 0x5a6   : > { %3784 = vtanh.f32 %v2173_v53  ;;  %2176 = vst [vmem:[#allocation3] sm:$0x3] %v2173_v53  ;;  %v2291_v15 = vmul.f32 1.442695, %v2290_v12  ;;  %v2299_v17 = vsub.f32 0.0, %v2297_v51  ;;  %v2310_v7 = vsub.f32 0.0, %v2308_v8 }
 0x5a7   : > { %v5129_v53 = vld [vmem:[%s4169_s26 + $0xa8] ss:$16 sps:$4 sm:$0xff]   ;;  %v5133_v12 = vld [vmem:[%s4169_s26 + $0xc4] ss:$16 sps:$4 sm:$0xff]   ;;  %v5137_v51 = vld [vmem:[%s4169_s26 + $0xcc] ss:$16 sps:$4 sm:$0xff]  }
 0x5a8   : > { %3786 = vpow2.f32 %v2291_v15  ;;  %v2300_v9 = vmul.f32 1.442695, %v2299_v17  ;;  %v2311_v14 = vmul.f32 1.442695, %v2310_v7  ;;  %v5141_v15 = vld [vmem:[%s4169_s26 + $0xc0] ss:$16 sps:$4 sm:$0xff]  }
 0x5a9   : > { %v5145_v17 = vld [vmem:[%s4169_s26 + $0xc8] ss:$16 sps:$4 sm:$0xff]   ;;  %v5153_v8 = vld [vmem:[%s4169_s26 + $0xec] ss:$16 sps:$4 sm:$0xff]  }
 0x5aa   : > { %3788 = vpow2.f32 %v2300_v9  ;;  %v5149_v9 = vld [vmem:[%s4169_s26 + $0xe4] ss:$16 sps:$4 sm:$0xff]  }
 0x5ab   : > { %3790 = vpow2.f32 %v2311_v14 }
 0x5b0   : > { %v3785_v42 = vpop.eup %3784 }
 0x5b1   : > { %v2175_v39 = vmul.f32 %v3785_v42, %v3783_v30 }
 0x5b2   : > { %v3787_v33 = vpop.eup %3786 }
 0x5b3   : > { %v2178_v62 = vpack.c.bf16 %v2175_v39, %v2175_v39  ;;  %2177 = vst [vmem:[#allocation2] sm:$0x3] %v2175_v39  ;;  %v2293_v63 = vadd.f32 1.0, %v3787_v33 }
 0x5b4   : > { %v3789_v16 = vpop.eup %3788 }
 0x5b5   : > { %3484 = vst [vmem:[%s4495_s12 + $0x4] sm:$0x1] %v2178_v62  ;;  %3792 = vrcp.f32 %v2293_v63  ;;  %v2302_v0 = vadd.f32 1.0, %v3789_v16  ;;  %v3791_v2 = vpop.eup %3790 }
 0x5b6   : > { %3794 = vtanh.f32 %v2305_v61  ;;  %v2313_v6 = vadd.f32 1.0, %v3791_v2 }
 0x5b7   : > { %3796 = vrcp.f32 %v2302_v0 }
 0x5b8   : > { %3798 = vrcp.f32 %v2313_v6 }
 0x5ba   : > { %v2329_v1 = vld [vmem:[#allocation2] sm:$0x3] }
 0x5bb   : > { %v2330_v29 = vpack.c.bf16 %v2329_v1, %v2329_v1  ;;  %v3487_v1 = vld [vmem:[%s4480_s18 + $0x28] sm:$0xff] }
 0x5bd   : > { %2364 = vmatmul.mubr.bf16.vlgmr.msra.gmra.mrb[40].mxu0 %v2330_v29  ;;  %2405 = vmatmul.mubr.bf16.vlgmr.msra.gmra.mrb[40].mxu1 %v2330_v29 }
 0x5be   : > { %2478 = vmatpush1.bf16.msra.mxu0 %v4748_v46  ;;  %2519 = vmatpush1.bf16.msra.mxu1 %v4752_v49 }
 0x5bf   : > { %v3793_v3 = vpop.eup %3792  ;;  %2479 = vmatprep.subr.bf16.mxu0 %v4756_v32  ;;  %2520 = vmatprep.subr.bf16.mxu1 %v4760_v47 }
 0x5c0   : > { %v3795_v4 = vpop.eup %3794  ;;  %2509 = vmatprep.mubr.bf16.mxu0 %v5477_v50  ;;  %2550 = vmatprep.mubr.bf16.mxu1 %v5477_v50 }
 0x5c1   : > { %v3797_v5 = vpop.eup %3796  ;;  %v2318_v48 = vmul.f32 %v3795_v4, %v3793_v3 }
 0x5c2   : > { %v2317_v40 = vmul.f32 %v3797_v5, %v2316_v31  ;;  %2480 = vmatpush1.bf16.msra.mxu0 %v4766_v21  ;;  %2521 = vmatpush1.bf16.msra.mxu1 %v4770_v22  ;;  %v3799_v49 = vpop.eup %3798 }
 0x5c3   : > { %2481 = vmatprep.subr.bf16.mxu0 %v4774_v23  ;;  %2522 = vmatprep.subr.bf16.mxu1 %v4778_v24  ;;  %v5035_v24 = vld [vmem:[%s4169_s26 + $0x4] ss:$16 sps:$4 sm:$0xff]  }
 0x5c4   : > { %v2319_v46 = vadd.f32 %v2318_v48, %v2317_v40 }
 0x5c6   : > { %3800 = vtanh.f32 %v2319_v46  ;;  %2322 = vst [vmem:[#allocation5] sm:$0x3] %v2319_v46  ;;  %2482 = vmatpush1.bf16.msra.mxu0 %v4782_v26  ;;  %2523 = vmatpush1.bf16.msra.mxu1 %v4786_v54  ;;  %v5039_v26 = vld [vmem:[%s4169_s26 + $0xc] ss:$16 sps:$4 sm:$0xff]   ;;  %v5043_v54 = vld [vmem:[%s4169_s26] ss:$16 sps:$4 sm:$0xff]  }
 0x5c7   : > { %2483 = vmatprep.subr.bf16.mxu0 %v4790_v55  ;;  %2524 = vmatprep.subr.bf16.mxu1 %v4794_v56  ;;  %v5047_v55 = vld [vmem:[%s4169_s26 + $0x8] ss:$16 sps:$4 sm:$0xff]   ;;  %v5051_v56 = vld [vmem:[%s4169_s26 + $0x24] ss:$16 sps:$4 sm:$0xff]  }
 0x5ca   : > { %2484 = vmatpush1.bf16.msra.mxu0 %v4798_v57  ;;  %2525 = vmatpush1.bf16.msra.mxu1 %v4802_v58  ;;  %v5055_v57 = vld [vmem:[%s4169_s26 + $0x2c] ss:$16 sps:$4 sm:$0xff]   ;;  %v5061_v58 = vld [vmem:[%s4169_s26 + $0x20] ss:$16 sps:$4 sm:$0xff]  }
 0x5cb   : > { %2485 = vmatprep.subr.bf16.mxu0 %v4806_v59  ;;  %2526 = vmatprep.subr.bf16.mxu1 %v4810_v60  ;;  %v5065_v59 = vld [vmem:[%s4169_s26 + $0x28] ss:$16 sps:$4 sm:$0xff]   ;;  %v5069_v60 = vld [vmem:[%s4169_s26 + $0x44] ss:$16 sps:$4 sm:$0xff]  }
 0x5ce   : > { %2486 = vmatpush1.bf16.msra.mxu0 %v4814_v41  ;;  %2527 = vmatpush1.bf16.msra.mxu1 %v4818_v43  ;;  %v5073_v41 = vld [vmem:[%s4169_s26 + $0x4c] ss:$16 sps:$4 sm:$0xff]   ;;  %v5077_v43 = vld [vmem:[%s4169_s26 + $0x40] ss:$16 sps:$4 sm:$0xff]  }
 0x5cf   : > { %2487 = vmatprep.subr.bf16.mxu0 %v4822_v34  ;;  %2528 = vmatprep.subr.bf16.mxu1 %v4826_v44  ;;  %v5081_v34 = vld [vmem:[%s4169_s26 + $0x48] ss:$16 sps:$4 sm:$0xff]   ;;  %v5085_v44 = vld [vmem:[%s4169_s26 + $0x64] ss:$16 sps:$4 sm:$0xff]  }
 0x5d0   : > { %v3801_v32 = vpop.eup %3800 }
 0x5d1   : > { %v2321_v47 = vmul.f32 %v3801_v32, %v3799_v49 }
 0x5d2   : > { %2488 = vmatpush1.bf16.msra.mxu0 %v4830_v45  ;;  %2529 = vmatpush1.bf16.msra.mxu1 %v4834_v37  ;;  %v5089_v45 = vld [vmem:[%s4169_s26 + $0x6c] ss:$16 sps:$4 sm:$0xff]   ;;  %v5093_v37 = vld [vmem:[%s4169_s26 + $0x60] ss:$16 sps:$4 sm:$0xff]  }
 0x5d3   : > { %v2324_v21 = vpack.c.bf16 %v2321_v47, %v2321_v47  ;;  %2323 = vst [vmem:[#allocation4] sm:$0x3] %v2321_v47  ;;  %2489 = vmatprep.subr.bf16.mxu0 %v4838_v18  ;;  %2530 = vmatprep.subr.bf16.mxu1 %v4842_v52  ;;  %v5097_v18 = vld [vmem:[%s4169_s26 + $0x68] ss:$16 sps:$4 sm:$0xff]   ;;  %v5101_v52 = vld [vmem:[%s4169_s26 + $0x84] ss:$16 sps:$4 sm:$0xff]  }
 0x5d5   : > { %3486 = vst [vmem:[%s4525_s15 + $0x3] sm:$0x1] %v2324_v21 }
 0x5d6   : > { %2490 = vmatpush1.bf16.msra.mxu0 %v4847_v19  ;;  %2531 = vmatpush1.bf16.msra.mxu1 %v4851_v11  ;;  %v5105_v19 = vld [vmem:[%s4169_s26 + $0x8c] ss:$16 sps:$4 sm:$0xff]   ;;  %v5109_v11 = vld [vmem:[%s4169_s26 + $0x80] ss:$16 sps:$4 sm:$0xff]  }
 0x5d7   : > { %2491 = vmatprep.subr.bf16.mxu0 %v4855_v20  ;;  %2532 = vmatprep.subr.bf16.mxu1 %v4859_v25  ;;  %v5113_v20 = vld [vmem:[%s4169_s26 + $0x88] ss:$16 sps:$4 sm:$0xff]   ;;  %v5117_v25 = vld [vmem:[%s4169_s26 + $0xa4] ss:$16 sps:$4 sm:$0xff]  }
 0x5da   : > { %2492 = vmatpush1.bf16.msra.mxu0 %v4863_v35  ;;  %2533 = vmatpush1.bf16.msra.mxu1 %v4867_v36  ;;  %v2475_v22 = vld [vmem:[#allocation4] sm:$0x3]  ;;  %v5121_v35 = vld [vmem:[%s4169_s26 + $0xac] ss:$16 sps:$4 sm:$0xff]   ;;  %v5125_v36 = vld [vmem:[%s4169_s26 + $0xa0] ss:$16 sps:$4 sm:$0xff]  }
 0x5db   : > { %v2476_v23 = vpack.c.bf16 %v2475_v22, %v2475_v22  ;;  %2623 = vmatprep.subr.bf16.mxu0 %v5035_v24  ;;  %2664 = vmatprep.subr.bf16.mxu1 %v5039_v26 }
 0x5dd   : > { %2510 = vmatmul.mubr.bf16.vlgmr.msra.gmra.mrb[44].mxu0 %v2476_v23  ;;  %2551 = vmatmul.mubr.bf16.vlgmr.msra.gmra.mrb[44].mxu1 %v2476_v23 }
 0x5de   : > { %2624 = vmatpush1.bf16.msra.mxu0 %v5043_v54  ;;  %2665 = vmatpush1.bf16.msra.mxu1 %v5047_v55 }
 0x5df   : > { %2625 = vmatprep.subr.bf16.mxu0 %v5051_v56  ;;  %2666 = vmatprep.subr.bf16.mxu1 %v5055_v57 }
 0x5e0   : > { %2655 = vmatprep.mubr.bf16.mxu0 %v5477_v50  ;;  %2696 = vmatprep.mubr.bf16.mxu1 %v5477_v50 }
 0x5e2   : > { %2626 = vmatpush1.bf16.msra.mxu0 %v5061_v58  ;;  %2667 = vmatpush1.bf16.msra.mxu1 %v5065_v59 }
 0x5e3   : > { %2627 = vmatprep.subr.bf16.mxu0 %v5069_v60  ;;  %2668 = vmatprep.subr.bf16.mxu1 %v5073_v41 }
 0x5e6   : > { %2628 = vmatpush1.bf16.msra.mxu0 %v5077_v43  ;;  %2669 = vmatpush1.bf16.msra.mxu1 %v5081_v34 }
 0x5e7   : > { %2629 = vmatprep.subr.bf16.mxu0 %v5085_v44  ;;  %2670 = vmatprep.subr.bf16.mxu1 %v5089_v45 }
 0x5ea   : > { %2630 = vmatpush1.bf16.msra.mxu0 %v5093_v37  ;;  %2671 = vmatpush1.bf16.msra.mxu1 %v5097_v18 }
 0x5eb   : > { %2631 = vmatprep.subr.bf16.mxu0 %v5101_v52  ;;  %2672 = vmatprep.subr.bf16.mxu1 %v5105_v19 }
 0x5ee   : > { %2632 = vmatpush1.bf16.msra.mxu0 %v5109_v11  ;;  %2673 = vmatpush1.bf16.msra.mxu1 %v5113_v20 }
 0x5ef   : > { %2633 = vmatprep.subr.bf16.mxu0 %v5117_v25  ;;  %2674 = vmatprep.subr.bf16.mxu1 %v5121_v35 }
 0x5f2   : > { %2634 = vmatpush1.bf16.msra.mxu0 %v5125_v36  ;;  %2675 = vmatpush1.bf16.msra.mxu1 %v5129_v53 }
 0x5f3   : > { %2635 = vmatprep.subr.bf16.mxu0 %v5133_v12  ;;  %2676 = vmatprep.subr.bf16.mxu1 %v5137_v51 }
 0x5f6   : > { %2636 = vmatpush1.bf16.msra.mxu0 %v5141_v15  ;;  %2677 = vmatpush1.bf16.msra.mxu1 %v5145_v17 }
 0x5f7   : > { %2637 = vmatprep.subr.bf16.mxu0 %v5149_v9  ;;  %2678 = vmatprep.subr.bf16.mxu1 %v5153_v8 }
 0x5fa   : > { %2638 = vmatpush1.bf16.msra.mxu0 %v5545_v13  ;;  %2679 = vmatpush1.bf16.msra.mxu1 %v5546_v10 }
 0x5fb   : > { %2769 = vmatprep.subr.bf16.mxu0 %v5547_v28  ;;  %2810 = vmatprep.subr.bf16.mxu1 %v5548_v27 }
 0x690   : > { %v2365_v7 = vpop.f32.mrb[40].mxu0  ;;  %v2406_v30 = vpop.f32.mrb[40].mxu1 }
 0x691   : > { %v2367_v42 = vpop.f32.mrb[41].mxu0  ;;  %v2408_v14 = vpop.f32.mrb[41].mxu1 }
 0x692   : > { %v2417_v39 = vcombine.low %v2365_v7, %v2367_v42  ;;  %v2418_v33 = vcombine.low %v2406_v30, %v2408_v14  ;;  %v2369_v61 = vpop.f32.mrb[42].mxu0  ;;  %v2410_v62 = vpop.f32.mrb[42].mxu1 }
 0x693   : > { %v2370_v63 = vpop.f32.mrb[43].mxu0  ;;  %v2411_v16 = vpop.f32.mrb[43].mxu1 }
 0x694   : > { %v2425_v0 = vrot.slane %v2417_v39, %v5500_v38  ;;  %v2432_v13 = vrot.slane %v2418_v33, %v5500_v38 }
 0x696   : > { %v2433_v10 = vcombine.low %v2425_v0, %v2432_v13  ;;  %v3489_v0 = vld [vmem:[%s4486_s8 + $0x10] sm:$0xff] }
 0x698   : > { %v2435_v29 = vadd.f32 %v3487_v1, %v2433_v10 }
 0x69a   : > { %v2436_v28 = vsub.f32 0.0, %v2435_v29  ;;  %v2443_v2 = vrot.slane %v2435_v29, 2  ;;  %v2454_v5 = vrot.slane %v2435_v29, 6  ;;  %v2451_v48 = vrot.slane %v2435_v29, 4 }
 0x69c   : > { %v2437_v27 = vmul.f32 1.442695, %v2436_v28  ;;  %v2445_v3 = vsub.f32 0.0, %v2443_v2  ;;  %v2456_v6 = vsub.f32 0.0, %v2454_v5  ;;  %v2462_v28 = vld [vmem:[#allocation3] sm:$0x3] }
 0x69e   : > { %3802 = vpow2.f32 %v2437_v27  ;;  %v2446_v4 = vmul.f32 1.442695, %v2445_v3  ;;  %v2457_v31 = vmul.f32 1.442695, %v2456_v6 }
 0x6a0   : > { %3804 = vpow2.f32 %v2446_v4 }
 0x6a1   : > { %3806 = vpow2.f32 %v2457_v31 }
 0x6a8   : > { %v3803_v40 = vpop.eup %3802 }
 0x6a9   : > { %v2439_v46 = vadd.f32 1.0, %v3803_v40 }
 0x6aa   : > { %v3805_v49 = vpop.eup %3804 }
 0x6ab   : > { %3808 = vrcp.f32 %v2439_v46  ;;  %v2448_v32 = vadd.f32 1.0, %v3805_v49  ;;  %v3807_v61 = vpop.eup %3806 }
 0x6ac   : > { %3810 = vtanh.f32 %v2451_v48  ;;  %v2459_v29 = vadd.f32 1.0, %v3807_v61 }
 0x6ad   : > { %3812 = vrcp.f32 %v2448_v32 }
 0x6ae   : > { %3814 = vrcp.f32 %v2459_v29 }
 0x6b0   : > { %v2511_v47 = vpop.f32.mrb[44].mxu0  ;;  %v2552_v21 = vpop.f32.mrb[44].mxu1 }
 0x6b1   : > { %v2513_v22 = vpop.f32.mrb[45].mxu0  ;;  %v2554_v23 = vpop.f32.mrb[45].mxu1 }
 0x6b2   : > { %v2563_v7 = vcombine.low %v2511_v47, %v2513_v22  ;;  %v2564_v30 = vcombine.low %v2552_v21, %v2554_v23  ;;  %v2515_v42 = vpop.f32.mrb[46].mxu0  ;;  %v2556_v14 = vpop.f32.mrb[46].mxu1 }
 0x6b3   : > { %v2516_v39 = vpop.f32.mrb[47].mxu0  ;;  %v2557_v33 = vpop.f32.mrb[47].mxu1 }
 0x6b4   : > { %v2571_v62 = vrot.slane %v2563_v7, %v5500_v38  ;;  %v2578_v63 = vrot.slane %v2564_v30, %v5500_v38 }
 0x6b5   : > { %v3809_v16 = vpop.eup %3808 }
 0x6b6   : > { %v3811_v13 = vpop.eup %3810  ;;  %v2579_v1 = vcombine.low %v2571_v62, %v2578_v63  ;;  %v5168_v63 = vld [vmem:[%s4268_s30] ss:$16 sps:$4 sm:$0xff]  }
 0x6b7   : > { %v3813_v10 = vpop.eup %3812  ;;  %v2464_v27 = vmul.f32 %v3811_v13, %v3809_v16  ;;  %v5172_v16 = vld [vmem:[%s4268_s30 + $0x8] ss:$16 sps:$4 sm:$0xff]   ;;  %v5176_v13 = vld [vmem:[%s4268_s30 + $0x24] ss:$16 sps:$4 sm:$0xff]  }
 0x6b8   : > { %v2463_v2 = vmul.f32 %v3813_v10, %v2462_v28  ;;  %v2581_v3 = vadd.f32 %v3489_v0, %v2579_v1  ;;  %v3815_v32 = vpop.eup %3814  ;;  %v5180_v1 = vld [vmem:[%s4268_s30 + $0x2c] ss:$16 sps:$4 sm:$0xff]  }
 0x6ba   : > { %v2465_v4 = vadd.f32 %v2464_v27, %v2463_v2  ;;  %v2582_v5 = vsub.f32 0.0, %v2581_v3  ;;  %v2589_v6 = vrot.slane %v2581_v3, 2  ;;  %v2600_v46 = vrot.slane %v2581_v3, 6  ;;  %v2608_v2 = vld [vmem:[#allocation5] sm:$0x3] }
 0x6bb   : > { %v2597_v7 = vrot.slane %v2581_v3, 4 }
 0x6bc   : > { %3816 = vtanh.f32 %v2465_v4  ;;  %2468 = vst [vmem:[#allocation3] sm:$0x3] %v2465_v4  ;;  %v2583_v31 = vmul.f32 1.442695, %v2582_v5  ;;  %v2591_v40 = vsub.f32 0.0, %v2589_v6  ;;  %v2602_v49 = vsub.f32 0.0, %v2600_v46 }
 0x6bd   : > { %v5186_v4 = vld [vmem:[%s4268_s30 + $0x20] ss:$16 sps:$4 sm:$0xff]   ;;  %v5190_v5 = vld [vmem:[%s4268_s30 + $0x28] ss:$16 sps:$4 sm:$0xff]   ;;  %v5194_v6 = vld [vmem:[%s4268_s30 + $0x44] ss:$16 sps:$4 sm:$0xff]  }
 0x6be   : > { %3818 = vpow2.f32 %v2583_v31  ;;  %v2592_v48 = vmul.f32 1.442695, %v2591_v40  ;;  %v2603_v21 = vmul.f32 1.442695, %v2602_v49  ;;  %v5198_v31 = vld [vmem:[%s4268_s30 + $0x4c] ss:$16 sps:$4 sm:$0xff]  }
 0x6bf   : > { %v5206_v46 = vld [vmem:[%s4268_s30 + $0x48] ss:$16 sps:$4 sm:$0xff]   ;;  %v5210_v49 = vld [vmem:[%s4268_s30 + $0x64] ss:$16 sps:$4 sm:$0xff]  }
 0x6c0   : > { %3820 = vpow2.f32 %v2592_v48  ;;  %v5202_v48 = vld [vmem:[%s4268_s30 + $0x40] ss:$16 sps:$4 sm:$0xff]  }
 0x6c1   : > { %3822 = vpow2.f32 %v2603_v21  ;;  %v5222_v21 = vld [vmem:[%s4268_s30 + $0x68] ss:$16 sps:$4 sm:$0xff]  }
 0x6c6   : > { %v3817_v47 = vpop.eup %3816 }
 0x6c7   : > { %v2467_v22 = vmul.f32 %v3817_v47, %v3815_v32  ;;  %v5214_v32 = vld [vmem:[%s4268_s30 + $0x6c] ss:$16 sps:$4 sm:$0xff]   ;;  %v5218_v47 = vld [vmem:[%s4268_s30 + $0x60] ss:$16 sps:$4 sm:$0xff]  }
 0x6c8   : > { %v3819_v23 = vpop.eup %3818 }
 0x6c9   : > { %v2470_v30 = vpack.c.bf16 %v2467_v22, %v2467_v22  ;;  %2469 = vst [vmem:[#allocation2] sm:$0x3] %v2467_v22  ;;  %v2585_v42 = vadd.f32 1.0, %v3819_v23  ;;  %v5226_v22 = vld [vmem:[%s4268_s30 + $0x84] ss:$16 sps:$4 sm:$0xff]  }
 0x6ca   : > { %v3821_v14 = vpop.eup %3820  ;;  %v5230_v23 = vld [vmem:[%s4268_s30 + $0x8c] ss:$16 sps:$4 sm:$0xff]  }
 0x6cb   : > { %3488 = vst [vmem:[%s4495_s12 + $0x5] sm:$0x1] %v2470_v30  ;;  %3824 = vrcp.f32 %v2585_v42  ;;  %v2594_v39 = vadd.f32 1.0, %v3821_v14  ;;  %v3823_v62 = vpop.eup %3822  ;;  %v5238_v30 = vld [vmem:[%s4268_s30 + $0x88] ss:$16 sps:$4 sm:$0xff]  }
 0x6cc   : > { %3826 = vtanh.f32 %v2597_v7  ;;  %v2605_v28 = vadd.f32 1.0, %v3823_v62  ;;  %v5234_v7 = vld [vmem:[%s4268_s30 + $0x80] ss:$16 sps:$4 sm:$0xff]   ;;  %v5242_v14 = vld [vmem:[%s4268_s30 + $0xa4] ss:$16 sps:$4 sm:$0xff]  }
 0x6cd   : > { %3828 = vrcp.f32 %v2594_v39  ;;  %v5246_v39 = vld [vmem:[%s4268_s30 + $0xac] ss:$16 sps:$4 sm:$0xff]   ;;  %v5250_v62 = vld [vmem:[%s4268_s30 + $0xa0] ss:$16 sps:$4 sm:$0xff]  }
 0x6ce   : > { %3830 = vrcp.f32 %v2605_v28  ;;  %v5262_v28 = vld [vmem:[%s4268_s30 + $0xcc] ss:$16 sps:$4 sm:$0xff]  }
 0x6d0   : > { %v2621_v33 = vld [vmem:[#allocation2] sm:$0x3] }
 0x6d1   : > { %v2622_v61 = vpack.c.bf16 %v2621_v33, %v2621_v33 }
 0x6d3   : > { %2656 = vmatmul.mubr.bf16.vlgmr.msra.gmra.mrb[48].mxu0 %v2622_v61  ;;  %2697 = vmatmul.mubr.bf16.vlgmr.msra.gmra.mrb[48].mxu1 %v2622_v61 }
 0x6d4   : > { %2770 = vmatpush1.bf16.msra.mxu0 %v5168_v63  ;;  %2811 = vmatpush1.bf16.msra.mxu1 %v5172_v16 }
 0x6d5   : > { %v3825_v0 = vpop.eup %3824  ;;  %2771 = vmatprep.subr.bf16.mxu0 %v5176_v13  ;;  %2812 = vmatprep.subr.bf16.mxu1 %v5180_v1 }
 0x6d6   : > { %v3827_v10 = vpop.eup %3826  ;;  %2801 = vmatprep.mubr.bf16.mxu0 %v5477_v50  ;;  %2842 = vmatprep.mubr.bf16.mxu1 %v5477_v50 }
 0x6d7   : > { %v3829_v29 = vpop.eup %3828  ;;  %v2610_v3 = vmul.f32 %v3827_v10, %v3825_v0  ;;  %v5254_v0 = vld [vmem:[%s4268_s30 + $0xa8] ss:$16 sps:$4 sm:$0xff]  }
 0x6d8   : > { %v2609_v27 = vmul.f32 %v3829_v29, %v2608_v2  ;;  %2772 = vmatpush1.bf16.msra.mxu0 %v5186_v4  ;;  %2813 = vmatpush1.bf16.msra.mxu1 %v5190_v5  ;;  %v3831_v42 = vpop.eup %3830  ;;  %v5258_v29 = vld [vmem:[%s4268_s30 + $0xc4] ss:$16 sps:$4 sm:$0xff]   ;;  %v5267_v2 = vld [vmem:[%s4268_s30 + $0xc0] ss:$16 sps:$4 sm:$0xff]  }
 0x6d9   : > { %2773 = vmatprep.subr.bf16.mxu0 %v5194_v6  ;;  %2814 = vmatprep.subr.bf16.mxu1 %v5198_v31 }
 0x6da   : > { %v2611_v40 = vadd.f32 %v2610_v3, %v2609_v27  ;;  %v5271_v27 = vld [vmem:[%s4268_s30 + $0xc8] ss:$16 sps:$4 sm:$0xff]   ;;  %v5275_v3 = vld [vmem:[%s4268_s30 + $0xe4] ss:$16 sps:$4 sm:$0xff]  }
 0x6dc   : > { %3832 = vtanh.f32 %v2611_v40  ;;  %2614 = vst [vmem:[#allocation5] sm:$0x3] %v2611_v40  ;;  %2774 = vmatpush1.bf16.msra.mxu0 %v5202_v48  ;;  %2815 = vmatpush1.bf16.msra.mxu1 %v5206_v46  ;;  %v5279_v40 = vld [vmem:[%s4268_s30 + $0xec] ss:$16 sps:$4 sm:$0xff]  }
 0x6dd   : > { %2775 = vmatprep.subr.bf16.mxu0 %v5210_v49  ;;  %2816 = vmatprep.subr.bf16.mxu1 %v5214_v32 }
 0x6e0   : > { %2776 = vmatpush1.bf16.msra.mxu0 %v5218_v47  ;;  %2817 = vmatpush1.bf16.msra.mxu1 %v5222_v21 }
 0x6e1   : > { %2777 = vmatprep.subr.bf16.mxu0 %v5226_v22  ;;  %2818 = vmatprep.subr.bf16.mxu1 %v5230_v23 }
 0x6e4   : > { %2778 = vmatpush1.bf16.msra.mxu0 %v5234_v7  ;;  %2819 = vmatpush1.bf16.msra.mxu1 %v5238_v30 }
 0x6e5   : > { %2779 = vmatprep.subr.bf16.mxu0 %v5242_v14  ;;  %2820 = vmatprep.subr.bf16.mxu1 %v5246_v39 }
 0x6e6   : > { %v3833_v33 = vpop.eup %3832 }
 0x6e7   : > { %v2613_v61 = vmul.f32 %v3833_v33, %v3831_v42  ;;  %v5283_v42 = vld [vmem:[%s4268_s30 + $0xe0] ss:$16 sps:$4 sm:$0xff]   ;;  %v5287_v33 = vld [vmem:[%s4268_s30 + $0xe8] ss:$16 sps:$4 sm:$0xff]  }
 0x6e8   : > { %2780 = vmatpush1.bf16.msra.mxu0 %v5250_v62  ;;  %2821 = vmatpush1.bf16.msra.mxu1 %v5254_v0 }
 0x6e9   : > { %v2616_v10 = vpack.c.bf16 %v2613_v61, %v2613_v61  ;;  %2615 = vst [vmem:[#allocation4] sm:$0x3] %v2613_v61  ;;  %2781 = vmatprep.subr.bf16.mxu0 %v5258_v29  ;;  %2822 = vmatprep.subr.bf16.mxu1 %v5262_v28 }
 0x6eb   : > { %3490 = vst [vmem:[%s4525_s15 + $0x2] sm:$0x1] %v2616_v10 }
 0x6ec   : > { %2782 = vmatpush1.bf16.msra.mxu0 %v5267_v2  ;;  %2823 = vmatpush1.bf16.msra.mxu1 %v5271_v27 }
 0x6ed   : > { %2783 = vmatprep.subr.bf16.mxu0 %v5275_v3  ;;  %2824 = vmatprep.subr.bf16.mxu1 %v5279_v40 }
 0x6f0   : > { %2784 = vmatpush1.bf16.msra.mxu0 %v5283_v42  ;;  %2825 = vmatpush1.bf16.msra.mxu1 %v5287_v33  ;;  %v2767_v61 = vld [vmem:[#allocation4] sm:$0x3] }
 0x6f1   : > { %v2768_v10 = vpack.c.bf16 %v2767_v61, %v2767_v61  ;;  %2915 = vmatprep.subr.bf16.mxu0 %v5035_v24  ;;  %2956 = vmatprep.subr.bf16.mxu1 %v5039_v26  ;;  %v4022_v24 = vld [vmem:[%s4169_s26 + $0xe0] ss:$16 sps:$4 sm:$0xff]   ;;  %v4023_v26 = vld [vmem:[%s4169_s26 + $0xe8] ss:$16 sps:$4 sm:$0xff]  }
 0x6f3   : > { %2802 = vmatmul.mubr.bf16.vlgmr.msra.gmra.mrb[52].mxu0 %v2768_v10  ;;  %2843 = vmatmul.mubr.bf16.vlgmr.msra.gmra.mrb[52].mxu1 %v2768_v10 }
 0x6f4   : > { %2916 = vmatpush1.bf16.msra.mxu0 %v5043_v54  ;;  %2957 = vmatpush1.bf16.msra.mxu1 %v5047_v55  ;;  %v4024_v54 = vld [vmem:[%s4268_s30 + $0x4] ss:$16 sps:$4 sm:$0xff]   ;;  %v4025_v55 = vld [vmem:[%s4268_s30 + $0xc] ss:$16 sps:$4 sm:$0xff]  }
 0x6f5   : > { %2917 = vmatprep.subr.bf16.mxu0 %v5051_v56  ;;  %2958 = vmatprep.subr.bf16.mxu1 %v5055_v57 }
 0x6f6   : > { %2947 = vmatprep.mubr.bf16.mxu0 %v5477_v50  ;;  %2988 = vmatprep.mubr.bf16.mxu1 %v5477_v50 }
 0x6f8   : > { %2918 = vmatpush1.bf16.msra.mxu0 %v5061_v58  ;;  %2959 = vmatpush1.bf16.msra.mxu1 %v5065_v59 }
 0x6f9   : > { %2919 = vmatprep.subr.bf16.mxu0 %v5069_v60  ;;  %2960 = vmatprep.subr.bf16.mxu1 %v5073_v41 }
 0x6fc   : > { %2920 = vmatpush1.bf16.msra.mxu0 %v5077_v43  ;;  %2961 = vmatpush1.bf16.msra.mxu1 %v5081_v34 }
 0x6fd   : > { %2921 = vmatprep.subr.bf16.mxu0 %v5085_v44  ;;  %2962 = vmatprep.subr.bf16.mxu1 %v5089_v45 }
 0x700   : > { %2922 = vmatpush1.bf16.msra.mxu0 %v5093_v37  ;;  %2963 = vmatpush1.bf16.msra.mxu1 %v5097_v18 }
 0x701   : > { %2923 = vmatprep.subr.bf16.mxu0 %v5101_v52  ;;  %2964 = vmatprep.subr.bf16.mxu1 %v5105_v19  ;;  %v3491_v52 = vld [vmem:[%s4480_s18 + $0x30] sm:$0xff] }
 0x704   : > { %2924 = vmatpush1.bf16.msra.mxu0 %v5109_v11  ;;  %2965 = vmatpush1.bf16.msra.mxu1 %v5113_v20 }
 0x705   : > { %2925 = vmatprep.subr.bf16.mxu0 %v5117_v25  ;;  %2966 = vmatprep.subr.bf16.mxu1 %v5121_v35 }
 0x708   : > { %2926 = vmatpush1.bf16.msra.mxu0 %v5125_v36  ;;  %2967 = vmatpush1.bf16.msra.mxu1 %v5129_v53 }
 0x709   : > { %2927 = vmatprep.subr.bf16.mxu0 %v5133_v12  ;;  %2968 = vmatprep.subr.bf16.mxu1 %v5137_v51 }
 0x70c   : > { %2928 = vmatpush1.bf16.msra.mxu0 %v5141_v15  ;;  %2969 = vmatpush1.bf16.msra.mxu1 %v5145_v17 }
 0x70d   : > { %2929 = vmatprep.subr.bf16.mxu0 %v5149_v9  ;;  %2970 = vmatprep.subr.bf16.mxu1 %v5153_v8 }
 0x710   : > { %2930 = vmatpush1.bf16.msra.mxu0 %v4022_v24  ;;  %2971 = vmatpush1.bf16.msra.mxu1 %v4023_v26 }
 0x711   : > { %3060 = vmatprep.subr.bf16.mxu0 %v4024_v54  ;;  %3101 = vmatprep.subr.bf16.mxu1 %v4025_v55 }
 0x7a6   : > { %v2657_v56 = vpop.f32.mrb[48].mxu0  ;;  %v2698_v57 = vpop.f32.mrb[48].mxu1 }
 0x7a7   : > { %v2659_v58 = vpop.f32.mrb[49].mxu0  ;;  %v2700_v59 = vpop.f32.mrb[49].mxu1 }
 0x7a8   : > { %v2709_v60 = vcombine.low %v2657_v56, %v2659_v58  ;;  %v2710_v41 = vcombine.low %v2698_v57, %v2700_v59  ;;  %v2661_v43 = vpop.f32.mrb[50].mxu0  ;;  %v2702_v34 = vpop.f32.mrb[50].mxu1 }
 0x7a9   : > { %v2662_v44 = vpop.f32.mrb[51].mxu0  ;;  %v2703_v45 = vpop.f32.mrb[51].mxu1 }
 0x7aa   : > { %v2717_v37 = vrot.slane %v2709_v60, %v5500_v38  ;;  %v2724_v18 = vrot.slane %v2710_v41, %v5500_v38 }
 0x7ac   : > { %v2725_v19 = vcombine.low %v2717_v37, %v2724_v18  ;;  %v3493_v37 = vld [vmem:[%s4486_s8 + $0x8] sm:$0xff] }
 0x7ae   : > { %v2727_v11 = vadd.f32 %v3491_v52, %v2725_v19 }
 0x7b0   : > { %v2728_v20 = vsub.f32 0.0, %v2727_v11  ;;  %v2735_v25 = vrot.slane %v2727_v11, 2  ;;  %v2746_v12 = vrot.slane %v2727_v11, 6  ;;  %v2743_v9 = vrot.slane %v2727_v11, 4 }
 0x7b2   : > { %v2729_v35 = vmul.f32 1.442695, %v2728_v20  ;;  %v2737_v36 = vsub.f32 0.0, %v2735_v25  ;;  %v2748_v51 = vsub.f32 0.0, %v2746_v12  ;;  %v2754_v20 = vld [vmem:[#allocation3] sm:$0x3] }
 0x7b4   : > { %3834 = vpow2.f32 %v2729_v35  ;;  %v2738_v53 = vmul.f32 1.442695, %v2737_v36  ;;  %v2749_v15 = vmul.f32 1.442695, %v2748_v51 }
 0x7b6   : > { %3836 = vpow2.f32 %v2738_v53 }
 0x7b7   : > { %3838 = vpow2.f32 %v2749_v15 }
 0x7be   : > { %v3835_v17 = vpop.eup %3834 }
 0x7bf   : > { %v2731_v8 = vadd.f32 1.0, %v3835_v17 }
 0x7c0   : > { %v3837_v61 = vpop.eup %3836 }
 0x7c1   : > { %3840 = vrcp.f32 %v2731_v8  ;;  %v2740_v10 = vadd.f32 1.0, %v3837_v61  ;;  %v3839_v43 = vpop.eup %3838 }
 0x7c2   : > { %3842 = vtanh.f32 %v2743_v9  ;;  %v2751_v11 = vadd.f32 1.0, %v3839_v43 }
 0x7c3   : > { %3844 = vrcp.f32 %v2740_v10 }
 0x7c4   : > { %3846 = vrcp.f32 %v2751_v11 }
 0x7c6   : > { %v2803_v24 = vpop.f32.mrb[52].mxu0  ;;  %v2844_v26 = vpop.f32.mrb[52].mxu1 }
 0x7c7   : > { %v2805_v54 = vpop.f32.mrb[53].mxu0  ;;  %v2846_v55 = vpop.f32.mrb[53].mxu1 }
 0x7c8   : > { %v2855_v56 = vcombine.low %v2803_v24, %v2805_v54  ;;  %v2856_v57 = vcombine.low %v2844_v26, %v2846_v55  ;;  %v2807_v58 = vpop.f32.mrb[54].mxu0  ;;  %v2848_v59 = vpop.f32.mrb[54].mxu1 }
 0x7c9   : > { %v2808_v60 = vpop.f32.mrb[55].mxu0  ;;  %v2849_v41 = vpop.f32.mrb[55].mxu1 }
 0x7ca   : > { %v2863_v34 = vrot.slane %v2855_v56, %v5500_v38  ;;  %v2870_v44 = vrot.slane %v2856_v57, %v5500_v38 }
 0x7cb   : > { %v3841_v45 = vpop.eup %3840 }
 0x7cc   : > { %v3843_v18 = vpop.eup %3842  ;;  %v2871_v52 = vcombine.low %v2863_v34, %v2870_v44 }
 0x7cd   : > { %v3845_v19 = vpop.eup %3844  ;;  %v2756_v35 = vmul.f32 %v3843_v18, %v3841_v45 }
 0x7ce   : > { %v2755_v25 = vmul.f32 %v3845_v19, %v2754_v20  ;;  %v2873_v36 = vadd.f32 %v3493_v37, %v2871_v52  ;;  %v3847_v10 = vpop.eup %3846  ;;  %v2900_v52 = vld [vmem:[#allocation5] sm:$0x3] }
 0x7d0   : > { %v2757_v53 = vadd.f32 %v2756_v35, %v2755_v25  ;;  %v2874_v12 = vsub.f32 0.0, %v2873_v36  ;;  %v2881_v51 = vrot.slane %v2873_v36, 2  ;;  %v2892_v8 = vrot.slane %v2873_v36, 6 }
 0x7d1   : > { %v2889_v56 = vrot.slane %v2873_v36, 4 }
 0x7d2   : > { %3848 = vtanh.f32 %v2757_v53  ;;  %2760 = vst [vmem:[#allocation3] sm:$0x3] %v2757_v53  ;;  %v2875_v15 = vmul.f32 1.442695, %v2874_v12  ;;  %v2883_v17 = vsub.f32 0.0, %v2881_v51  ;;  %v2894_v61 = vsub.f32 0.0, %v2892_v8 }
 0x7d4   : > { %3850 = vpow2.f32 %v2875_v15  ;;  %v2884_v9 = vmul.f32 1.442695, %v2883_v17  ;;  %v2895_v26 = vmul.f32 1.442695, %v2894_v61 }
 0x7d6   : > { %3852 = vpow2.f32 %v2884_v9 }
 0x7d7   : > { %3854 = vpow2.f32 %v2895_v26 }
 0x7dc   : > { %v3849_v24 = vpop.eup %3848 }
 0x7dd   : > { %v2759_v54 = vmul.f32 %v3849_v24, %v3847_v10 }
 0x7de   : > { %v3851_v55 = vpop.eup %3850 }
 0x7df   : > { %v2762_v57 = vpack.c.bf16 %v2759_v54, %v2759_v54  ;;  %2761 = vst [vmem:[#allocation2] sm:$0x3] %v2759_v54  ;;  %v2877_v58 = vadd.f32 1.0, %v3851_v55 }
 0x7e0   : > { %v3853_v59 = vpop.eup %3852 }
 0x7e1   : > { %3492 = vst [vmem:[%s4495_s12 + $0x6] sm:$0x1] %v2762_v57  ;;  %3856 = vrcp.f32 %v2877_v58  ;;  %v2886_v60 = vadd.f32 1.0, %v3853_v59  ;;  %v3855_v34 = vpop.eup %3854  ;;  %v3057_v57 = vld [vmem:[%s4486_s8] sm:$0xff] }
 0x7e2   : > { %3858 = vtanh.f32 %v2889_v56  ;;  %v2897_v18 = vadd.f32 1.0, %v3855_v34 }
 0x7e3   : > { %3860 = vrcp.f32 %v2886_v60 }
 0x7e4   : > { %3862 = vrcp.f32 %v2897_v18 }
 0x7e6   : > { %v2913_v41 = vld [vmem:[#allocation2] sm:$0x3] }
 0x7e7   : > { %v2914_v43 = vpack.c.bf16 %v2913_v41, %v2913_v41 }
 0x7e9   : > { %2948 = vmatmul.mubr.bf16.vlgmr.msra.gmra.mrb[56].mxu0 %v2914_v43  ;;  %2989 = vmatmul.mubr.bf16.vlgmr.msra.gmra.mrb[56].mxu1 %v2914_v43  ;;  %v3046_v43 = vld [vmem:[#allocation3] sm:$0x3] }
 0x7ea   : > { %3061 = vmatpush1.bf16.msra.mxu0 %v5168_v63  ;;  %3102 = vmatpush1.bf16.msra.mxu1 %v5172_v16 }
 0x7eb   : > { %v3857_v44 = vpop.eup %3856  ;;  %3062 = vmatprep.subr.bf16.mxu0 %v5176_v13  ;;  %3103 = vmatprep.subr.bf16.mxu1 %v5180_v1 }
 0x7ec   : > { %v3859_v45 = vpop.eup %3858  ;;  %3092 = vmatprep.mubr.bf16.mxu0 %v5477_v50  ;;  %3133 = vmatprep.mubr.bf16.mxu1 %v5477_v50 }
 0x7ed   : > { %v3861_v37 = vpop.eup %3860  ;;  %v2902_v11 = vmul.f32 %v3859_v45, %v3857_v44 }
 0x7ee   : > { %v2901_v19 = vmul.f32 %v3861_v37, %v2900_v52  ;;  %3063 = vmatpush1.bf16.msra.mxu0 %v5186_v4  ;;  %3104 = vmatpush1.bf16.msra.mxu1 %v5190_v5  ;;  %v3863_v50 = vpop.eup %3862 }
 0x7ef   : > { %3064 = vmatprep.subr.bf16.mxu0 %v5194_v6  ;;  %3105 = vmatprep.subr.bf16.mxu1 %v5198_v31 }
 0x7f0   : > { %v2903_v63 = vadd.f32 %v2902_v11, %v2901_v19 }
 0x7f2   : > { %3864 = vtanh.f32 %v2903_v63  ;;  %2906 = vst [vmem:[#allocation5] sm:$0x3] %v2903_v63  ;;  %3065 = vmatpush1.bf16.msra.mxu0 %v5202_v48  ;;  %3106 = vmatpush1.bf16.msra.mxu1 %v5206_v46 }
 0x7f3   : > { %3066 = vmatprep.subr.bf16.mxu0 %v5210_v49  ;;  %3107 = vmatprep.subr.bf16.mxu1 %v5214_v32 }
 0x7f6   : > { %3067 = vmatpush1.bf16.msra.mxu0 %v5218_v47  ;;  %3108 = vmatpush1.bf16.msra.mxu1 %v5222_v21 }
 0x7f7   : > { %3068 = vmatprep.subr.bf16.mxu0 %v5226_v22  ;;  %3109 = vmatprep.subr.bf16.mxu1 %v5230_v23 }
 0x7fa   : > { %3069 = vmatpush1.bf16.msra.mxu0 %v5234_v7  ;;  %3110 = vmatpush1.bf16.msra.mxu1 %v5238_v30 }
 0x7fb   : > { %3070 = vmatprep.subr.bf16.mxu0 %v5242_v14  ;;  %3111 = vmatprep.subr.bf16.mxu1 %v5246_v39  ;;  %v3495_v14 = vld [vmem:[%s4480_s18 + $0x38] sm:$0xff] }
 0x7fc   : > { %v3865_v16 = vpop.eup %3864 }
 0x7fd   : > { %v2905_v13 = vmul.f32 %v3865_v16, %v3863_v50 }
 0x7fe   : > { %3071 = vmatpush1.bf16.msra.mxu0 %v5250_v62  ;;  %3112 = vmatpush1.bf16.msra.mxu1 %v5254_v0 }
 0x7ff   : > { %v2908_v1 = vpack.c.bf16 %v2905_v13, %v2905_v13  ;;  %2907 = vst [vmem:[#allocation4] sm:$0x3] %v2905_v13  ;;  %3072 = vmatprep.subr.bf16.mxu0 %v5258_v29  ;;  %3113 = vmatprep.subr.bf16.mxu1 %v5262_v28 }
 0x801   : > { %3494 = vst [vmem:[%s4525_s15 + $0x1] sm:$0x1] %v2908_v1 }
 0x802   : > { %3073 = vmatpush1.bf16.msra.mxu0 %v5267_v2  ;;  %3114 = vmatpush1.bf16.msra.mxu1 %v5271_v27 }
 0x803   : > { %3074 = vmatprep.subr.bf16.mxu0 %v5275_v3  ;;  %3115 = vmatprep.subr.bf16.mxu1 %v5279_v40 }
 0x806   : > { %3075 = vmatpush1.bf16.msra.mxu0 %v5283_v42  ;;  %3116 = vmatpush1.bf16.msra.mxu1 %v5287_v33  ;;  %v3058_v4 = vld [vmem:[#allocation4] sm:$0x3] }
 0x807   : > { %v3059_v5 = vpack.c.bf16 %v3058_v4, %v3058_v4 }
 0x809   : > { %3093 = vmatmul.mubr.bf16.vlgmr.msra.gmra.mrb[60].mxu0 %v3059_v5  ;;  %3134 = vmatmul.mubr.bf16.vlgmr.msra.gmra.mrb[60].mxu1 %v3059_v5 }
 0x8bc   : > { %v2949_v6 = vpop.f32.mrb[56].mxu0  ;;  %v2990_v31 = vpop.f32.mrb[56].mxu1 }
 0x8bd   : > { %v2951_v48 = vpop.f32.mrb[57].mxu0  ;;  %v2992_v46 = vpop.f32.mrb[57].mxu1 }
 0x8be   : > { %v3001_v49 = vcombine.low %v2949_v6, %v2951_v48  ;;  %v3002_v32 = vcombine.low %v2990_v31, %v2992_v46  ;;  %v2953_v47 = vpop.f32.mrb[58].mxu0  ;;  %v2994_v21 = vpop.f32.mrb[58].mxu1 }
 0x8bf   : > { %v2954_v22 = vpop.f32.mrb[59].mxu0  ;;  %v2995_v23 = vpop.f32.mrb[59].mxu1 }
 0x8c0   : > { %v3009_v7 = vrot.slane %v3001_v49, %v5500_v38  ;;  %v3016_v30 = vrot.slane %v3002_v32, %v5500_v38 }
 0x8c2   : > { %v3017_v39 = vcombine.low %v3009_v7, %v3016_v30  ;;  %v3191_v7 = vld [vmem:[#allocation5] sm:$0x3] }
 0x8c4   : > { %v3019_v62 = vadd.f32 %v3495_v14, %v3017_v39 }
 0x8c6   : > { %v3020_v0 = vsub.f32 0.0, %v3019_v62  ;;  %v3027_v29 = vrot.slane %v3019_v62, 2  ;;  %v3038_v3 = vrot.slane %v3019_v62, 6  ;;  %v3035_v20 = vrot.slane %v3019_v62, 4 }
 0x8c8   : > { %v3021_v28 = vmul.f32 1.442695, %v3020_v0  ;;  %v3029_v2 = vsub.f32 0.0, %v3027_v29  ;;  %v3040_v40 = vsub.f32 0.0, %v3038_v3 }
 0x8ca   : > { %3866 = vpow2.f32 %v3021_v28  ;;  %v3030_v27 = vmul.f32 1.442695, %v3029_v2  ;;  %v3041_v42 = vmul.f32 1.442695, %v3040_v40 }
 0x8cc   : > { %3868 = vpow2.f32 %v3030_v27 }
 0x8cd   : > { %3870 = vpow2.f32 %v3041_v42 }
 0x8d4   : > { %v3867_v33 = vpop.eup %3866 }
 0x8d5   : > { %v3023_v25 = vadd.f32 1.0, %v3867_v33 }
 0x8d6   : > { %v3869_v35 = vpop.eup %3868 }
 0x8d7   : > { %3872 = vrcp.f32 %v3023_v25  ;;  %v3032_v36 = vadd.f32 1.0, %v3869_v35  ;;  %v3871_v26 = vpop.eup %3870 }
 0x8d8   : > { %3874 = vtanh.f32 %v3035_v20  ;;  %v3043_v41 = vadd.f32 1.0, %v3871_v26 }
 0x8d9   : > { %3876 = vrcp.f32 %v3032_v36 }
 0x8da   : > { %3878 = vrcp.f32 %v3043_v41 }
 0x8dc   : > { %v3094_v53 = vpop.f32.mrb[60].mxu0  ;;  %v3135_v12 = vpop.f32.mrb[60].mxu1 }
 0x8dd   : > { %v3096_v51 = vpop.f32.mrb[61].mxu0  ;;  %v3137_v15 = vpop.f32.mrb[61].mxu1 }
 0x8de   : > { %v3146_v17 = vcombine.low %v3094_v53, %v3096_v51  ;;  %v3147_v9 = vcombine.low %v3135_v12, %v3137_v15  ;;  %v3098_v8 = vpop.f32.mrb[62].mxu0  ;;  %v3139_v61 = vpop.f32.mrb[62].mxu1 }
 0x8df   : > { %v3099_v10 = vpop.f32.mrb[63].mxu0  ;;  %v3140_v24 = vpop.f32.mrb[63].mxu1 }
 0x8e0   : > { %v3154_v54 = vrot.slane %v3146_v17, %v5500_v38  ;;  %v3161_v55 = vrot.slane %v3147_v9, %v5500_v38 }
 0x8e1   : > { %v3873_v56 = vpop.eup %3872 }
 0x8e2   : > { %v3875_v58 = vpop.eup %3874  ;;  %v3162_v59 = vcombine.low %v3154_v54, %v3161_v55 }
 0x8e3   : > { %v3877_v60 = vpop.eup %3876  ;;  %v3048_v44 = vmul.f32 %v3875_v58, %v3873_v56 }
 0x8e4   : > { %v3047_v34 = vmul.f32 %v3877_v60, %v3046_v43  ;;  %v3164_v45 = vadd.f32 %v3162_v59, %v3057_v57  ;;  %v3879_v16 = vpop.eup %3878 }
 0x8e6   : > { %v3049_v37 = vadd.f32 %v3048_v44, %v3047_v34  ;;  %v3165_v18 = vsub.f32 0.0, %v3164_v45  ;;  %v3172_v52 = vrot.slane %v3164_v45, 2  ;;  %v3183_v63 = vrot.slane %v3164_v45, 6 }
 0x8e7   : > { %v3180_v6 = vrot.slane %v3164_v45, 4 }
 0x8e8   : > { %3880 = vtanh.f32 %v3049_v37  ;;  %3052 = vst [vmem:[#allocation3] sm:$0x3] %v3049_v37  ;;  %v3166_v19 = vmul.f32 1.442695, %v3165_v18  ;;  %v3174_v11 = vsub.f32 0.0, %v3172_v52  ;;  %v3185_v50 = vsub.f32 0.0, %v3183_v63 }
 0x8ea   : > { %3882 = vpow2.f32 %v3166_v19  ;;  %v3175_v38 = vmul.f32 1.442695, %v3174_v11  ;;  %v3186_v1 = vmul.f32 1.442695, %v3185_v50 }
 0x8ec   : > { %3884 = vpow2.f32 %v3175_v38 }
 0x8ed   : > { %3886 = vpow2.f32 %v3186_v1 }
 0x8f2   : > { %v3881_v13 = vpop.eup %3880 }
 0x8f3   : > { %v3051_v4 = vmul.f32 %v3881_v13, %v3879_v16 }
 0x8f4   : > { %v3883_v5 = vpop.eup %3882 }
 0x8f5   : > { %3053 = vst [vmem:[#allocation2] sm:$0x3] %v3051_v4  ;;  %v3054_v31 = vpack.c.bf16 %v3051_v4, %v3051_v4  ;;  %v3168_v48 = vadd.f32 1.0, %v3883_v5 }
 0x8f6   : > { %v3885_v46 = vpop.eup %3884 }
 0x8f7   : > { %3496 = vst [vmem:[%s4495_s12 + $0x7] sm:$0x1] %v3054_v31  ;;  %3888 = vrcp.f32 %v3168_v48  ;;  %v3177_v49 = vadd.f32 1.0, %v3885_v46  ;;  %v3887_v32 = vpop.eup %3886 }
 0x8f8   : > { %3890 = vtanh.f32 %v3180_v6  ;;  %v3188_v23 = vadd.f32 1.0, %v3887_v32 }
 0x8f9   : > { %3892 = vrcp.f32 %v3177_v49 }
 0x8fa   : > { %3894 = vrcp.f32 %v3188_v23 }
 0x901   : > { %v3889_v47 = vpop.eup %3888 }
 0x902   : > { %v3891_v21 = vpop.eup %3890 }
 0x903   : > { %v3893_v22 = vpop.eup %3892  ;;  %v3193_v14 = vmul.f32 %v3891_v21, %v3889_v47 }
 0x904   : > { %v3192_v30 = vmul.f32 %v3893_v22, %v3191_v7  ;;  %v3895_v62 = vpop.eup %3894 }
 0x906   : > { %v3194_v39 = vadd.f32 %v3193_v14, %v3192_v30 }
 0x908   : > { %3896 = vtanh.f32 %v3194_v39  ;;  %3197 = vst [vmem:[#allocation5] sm:$0x3] %v3194_v39 }
 0x912   : > { %v3897_v0 = vpop.eup %3896 }
 0x913   : > { %v3196_v29 = vmul.f32 %v3897_v0, %v3895_v62 }
 0x915   : > { %3198 = vst [vmem:[#allocation4] sm:$0x3] %v3196_v29  ;;  %v3199_v28 = vpack.c.bf16 %v3196_v29, %v3196_v29 }
 0x917   : > { %3200 = vst [vmem:[%s4525_s15] sm:$0x1] %v3199_v28 }
 0x918 PF: > { %s16_s22 = sadd.s32 1, %s4064_s22   ;;  %s5549_s18 = smov %s4052_s19 }
 0x919   : > { %p13_p10 = scmp.ge.s32.totalorder %s16_s22, 4   ;;  %s5550_s19 = smov %s4138_s27 }
 0x91a   : > { %s5551_s20 = smov %s4060_s21  ;;  %s5552_s21 = smov %s5554_s23 }
 0x91b   :  { %15 = sbr.rel (!%p13_p10) target bundleno = 3 (0x3), region = 205 }

</bundles_post_ra>
